<compile_context>
chip_gen: v6e
topology: v6e:2x2x1
jax: 0.10.0
libtpu: 0.0.40
codegen_flags: <defaults>
</compile_context>

<pallas_src>
import functools

import jax
import jax.numpy as jnp
from jax.experimental import pallas as pl
from jax.experimental.pallas import tpu as pltpu


# ---------------------------------------------------------------------------
# Pallas kernels
# ---------------------------------------------------------------------------

def _conv3x3_kernel(*refs, Wd, Cin, Cout, th, pre_relu, post_relu, has_residual):
    """3x3 conv (stride 1, pad 1) for one (batch, row-chunk) grid step.

    bf16 operands feed the MXU; accumulation is f32.  Optionally fuses an
    input ReLU (pre-activation), an output ReLU and a residual add.
    """
    if has_residual:
        xpad_ref, w_ref, b_ref, res_ref, o_ref = refs
    else:
        xpad_ref, w_ref, b_ref, o_ref = refs
        res_ref = None

    r0 = pl.program_id(1) * th                 # first output row of this chunk
    acc = jnp.zeros((th * Wd, Cout), jnp.float32) + b_ref[...]
    for kh in range(3):
        for kw in range(3):
            patch = xpad_ref[0, pl.ds(r0 + kh, th), pl.ds(kw, Wd), :]
            if pre_relu:
                # relu(pad(x)) == pad(relu(x)) since relu(0) == 0
                patch = jnp.maximum(patch, 0)
            patch = patch.reshape(th * Wd, Cin)
            acc += jnp.dot(patch, w_ref[kh, kw],
                           preferred_element_type=jnp.float32)
    if has_residual:
        acc += res_ref[0].reshape(th * Wd, Cout).astype(jnp.float32)
    if post_relu:
        acc = jnp.maximum(acc, 0.0)
    o_ref[0] = acc.reshape(th, Wd, Cout).astype(o_ref.dtype)


def conv3x3(x, w, b, *, pre_relu=False, post_relu=False, residual=None):
    """x: (B,H,W,Cin) NHWC bf16, w: (3,3,Cin,Cout) bf16, b: (Cout,) f32."""
    B, H, W, Cin = x.shape
    Cout = w.shape[-1]
    xpad = jnp.pad(x, ((0, 0), (1, 1), (1, 1), (0, 0)))

    # Rows per grid step: keep the live f32 accumulator <= (128, Cout)
    # (~16 vregs at Cout=128) so it does not spill to VMEM.
    th = H
    while th * W > 128 and th % 2 == 0:
        th //= 2
    n_chunks = H // th

    kernel = functools.partial(
        _conv3x3_kernel, Wd=W, Cin=Cin, Cout=Cout, th=th,
        pre_relu=pre_relu, post_relu=post_relu,
        has_residual=residual is not None)

    in_specs = [
        pl.BlockSpec((1, H + 2, W + 2, Cin), lambda n, c: (n, 0, 0, 0)),
        pl.BlockSpec((3, 3, Cin, Cout), lambda n, c: (0, 0, 0, 0)),
        pl.BlockSpec((1, Cout), lambda n, c: (0, 0)),
    ]
    args = [xpad, w, b.reshape(1, Cout)]
    if residual is not None:
        in_specs.append(pl.BlockSpec((1, th, W, Cout), lambda n, c: (n, c, 0, 0)))
        args.append(residual)

    return pl.pallas_call(
        kernel,
        out_shape=jax.ShapeDtypeStruct((B, H, W, Cout), x.dtype),
        grid=(B, n_chunks),
        in_specs=in_specs,
        out_specs=pl.BlockSpec((1, th, W, Cout), lambda n, c: (n, c, 0, 0)),
        compiler_params=pltpu.CompilerParams(
            dimension_semantics=("parallel", "arbitrary")),
    )(*args)


def _pool_sc_kernel(xp_ref, w_ref, b_ref, hr_ref, o_ref, *, Ho, Wo, Cin, Cout):
    """Fused downsample tail of a residual block (one batch element):

       out = avgpool2x2(h) + conv1x1(avgpool2x2(x))

    The main-path tensor h arrives pre-reshaped to (Ho, 2, Wo, 2*Cout) so the
    2x2 pooling is a pair of cheap static slices (no strided vector access);
    the shortcut input arrives already pooled (tiny tensor, pooled in wrapper).
    """
    xp = xp_ref[0].reshape(Ho * Wo, Cin)                       # bf16
    sc = jnp.dot(xp, w_ref[...], preferred_element_type=jnp.float32) + b_ref[...]

    a = hr_ref[0, :, 0, :, :].astype(jnp.float32)              # (Ho, Wo, 2*Cout)
    c = hr_ref[0, :, 1, :, :].astype(jnp.float32)
    v = a + c
    hp = (v[:, :, :Cout] + v[:, :, Cout:]) * 0.25              # (Ho, Wo, Cout)

    o_ref[0] = (hp + sc.reshape(Ho, Wo, Cout)).astype(o_ref.dtype)


def pool_shortcut_add(h, x, sc_w, sc_b):
    """h: (B,H,W,C) main path (pre-pool), x: (B,H,W,Cin) raw block input."""
    B, H, W, C = h.shape
    Cin = x.shape[-1]
    Ho, Wo = H // 2, W // 2

    # Free, contiguous reshape: h[b, 2i+t, 2j+s, c] -> hr[b, i, t, j, s*C + c]
    hr = h.reshape(B, Ho, 2, Wo, 2 * C)
    # avgpool(conv1x1(x)) == conv1x1(avgpool(x)); pool the (small) raw input
    # in the wrapper, do the 1x1 conv + add on-chip.
    xp = x.astype(jnp.float32).reshape(B, Ho, 2, Wo, 2, Cin)
    xp = xp.mean(axis=(2, 4)).astype(h.dtype)

    kernel = functools.partial(_pool_sc_kernel, Ho=Ho, Wo=Wo, Cin=Cin, Cout=C)
    return pl.pallas_call(
        kernel,
        out_shape=jax.ShapeDtypeStruct((B, Ho, Wo, C), h.dtype),
        grid=(B,),
        in_specs=[
            pl.BlockSpec((1, Ho, Wo, Cin), lambda n: (n, 0, 0, 0)),
            pl.BlockSpec((Cin, C), lambda n: (0, 0)),
            pl.BlockSpec((1, C), lambda n: (0, 0)),
            pl.BlockSpec((1, Ho, 2, Wo, 2 * C), lambda n: (n, 0, 0, 0, 0)),
        ],
        out_specs=pl.BlockSpec((1, Ho, Wo, C), lambda n: (n, 0, 0, 0)),
        compiler_params=pltpu.CompilerParams(
            dimension_semantics=("parallel",)),
    )(xp, sc_w, sc_b.reshape(1, C), hr)


def _head_kernel(x_ref, w_ref, b_ref, o_ref):
    """Fused head: ReLU -> spatial sum -> [fc1 | fc2] into a lane-dense (B,128)
    output (fc1 logit in lane 0, fc2 logits in lanes 1..4, rest zero-weight)."""
    x = jnp.maximum(x_ref[...].astype(jnp.float32), 0.0)        # (B, H, W, C)
    feat = jnp.sum(x, axis=(1, 2))                              # (B, C)
    o_ref[...] = (jnp.dot(feat, w_ref[...],
                          preferred_element_type=jnp.float32) + b_ref[...])


def head(x, head_w, head_b):
    B, H, W, C = x.shape
    NP = head_w.shape[1]
    return pl.pallas_call(
        _head_kernel,
        out_shape=jax.ShapeDtypeStruct((B, NP), jnp.float32),
        grid=(1,),
        in_specs=[
            pl.BlockSpec((B, H, W, C), lambda i: (0, 0, 0, 0)),
            pl.BlockSpec((C, NP), lambda i: (0, 0)),
            pl.BlockSpec((1, NP), lambda i: (0, 0)),
        ],
        out_specs=pl.BlockSpec((B, NP), lambda i: (0, 0)),
    )(x, head_w, head_b.reshape(1, NP))


# ---------------------------------------------------------------------------
# Model glue (residual-block wiring, NCHW<->NHWC, tiny sigmoid/softmax heads)
# ---------------------------------------------------------------------------

def d_block_first(x, p):
    # "Optimized" first block: h = avgpool(conv2(relu(conv1(x))))
    #                          sc = conv1x1(avgpool(x))
    h = conv3x3(x, p["w1"], p["b1"], post_relu=True)
    h = conv3x3(h, p["w2"], p["b2"])
    return pool_shortcut_add(h, x, p["sc_w"], p["sc_b"])


def d_block_down(x, p):
    # h = avgpool(conv2(relu(conv1(relu(x)))));  sc = avgpool(conv1x1(x))
    h = conv3x3(x, p["w1"], p["b1"], pre_relu=True, post_relu=True)
    h = conv3x3(h, p["w2"], p["b2"])
    return pool_shortcut_add(h, x, p["sc_w"], p["sc_b"])


def d_block_plain(x, p):
    # h = conv2(relu(conv1(relu(x))));  out = h + x   (identity shortcut)
    h = conv3x3(x, p["w1"], p["b1"], pre_relu=True, post_relu=True)
    return conv3x3(h, p["w2"], p["b2"], residual=x)


def discriminator_forward(x_nchw, params):
    x = jnp.transpose(x_nchw, (0, 2, 3, 1)).astype(jnp.bfloat16)  # NHWC, bf16
    x = d_block_first(x, params["res1"])      # (B, H/2, W/2, 128)
    x = d_block_down(x, params["res2"])       # (B, H/4, W/4, 128)
    x = d_block_plain(x, params["res3"])
    x = d_block_plain(x, params["res4"])
    logits = head(x, params["head_w"], params["head_b"])          # (B, 128)
    out_logit = logits[:, 0:1]
    pre_logits = logits[:, 1:5]
    out = jax.nn.sigmoid(out_logit)
    pre = jax.nn.softmax(pre_logits, axis=-1)   # nn.Softmax() -> dim=1 on 2-D
    return out, out_logit, pre, pre_logits


# ---------------------------------------------------------------------------
# Deterministic synthetic parameter init
# ---------------------------------------------------------------------------

def _normal(key, shape, scale=0.05, dtype=jnp.bfloat16):
    return (scale * jax.random.normal(key, shape, jnp.float32)).astype(dtype)


def _init_block(key, cin, cout, learnable_sc):
    ks = jax.random.split(key, 6)
    p = {
        "w1": _normal(ks[0], (3, 3, cin, cout)),
        "b1": _normal(ks[1], (cout,), 0.01, jnp.float32),
        "w2": _normal(ks[2], (3, 3, cout, cout)),
        "b2": _normal(ks[3], (cout,), 0.01, jnp.float32),
    }
    if learnable_sc:
        p["sc_w"] = _normal(ks[4], (cin, cout))
        p["sc_b"] = _normal(ks[5], (cout,), 0.01, jnp.float32)
    return p


def init_params(key, in_channels, ch=128, lane_pad=128):
    ks = jax.random.split(key, 8)
    fc1_w = _normal(ks[4], (ch, 1), dtype=jnp.float32)
    fc1_b = _normal(ks[5], (1,), 0.01, jnp.float32)
    fc2_w = _normal(ks[6], (ch, 4), dtype=jnp.float32)
    fc2_b = _normal(ks[7], (4,), 0.01, jnp.float32)
    head_w = jnp.zeros((ch, lane_pad), jnp.float32)
    head_w = head_w.at[:, 0:1].set(fc1_w).at[:, 1:5].set(fc2_w)
    head_b = jnp.zeros((lane_pad,), jnp.float32)
    head_b = head_b.at[0:1].set(fc1_b).at[1:5].set(fc2_b)
    return {
        "res1": _init_block(ks[0], in_channels, ch, True),
        "res2": _init_block(ks[1], ch, ch, True),
        "res3": _init_block(ks[2], ch, ch, False),
        "res4": _init_block(ks[3], ch, ch, False),
        "head_w": head_w,
        "head_b": head_b,
    }


# ---------------------------------------------------------------------------

if __name__ == "__main__":
    in_channels = 3
    batch, height, width = 2, 16, 16

    key = jax.random.PRNGKey(0)
    pkey, xkey = jax.random.split(key)
    params = init_params(pkey, in_channels)
    x = jax.random.normal(xkey, (batch, in_channels, height, width), jnp.float32)

    fwd = jax.jit(discriminator_forward)
    out, out_logit, pre, pre_logits = jax.block_until_ready(fwd(x, params))

    assert out.shape == (batch, 1), out.shape
    assert out_logit.shape == (batch, 1), out_logit.shape
    assert pre.shape == (batch, 4), pre.shape
    assert pre_logits.shape == (batch, 4), pre_logits.shape
    for t in (out, out_logit, pre, pre_logits):
        assert bool(jnp.all(jnp.isfinite(t)))
    assert bool(jnp.all((out >= 0.0) & (out <= 1.0)))           # sigmoid range
    assert bool(jnp.allclose(jnp.sum(pre, axis=-1), 1.0, atol=1e-3))  # softmax
    print("KERNEL_OK")
</pallas_src>

<mosaic_0001>
module attributes {stable_mosaic.version = 11 : i64} {
  func.func @_conv3x3_kernel(%arg0: i32, %arg1: i32, %arg2: memref<1x18x18x3xbf16, #tpu.memory_space<vmem>>, %arg3: memref<3x3x3x128xbf16, #tpu.memory_space<vmem>>, %arg4: memref<1x128xf32, #tpu.memory_space<vmem>>, %arg5: memref<1x8x16x128xbf16, #tpu.memory_space<vmem>>) attributes {dimension_semantics = [#tpu.dimension_semantics<parallel>, #tpu.dimension_semantics<arbitrary>], iteration_bounds = array<i64: 2, 2>, scalar_prefetch = 0 : i64, scratch_operands = 0 : i64, tpu.core_type = #tpu.core_type<tc>, window_params = [{transform_indices = @transform_0, window_bounds = array<i64: 1, 18, 18, 3>}, {pipeline_mode = #tpu.pipeline_mode<synchronous>, transform_indices = @transform_1, window_bounds = array<i64: 3, 3, 3, 128>}, {pipeline_mode = #tpu.pipeline_mode<synchronous>, transform_indices = @transform_2, window_bounds = array<i64: 1, 128>}, {transform_indices = @transform_3, window_bounds = array<i64: 1, 8, 16, 128>}]} {
    %c8_i32 = arith.constant 8 : i32
    %0 = arith.muli %arg1, %c8_i32 : i32
    %cst = arith.constant 0.000000e+00 : f32
    %1 = vector.broadcast %cst : f32 to vector<128x128xf32>
    %c0 = arith.constant 0 : index
    %c0_0 = arith.constant 0 : index
    %2 = vector.load %arg4[%c0, %c0_0] : memref<1x128xf32, #tpu.memory_space<vmem>>, vector<1x128xf32>
    %3 = vector.broadcast %2 : vector<1x128xf32> to vector<128x128xf32>
    %4 = arith.addf %1, %3 : vector<128x128xf32>
    %c0_i32 = arith.constant 0 : i32
    %5 = arith.addi %0, %c0_i32 : i32
    %c0_1 = arith.constant 0 : index
    %6 = arith.index_cast %5 : i32 to index
    %c0_2 = arith.constant 0 : index
    %c0_3 = arith.constant 0 : index
    %7 = vector.load %arg2[%c0_1, %6, %c0_2, %c0_3] : memref<1x18x18x3xbf16, #tpu.memory_space<vmem>>, vector<1x8x16x3xbf16>
    %8 = vector.shape_cast %7 : vector<1x8x16x3xbf16> to vector<8x16x3xbf16>
    %9 = vector.shape_cast %8 : vector<8x16x3xbf16> to vector<128x3xbf16>
    %c0_4 = arith.constant 0 : index
    %c0_5 = arith.constant 0 : index
    %c0_6 = arith.constant 0 : index
    %c0_7 = arith.constant 0 : index
    %10 = vector.load %arg3[%c0_4, %c0_5, %c0_6, %c0_7] : memref<3x3x3x128xbf16, #tpu.memory_space<vmem>>, vector<1x1x3x128xbf16>
    %11 = vector.shape_cast %10 : vector<1x1x3x128xbf16> to vector<3x128xbf16>
    %cst_8 = arith.constant dense<0.000000e+00> : vector<128x128xf32>
    %12 = tpu.matmul %9, %11, %cst_8 {dimension_numbers = #tpu.dot_dimension_numbers<[1], [0], [0], [1], [0, 0, 1, 1], [], []>} : vector<128x3xbf16>, vector<3x128xbf16>, vector<128x128xf32> -> vector<128x128xf32>
    %13 = arith.addf %4, %12 : vector<128x128xf32>
    %c0_i32_9 = arith.constant 0 : i32
    %14 = arith.addi %0, %c0_i32_9 : i32
    %c0_10 = arith.constant 0 : index
    %15 = arith.index_cast %14 : i32 to index
    %c1 = arith.constant 1 : index
    %c0_11 = arith.constant 0 : index
    %16 = vector.load %arg2[%c0_10, %15, %c1, %c0_11] : memref<1x18x18x3xbf16, #tpu.memory_space<vmem>>, vector<1x8x16x3xbf16>
    %17 = vector.shape_cast %16 : vector<1x8x16x3xbf16> to vector<8x16x3xbf16>
    %18 = vector.shape_cast %17 : vector<8x16x3xbf16> to vector<128x3xbf16>
    %c0_12 = arith.constant 0 : index
    %c1_13 = arith.constant 1 : index
    %c0_14 = arith.constant 0 : index
    %c0_15 = arith.constant 0 : index
    %19 = vector.load %arg3[%c0_12, %c1_13, %c0_14, %c0_15] : memref<3x3x3x128xbf16, #tpu.memory_space<vmem>>, vector<1x1x3x128xbf16>
    %20 = vector.shape_cast %19 : vector<1x1x3x128xbf16> to vector<3x128xbf16>
    %cst_16 = arith.constant dense<0.000000e+00> : vector<128x128xf32>
    %21 = tpu.matmul %18, %20, %cst_16 {dimension_numbers = #tpu.dot_dimension_numbers<[1], [0], [0], [1], [0, 0, 1, 1], [], []>} : vector<128x3xbf16>, vector<3x128xbf16>, vector<128x128xf32> -> vector<128x128xf32>
    %22 = arith.addf %13, %21 : vector<128x128xf32>
    %c0_i32_17 = arith.constant 0 : i32
    %23 = arith.addi %0, %c0_i32_17 : i32
    %c0_18 = arith.constant 0 : index
    %24 = arith.index_cast %23 : i32 to index
    %c2 = arith.constant 2 : index
    %c0_19 = arith.constant 0 : index
    %25 = vector.load %arg2[%c0_18, %24, %c2, %c0_19] : memref<1x18x18x3xbf16, #tpu.memory_space<vmem>>, vector<1x8x16x3xbf16>
    %26 = vector.shape_cast %25 : vector<1x8x16x3xbf16> to vector<8x16x3xbf16>
    %27 = vector.shape_cast %26 : vector<8x16x3xbf16> to vector<128x3xbf16>
    %c0_20 = arith.constant 0 : index
    %c2_21 = arith.constant 2 : index
    %c0_22 = arith.constant 0 : index
    %c0_23 = arith.constant 0 : index
    %28 = vector.load %arg3[%c0_20, %c2_21, %c0_22, %c0_23] : memref<3x3x3x128xbf16, #tpu.memory_space<vmem>>, vector<1x1x3x128xbf16>
    %29 = vector.shape_cast %28 : vector<1x1x3x128xbf16> to vector<3x128xbf16>
    %cst_24 = arith.constant dense<0.000000e+00> : vector<128x128xf32>
    %30 = tpu.matmul %27, %29, %cst_24 {dimension_numbers = #tpu.dot_dimension_numbers<[1], [0], [0], [1], [0, 0, 1, 1], [], []>} : vector<128x3xbf16>, vector<3x128xbf16>, vector<128x128xf32> -> vector<128x128xf32>
    %31 = arith.addf %22, %30 : vector<128x128xf32>
    %c1_i32 = arith.constant 1 : i32
    %32 = arith.addi %0, %c1_i32 : i32
    %c0_25 = arith.constant 0 : index
    %33 = arith.index_cast %32 : i32 to index
    %c0_26 = arith.constant 0 : index
    %c0_27 = arith.constant 0 : index
    %34 = vector.load %arg2[%c0_25, %33, %c0_26, %c0_27] : memref<1x18x18x3xbf16, #tpu.memory_space<vmem>>, vector<1x8x16x3xbf16>
    %35 = vector.shape_cast %34 : vector<1x8x16x3xbf16> to vector<8x16x3xbf16>
    %36 = vector.shape_cast %35 : vector<8x16x3xbf16> to vector<128x3xbf16>
    %c1_28 = arith.constant 1 : index
    %c0_29 = arith.constant 0 : index
    %c0_30 = arith.constant 0 : index
    %c0_31 = arith.constant 0 : index
    %37 = vector.load %arg3[%c1_28, %c0_29, %c0_30, %c0_31] : memref<3x3x3x128xbf16, #tpu.memory_space<vmem>>, vector<1x1x3x128xbf16>
    %38 = vector.shape_cast %37 : vector<1x1x3x128xbf16> to vector<3x128xbf16>
    %cst_32 = arith.constant dense<0.000000e+00> : vector<128x128xf32>
    %39 = tpu.matmul %36, %38, %cst_32 {dimension_numbers = #tpu.dot_dimension_numbers<[1], [0], [0], [1], [0, 0, 1, 1], [], []>} : vector<128x3xbf16>, vector<3x128xbf16>, vector<128x128xf32> -> vector<128x128xf32>
    %40 = arith.addf %31, %39 : vector<128x128xf32>
    %c1_i32_33 = arith.constant 1 : i32
    %41 = arith.addi %0, %c1_i32_33 : i32
    %c0_34 = arith.constant 0 : index
    %42 = arith.index_cast %41 : i32 to index
    %c1_35 = arith.constant 1 : index
    %c0_36 = arith.constant 0 : index
    %43 = vector.load %arg2[%c0_34, %42, %c1_35, %c0_36] : memref<1x18x18x3xbf16, #tpu.memory_space<vmem>>, vector<1x8x16x3xbf16>
    %44 = vector.shape_cast %43 : vector<1x8x16x3xbf16> to vector<8x16x3xbf16>
    %45 = vector.shape_cast %44 : vector<8x16x3xbf16> to vector<128x3xbf16>
    %c1_37 = arith.constant 1 : index
    %c1_38 = arith.constant 1 : index
    %c0_39 = arith.constant 0 : index
    %c0_40 = arith.constant 0 : index
    %46 = vector.load %arg3[%c1_37, %c1_38, %c0_39, %c0_40] : memref<3x3x3x128xbf16, #tpu.memory_space<vmem>>, vector<1x1x3x128xbf16>
    %47 = vector.shape_cast %46 : vector<1x1x3x128xbf16> to vector<3x128xbf16>
    %cst_41 = arith.constant dense<0.000000e+00> : vector<128x128xf32>
    %48 = tpu.matmul %45, %47, %cst_41 {dimension_numbers = #tpu.dot_dimension_numbers<[1], [0], [0], [1], [0, 0, 1, 1], [], []>} : vector<128x3xbf16>, vector<3x128xbf16>, vector<128x128xf32> -> vector<128x128xf32>
    %49 = arith.addf %40, %48 : vector<128x128xf32>
    %c1_i32_42 = arith.constant 1 : i32
    %50 = arith.addi %0, %c1_i32_42 : i32
    %c0_43 = arith.constant 0 : index
    %51 = arith.index_cast %50 : i32 to index
    %c2_44 = arith.constant 2 : index
    %c0_45 = arith.constant 0 : index
    %52 = vector.load %arg2[%c0_43, %51, %c2_44, %c0_45] : memref<1x18x18x3xbf16, #tpu.memory_space<vmem>>, vector<1x8x16x3xbf16>
    %53 = vector.shape_cast %52 : vector<1x8x16x3xbf16> to vector<8x16x3xbf16>
    %54 = vector.shape_cast %53 : vector<8x16x3xbf16> to vector<128x3xbf16>
    %c1_46 = arith.constant 1 : index
    %c2_47 = arith.constant 2 : index
    %c0_48 = arith.constant 0 : index
    %c0_49 = arith.constant 0 : index
    %55 = vector.load %arg3[%c1_46, %c2_47, %c0_48, %c0_49] : memref<3x3x3x128xbf16, #tpu.memory_space<vmem>>, vector<1x1x3x128xbf16>
    %56 = vector.shape_cast %55 : vector<1x1x3x128xbf16> to vector<3x128xbf16>
    %cst_50 = arith.constant dense<0.000000e+00> : vector<128x128xf32>
    %57 = tpu.matmul %54, %56, %cst_50 {dimension_numbers = #tpu.dot_dimension_numbers<[1], [0], [0], [1], [0, 0, 1, 1], [], []>} : vector<128x3xbf16>, vector<3x128xbf16>, vector<128x128xf32> -> vector<128x128xf32>
    %58 = arith.addf %49, %57 : vector<128x128xf32>
    %c2_i32 = arith.constant 2 : i32
    %59 = arith.addi %0, %c2_i32 : i32
    %c0_51 = arith.constant 0 : index
    %60 = arith.index_cast %59 : i32 to index
    %c0_52 = arith.constant 0 : index
    %c0_53 = arith.constant 0 : index
    %61 = vector.load %arg2[%c0_51, %60, %c0_52, %c0_53] : memref<1x18x18x3xbf16, #tpu.memory_space<vmem>>, vector<1x8x16x3xbf16>
    %62 = vector.shape_cast %61 : vector<1x8x16x3xbf16> to vector<8x16x3xbf16>
    %63 = vector.shape_cast %62 : vector<8x16x3xbf16> to vector<128x3xbf16>
    %c2_54 = arith.constant 2 : index
    %c0_55 = arith.constant 0 : index
    %c0_56 = arith.constant 0 : index
    %c0_57 = arith.constant 0 : index
    %64 = vector.load %arg3[%c2_54, %c0_55, %c0_56, %c0_57] : memref<3x3x3x128xbf16, #tpu.memory_space<vmem>>, vector<1x1x3x128xbf16>
    %65 = vector.shape_cast %64 : vector<1x1x3x128xbf16> to vector<3x128xbf16>
    %cst_58 = arith.constant dense<0.000000e+00> : vector<128x128xf32>
    %66 = tpu.matmul %63, %65, %cst_58 {dimension_numbers = #tpu.dot_dimension_numbers<[1], [0], [0], [1], [0, 0, 1, 1], [], []>} : vector<128x3xbf16>, vector<3x128xbf16>, vector<128x128xf32> -> vector<128x128xf32>
    %67 = arith.addf %58, %66 : vector<128x128xf32>
    %c2_i32_59 = arith.constant 2 : i32
    %68 = arith.addi %0, %c2_i32_59 : i32
    %c0_60 = arith.constant 0 : index
    %69 = arith.index_cast %68 : i32 to index
    %c1_61 = arith.constant 1 : index
    %c0_62 = arith.constant 0 : index
    %70 = vector.load %arg2[%c0_60, %69, %c1_61, %c0_62] : memref<1x18x18x3xbf16, #tpu.memory_space<vmem>>, vector<1x8x16x3xbf16>
    %71 = vector.shape_cast %70 : vector<1x8x16x3xbf16> to vector<8x16x3xbf16>
    %72 = vector.shape_cast %71 : vector<8x16x3xbf16> to vector<128x3xbf16>
    %c2_63 = arith.constant 2 : index
    %c1_64 = arith.constant 1 : index
    %c0_65 = arith.constant 0 : index
    %c0_66 = arith.constant 0 : index
    %73 = vector.load %arg3[%c2_63, %c1_64, %c0_65, %c0_66] : memref<3x3x3x128xbf16, #tpu.memory_space<vmem>>, vector<1x1x3x128xbf16>
    %74 = vector.shape_cast %73 : vector<1x1x3x128xbf16> to vector<3x128xbf16>
    %cst_67 = arith.constant dense<0.000000e+00> : vector<128x128xf32>
    %75 = tpu.matmul %72, %74, %cst_67 {dimension_numbers = #tpu.dot_dimension_numbers<[1], [0], [0], [1], [0, 0, 1, 1], [], []>} : vector<128x3xbf16>, vector<3x128xbf16>, vector<128x128xf32> -> vector<128x128xf32>
    %76 = arith.addf %67, %75 : vector<128x128xf32>
    %c2_i32_68 = arith.constant 2 : i32
    %77 = arith.addi %0, %c2_i32_68 : i32
    %c0_69 = arith.constant 0 : index
    %78 = arith.index_cast %77 : i32 to index
    %c2_70 = arith.constant 2 : index
    %c0_71 = arith.constant 0 : index
    %79 = vector.load %arg2[%c0_69, %78, %c2_70, %c0_71] : memref<1x18x18x3xbf16, #tpu.memory_space<vmem>>, vector<1x8x16x3xbf16>
    %80 = vector.shape_cast %79 : vector<1x8x16x3xbf16> to vector<8x16x3xbf16>
    %81 = vector.shape_cast %80 : vector<8x16x3xbf16> to vector<128x3xbf16>
    %c2_72 = arith.constant 2 : index
    %c2_73 = arith.constant 2 : index
    %c0_74 = arith.constant 0 : index
    %c0_75 = arith.constant 0 : index
    %82 = vector.load %arg3[%c2_72, %c2_73, %c0_74, %c0_75] : memref<3x3x3x128xbf16, #tpu.memory_space<vmem>>, vector<1x1x3x128xbf16>
    %83 = vector.shape_cast %82 : vector<1x1x3x128xbf16> to vector<3x128xbf16>
    %cst_76 = arith.constant dense<0.000000e+00> : vector<128x128xf32>
    %84 = tpu.matmul %81, %83, %cst_76 {dimension_numbers = #tpu.dot_dimension_numbers<[1], [0], [0], [1], [0, 0, 1, 1], [], []>} : vector<128x3xbf16>, vector<3x128xbf16>, vector<128x128xf32> -> vector<128x128xf32>
    %85 = arith.addf %76, %84 : vector<128x128xf32>
    %cst_77 = arith.constant 0.000000e+00 : f32
    %86 = vector.broadcast %cst_77 : f32 to vector<128x128xf32>
    %87 = arith.maximumf %85, %86 : vector<128x128xf32>
    %88 = vector.shape_cast %87 : vector<128x128xf32> to vector<8x16x128xf32>
    %89 = arith.truncf %88 : vector<8x16x128xf32> to vector<8x16x128xbf16>
    %c0_78 = arith.constant 0 : index
    %c0_79 = arith.constant 0 : index
    %c0_80 = arith.constant 0 : index
    %c0_81 = arith.constant 0 : index
    %90 = vector.load %arg5[%c0_78, %c0_79, %c0_80, %c0_81] : memref<1x8x16x128xbf16, #tpu.memory_space<vmem>>, vector<1x8x16x128xbf16>
    %91 = vector.shape_cast %90 : vector<1x8x16x128xbf16> to vector<8x16x128xbf16>
    %92 = vector.shape_cast %89 : vector<8x16x128xbf16> to vector<1x8x16x128xbf16>
    tpu.vector_store %arg5[%c0_78, %c0_79, %c0_80, %c0_81], %92 {strides = array<i32>} : memref<1x8x16x128xbf16, #tpu.memory_space<vmem>>, vector<1x8x16x128xbf16>,
    return
  }
  func.func @transform_0(%arg0: i32, %arg1: i32) -> (i32, i32, i32, i32) {
    %c0_i32 = arith.constant 0 : i32
    %c0_i32_0 = arith.constant 0 : i32
    %c0_i32_1 = arith.constant 0 : i32
    %c0_i32_2 = arith.constant 0 : i32
    return %arg0, %c0_i32, %c0_i32_0, %c0_i32_1 : i32, i32, i32, i32
  }
  func.func @transform_1(%arg0: i32, %arg1: i32) -> (i32, i32, i32, i32) {
    %c0_i32 = arith.constant 0 : i32
    %c0_i32_0 = arith.constant 0 : i32
    %c0_i32_1 = arith.constant 0 : i32
    %c0_i32_2 = arith.constant 0 : i32
    %c0_i32_3 = arith.constant 0 : i32
    return %c0_i32, %c0_i32_0, %c0_i32_1, %c0_i32_2 : i32, i32, i32, i32
  }
  func.func @transform_2(%arg0: i32, %arg1: i32) -> (i32, i32) {
    %c0_i32 = arith.constant 0 : i32
    %c0_i32_0 = arith.constant 0 : i32
    %c0_i32_1 = arith.constant 0 : i32
    return %c0_i32, %c0_i32_0 : i32, i32
  }
  func.func @transform_3(%arg0: i32, %arg1: i32) -> (i32, i32, i32, i32) {
    %c0_i32 = arith.constant 0 : i32
    %c0_i32_0 = arith.constant 0 : i32
    %c0_i32_1 = arith.constant 0 : i32
    return %arg0, %arg1, %c0_i32, %c0_i32_0 : i32, i32, i32, i32
  }
}

module attributes {stable_mosaic.version = 11 : i64} {
  func.func @_conv3x3_kernel(%arg0: i32, %arg1: i32, %arg2: memref<1x18x18x128xbf16, #tpu.memory_space<vmem>>, %arg3: memref<3x3x128x128xbf16, #tpu.memory_space<vmem>>, %arg4: memref<1x128xf32, #tpu.memory_space<vmem>>, %arg5: memref<1x8x16x128xbf16, #tpu.memory_space<vmem>>) attributes {dimension_semantics = [#tpu.dimension_semantics<parallel>, #tpu.dimension_semantics<arbitrary>], iteration_bounds = array<i64: 2, 2>, scalar_prefetch = 0 : i64, scratch_operands = 0 : i64, tpu.core_type = #tpu.core_type<tc>, window_params = [{transform_indices = @transform_0, window_bounds = array<i64: 1, 18, 18, 128>}, {pipeline_mode = #tpu.pipeline_mode<synchronous>, transform_indices = @transform_1, window_bounds = array<i64: 3, 3, 128, 128>}, {pipeline_mode = #tpu.pipeline_mode<synchronous>, transform_indices = @transform_2, window_bounds = array<i64: 1, 128>}, {transform_indices = @transform_3, window_bounds = array<i64: 1, 8, 16, 128>}]} {
    %c8_i32 = arith.constant 8 : i32
    %0 = arith.muli %arg1, %c8_i32 : i32
    %cst = arith.constant 0.000000e+00 : f32
    %1 = vector.broadcast %cst : f32 to vector<128x128xf32>
    %c0 = arith.constant 0 : index
    %c0_0 = arith.constant 0 : index
    %2 = vector.load %arg4[%c0, %c0_0] : memref<1x128xf32, #tpu.memory_space<vmem>>, vector<1x128xf32>
    %3 = vector.broadcast %2 : vector<1x128xf32> to vector<128x128xf32>
    %4 = arith.addf %1, %3 : vector<128x128xf32>
    %c0_i32 = arith.constant 0 : i32
    %5 = arith.addi %0, %c0_i32 : i32
    %c0_1 = arith.constant 0 : index
    %6 = arith.index_cast %5 : i32 to index
    %c0_2 = arith.constant 0 : index
    %c0_3 = arith.constant 0 : index
    %7 = vector.load %arg2[%c0_1, %6, %c0_2, %c0_3] : memref<1x18x18x128xbf16, #tpu.memory_space<vmem>>, vector<1x8x16x128xbf16>
    %8 = vector.shape_cast %7 : vector<1x8x16x128xbf16> to vector<8x16x128xbf16>
    %9 = vector.shape_cast %8 : vector<8x16x128xbf16> to vector<128x128xbf16>
    %c0_4 = arith.constant 0 : index
    %c0_5 = arith.constant 0 : index
    %c0_6 = arith.constant 0 : index
    %c0_7 = arith.constant 0 : index
    %10 = vector.load %arg3[%c0_4, %c0_5, %c0_6, %c0_7] : memref<3x3x128x128xbf16, #tpu.memory_space<vmem>>, vector<1x1x128x128xbf16>
    %11 = vector.shape_cast %10 : vector<1x1x128x128xbf16> to vector<128x128xbf16>
    %cst_8 = arith.constant dense<0.000000e+00> : vector<128x128xf32>
    %12 = tpu.matmul %9, %11, %cst_8 {dimension_numbers = #tpu.dot_dimension_numbers<[1], [0], [0], [1], [0, 0, 1, 1], [], []>} : vector<128x128xbf16>, vector<128x128xbf16>, vector<128x128xf32> -> vector<128x128xf32>
    %13 = arith.addf %4, %12 : vector<128x128xf32>
    %c0_i32_9 = arith.constant 0 : i32
    %14 = arith.addi %0, %c0_i32_9 : i32
    %c0_10 = arith.constant 0 : index
    %15 = arith.index_cast %14 : i32 to index
    %c1 = arith.constant 1 : index
    %c0_11 = arith.constant 0 : index
    %16 = vector.load %arg2[%c0_10, %15, %c1, %c0_11] : memref<1x18x18x128xbf16, #tpu.memory_space<vmem>>, vector<1x8x16x128xbf16>
    %17 = vector.shape_cast %16 : vector<1x8x16x128xbf16> to vector<8x16x128xbf16>
    %18 = vector.shape_cast %17 : vector<8x16x128xbf16> to vector<128x128xbf16>
    %c0_12 = arith.constant 0 : index
    %c1_13 = arith.constant 1 : index
    %c0_14 = arith.constant 0 : index
    %c0_15 = arith.constant 0 : index
    %19 = vector.load %arg3[%c0_12, %c1_13, %c0_14, %c0_15] : memref<3x3x128x128xbf16, #tpu.memory_space<vmem>>, vector<1x1x128x128xbf16>
    %20 = vector.shape_cast %19 : vector<1x1x128x128xbf16> to vector<128x128xbf16>
    %cst_16 = arith.constant dense<0.000000e+00> : vector<128x128xf32>
    %21 = tpu.matmul %18, %20, %cst_16 {dimension_numbers = #tpu.dot_dimension_numbers<[1], [0], [0], [1], [0, 0, 1, 1], [], []>} : vector<128x128xbf16>, vector<128x128xbf16>, vector<128x128xf32> -> vector<128x128xf32>
    %22 = arith.addf %13, %21 : vector<128x128xf32>
    %c0_i32_17 = arith.constant 0 : i32
    %23 = arith.addi %0, %c0_i32_17 : i32
    %c0_18 = arith.constant 0 : index
    %24 = arith.index_cast %23 : i32 to index
    %c2 = arith.constant 2 : index
    %c0_19 = arith.constant 0 : index
    %25 = vector.load %arg2[%c0_18, %24, %c2, %c0_19] : memref<1x18x18x128xbf16, #tpu.memory_space<vmem>>, vector<1x8x16x128xbf16>
    %26 = vector.shape_cast %25 : vector<1x8x16x128xbf16> to vector<8x16x128xbf16>
    %27 = vector.shape_cast %26 : vector<8x16x128xbf16> to vector<128x128xbf16>
    %c0_20 = arith.constant 0 : index
    %c2_21 = arith.constant 2 : index
    %c0_22 = arith.constant 0 : index
    %c0_23 = arith.constant 0 : index
    %28 = vector.load %arg3[%c0_20, %c2_21, %c0_22, %c0_23] : memref<3x3x128x128xbf16, #tpu.memory_space<vmem>>, vector<1x1x128x128xbf16>
    %29 = vector.shape_cast %28 : vector<1x1x128x128xbf16> to vector<128x128xbf16>
    %cst_24 = arith.constant dense<0.000000e+00> : vector<128x128xf32>
    %30 = tpu.matmul %27, %29, %cst_24 {dimension_numbers = #tpu.dot_dimension_numbers<[1], [0], [0], [1], [0, 0, 1, 1], [], []>} : vector<128x128xbf16>, vector<128x128xbf16>, vector<128x128xf32> -> vector<128x128xf32>
    %31 = arith.addf %22, %30 : vector<128x128xf32>
    %c1_i32 = arith.constant 1 : i32
    %32 = arith.addi %0, %c1_i32 : i32
    %c0_25 = arith.constant 0 : index
    %33 = arith.index_cast %32 : i32 to index
    %c0_26 = arith.constant 0 : index
    %c0_27 = arith.constant 0 : index
    %34 = vector.load %arg2[%c0_25, %33, %c0_26, %c0_27] : memref<1x18x18x128xbf16, #tpu.memory_space<vmem>>, vector<1x8x16x128xbf16>
    %35 = vector.shape_cast %34 : vector<1x8x16x128xbf16> to vector<8x16x128xbf16>
    %36 = vector.shape_cast %35 : vector<8x16x128xbf16> to vector<128x128xbf16>
    %c1_28 = arith.constant 1 : index
    %c0_29 = arith.constant 0 : index
    %c0_30 = arith.constant 0 : index
    %c0_31 = arith.constant 0 : index
    %37 = vector.load %arg3[%c1_28, %c0_29, %c0_30, %c0_31] : memref<3x3x128x128xbf16, #tpu.memory_space<vmem>>, vector<1x1x128x128xbf16>
    %38 = vector.shape_cast %37 : vector<1x1x128x128xbf16> to vector<128x128xbf16>
    %cst_32 = arith.constant dense<0.000000e+00> : vector<128x128xf32>
    %39 = tpu.matmul %36, %38, %cst_32 {dimension_numbers = #tpu.dot_dimension_numbers<[1], [0], [0], [1], [0, 0, 1, 1], [], []>} : vector<128x128xbf16>, vector<128x128xbf16>, vector<128x128xf32> -> vector<128x128xf32>
    %40 = arith.addf %31, %39 : vector<128x128xf32>
    %c1_i32_33 = arith.constant 1 : i32
    %41 = arith.addi %0, %c1_i32_33 : i32
    %c0_34 = arith.constant 0 : index
    %42 = arith.index_cast %41 : i32 to index
    %c1_35 = arith.constant 1 : index
    %c0_36 = arith.constant 0 : index
    %43 = vector.load %arg2[%c0_34, %42, %c1_35, %c0_36] : memref<1x18x18x128xbf16, #tpu.memory_space<vmem>>, vector<1x8x16x128xbf16>
    %44 = vector.shape_cast %43 : vector<1x8x16x128xbf16> to vector<8x16x128xbf16>
    %45 = vector.shape_cast %44 : vector<8x16x128xbf16> to vector<128x128xbf16>
    %c1_37 = arith.constant 1 : index
    %c1_38 = arith.constant 1 : index
    %c0_39 = arith.constant 0 : index
    %c0_40 = arith.constant 0 : index
    %46 = vector.load %arg3[%c1_37, %c1_38, %c0_39, %c0_40] : memref<3x3x128x128xbf16, #tpu.memory_space<vmem>>, vector<1x1x128x128xbf16>
    %47 = vector.shape_cast %46 : vector<1x1x128x128xbf16> to vector<128x128xbf16>
    %cst_41 = arith.constant dense<0.000000e+00> : vector<128x128xf32>
    %48 = tpu.matmul %45, %47, %cst_41 {dimension_numbers = #tpu.dot_dimension_numbers<[1], [0], [0], [1], [0, 0, 1, 1], [], []>} : vector<128x128xbf16>, vector<128x128xbf16>, vector<128x128xf32> -> vector<128x128xf32>
    %49 = arith.addf %40, %48 : vector<128x128xf32>
    %c1_i32_42 = arith.constant 1 : i32
    %50 = arith.addi %0, %c1_i32_42 : i32
    %c0_43 = arith.constant 0 : index
    %51 = arith.index_cast %50 : i32 to index
    %c2_44 = arith.constant 2 : index
    %c0_45 = arith.constant 0 : index
    %52 = vector.load %arg2[%c0_43, %51, %c2_44, %c0_45] : memref<1x18x18x128xbf16, #tpu.memory_space<vmem>>, vector<1x8x16x128xbf16>
    %53 = vector.shape_cast %52 : vector<1x8x16x128xbf16> to vector<8x16x128xbf16>
    %54 = vector.shape_cast %53 : vector<8x16x128xbf16> to vector<128x128xbf16>
    %c1_46 = arith.constant 1 : index
    %c2_47 = arith.constant 2 : index
    %c0_48 = arith.constant 0 : index
    %c0_49 = arith.constant 0 : index
    %55 = vector.load %arg3[%c1_46, %c2_47, %c0_48, %c0_49] : memref<3x3x128x128xbf16, #tpu.memory_space<vmem>>, vector<1x1x128x128xbf16>
    %56 = vector.shape_cast %55 : vector<1x1x128x128xbf16> to vector<128x128xbf16>
    %cst_50 = arith.constant dense<0.000000e+00> : vector<128x128xf32>
    %57 = tpu.matmul %54, %56, %cst_50 {dimension_numbers = #tpu.dot_dimension_numbers<[1], [0], [0], [1], [0, 0, 1, 1], [], []>} : vector<128x128xbf16>, vector<128x128xbf16>, vector<128x128xf32> -> vector<128x128xf32>
    %58 = arith.addf %49, %57 : vector<128x128xf32>
    %c2_i32 = arith.constant 2 : i32
    %59 = arith.addi %0, %c2_i32 : i32
    %c0_51 = arith.constant 0 : index
    %60 = arith.index_cast %59 : i32 to index
    %c0_52 = arith.constant 0 : index
    %c0_53 = arith.constant 0 : index
    %61 = vector.load %arg2[%c0_51, %60, %c0_52, %c0_53] : memref<1x18x18x128xbf16, #tpu.memory_space<vmem>>, vector<1x8x16x128xbf16>
    %62 = vector.shape_cast %61 : vector<1x8x16x128xbf16> to vector<8x16x128xbf16>
    %63 = vector.shape_cast %62 : vector<8x16x128xbf16> to vector<128x128xbf16>
    %c2_54 = arith.constant 2 : index
    %c0_55 = arith.constant 0 : index
    %c0_56 = arith.constant 0 : index
    %c0_57 = arith.constant 0 : index
    %64 = vector.load %arg3[%c2_54, %c0_55, %c0_56, %c0_57] : memref<3x3x128x128xbf16, #tpu.memory_space<vmem>>, vector<1x1x128x128xbf16>
    %65 = vector.shape_cast %64 : vector<1x1x128x128xbf16> to vector<128x128xbf16>
    %cst_58 = arith.constant dense<0.000000e+00> : vector<128x128xf32>
    %66 = tpu.matmul %63, %65, %cst_58 {dimension_numbers = #tpu.dot_dimension_numbers<[1], [0], [0], [1], [0, 0, 1, 1], [], []>} : vector<128x128xbf16>, vector<128x128xbf16>, vector<128x128xf32> -> vector<128x128xf32>
    %67 = arith.addf %58, %66 : vector<128x128xf32>
    %c2_i32_59 = arith.constant 2 : i32
    %68 = arith.addi %0, %c2_i32_59 : i32
    %c0_60 = arith.constant 0 : index
    %69 = arith.index_cast %68 : i32 to index
    %c1_61 = arith.constant 1 : index
    %c0_62 = arith.constant 0 : index
    %70 = vector.load %arg2[%c0_60, %69, %c1_61, %c0_62] : memref<1x18x18x128xbf16, #tpu.memory_space<vmem>>, vector<1x8x16x128xbf16>
    %71 = vector.shape_cast %70 : vector<1x8x16x128xbf16> to vector<8x16x128xbf16>
    %72 = vector.shape_cast %71 : vector<8x16x128xbf16> to vector<128x128xbf16>
    %c2_63 = arith.constant 2 : index
    %c1_64 = arith.constant 1 : index
    %c0_65 = arith.constant 0 : index
    %c0_66 = arith.constant 0 : index
    %73 = vector.load %arg3[%c2_63, %c1_64, %c0_65, %c0_66] : memref<3x3x128x128xbf16, #tpu.memory_space<vmem>>, vector<1x1x128x128xbf16>
    %74 = vector.shape_cast %73 : vector<1x1x128x128xbf16> to vector<128x128xbf16>
    %cst_67 = arith.constant dense<0.000000e+00> : vector<128x128xf32>
    %75 = tpu.matmul %72, %74, %cst_67 {dimension_numbers = #tpu.dot_dimension_numbers<[1], [0], [0], [1], [0, 0, 1, 1], [], []>} : vector<128x128xbf16>, vector<128x128xbf16>, vector<128x128xf32> -> vector<128x128xf32>
    %76 = arith.addf %67, %75 : vector<128x128xf32>
    %c2_i32_68 = arith.constant 2 : i32
    %77 = arith.addi %0, %c2_i32_68 : i32
    %c0_69 = arith.constant 0 : index
    %78 = arith.index_cast %77 : i32 to index
    %c2_70 = arith.constant 2 : index
    %c0_71 = arith.constant 0 : index
    %79 = vector.load %arg2[%c0_69, %78, %c2_70, %c0_71] : memref<1x18x18x128xbf16, #tpu.memory_space<vmem>>, vector<1x8x16x128xbf16>
    %80 = vector.shape_cast %79 : vector<1x8x16x128xbf16> to vector<8x16x128xbf16>
    %81 = vector.shape_cast %80 : vector<8x16x128xbf16> to vector<128x128xbf16>
    %c2_72 = arith.constant 2 : index
    %c2_73 = arith.constant 2 : index
    %c0_74 = arith.constant 0 : index
    %c0_75 = arith.constant 0 : index
    %82 = vector.load %arg3[%c2_72, %c2_73, %c0_74, %c0_75] : memref<3x3x128x128xbf16, #tpu.memory_space<vmem>>, vector<1x1x128x128xbf16>
    %83 = vector.shape_cast %82 : vector<1x1x128x128xbf16> to vector<128x128xbf16>
    %cst_76 = arith.constant dense<0.000000e+00> : vector<128x128xf32>
    %84 = tpu.matmul %81, %83, %cst_76 {dimension_numbers = #tpu.dot_dimension_numbers<[1], [0], [0], [1], [0, 0, 1, 1], [], []>} : vector<128x128xbf16>, vector<128x128xbf16>, vector<128x128xf32> -> vector<128x128xf32>
    %85 = arith.addf %76, %84 : vector<128x128xf32>
    %86 = vector.shape_cast %85 : vector<128x128xf32> to vector<8x16x128xf32>
    %87 = arith.truncf %86 : vector<8x16x128xf32> to vector<8x16x128xbf16>
    %c0_77 = arith.constant 0 : index
    %c0_78 = arith.constant 0 : index
    %c0_79 = arith.constant 0 : index
    %c0_80 = arith.constant 0 : index
    %88 = vector.load %arg5[%c0_77, %c0_78, %c0_79, %c0_80] : memref<1x8x16x128xbf16, #tpu.memory_space<vmem>>, vector<1x8x16x128xbf16>
    %89 = vector.shape_cast %88 : vector<1x8x16x128xbf16> to vector<8x16x128xbf16>
    %90 = vector.shape_cast %87 : vector<8x16x128xbf16> to vector<1x8x16x128xbf16>
    tpu.vector_store %arg5[%c0_77, %c0_78, %c0_79, %c0_80], %90 {strides = array<i32>} : memref<1x8x16x128xbf16, #tpu.memory_space<vmem>>, vector<1x8x16x128xbf16>,
    return
  }
  func.func @transform_0(%arg0: i32, %arg1: i32) -> (i32, i32, i32, i32) {
    %c0_i32 = arith.constant 0 : i32
    %c0_i32_0 = arith.constant 0 : i32
    %c0_i32_1 = arith.constant 0 : i32
    %c0_i32_2 = arith.constant 0 : i32
    return %arg0, %c0_i32, %c0_i32_0, %c0_i32_1 : i32, i32, i32, i32
  }
  func.func @transform_1(%arg0: i32, %arg1: i32) -> (i32, i32, i32, i32) {
    %c0_i32 = arith.constant 0 : i32
    %c0_i32_0 = arith.constant 0 : i32
    %c0_i32_1 = arith.constant 0 : i32
    %c0_i32_2 = arith.constant 0 : i32
    %c0_i32_3 = arith.constant 0 : i32
    return %c0_i32, %c0_i32_0, %c0_i32_1, %c0_i32_2 : i32, i32, i32, i32
  }
  func.func @transform_2(%arg0: i32, %arg1: i32) -> (i32, i32) {
    %c0_i32 = arith.constant 0 : i32
    %c0_i32_0 = arith.constant 0 : i32
    %c0_i32_1 = arith.constant 0 : i32
    return %c0_i32, %c0_i32_0 : i32, i32
  }
  func.func @transform_3(%arg0: i32, %arg1: i32) -> (i32, i32, i32, i32) {
    %c0_i32 = arith.constant 0 : i32
    %c0_i32_0 = arith.constant 0 : i32
    %c0_i32_1 = arith.constant 0 : i32
    return %arg0, %arg1, %c0_i32, %c0_i32_0 : i32, i32, i32, i32
  }
}

module attributes {stable_mosaic.version = 11 : i64} {
  func.func @_pool_sc_kernel(%arg0: i32, %arg1: memref<1x8x8x3xbf16, #tpu.memory_space<vmem>>, %arg2: memref<3x128xbf16, #tpu.memory_space<vmem>>, %arg3: memref<1x128xf32, #tpu.memory_space<vmem>>, %arg4: memref<1x8x2x8x256xbf16, #tpu.memory_space<vmem>>, %arg5: memref<1x8x8x128xbf16, #tpu.memory_space<vmem>>) attributes {dimension_semantics = [#tpu.dimension_semantics<parallel>], iteration_bounds = array<i64: 2>, scalar_prefetch = 0 : i64, scratch_operands = 0 : i64, tpu.core_type = #tpu.core_type<tc>, window_params = [{transform_indices = @transform_0, window_bounds = array<i64: 1, 8, 8, 3>}, {pipeline_mode = #tpu.pipeline_mode<synchronous>, transform_indices = @transform_1, window_bounds = array<i64: 3, 128>}, {pipeline_mode = #tpu.pipeline_mode<synchronous>, transform_indices = @transform_2, window_bounds = array<i64: 1, 128>}, {transform_indices = @transform_3, window_bounds = array<i64: 1, 8, 2, 8, 256>}, {transform_indices = @transform_4, window_bounds = array<i64: 1, 8, 8, 128>}]} {
    %c0 = arith.constant 0 : index
    %c0_0 = arith.constant 0 : index
    %c0_1 = arith.constant 0 : index
    %c0_2 = arith.constant 0 : index
    %0 = vector.load %arg1[%c0, %c0_0, %c0_1, %c0_2] : memref<1x8x8x3xbf16, #tpu.memory_space<vmem>>, vector<1x8x8x3xbf16>
    %1 = vector.shape_cast %0 : vector<1x8x8x3xbf16> to vector<8x8x3xbf16>
    %2 = vector.shape_cast %1 : vector<8x8x3xbf16> to vector<64x3xbf16>
    %c0_3 = arith.constant 0 : index
    %c0_4 = arith.constant 0 : index
    %3 = vector.load %arg2[%c0_3, %c0_4] : memref<3x128xbf16, #tpu.memory_space<vmem>>, vector<3x128xbf16>
    %cst = arith.constant dense<0.000000e+00> : vector<64x128xf32>
    %4 = tpu.matmul %2, %3, %cst {dimension_numbers = #tpu.dot_dimension_numbers<[1], [0], [0], [1], [0, 0, 1, 1], [], []>} : vector<64x3xbf16>, vector<3x128xbf16>, vector<64x128xf32> -> vector<64x128xf32>
    %c0_5 = arith.constant 0 : index
    %c0_6 = arith.constant 0 : index
    %5 = vector.load %arg3[%c0_5, %c0_6] : memref<1x128xf32, #tpu.memory_space<vmem>>, vector<1x128xf32>
    %6 = vector.broadcast %5 : vector<1x128xf32> to vector<64x128xf32>
    %7 = arith.addf %4, %6 : vector<64x128xf32>
    %c0_7 = arith.constant 0 : index
    %c0_8 = arith.constant 0 : index
    %c0_9 = arith.constant 0 : index
    %c0_10 = arith.constant 0 : index
    %c0_11 = arith.constant 0 : index
    %8 = vector.load %arg4[%c0_7, %c0_8, %c0_9, %c0_10, %c0_11] : memref<1x8x2x8x256xbf16, #tpu.memory_space<vmem>>, vector<1x8x1x8x256xbf16>
    %9 = vector.shape_cast %8 : vector<1x8x1x8x256xbf16> to vector<8x8x256xbf16>
    %10 = arith.extf %9 : vector<8x8x256xbf16> to vector<8x8x256xf32>
    %c0_12 = arith.constant 0 : index
    %c0_13 = arith.constant 0 : index
    %c1 = arith.constant 1 : index
    %c0_14 = arith.constant 0 : index
    %c0_15 = arith.constant 0 : index
    %11 = vector.load %arg4[%c0_12, %c0_13, %c1, %c0_14, %c0_15] : memref<1x8x2x8x256xbf16, #tpu.memory_space<vmem>>, vector<1x8x1x8x256xbf16>
    %12 = vector.shape_cast %11 : vector<1x8x1x8x256xbf16> to vector<8x8x256xbf16>
    %13 = arith.extf %12 : vector<8x8x256xbf16> to vector<8x8x256xf32>
    %14 = arith.addf %10, %13 : vector<8x8x256xf32>
    %15 = vector.extract_strided_slice %14 {offsets = [0, 0, 0], sizes = [8, 8, 128], strides = [1, 1, 1]} : vector<8x8x256xf32> to vector<8x8x128xf32>
    %16 = vector.extract_strided_slice %14 {offsets = [0, 0, 128], sizes = [8, 8, 128], strides = [1, 1, 1]} : vector<8x8x256xf32> to vector<8x8x128xf32>
    %17 = arith.addf %15, %16 : vector<8x8x128xf32>
    %cst_16 = arith.constant 2.500000e-01 : f32
    %18 = vector.broadcast %cst_16 : f32 to vector<8x8x128xf32>
    %19 = arith.mulf %17, %18 : vector<8x8x128xf32>
    %20 = vector.shape_cast %7 : vector<64x128xf32> to vector<8x8x128xf32>
    %21 = arith.addf %19, %20 : vector<8x8x128xf32>
    %22 = arith.truncf %21 : vector<8x8x128xf32> to vector<8x8x128xbf16>
    %c0_17 = arith.constant 0 : index
    %c0_18 = arith.constant 0 : index
    %c0_19 = arith.constant 0 : index
    %c0_20 = arith.constant 0 : index
    %23 = vector.load %arg5[%c0_17, %c0_18, %c0_19, %c0_20] : memref<1x8x8x128xbf16, #tpu.memory_space<vmem>>, vector<1x8x8x128xbf16>
    %24 = vector.shape_cast %23 : vector<1x8x8x128xbf16> to vector<8x8x128xbf16>
    %25 = vector.shape_cast %22 : vector<8x8x128xbf16> to vector<1x8x8x128xbf16>
    tpu.vector_store %arg5[%c0_17, %c0_18, %c0_19, %c0_20], %25 {strides = array<i32>} : memref<1x8x8x128xbf16, #tpu.memory_space<vmem>>, vector<1x8x8x128xbf16>,
    return
  }
  func.func @transform_0(%arg0: i32) -> (i32, i32, i32, i32) {
    %c0_i32 = arith.constant 0 : i32
    %c0_i32_0 = arith.constant 0 : i32
    %c0_i32_1 = arith.constant 0 : i32
    %c0_i32_2 = arith.constant 0 : i32
    return %arg0, %c0_i32, %c0_i32_0, %c0_i32_1 : i32, i32, i32, i32
  }
  func.func @transform_1(%arg0: i32) -> (i32, i32) {
    %c0_i32 = arith.constant 0 : i32
    %c0_i32_0 = arith.constant 0 : i32
    %c0_i32_1 = arith.constant 0 : i32
    return %c0_i32, %c0_i32_0 : i32, i32
  }
  func.func @transform_2(%arg0: i32) -> (i32, i32) {
    %c0_i32 = arith.constant 0 : i32
    %c0_i32_0 = arith.constant 0 : i32
    %c0_i32_1 = arith.constant 0 : i32
    return %c0_i32, %c0_i32_0 : i32, i32
  }
  func.func @transform_3(%arg0: i32) -> (i32, i32, i32, i32, i32) {
    %c0_i32 = arith.constant 0 : i32
    %c0_i32_0 = arith.constant 0 : i32
    %c0_i32_1 = arith.constant 0 : i32
    %c0_i32_2 = arith.constant 0 : i32
    %c0_i32_3 = arith.constant 0 : i32
    return %arg0, %c0_i32, %c0_i32_0, %c0_i32_1, %c0_i32_2 : i32, i32, i32, i32, i32
  }
  func.func @transform_4(%arg0: i32) -> (i32, i32, i32, i32) {
    %c0_i32 = arith.constant 0 : i32
    %c0_i32_0 = arith.constant 0 : i32
    %c0_i32_1 = arith.constant 0 : i32
    %c0_i32_2 = arith.constant 0 : i32
    return %arg0, %c0_i32, %c0_i32_0, %c0_i32_1 : i32, i32, i32, i32
  }
}

module attributes {stable_mosaic.version = 11 : i64} {
  func.func @_conv3x3_kernel(%arg0: i32, %arg1: i32, %arg2: memref<1x10x10x128xbf16, #tpu.memory_space<vmem>>, %arg3: memref<3x3x128x128xbf16, #tpu.memory_space<vmem>>, %arg4: memref<1x128xf32, #tpu.memory_space<vmem>>, %arg5: memref<1x8x8x128xbf16, #tpu.memory_space<vmem>>) attributes {dimension_semantics = [#tpu.dimension_semantics<parallel>, #tpu.dimension_semantics<arbitrary>], iteration_bounds = array<i64: 2, 1>, scalar_prefetch = 0 : i64, scratch_operands = 0 : i64, tpu.core_type = #tpu.core_type<tc>, window_params = [{transform_indices = @transform_0, window_bounds = array<i64: 1, 10, 10, 128>}, {pipeline_mode = #tpu.pipeline_mode<synchronous>, transform_indices = @transform_1, window_bounds = array<i64: 3, 3, 128, 128>}, {pipeline_mode = #tpu.pipeline_mode<synchronous>, transform_indices = @transform_2, window_bounds = array<i64: 1, 128>}, {transform_indices = @transform_3, window_bounds = array<i64: 1, 8, 8, 128>}]} {
    %c8_i32 = arith.constant 8 : i32
    %0 = arith.muli %arg1, %c8_i32 : i32
    %cst = arith.constant 0.000000e+00 : f32
    %1 = vector.broadcast %cst : f32 to vector<64x128xf32>
    %c0 = arith.constant 0 : index
    %c0_0 = arith.constant 0 : index
    %2 = vector.load %arg4[%c0, %c0_0] : memref<1x128xf32, #tpu.memory_space<vmem>>, vector<1x128xf32>
    %3 = vector.broadcast %2 : vector<1x128xf32> to vector<64x128xf32>
    %4 = arith.addf %1, %3 : vector<64x128xf32>
    %c0_i32 = arith.constant 0 : i32
    %5 = arith.addi %0, %c0_i32 : i32
    %c0_1 = arith.constant 0 : index
    %6 = arith.index_cast %5 : i32 to index
    %c0_2 = arith.constant 0 : index
    %c0_3 = arith.constant 0 : index
    %7 = vector.load %arg2[%c0_1, %6, %c0_2, %c0_3] : memref<1x10x10x128xbf16, #tpu.memory_space<vmem>>, vector<1x8x8x128xbf16>
    %8 = vector.shape_cast %7 : vector<1x8x8x128xbf16> to vector<8x8x128xbf16>
    %cst_4 = arith.constant 0.000000e+00 : bf16
    %9 = vector.broadcast %cst_4 : bf16 to vector<8x8x128xbf16>
    %10 = arith.maximumf %8, %9 : vector<8x8x128xbf16>
    %11 = vector.shape_cast %10 : vector<8x8x128xbf16> to vector<64x128xbf16>
    %c0_5 = arith.constant 0 : index
    %c0_6 = arith.constant 0 : index
    %c0_7 = arith.constant 0 : index
    %c0_8 = arith.constant 0 : index
    %12 = vector.load %arg3[%c0_5, %c0_6, %c0_7, %c0_8] : memref<3x3x128x128xbf16, #tpu.memory_space<vmem>>, vector<1x1x128x128xbf16>
    %13 = vector.shape_cast %12 : vector<1x1x128x128xbf16> to vector<128x128xbf16>
    %cst_9 = arith.constant dense<0.000000e+00> : vector<64x128xf32>
    %14 = tpu.matmul %11, %13, %cst_9 {dimension_numbers = #tpu.dot_dimension_numbers<[1], [0], [0], [1], [0, 0, 1, 1], [], []>} : vector<64x128xbf16>, vector<128x128xbf16>, vector<64x128xf32> -> vector<64x128xf32>
    %15 = arith.addf %4, %14 : vector<64x128xf32>
    %c0_i32_10 = arith.constant 0 : i32
    %16 = arith.addi %0, %c0_i32_10 : i32
    %c0_11 = arith.constant 0 : index
    %17 = arith.index_cast %16 : i32 to index
    %c1 = arith.constant 1 : index
    %c0_12 = arith.constant 0 : index
    %18 = vector.load %arg2[%c0_11, %17, %c1, %c0_12] : memref<1x10x10x128xbf16, #tpu.memory_space<vmem>>, vector<1x8x8x128xbf16>
    %19 = vector.shape_cast %18 : vector<1x8x8x128xbf16> to vector<8x8x128xbf16>
    %cst_13 = arith.constant 0.000000e+00 : bf16
    %20 = vector.broadcast %cst_13 : bf16 to vector<8x8x128xbf16>
    %21 = arith.maximumf %19, %20 : vector<8x8x128xbf16>
    %22 = vector.shape_cast %21 : vector<8x8x128xbf16> to vector<64x128xbf16>
    %c0_14 = arith.constant 0 : index
    %c1_15 = arith.constant 1 : index
    %c0_16 = arith.constant 0 : index
    %c0_17 = arith.constant 0 : index
    %23 = vector.load %arg3[%c0_14, %c1_15, %c0_16, %c0_17] : memref<3x3x128x128xbf16, #tpu.memory_space<vmem>>, vector<1x1x128x128xbf16>
    %24 = vector.shape_cast %23 : vector<1x1x128x128xbf16> to vector<128x128xbf16>
    %cst_18 = arith.constant dense<0.000000e+00> : vector<64x128xf32>
    %25 = tpu.matmul %22, %24, %cst_18 {dimension_numbers = #tpu.dot_dimension_numbers<[1], [0], [0], [1], [0, 0, 1, 1], [], []>} : vector<64x128xbf16>, vector<128x128xbf16>, vector<64x128xf32> -> vector<64x128xf32>
    %26 = arith.addf %15, %25 : vector<64x128xf32>
    %c0_i32_19 = arith.constant 0 : i32
    %27 = arith.addi %0, %c0_i32_19 : i32
    %c0_20 = arith.constant 0 : index
    %28 = arith.index_cast %27 : i32 to index
    %c2 = arith.constant 2 : index
    %c0_21 = arith.constant 0 : index
    %29 = vector.load %arg2[%c0_20, %28, %c2, %c0_21] : memref<1x10x10x128xbf16, #tpu.memory_space<vmem>>, vector<1x8x8x128xbf16>
    %30 = vector.shape_cast %29 : vector<1x8x8x128xbf16> to vector<8x8x128xbf16>
    %cst_22 = arith.constant 0.000000e+00 : bf16
    %31 = vector.broadcast %cst_22 : bf16 to vector<8x8x128xbf16>
    %32 = arith.maximumf %30, %31 : vector<8x8x128xbf16>
    %33 = vector.shape_cast %32 : vector<8x8x128xbf16> to vector<64x128xbf16>
    %c0_23 = arith.constant 0 : index
    %c2_24 = arith.constant 2 : index
    %c0_25 = arith.constant 0 : index
    %c0_26 = arith.constant 0 : index
    %34 = vector.load %arg3[%c0_23, %c2_24, %c0_25, %c0_26] : memref<3x3x128x128xbf16, #tpu.memory_space<vmem>>, vector<1x1x128x128xbf16>
    %35 = vector.shape_cast %34 : vector<1x1x128x128xbf16> to vector<128x128xbf16>
    %cst_27 = arith.constant dense<0.000000e+00> : vector<64x128xf32>
    %36 = tpu.matmul %33, %35, %cst_27 {dimension_numbers = #tpu.dot_dimension_numbers<[1], [0], [0], [1], [0, 0, 1, 1], [], []>} : vector<64x128xbf16>, vector<128x128xbf16>, vector<64x128xf32> -> vector<64x128xf32>
    %37 = arith.addf %26, %36 : vector<64x128xf32>
    %c1_i32 = arith.constant 1 : i32
    %38 = arith.addi %0, %c1_i32 : i32
    %c0_28 = arith.constant 0 : index
    %39 = arith.index_cast %38 : i32 to index
    %c0_29 = arith.constant 0 : index
    %c0_30 = arith.constant 0 : index
    %40 = vector.load %arg2[%c0_28, %39, %c0_29, %c0_30] : memref<1x10x10x128xbf16, #tpu.memory_space<vmem>>, vector<1x8x8x128xbf16>
    %41 = vector.shape_cast %40 : vector<1x8x8x128xbf16> to vector<8x8x128xbf16>
    %cst_31 = arith.constant 0.000000e+00 : bf16
    %42 = vector.broadcast %cst_31 : bf16 to vector<8x8x128xbf16>
    %43 = arith.maximumf %41, %42 : vector<8x8x128xbf16>
    %44 = vector.shape_cast %43 : vector<8x8x128xbf16> to vector<64x128xbf16>
    %c1_32 = arith.constant 1 : index
    %c0_33 = arith.constant 0 : index
    %c0_34 = arith.constant 0 : index
    %c0_35 = arith.constant 0 : index
    %45 = vector.load %arg3[%c1_32, %c0_33, %c0_34, %c0_35] : memref<3x3x128x128xbf16, #tpu.memory_space<vmem>>, vector<1x1x128x128xbf16>
    %46 = vector.shape_cast %45 : vector<1x1x128x128xbf16> to vector<128x128xbf16>
    %cst_36 = arith.constant dense<0.000000e+00> : vector<64x128xf32>
    %47 = tpu.matmul %44, %46, %cst_36 {dimension_numbers = #tpu.dot_dimension_numbers<[1], [0], [0], [1], [0, 0, 1, 1], [], []>} : vector<64x128xbf16>, vector<128x128xbf16>, vector<64x128xf32> -> vector<64x128xf32>
    %48 = arith.addf %37, %47 : vector<64x128xf32>
    %c1_i32_37 = arith.constant 1 : i32
    %49 = arith.addi %0, %c1_i32_37 : i32
    %c0_38 = arith.constant 0 : index
    %50 = arith.index_cast %49 : i32 to index
    %c1_39 = arith.constant 1 : index
    %c0_40 = arith.constant 0 : index
    %51 = vector.load %arg2[%c0_38, %50, %c1_39, %c0_40] : memref<1x10x10x128xbf16, #tpu.memory_space<vmem>>, vector<1x8x8x128xbf16>
    %52 = vector.shape_cast %51 : vector<1x8x8x128xbf16> to vector<8x8x128xbf16>
    %cst_41 = arith.constant 0.000000e+00 : bf16
    %53 = vector.broadcast %cst_41 : bf16 to vector<8x8x128xbf16>
    %54 = arith.maximumf %52, %53 : vector<8x8x128xbf16>
    %55 = vector.shape_cast %54 : vector<8x8x128xbf16> to vector<64x128xbf16>
    %c1_42 = arith.constant 1 : index
    %c1_43 = arith.constant 1 : index
    %c0_44 = arith.constant 0 : index
    %c0_45 = arith.constant 0 : index
    %56 = vector.load %arg3[%c1_42, %c1_43, %c0_44, %c0_45] : memref<3x3x128x128xbf16, #tpu.memory_space<vmem>>, vector<1x1x128x128xbf16>
    %57 = vector.shape_cast %56 : vector<1x1x128x128xbf16> to vector<128x128xbf16>
    %cst_46 = arith.constant dense<0.000000e+00> : vector<64x128xf32>
    %58 = tpu.matmul %55, %57, %cst_46 {dimension_numbers = #tpu.dot_dimension_numbers<[1], [0], [0], [1], [0, 0, 1, 1], [], []>} : vector<64x128xbf16>, vector<128x128xbf16>, vector<64x128xf32> -> vector<64x128xf32>
    %59 = arith.addf %48, %58 : vector<64x128xf32>
    %c1_i32_47 = arith.constant 1 : i32
    %60 = arith.addi %0, %c1_i32_47 : i32
    %c0_48 = arith.constant 0 : index
    %61 = arith.index_cast %60 : i32 to index
    %c2_49 = arith.constant 2 : index
    %c0_50 = arith.constant 0 : index
    %62 = vector.load %arg2[%c0_48, %61, %c2_49, %c0_50] : memref<1x10x10x128xbf16, #tpu.memory_space<vmem>>, vector<1x8x8x128xbf16>
    %63 = vector.shape_cast %62 : vector<1x8x8x128xbf16> to vector<8x8x128xbf16>
    %cst_51 = arith.constant 0.000000e+00 : bf16
    %64 = vector.broadcast %cst_51 : bf16 to vector<8x8x128xbf16>
    %65 = arith.maximumf %63, %64 : vector<8x8x128xbf16>
    %66 = vector.shape_cast %65 : vector<8x8x128xbf16> to vector<64x128xbf16>
    %c1_52 = arith.constant 1 : index
    %c2_53 = arith.constant 2 : index
    %c0_54 = arith.constant 0 : index
    %c0_55 = arith.constant 0 : index
    %67 = vector.load %arg3[%c1_52, %c2_53, %c0_54, %c0_55] : memref<3x3x128x128xbf16, #tpu.memory_space<vmem>>, vector<1x1x128x128xbf16>
    %68 = vector.shape_cast %67 : vector<1x1x128x128xbf16> to vector<128x128xbf16>
    %cst_56 = arith.constant dense<0.000000e+00> : vector<64x128xf32>
    %69 = tpu.matmul %66, %68, %cst_56 {dimension_numbers = #tpu.dot_dimension_numbers<[1], [0], [0], [1], [0, 0, 1, 1], [], []>} : vector<64x128xbf16>, vector<128x128xbf16>, vector<64x128xf32> -> vector<64x128xf32>
    %70 = arith.addf %59, %69 : vector<64x128xf32>
    %c2_i32 = arith.constant 2 : i32
    %71 = arith.addi %0, %c2_i32 : i32
    %c0_57 = arith.constant 0 : index
    %72 = arith.index_cast %71 : i32 to index
    %c0_58 = arith.constant 0 : index
    %c0_59 = arith.constant 0 : index
    %73 = vector.load %arg2[%c0_57, %72, %c0_58, %c0_59] : memref<1x10x10x128xbf16, #tpu.memory_space<vmem>>, vector<1x8x8x128xbf16>
    %74 = vector.shape_cast %73 : vector<1x8x8x128xbf16> to vector<8x8x128xbf16>
    %cst_60 = arith.constant 0.000000e+00 : bf16
    %75 = vector.broadcast %cst_60 : bf16 to vector<8x8x128xbf16>
    %76 = arith.maximumf %74, %75 : vector<8x8x128xbf16>
    %77 = vector.shape_cast %76 : vector<8x8x128xbf16> to vector<64x128xbf16>
    %c2_61 = arith.constant 2 : index
    %c0_62 = arith.constant 0 : index
    %c0_63 = arith.constant 0 : index
    %c0_64 = arith.constant 0 : index
    %78 = vector.load %arg3[%c2_61, %c0_62, %c0_63, %c0_64] : memref<3x3x128x128xbf16, #tpu.memory_space<vmem>>, vector<1x1x128x128xbf16>
    %79 = vector.shape_cast %78 : vector<1x1x128x128xbf16> to vector<128x128xbf16>
    %cst_65 = arith.constant dense<0.000000e+00> : vector<64x128xf32>
    %80 = tpu.matmul %77, %79, %cst_65 {dimension_numbers = #tpu.dot_dimension_numbers<[1], [0], [0], [1], [0, 0, 1, 1], [], []>} : vector<64x128xbf16>, vector<128x128xbf16>, vector<64x128xf32> -> vector<64x128xf32>
    %81 = arith.addf %70, %80 : vector<64x128xf32>
    %c2_i32_66 = arith.constant 2 : i32
    %82 = arith.addi %0, %c2_i32_66 : i32
    %c0_67 = arith.constant 0 : index
    %83 = arith.index_cast %82 : i32 to index
    %c1_68 = arith.constant 1 : index
    %c0_69 = arith.constant 0 : index
    %84 = vector.load %arg2[%c0_67, %83, %c1_68, %c0_69] : memref<1x10x10x128xbf16, #tpu.memory_space<vmem>>, vector<1x8x8x128xbf16>
    %85 = vector.shape_cast %84 : vector<1x8x8x128xbf16> to vector<8x8x128xbf16>
    %cst_70 = arith.constant 0.000000e+00 : bf16
    %86 = vector.broadcast %cst_70 : bf16 to vector<8x8x128xbf16>
    %87 = arith.maximumf %85, %86 : vector<8x8x128xbf16>
    %88 = vector.shape_cast %87 : vector<8x8x128xbf16> to vector<64x128xbf16>
    %c2_71 = arith.constant 2 : index
    %c1_72 = arith.constant 1 : index
    %c0_73 = arith.constant 0 : index
    %c0_74 = arith.constant 0 : index
    %89 = vector.load %arg3[%c2_71, %c1_72, %c0_73, %c0_74] : memref<3x3x128x128xbf16, #tpu.memory_space<vmem>>, vector<1x1x128x128xbf16>
    %90 = vector.shape_cast %89 : vector<1x1x128x128xbf16> to vector<128x128xbf16>
    %cst_75 = arith.constant dense<0.000000e+00> : vector<64x128xf32>
    %91 = tpu.matmul %88, %90, %cst_75 {dimension_numbers = #tpu.dot_dimension_numbers<[1], [0], [0], [1], [0, 0, 1, 1], [], []>} : vector<64x128xbf16>, vector<128x128xbf16>, vector<64x128xf32> -> vector<64x128xf32>
    %92 = arith.addf %81, %91 : vector<64x128xf32>
    %c2_i32_76 = arith.constant 2 : i32
    %93 = arith.addi %0, %c2_i32_76 : i32
    %c0_77 = arith.constant 0 : index
    %94 = arith.index_cast %93 : i32 to index
    %c2_78 = arith.constant 2 : index
    %c0_79 = arith.constant 0 : index
    %95 = vector.load %arg2[%c0_77, %94, %c2_78, %c0_79] : memref<1x10x10x128xbf16, #tpu.memory_space<vmem>>, vector<1x8x8x128xbf16>
    %96 = vector.shape_cast %95 : vector<1x8x8x128xbf16> to vector<8x8x128xbf16>
    %cst_80 = arith.constant 0.000000e+00 : bf16
    %97 = vector.broadcast %cst_80 : bf16 to vector<8x8x128xbf16>
    %98 = arith.maximumf %96, %97 : vector<8x8x128xbf16>
    %99 = vector.shape_cast %98 : vector<8x8x128xbf16> to vector<64x128xbf16>
    %c2_81 = arith.constant 2 : index
    %c2_82 = arith.constant 2 : index
    %c0_83 = arith.constant 0 : index
    %c0_84 = arith.constant 0 : index
    %100 = vector.load %arg3[%c2_81, %c2_82, %c0_83, %c0_84] : memref<3x3x128x128xbf16, #tpu.memory_space<vmem>>, vector<1x1x128x128xbf16>
    %101 = vector.shape_cast %100 : vector<1x1x128x128xbf16> to vector<128x128xbf16>
    %cst_85 = arith.constant dense<0.000000e+00> : vector<64x128xf32>
    %102 = tpu.matmul %99, %101, %cst_85 {dimension_numbers = #tpu.dot_dimension_numbers<[1], [0], [0], [1], [0, 0, 1, 1], [], []>} : vector<64x128xbf16>, vector<128x128xbf16>, vector<64x128xf32> -> vector<64x128xf32>
    %103 = arith.addf %92, %102 : vector<64x128xf32>
    %cst_86 = arith.constant 0.000000e+00 : f32
    %104 = vector.broadcast %cst_86 : f32 to vector<64x128xf32>
    %105 = arith.maximumf %103, %104 : vector<64x128xf32>
    %106 = vector.shape_cast %105 : vector<64x128xf32> to vector<8x8x128xf32>
    %107 = arith.truncf %106 : vector<8x8x128xf32> to vector<8x8x128xbf16>
    %c0_87 = arith.constant 0 : index
    %c0_88 = arith.constant 0 : index
    %c0_89 = arith.constant 0 : index
    %c0_90 = arith.constant 0 : index
    %108 = vector.load %arg5[%c0_87, %c0_88, %c0_89, %c0_90] : memref<1x8x8x128xbf16, #tpu.memory_space<vmem>>, vector<1x8x8x128xbf16>
    %109 = vector.shape_cast %108 : vector<1x8x8x128xbf16> to vector<8x8x128xbf16>
    %110 = vector.shape_cast %107 : vector<8x8x128xbf16> to vector<1x8x8x128xbf16>
    tpu.vector_store %arg5[%c0_87, %c0_88, %c0_89, %c0_90], %110 {strides = array<i32>} : memref<1x8x8x128xbf16, #tpu.memory_space<vmem>>, vector<1x8x8x128xbf16>,
    return
  }
  func.func @transform_0(%arg0: i32, %arg1: i32) -> (i32, i32, i32, i32) {
    %c0_i32 = arith.constant 0 : i32
    %c0_i32_0 = arith.constant 0 : i32
    %c0_i32_1 = arith.constant 0 : i32
    %c0_i32_2 = arith.constant 0 : i32
    return %arg0, %c0_i32, %c0_i32_0, %c0_i32_1 : i32, i32, i32, i32
  }
  func.func @transform_1(%arg0: i32, %arg1: i32) -> (i32, i32, i32, i32) {
    %c0_i32 = arith.constant 0 : i32
    %c0_i32_0 = arith.constant 0 : i32
    %c0_i32_1 = arith.constant 0 : i32
    %c0_i32_2 = arith.constant 0 : i32
    %c0_i32_3 = arith.constant 0 : i32
    return %c0_i32, %c0_i32_0, %c0_i32_1, %c0_i32_2 : i32, i32, i32, i32
  }
  func.func @transform_2(%arg0: i32, %arg1: i32) -> (i32, i32) {
    %c0_i32 = arith.constant 0 : i32
    %c0_i32_0 = arith.constant 0 : i32
    %c0_i32_1 = arith.constant 0 : i32
    return %c0_i32, %c0_i32_0 : i32, i32
  }
  func.func @transform_3(%arg0: i32, %arg1: i32) -> (i32, i32, i32, i32) {
    %c0_i32 = arith.constant 0 : i32
    %c0_i32_0 = arith.constant 0 : i32
    %c0_i32_1 = arith.constant 0 : i32
    return %arg0, %arg1, %c0_i32, %c0_i32_0 : i32, i32, i32, i32
  }
}

module attributes {stable_mosaic.version = 11 : i64} {
  func.func @_conv3x3_kernel(%arg0: i32, %arg1: i32, %arg2: memref<1x10x10x128xbf16, #tpu.memory_space<vmem>>, %arg3: memref<3x3x128x128xbf16, #tpu.memory_space<vmem>>, %arg4: memref<1x128xf32, #tpu.memory_space<vmem>>, %arg5: memref<1x8x8x128xbf16, #tpu.memory_space<vmem>>) attributes {dimension_semantics = [#tpu.dimension_semantics<parallel>, #tpu.dimension_semantics<arbitrary>], iteration_bounds = array<i64: 2, 1>, scalar_prefetch = 0 : i64, scratch_operands = 0 : i64, tpu.core_type = #tpu.core_type<tc>, window_params = [{transform_indices = @transform_0, window_bounds = array<i64: 1, 10, 10, 128>}, {pipeline_mode = #tpu.pipeline_mode<synchronous>, transform_indices = @transform_1, window_bounds = array<i64: 3, 3, 128, 128>}, {pipeline_mode = #tpu.pipeline_mode<synchronous>, transform_indices = @transform_2, window_bounds = array<i64: 1, 128>}, {transform_indices = @transform_3, window_bounds = array<i64: 1, 8, 8, 128>}]} {
    %c8_i32 = arith.constant 8 : i32
    %0 = arith.muli %arg1, %c8_i32 : i32
    %cst = arith.constant 0.000000e+00 : f32
    %1 = vector.broadcast %cst : f32 to vector<64x128xf32>
    %c0 = arith.constant 0 : index
    %c0_0 = arith.constant 0 : index
    %2 = vector.load %arg4[%c0, %c0_0] : memref<1x128xf32, #tpu.memory_space<vmem>>, vector<1x128xf32>
    %3 = vector.broadcast %2 : vector<1x128xf32> to vector<64x128xf32>
    %4 = arith.addf %1, %3 : vector<64x128xf32>
    %c0_i32 = arith.constant 0 : i32
    %5 = arith.addi %0, %c0_i32 : i32
    %c0_1 = arith.constant 0 : index
    %6 = arith.index_cast %5 : i32 to index
    %c0_2 = arith.constant 0 : index
    %c0_3 = arith.constant 0 : index
    %7 = vector.load %arg2[%c0_1, %6, %c0_2, %c0_3] : memref<1x10x10x128xbf16, #tpu.memory_space<vmem>>, vector<1x8x8x128xbf16>
    %8 = vector.shape_cast %7 : vector<1x8x8x128xbf16> to vector<8x8x128xbf16>
    %9 = vector.shape_cast %8 : vector<8x8x128xbf16> to vector<64x128xbf16>
    %c0_4 = arith.constant 0 : index
    %c0_5 = arith.constant 0 : index
    %c0_6 = arith.constant 0 : index
    %c0_7 = arith.constant 0 : index
    %10 = vector.load %arg3[%c0_4, %c0_5, %c0_6, %c0_7] : memref<3x3x128x128xbf16, #tpu.memory_space<vmem>>, vector<1x1x128x128xbf16>
    %11 = vector.shape_cast %10 : vector<1x1x128x128xbf16> to vector<128x128xbf16>
    %cst_8 = arith.constant dense<0.000000e+00> : vector<64x128xf32>
    %12 = tpu.matmul %9, %11, %cst_8 {dimension_numbers = #tpu.dot_dimension_numbers<[1], [0], [0], [1], [0, 0, 1, 1], [], []>} : vector<64x128xbf16>, vector<128x128xbf16>, vector<64x128xf32> -> vector<64x128xf32>
    %13 = arith.addf %4, %12 : vector<64x128xf32>
    %c0_i32_9 = arith.constant 0 : i32
    %14 = arith.addi %0, %c0_i32_9 : i32
    %c0_10 = arith.constant 0 : index
    %15 = arith.index_cast %14 : i32 to index
    %c1 = arith.constant 1 : index
    %c0_11 = arith.constant 0 : index
    %16 = vector.load %arg2[%c0_10, %15, %c1, %c0_11] : memref<1x10x10x128xbf16, #tpu.memory_space<vmem>>, vector<1x8x8x128xbf16>
    %17 = vector.shape_cast %16 : vector<1x8x8x128xbf16> to vector<8x8x128xbf16>
    %18 = vector.shape_cast %17 : vector<8x8x128xbf16> to vector<64x128xbf16>
    %c0_12 = arith.constant 0 : index
    %c1_13 = arith.constant 1 : index
    %c0_14 = arith.constant 0 : index
    %c0_15 = arith.constant 0 : index
    %19 = vector.load %arg3[%c0_12, %c1_13, %c0_14, %c0_15] : memref<3x3x128x128xbf16, #tpu.memory_space<vmem>>, vector<1x1x128x128xbf16>
    %20 = vector.shape_cast %19 : vector<1x1x128x128xbf16> to vector<128x128xbf16>
    %cst_16 = arith.constant dense<0.000000e+00> : vector<64x128xf32>
    %21 = tpu.matmul %18, %20, %cst_16 {dimension_numbers = #tpu.dot_dimension_numbers<[1], [0], [0], [1], [0, 0, 1, 1], [], []>} : vector<64x128xbf16>, vector<128x128xbf16>, vector<64x128xf32> -> vector<64x128xf32>
    %22 = arith.addf %13, %21 : vector<64x128xf32>
    %c0_i32_17 = arith.constant 0 : i32
    %23 = arith.addi %0, %c0_i32_17 : i32
    %c0_18 = arith.constant 0 : index
    %24 = arith.index_cast %23 : i32 to index
    %c2 = arith.constant 2 : index
    %c0_19 = arith.constant 0 : index
    %25 = vector.load %arg2[%c0_18, %24, %c2, %c0_19] : memref<1x10x10x128xbf16, #tpu.memory_space<vmem>>, vector<1x8x8x128xbf16>
    %26 = vector.shape_cast %25 : vector<1x8x8x128xbf16> to vector<8x8x128xbf16>
    %27 = vector.shape_cast %26 : vector<8x8x128xbf16> to vector<64x128xbf16>
    %c0_20 = arith.constant 0 : index
    %c2_21 = arith.constant 2 : index
    %c0_22 = arith.constant 0 : index
    %c0_23 = arith.constant 0 : index
    %28 = vector.load %arg3[%c0_20, %c2_21, %c0_22, %c0_23] : memref<3x3x128x128xbf16, #tpu.memory_space<vmem>>, vector<1x1x128x128xbf16>
    %29 = vector.shape_cast %28 : vector<1x1x128x128xbf16> to vector<128x128xbf16>
    %cst_24 = arith.constant dense<0.000000e+00> : vector<64x128xf32>
    %30 = tpu.matmul %27, %29, %cst_24 {dimension_numbers = #tpu.dot_dimension_numbers<[1], [0], [0], [1], [0, 0, 1, 1], [], []>} : vector<64x128xbf16>, vector<128x128xbf16>, vector<64x128xf32> -> vector<64x128xf32>
    %31 = arith.addf %22, %30 : vector<64x128xf32>
    %c1_i32 = arith.constant 1 : i32
    %32 = arith.addi %0, %c1_i32 : i32
    %c0_25 = arith.constant 0 : index
    %33 = arith.index_cast %32 : i32 to index
    %c0_26 = arith.constant 0 : index
    %c0_27 = arith.constant 0 : index
    %34 = vector.load %arg2[%c0_25, %33, %c0_26, %c0_27] : memref<1x10x10x128xbf16, #tpu.memory_space<vmem>>, vector<1x8x8x128xbf16>
    %35 = vector.shape_cast %34 : vector<1x8x8x128xbf16> to vector<8x8x128xbf16>
    %36 = vector.shape_cast %35 : vector<8x8x128xbf16> to vector<64x128xbf16>
    %c1_28 = arith.constant 1 : index
    %c0_29 = arith.constant 0 : index
    %c0_30 = arith.constant 0 : index
    %c0_31 = arith.constant 0 : index
    %37 = vector.load %arg3[%c1_28, %c0_29, %c0_30, %c0_31] : memref<3x3x128x128xbf16, #tpu.memory_space<vmem>>, vector<1x1x128x128xbf16>
    %38 = vector.shape_cast %37 : vector<1x1x128x128xbf16> to vector<128x128xbf16>
    %cst_32 = arith.constant dense<0.000000e+00> : vector<64x128xf32>
    %39 = tpu.matmul %36, %38, %cst_32 {dimension_numbers = #tpu.dot_dimension_numbers<[1], [0], [0], [1], [0, 0, 1, 1], [], []>} : vector<64x128xbf16>, vector<128x128xbf16>, vector<64x128xf32> -> vector<64x128xf32>
    %40 = arith.addf %31, %39 : vector<64x128xf32>
    %c1_i32_33 = arith.constant 1 : i32
    %41 = arith.addi %0, %c1_i32_33 : i32
    %c0_34 = arith.constant 0 : index
    %42 = arith.index_cast %41 : i32 to index
    %c1_35 = arith.constant 1 : index
    %c0_36 = arith.constant 0 : index
    %43 = vector.load %arg2[%c0_34, %42, %c1_35, %c0_36] : memref<1x10x10x128xbf16, #tpu.memory_space<vmem>>, vector<1x8x8x128xbf16>
    %44 = vector.shape_cast %43 : vector<1x8x8x128xbf16> to vector<8x8x128xbf16>
    %45 = vector.shape_cast %44 : vector<8x8x128xbf16> to vector<64x128xbf16>
    %c1_37 = arith.constant 1 : index
    %c1_38 = arith.constant 1 : index
    %c0_39 = arith.constant 0 : index
    %c0_40 = arith.constant 0 : index
    %46 = vector.load %arg3[%c1_37, %c1_38, %c0_39, %c0_40] : memref<3x3x128x128xbf16, #tpu.memory_space<vmem>>, vector<1x1x128x128xbf16>
    %47 = vector.shape_cast %46 : vector<1x1x128x128xbf16> to vector<128x128xbf16>
    %cst_41 = arith.constant dense<0.000000e+00> : vector<64x128xf32>
    %48 = tpu.matmul %45, %47, %cst_41 {dimension_numbers = #tpu.dot_dimension_numbers<[1], [0], [0], [1], [0, 0, 1, 1], [], []>} : vector<64x128xbf16>, vector<128x128xbf16>, vector<64x128xf32> -> vector<64x128xf32>
    %49 = arith.addf %40, %48 : vector<64x128xf32>
    %c1_i32_42 = arith.constant 1 : i32
    %50 = arith.addi %0, %c1_i32_42 : i32
    %c0_43 = arith.constant 0 : index
    %51 = arith.index_cast %50 : i32 to index
    %c2_44 = arith.constant 2 : index
    %c0_45 = arith.constant 0 : index
    %52 = vector.load %arg2[%c0_43, %51, %c2_44, %c0_45] : memref<1x10x10x128xbf16, #tpu.memory_space<vmem>>, vector<1x8x8x128xbf16>
    %53 = vector.shape_cast %52 : vector<1x8x8x128xbf16> to vector<8x8x128xbf16>
    %54 = vector.shape_cast %53 : vector<8x8x128xbf16> to vector<64x128xbf16>
    %c1_46 = arith.constant 1 : index
    %c2_47 = arith.constant 2 : index
    %c0_48 = arith.constant 0 : index
    %c0_49 = arith.constant 0 : index
    %55 = vector.load %arg3[%c1_46, %c2_47, %c0_48, %c0_49] : memref<3x3x128x128xbf16, #tpu.memory_space<vmem>>, vector<1x1x128x128xbf16>
    %56 = vector.shape_cast %55 : vector<1x1x128x128xbf16> to vector<128x128xbf16>
    %cst_50 = arith.constant dense<0.000000e+00> : vector<64x128xf32>
    %57 = tpu.matmul %54, %56, %cst_50 {dimension_numbers = #tpu.dot_dimension_numbers<[1], [0], [0], [1], [0, 0, 1, 1], [], []>} : vector<64x128xbf16>, vector<128x128xbf16>, vector<64x128xf32> -> vector<64x128xf32>
    %58 = arith.addf %49, %57 : vector<64x128xf32>
    %c2_i32 = arith.constant 2 : i32
    %59 = arith.addi %0, %c2_i32 : i32
    %c0_51 = arith.constant 0 : index
    %60 = arith.index_cast %59 : i32 to index
    %c0_52 = arith.constant 0 : index
    %c0_53 = arith.constant 0 : index
    %61 = vector.load %arg2[%c0_51, %60, %c0_52, %c0_53] : memref<1x10x10x128xbf16, #tpu.memory_space<vmem>>, vector<1x8x8x128xbf16>
    %62 = vector.shape_cast %61 : vector<1x8x8x128xbf16> to vector<8x8x128xbf16>
    %63 = vector.shape_cast %62 : vector<8x8x128xbf16> to vector<64x128xbf16>
    %c2_54 = arith.constant 2 : index
    %c0_55 = arith.constant 0 : index
    %c0_56 = arith.constant 0 : index
    %c0_57 = arith.constant 0 : index
    %64 = vector.load %arg3[%c2_54, %c0_55, %c0_56, %c0_57] : memref<3x3x128x128xbf16, #tpu.memory_space<vmem>>, vector<1x1x128x128xbf16>
    %65 = vector.shape_cast %64 : vector<1x1x128x128xbf16> to vector<128x128xbf16>
    %cst_58 = arith.constant dense<0.000000e+00> : vector<64x128xf32>
    %66 = tpu.matmul %63, %65, %cst_58 {dimension_numbers = #tpu.dot_dimension_numbers<[1], [0], [0], [1], [0, 0, 1, 1], [], []>} : vector<64x128xbf16>, vector<128x128xbf16>, vector<64x128xf32> -> vector<64x128xf32>
    %67 = arith.addf %58, %66 : vector<64x128xf32>
    %c2_i32_59 = arith.constant 2 : i32
    %68 = arith.addi %0, %c2_i32_59 : i32
    %c0_60 = arith.constant 0 : index
    %69 = arith.index_cast %68 : i32 to index
    %c1_61 = arith.constant 1 : index
    %c0_62 = arith.constant 0 : index
    %70 = vector.load %arg2[%c0_60, %69, %c1_61, %c0_62] : memref<1x10x10x128xbf16, #tpu.memory_space<vmem>>, vector<1x8x8x128xbf16>
    %71 = vector.shape_cast %70 : vector<1x8x8x128xbf16> to vector<8x8x128xbf16>
    %72 = vector.shape_cast %71 : vector<8x8x128xbf16> to vector<64x128xbf16>
    %c2_63 = arith.constant 2 : index
    %c1_64 = arith.constant 1 : index
    %c0_65 = arith.constant 0 : index
    %c0_66 = arith.constant 0 : index
    %73 = vector.load %arg3[%c2_63, %c1_64, %c0_65, %c0_66] : memref<3x3x128x128xbf16, #tpu.memory_space<vmem>>, vector<1x1x128x128xbf16>
    %74 = vector.shape_cast %73 : vector<1x1x128x128xbf16> to vector<128x128xbf16>
    %cst_67 = arith.constant dense<0.000000e+00> : vector<64x128xf32>
    %75 = tpu.matmul %72, %74, %cst_67 {dimension_numbers = #tpu.dot_dimension_numbers<[1], [0], [0], [1], [0, 0, 1, 1], [], []>} : vector<64x128xbf16>, vector<128x128xbf16>, vector<64x128xf32> -> vector<64x128xf32>
    %76 = arith.addf %67, %75 : vector<64x128xf32>
    %c2_i32_68 = arith.constant 2 : i32
    %77 = arith.addi %0, %c2_i32_68 : i32
    %c0_69 = arith.constant 0 : index
    %78 = arith.index_cast %77 : i32 to index
    %c2_70 = arith.constant 2 : index
    %c0_71 = arith.constant 0 : index
    %79 = vector.load %arg2[%c0_69, %78, %c2_70, %c0_71] : memref<1x10x10x128xbf16, #tpu.memory_space<vmem>>, vector<1x8x8x128xbf16>
    %80 = vector.shape_cast %79 : vector<1x8x8x128xbf16> to vector<8x8x128xbf16>
    %81 = vector.shape_cast %80 : vector<8x8x128xbf16> to vector<64x128xbf16>
    %c2_72 = arith.constant 2 : index
    %c2_73 = arith.constant 2 : index
    %c0_74 = arith.constant 0 : index
    %c0_75 = arith.constant 0 : index
    %82 = vector.load %arg3[%c2_72, %c2_73, %c0_74, %c0_75] : memref<3x3x128x128xbf16, #tpu.memory_space<vmem>>, vector<1x1x128x128xbf16>
    %83 = vector.shape_cast %82 : vector<1x1x128x128xbf16> to vector<128x128xbf16>
    %cst_76 = arith.constant dense<0.000000e+00> : vector<64x128xf32>
    %84 = tpu.matmul %81, %83, %cst_76 {dimension_numbers = #tpu.dot_dimension_numbers<[1], [0], [0], [1], [0, 0, 1, 1], [], []>} : vector<64x128xbf16>, vector<128x128xbf16>, vector<64x128xf32> -> vector<64x128xf32>
    %85 = arith.addf %76, %84 : vector<64x128xf32>
    %86 = vector.shape_cast %85 : vector<64x128xf32> to vector<8x8x128xf32>
    %87 = arith.truncf %86 : vector<8x8x128xf32> to vector<8x8x128xbf16>
    %c0_77 = arith.constant 0 : index
    %c0_78 = arith.constant 0 : index
    %c0_79 = arith.constant 0 : index
    %c0_80 = arith.constant 0 : index
    %88 = vector.load %arg5[%c0_77, %c0_78, %c0_79, %c0_80] : memref<1x8x8x128xbf16, #tpu.memory_space<vmem>>, vector<1x8x8x128xbf16>
    %89 = vector.shape_cast %88 : vector<1x8x8x128xbf16> to vector<8x8x128xbf16>
    %90 = vector.shape_cast %87 : vector<8x8x128xbf16> to vector<1x8x8x128xbf16>
    tpu.vector_store %arg5[%c0_77, %c0_78, %c0_79, %c0_80], %90 {strides = array<i32>} : memref<1x8x8x128xbf16, #tpu.memory_space<vmem>>, vector<1x8x8x128xbf16>,
    return
  }
  func.func @transform_0(%arg0: i32, %arg1: i32) -> (i32, i32, i32, i32) {
    %c0_i32 = arith.constant 0 : i32
    %c0_i32_0 = arith.constant 0 : i32
    %c0_i32_1 = arith.constant 0 : i32
    %c0_i32_2 = arith.constant 0 : i32
    return %arg0, %c0_i32, %c0_i32_0, %c0_i32_1 : i32, i32, i32, i32
  }
  func.func @transform_1(%arg0: i32, %arg1: i32) -> (i32, i32, i32, i32) {
    %c0_i32 = arith.constant 0 : i32
    %c0_i32_0 = arith.constant 0 : i32
    %c0_i32_1 = arith.constant 0 : i32
    %c0_i32_2 = arith.constant 0 : i32
    %c0_i32_3 = arith.constant 0 : i32
    return %c0_i32, %c0_i32_0, %c0_i32_1, %c0_i32_2 : i32, i32, i32, i32
  }
  func.func @transform_2(%arg0: i32, %arg1: i32) -> (i32, i32) {
    %c0_i32 = arith.constant 0 : i32
    %c0_i32_0 = arith.constant 0 : i32
    %c0_i32_1 = arith.constant 0 : i32
    return %c0_i32, %c0_i32_0 : i32, i32
  }
  func.func @transform_3(%arg0: i32, %arg1: i32) -> (i32, i32, i32, i32) {
    %c0_i32 = arith.constant 0 : i32
    %c0_i32_0 = arith.constant 0 : i32
    %c0_i32_1 = arith.constant 0 : i32
    return %arg0, %arg1, %c0_i32, %c0_i32_0 : i32, i32, i32, i32
  }
}

module attributes {stable_mosaic.version = 11 : i64} {
  func.func @_pool_sc_kernel(%arg0: i32, %arg1: memref<1x4x4x128xbf16, #tpu.memory_space<vmem>>, %arg2: memref<128x128xbf16, #tpu.memory_space<vmem>>, %arg3: memref<1x128xf32, #tpu.memory_space<vmem>>, %arg4: memref<1x4x2x4x256xbf16, #tpu.memory_space<vmem>>, %arg5: memref<1x4x4x128xbf16, #tpu.memory_space<vmem>>) attributes {dimension_semantics = [#tpu.dimension_semantics<parallel>], iteration_bounds = array<i64: 2>, scalar_prefetch = 0 : i64, scratch_operands = 0 : i64, tpu.core_type = #tpu.core_type<tc>, window_params = [{transform_indices = @transform_0, window_bounds = array<i64: 1, 4, 4, 128>}, {pipeline_mode = #tpu.pipeline_mode<synchronous>, transform_indices = @transform_1, window_bounds = array<i64: 128, 128>}, {pipeline_mode = #tpu.pipeline_mode<synchronous>, transform_indices = @transform_2, window_bounds = array<i64: 1, 128>}, {transform_indices = @transform_3, window_bounds = array<i64: 1, 4, 2, 4, 256>}, {transform_indices = @transform_4, window_bounds = array<i64: 1, 4, 4, 128>}]} {
    %c0 = arith.constant 0 : index
    %c0_0 = arith.constant 0 : index
    %c0_1 = arith.constant 0 : index
    %c0_2 = arith.constant 0 : index
    %0 = vector.load %arg1[%c0, %c0_0, %c0_1, %c0_2] : memref<1x4x4x128xbf16, #tpu.memory_space<vmem>>, vector<1x4x4x128xbf16>
    %1 = vector.shape_cast %0 : vector<1x4x4x128xbf16> to vector<4x4x128xbf16>
    %2 = vector.shape_cast %1 : vector<4x4x128xbf16> to vector<16x128xbf16>
    %c0_3 = arith.constant 0 : index
    %c0_4 = arith.constant 0 : index
    %3 = vector.load %arg2[%c0_3, %c0_4] : memref<128x128xbf16, #tpu.memory_space<vmem>>, vector<128x128xbf16>
    %cst = arith.constant dense<0.000000e+00> : vector<16x128xf32>
    %4 = tpu.matmul %2, %3, %cst {dimension_numbers = #tpu.dot_dimension_numbers<[1], [0], [0], [1], [0, 0, 1, 1], [], []>} : vector<16x128xbf16>, vector<128x128xbf16>, vector<16x128xf32> -> vector<16x128xf32>
    %c0_5 = arith.constant 0 : index
    %c0_6 = arith.constant 0 : index
    %5 = vector.load %arg3[%c0_5, %c0_6] : memref<1x128xf32, #tpu.memory_space<vmem>>, vector<1x128xf32>
    %6 = vector.broadcast %5 : vector<1x128xf32> to vector<16x128xf32>
    %7 = arith.addf %4, %6 : vector<16x128xf32>
    %c0_7 = arith.constant 0 : index
    %c0_8 = arith.constant 0 : index
    %c0_9 = arith.constant 0 : index
    %c0_10 = arith.constant 0 : index
    %c0_11 = arith.constant 0 : index
    %8 = vector.load %arg4[%c0_7, %c0_8, %c0_9, %c0_10, %c0_11] : memref<1x4x2x4x256xbf16, #tpu.memory_space<vmem>>, vector<1x4x1x4x256xbf16>
    %9 = vector.shape_cast %8 : vector<1x4x1x4x256xbf16> to vector<4x4x256xbf16>
    %10 = arith.extf %9 : vector<4x4x256xbf16> to vector<4x4x256xf32>
    %c0_12 = arith.constant 0 : index
    %c0_13 = arith.constant 0 : index
    %c1 = arith.constant 1 : index
    %c0_14 = arith.constant 0 : index
    %c0_15 = arith.constant 0 : index
    %11 = vector.load %arg4[%c0_12, %c0_13, %c1, %c0_14, %c0_15] : memref<1x4x2x4x256xbf16, #tpu.memory_space<vmem>>, vector<1x4x1x4x256xbf16>
    %12 = vector.shape_cast %11 : vector<1x4x1x4x256xbf16> to vector<4x4x256xbf16>
    %13 = arith.extf %12 : vector<4x4x256xbf16> to vector<4x4x256xf32>
    %14 = arith.addf %10, %13 : vector<4x4x256xf32>
    %15 = vector.extract_strided_slice %14 {offsets = [0, 0, 0], sizes = [4, 4, 128], strides = [1, 1, 1]} : vector<4x4x256xf32> to vector<4x4x128xf32>
    %16 = vector.extract_strided_slice %14 {offsets = [0, 0, 128], sizes = [4, 4, 128], strides = [1, 1, 1]} : vector<4x4x256xf32> to vector<4x4x128xf32>
    %17 = arith.addf %15, %16 : vector<4x4x128xf32>
    %cst_16 = arith.constant 2.500000e-01 : f32
    %18 = vector.broadcast %cst_16 : f32 to vector<4x4x128xf32>
    %19 = arith.mulf %17, %18 : vector<4x4x128xf32>
    %20 = vector.shape_cast %7 : vector<16x128xf32> to vector<4x4x128xf32>
    %21 = arith.addf %19, %20 : vector<4x4x128xf32>
    %22 = arith.truncf %21 : vector<4x4x128xf32> to vector<4x4x128xbf16>
    %c0_17 = arith.constant 0 : index
    %c0_18 = arith.constant 0 : index
    %c0_19 = arith.constant 0 : index
    %c0_20 = arith.constant 0 : index
    %23 = vector.load %arg5[%c0_17, %c0_18, %c0_19, %c0_20] : memref<1x4x4x128xbf16, #tpu.memory_space<vmem>>, vector<1x4x4x128xbf16>
    %24 = vector.shape_cast %23 : vector<1x4x4x128xbf16> to vector<4x4x128xbf16>
    %25 = vector.shape_cast %22 : vector<4x4x128xbf16> to vector<1x4x4x128xbf16>
    tpu.vector_store %arg5[%c0_17, %c0_18, %c0_19, %c0_20], %25 {strides = array<i32>} : memref<1x4x4x128xbf16, #tpu.memory_space<vmem>>, vector<1x4x4x128xbf16>,
    return
  }
  func.func @transform_0(%arg0: i32) -> (i32, i32, i32, i32) {
    %c0_i32 = arith.constant 0 : i32
    %c0_i32_0 = arith.constant 0 : i32
    %c0_i32_1 = arith.constant 0 : i32
    %c0_i32_2 = arith.constant 0 : i32
    return %arg0, %c0_i32, %c0_i32_0, %c0_i32_1 : i32, i32, i32, i32
  }
  func.func @transform_1(%arg0: i32) -> (i32, i32) {
    %c0_i32 = arith.constant 0 : i32
    %c0_i32_0 = arith.constant 0 : i32
    %c0_i32_1 = arith.constant 0 : i32
    return %c0_i32, %c0_i32_0 : i32, i32
  }
  func.func @transform_2(%arg0: i32) -> (i32, i32) {
    %c0_i32 = arith.constant 0 : i32
    %c0_i32_0 = arith.constant 0 : i32
    %c0_i32_1 = arith.constant 0 : i32
    return %c0_i32, %c0_i32_0 : i32, i32
  }
  func.func @transform_3(%arg0: i32) -> (i32, i32, i32, i32, i32) {
    %c0_i32 = arith.constant 0 : i32
    %c0_i32_0 = arith.constant 0 : i32
    %c0_i32_1 = arith.constant 0 : i32
    %c0_i32_2 = arith.constant 0 : i32
    %c0_i32_3 = arith.constant 0 : i32
    return %arg0, %c0_i32, %c0_i32_0, %c0_i32_1, %c0_i32_2 : i32, i32, i32, i32, i32
  }
  func.func @transform_4(%arg0: i32) -> (i32, i32, i32, i32) {
    %c0_i32 = arith.constant 0 : i32
    %c0_i32_0 = arith.constant 0 : i32
    %c0_i32_1 = arith.constant 0 : i32
    %c0_i32_2 = arith.constant 0 : i32
    return %arg0, %c0_i32, %c0_i32_0, %c0_i32_1 : i32, i32, i32, i32
  }
}

module attributes {stable_mosaic.version = 11 : i64} {
  func.func @_conv3x3_kernel(%arg0: i32, %arg1: i32, %arg2: memref<1x6x6x128xbf16, #tpu.memory_space<vmem>>, %arg3: memref<3x3x128x128xbf16, #tpu.memory_space<vmem>>, %arg4: memref<1x128xf32, #tpu.memory_space<vmem>>, %arg5: memref<1x4x4x128xbf16, #tpu.memory_space<vmem>>, %arg6: memref<1x4x4x128xbf16, #tpu.memory_space<vmem>>) attributes {dimension_semantics = [#tpu.dimension_semantics<parallel>, #tpu.dimension_semantics<arbitrary>], iteration_bounds = array<i64: 2, 1>, scalar_prefetch = 0 : i64, scratch_operands = 0 : i64, tpu.core_type = #tpu.core_type<tc>, window_params = [{transform_indices = @transform_0, window_bounds = array<i64: 1, 6, 6, 128>}, {pipeline_mode = #tpu.pipeline_mode<synchronous>, transform_indices = @transform_1, window_bounds = array<i64: 3, 3, 128, 128>}, {pipeline_mode = #tpu.pipeline_mode<synchronous>, transform_indices = @transform_2, window_bounds = array<i64: 1, 128>}, {transform_indices = @transform_3, window_bounds = array<i64: 1, 4, 4, 128>}, {transform_indices = @transform_4, window_bounds = array<i64: 1, 4, 4, 128>}]} {
    %c4_i32 = arith.constant 4 : i32
    %0 = arith.muli %arg1, %c4_i32 : i32
    %cst = arith.constant 0.000000e+00 : f32
    %1 = vector.broadcast %cst : f32 to vector<16x128xf32>
    %c0 = arith.constant 0 : index
    %c0_0 = arith.constant 0 : index
    %2 = vector.load %arg4[%c0, %c0_0] : memref<1x128xf32, #tpu.memory_space<vmem>>, vector<1x128xf32>
    %3 = vector.broadcast %2 : vector<1x128xf32> to vector<16x128xf32>
    %4 = arith.addf %1, %3 : vector<16x128xf32>
    %c0_i32 = arith.constant 0 : i32
    %5 = arith.addi %0, %c0_i32 : i32
    %c0_1 = arith.constant 0 : index
    %6 = arith.index_cast %5 : i32 to index
    %c0_2 = arith.constant 0 : index
    %c0_3 = arith.constant 0 : index
    %7 = vector.load %arg2[%c0_1, %6, %c0_2, %c0_3] : memref<1x6x6x128xbf16, #tpu.memory_space<vmem>>, vector<1x4x4x128xbf16>
    %8 = vector.shape_cast %7 : vector<1x4x4x128xbf16> to vector<4x4x128xbf16>
    %9 = vector.shape_cast %8 : vector<4x4x128xbf16> to vector<16x128xbf16>
    %c0_4 = arith.constant 0 : index
    %c0_5 = arith.constant 0 : index
    %c0_6 = arith.constant 0 : index
    %c0_7 = arith.constant 0 : index
    %10 = vector.load %arg3[%c0_4, %c0_5, %c0_6, %c0_7] : memref<3x3x128x128xbf16, #tpu.memory_space<vmem>>, vector<1x1x128x128xbf16>
    %11 = vector.shape_cast %10 : vector<1x1x128x128xbf16> to vector<128x128xbf16>
    %cst_8 = arith.constant dense<0.000000e+00> : vector<16x128xf32>
    %12 = tpu.matmul %9, %11, %cst_8 {dimension_numbers = #tpu.dot_dimension_numbers<[1], [0], [0], [1], [0, 0, 1, 1], [], []>} : vector<16x128xbf16>, vector<128x128xbf16>, vector<16x128xf32> -> vector<16x128xf32>
    %13 = arith.addf %4, %12 : vector<16x128xf32>
    %c0_i32_9 = arith.constant 0 : i32
    %14 = arith.addi %0, %c0_i32_9 : i32
    %c0_10 = arith.constant 0 : index
    %15 = arith.index_cast %14 : i32 to index
    %c1 = arith.constant 1 : index
    %c0_11 = arith.constant 0 : index
    %16 = vector.load %arg2[%c0_10, %15, %c1, %c0_11] : memref<1x6x6x128xbf16, #tpu.memory_space<vmem>>, vector<1x4x4x128xbf16>
    %17 = vector.shape_cast %16 : vector<1x4x4x128xbf16> to vector<4x4x128xbf16>
    %18 = vector.shape_cast %17 : vector<4x4x128xbf16> to vector<16x128xbf16>
    %c0_12 = arith.constant 0 : index
    %c1_13 = arith.constant 1 : index
    %c0_14 = arith.constant 0 : index
    %c0_15 = arith.constant 0 : index
    %19 = vector.load %arg3[%c0_12, %c1_13, %c0_14, %c0_15] : memref<3x3x128x128xbf16, #tpu.memory_space<vmem>>, vector<1x1x128x128xbf16>
    %20 = vector.shape_cast %19 : vector<1x1x128x128xbf16> to vector<128x128xbf16>
    %cst_16 = arith.constant dense<0.000000e+00> : vector<16x128xf32>
    %21 = tpu.matmul %18, %20, %cst_16 {dimension_numbers = #tpu.dot_dimension_numbers<[1], [0], [0], [1], [0, 0, 1, 1], [], []>} : vector<16x128xbf16>, vector<128x128xbf16>, vector<16x128xf32> -> vector<16x128xf32>
    %22 = arith.addf %13, %21 : vector<16x128xf32>
    %c0_i32_17 = arith.constant 0 : i32
    %23 = arith.addi %0, %c0_i32_17 : i32
    %c0_18 = arith.constant 0 : index
    %24 = arith.index_cast %23 : i32 to index
    %c2 = arith.constant 2 : index
    %c0_19 = arith.constant 0 : index
    %25 = vector.load %arg2[%c0_18, %24, %c2, %c0_19] : memref<1x6x6x128xbf16, #tpu.memory_space<vmem>>, vector<1x4x4x128xbf16>
    %26 = vector.shape_cast %25 : vector<1x4x4x128xbf16> to vector<4x4x128xbf16>
    %27 = vector.shape_cast %26 : vector<4x4x128xbf16> to vector<16x128xbf16>
    %c0_20 = arith.constant 0 : index
    %c2_21 = arith.constant 2 : index
    %c0_22 = arith.constant 0 : index
    %c0_23 = arith.constant 0 : index
    %28 = vector.load %arg3[%c0_20, %c2_21, %c0_22, %c0_23] : memref<3x3x128x128xbf16, #tpu.memory_space<vmem>>, vector<1x1x128x128xbf16>
    %29 = vector.shape_cast %28 : vector<1x1x128x128xbf16> to vector<128x128xbf16>
    %cst_24 = arith.constant dense<0.000000e+00> : vector<16x128xf32>
    %30 = tpu.matmul %27, %29, %cst_24 {dimension_numbers = #tpu.dot_dimension_numbers<[1], [0], [0], [1], [0, 0, 1, 1], [], []>} : vector<16x128xbf16>, vector<128x128xbf16>, vector<16x128xf32> -> vector<16x128xf32>
    %31 = arith.addf %22, %30 : vector<16x128xf32>
    %c1_i32 = arith.constant 1 : i32
    %32 = arith.addi %0, %c1_i32 : i32
    %c0_25 = arith.constant 0 : index
    %33 = arith.index_cast %32 : i32 to index
    %c0_26 = arith.constant 0 : index
    %c0_27 = arith.constant 0 : index
    %34 = vector.load %arg2[%c0_25, %33, %c0_26, %c0_27] : memref<1x6x6x128xbf16, #tpu.memory_space<vmem>>, vector<1x4x4x128xbf16>
    %35 = vector.shape_cast %34 : vector<1x4x4x128xbf16> to vector<4x4x128xbf16>
    %36 = vector.shape_cast %35 : vector<4x4x128xbf16> to vector<16x128xbf16>
    %c1_28 = arith.constant 1 : index
    %c0_29 = arith.constant 0 : index
    %c0_30 = arith.constant 0 : index
    %c0_31 = arith.constant 0 : index
    %37 = vector.load %arg3[%c1_28, %c0_29, %c0_30, %c0_31] : memref<3x3x128x128xbf16, #tpu.memory_space<vmem>>, vector<1x1x128x128xbf16>
    %38 = vector.shape_cast %37 : vector<1x1x128x128xbf16> to vector<128x128xbf16>
    %cst_32 = arith.constant dense<0.000000e+00> : vector<16x128xf32>
    %39 = tpu.matmul %36, %38, %cst_32 {dimension_numbers = #tpu.dot_dimension_numbers<[1], [0], [0], [1], [0, 0, 1, 1], [], []>} : vector<16x128xbf16>, vector<128x128xbf16>, vector<16x128xf32> -> vector<16x128xf32>
    %40 = arith.addf %31, %39 : vector<16x128xf32>
    %c1_i32_33 = arith.constant 1 : i32
    %41 = arith.addi %0, %c1_i32_33 : i32
    %c0_34 = arith.constant 0 : index
    %42 = arith.index_cast %41 : i32 to index
    %c1_35 = arith.constant 1 : index
    %c0_36 = arith.constant 0 : index
    %43 = vector.load %arg2[%c0_34, %42, %c1_35, %c0_36] : memref<1x6x6x128xbf16, #tpu.memory_space<vmem>>, vector<1x4x4x128xbf16>
    %44 = vector.shape_cast %43 : vector<1x4x4x128xbf16> to vector<4x4x128xbf16>
    %45 = vector.shape_cast %44 : vector<4x4x128xbf16> to vector<16x128xbf16>
    %c1_37 = arith.constant 1 : index
    %c1_38 = arith.constant 1 : index
    %c0_39 = arith.constant 0 : index
    %c0_40 = arith.constant 0 : index
    %46 = vector.load %arg3[%c1_37, %c1_38, %c0_39, %c0_40] : memref<3x3x128x128xbf16, #tpu.memory_space<vmem>>, vector<1x1x128x128xbf16>
    %47 = vector.shape_cast %46 : vector<1x1x128x128xbf16> to vector<128x128xbf16>
    %cst_41 = arith.constant dense<0.000000e+00> : vector<16x128xf32>
    %48 = tpu.matmul %45, %47, %cst_41 {dimension_numbers = #tpu.dot_dimension_numbers<[1], [0], [0], [1], [0, 0, 1, 1], [], []>} : vector<16x128xbf16>, vector<128x128xbf16>, vector<16x128xf32> -> vector<16x128xf32>
    %49 = arith.addf %40, %48 : vector<16x128xf32>
    %c1_i32_42 = arith.constant 1 : i32
    %50 = arith.addi %0, %c1_i32_42 : i32
    %c0_43 = arith.constant 0 : index
    %51 = arith.index_cast %50 : i32 to index
    %c2_44 = arith.constant 2 : index
    %c0_45 = arith.constant 0 : index
    %52 = vector.load %arg2[%c0_43, %51, %c2_44, %c0_45] : memref<1x6x6x128xbf16, #tpu.memory_space<vmem>>, vector<1x4x4x128xbf16>
    %53 = vector.shape_cast %52 : vector<1x4x4x128xbf16> to vector<4x4x128xbf16>
    %54 = vector.shape_cast %53 : vector<4x4x128xbf16> to vector<16x128xbf16>
    %c1_46 = arith.constant 1 : index
    %c2_47 = arith.constant 2 : index
    %c0_48 = arith.constant 0 : index
    %c0_49 = arith.constant 0 : index
    %55 = vector.load %arg3[%c1_46, %c2_47, %c0_48, %c0_49] : memref<3x3x128x128xbf16, #tpu.memory_space<vmem>>, vector<1x1x128x128xbf16>
    %56 = vector.shape_cast %55 : vector<1x1x128x128xbf16> to vector<128x128xbf16>
    %cst_50 = arith.constant dense<0.000000e+00> : vector<16x128xf32>
    %57 = tpu.matmul %54, %56, %cst_50 {dimension_numbers = #tpu.dot_dimension_numbers<[1], [0], [0], [1], [0, 0, 1, 1], [], []>} : vector<16x128xbf16>, vector<128x128xbf16>, vector<16x128xf32> -> vector<16x128xf32>
    %58 = arith.addf %49, %57 : vector<16x128xf32>
    %c2_i32 = arith.constant 2 : i32
    %59 = arith.addi %0, %c2_i32 : i32
    %c0_51 = arith.constant 0 : index
    %60 = arith.index_cast %59 : i32 to index
    %c0_52 = arith.constant 0 : index
    %c0_53 = arith.constant 0 : index
    %61 = vector.load %arg2[%c0_51, %60, %c0_52, %c0_53] : memref<1x6x6x128xbf16, #tpu.memory_space<vmem>>, vector<1x4x4x128xbf16>
    %62 = vector.shape_cast %61 : vector<1x4x4x128xbf16> to vector<4x4x128xbf16>
    %63 = vector.shape_cast %62 : vector<4x4x128xbf16> to vector<16x128xbf16>
    %c2_54 = arith.constant 2 : index
    %c0_55 = arith.constant 0 : index
    %c0_56 = arith.constant 0 : index
    %c0_57 = arith.constant 0 : index
    %64 = vector.load %arg3[%c2_54, %c0_55, %c0_56, %c0_57] : memref<3x3x128x128xbf16, #tpu.memory_space<vmem>>, vector<1x1x128x128xbf16>
    %65 = vector.shape_cast %64 : vector<1x1x128x128xbf16> to vector<128x128xbf16>
    %cst_58 = arith.constant dense<0.000000e+00> : vector<16x128xf32>
    %66 = tpu.matmul %63, %65, %cst_58 {dimension_numbers = #tpu.dot_dimension_numbers<[1], [0], [0], [1], [0, 0, 1, 1], [], []>} : vector<16x128xbf16>, vector<128x128xbf16>, vector<16x128xf32> -> vector<16x128xf32>
    %67 = arith.addf %58, %66 : vector<16x128xf32>
    %c2_i32_59 = arith.constant 2 : i32
    %68 = arith.addi %0, %c2_i32_59 : i32
    %c0_60 = arith.constant 0 : index
    %69 = arith.index_cast %68 : i32 to index
    %c1_61 = arith.constant 1 : index
    %c0_62 = arith.constant 0 : index
    %70 = vector.load %arg2[%c0_60, %69, %c1_61, %c0_62] : memref<1x6x6x128xbf16, #tpu.memory_space<vmem>>, vector<1x4x4x128xbf16>
    %71 = vector.shape_cast %70 : vector<1x4x4x128xbf16> to vector<4x4x128xbf16>
    %72 = vector.shape_cast %71 : vector<4x4x128xbf16> to vector<16x128xbf16>
    %c2_63 = arith.constant 2 : index
    %c1_64 = arith.constant 1 : index
    %c0_65 = arith.constant 0 : index
    %c0_66 = arith.constant 0 : index
    %73 = vector.load %arg3[%c2_63, %c1_64, %c0_65, %c0_66] : memref<3x3x128x128xbf16, #tpu.memory_space<vmem>>, vector<1x1x128x128xbf16>
    %74 = vector.shape_cast %73 : vector<1x1x128x128xbf16> to vector<128x128xbf16>
    %cst_67 = arith.constant dense<0.000000e+00> : vector<16x128xf32>
    %75 = tpu.matmul %72, %74, %cst_67 {dimension_numbers = #tpu.dot_dimension_numbers<[1], [0], [0], [1], [0, 0, 1, 1], [], []>} : vector<16x128xbf16>, vector<128x128xbf16>, vector<16x128xf32> -> vector<16x128xf32>
    %76 = arith.addf %67, %75 : vector<16x128xf32>
    %c2_i32_68 = arith.constant 2 : i32
    %77 = arith.addi %0, %c2_i32_68 : i32
    %c0_69 = arith.constant 0 : index
    %78 = arith.index_cast %77 : i32 to index
    %c2_70 = arith.constant 2 : index
    %c0_71 = arith.constant 0 : index
    %79 = vector.load %arg2[%c0_69, %78, %c2_70, %c0_71] : memref<1x6x6x128xbf16, #tpu.memory_space<vmem>>, vector<1x4x4x128xbf16>
    %80 = vector.shape_cast %79 : vector<1x4x4x128xbf16> to vector<4x4x128xbf16>
    %81 = vector.shape_cast %80 : vector<4x4x128xbf16> to vector<16x128xbf16>
    %c2_72 = arith.constant 2 : index
    %c2_73 = arith.constant 2 : index
    %c0_74 = arith.constant 0 : index
    %c0_75 = arith.constant 0 : index
    %82 = vector.load %arg3[%c2_72, %c2_73, %c0_74, %c0_75] : memref<3x3x128x128xbf16, #tpu.memory_space<vmem>>, vector<1x1x128x128xbf16>
    %83 = vector.shape_cast %82 : vector<1x1x128x128xbf16> to vector<128x128xbf16>
    %cst_76 = arith.constant dense<0.000000e+00> : vector<16x128xf32>
    %84 = tpu.matmul %81, %83, %cst_76 {dimension_numbers = #tpu.dot_dimension_numbers<[1], [0], [0], [1], [0, 0, 1, 1], [], []>} : vector<16x128xbf16>, vector<128x128xbf16>, vector<16x128xf32> -> vector<16x128xf32>
    %85 = arith.addf %76, %84 : vector<16x128xf32>
    %c0_77 = arith.constant 0 : index
    %c0_78 = arith.constant 0 : index
    %c0_79 = arith.constant 0 : index
    %c0_80 = arith.constant 0 : index
    %86 = vector.load %arg5[%c0_77, %c0_78, %c0_79, %c0_80] : memref<1x4x4x128xbf16, #tpu.memory_space<vmem>>, vector<1x4x4x128xbf16>
    %87 = vector.shape_cast %86 : vector<1x4x4x128xbf16> to vector<4x4x128xbf16>
    %88 = vector.shape_cast %87 : vector<4x4x128xbf16> to vector<16x128xbf16>
    %89 = arith.extf %88 : vector<16x128xbf16> to vector<16x128xf32>
    %90 = arith.addf %85, %89 : vector<16x128xf32>
    %91 = vector.shape_cast %90 : vector<16x128xf32> to vector<4x4x128xf32>
    %92 = arith.truncf %91 : vector<4x4x128xf32> to vector<4x4x128xbf16>
    %c0_81 = arith.constant 0 : index
    %c0_82 = arith.constant 0 : index
    %c0_83 = arith.constant 0 : index
    %c0_84 = arith.constant 0 : index
    %93 = vector.load %arg6[%c0_81, %c0_82, %c0_83, %c0_84] : memref<1x4x4x128xbf16, #tpu.memory_space<vmem>>, vector<1x4x4x128xbf16>
    %94 = vector.shape_cast %93 : vector<1x4x4x128xbf16> to vector<4x4x128xbf16>
    %95 = vector.shape_cast %92 : vector<4x4x128xbf16> to vector<1x4x4x128xbf16>
    tpu.vector_store %arg6[%c0_81, %c0_82, %c0_83, %c0_84], %95 {strides = array<i32>} : memref<1x4x4x128xbf16, #tpu.memory_space<vmem>>, vector<1x4x4x128xbf16>,
    return
  }
  func.func @transform_0(%arg0: i32, %arg1: i32) -> (i32, i32, i32, i32) {
    %c0_i32 = arith.constant 0 : i32
    %c0_i32_0 = arith.constant 0 : i32
    %c0_i32_1 = arith.constant 0 : i32
    %c0_i32_2 = arith.constant 0 : i32
    return %arg0, %c0_i32, %c0_i32_0, %c0_i32_1 : i32, i32, i32, i32
  }
  func.func @transform_1(%arg0: i32, %arg1: i32) -> (i32, i32, i32, i32) {
    %c0_i32 = arith.constant 0 : i32
    %c0_i32_0 = arith.constant 0 : i32
    %c0_i32_1 = arith.constant 0 : i32
    %c0_i32_2 = arith.constant 0 : i32
    %c0_i32_3 = arith.constant 0 : i32
    return %c0_i32, %c0_i32_0, %c0_i32_1, %c0_i32_2 : i32, i32, i32, i32
  }
  func.func @transform_2(%arg0: i32, %arg1: i32) -> (i32, i32) {
    %c0_i32 = arith.constant 0 : i32
    %c0_i32_0 = arith.constant 0 : i32
    %c0_i32_1 = arith.constant 0 : i32
    return %c0_i32, %c0_i32_0 : i32, i32
  }
  func.func @transform_3(%arg0: i32, %arg1: i32) -> (i32, i32, i32, i32) {
    %c0_i32 = arith.constant 0 : i32
    %c0_i32_0 = arith.constant 0 : i32
    %c0_i32_1 = arith.constant 0 : i32
    return %arg0, %arg1, %c0_i32, %c0_i32_0 : i32, i32, i32, i32
  }
  func.func @transform_4(%arg0: i32, %arg1: i32) -> (i32, i32, i32, i32) {
    %c0_i32 = arith.constant 0 : i32
    %c0_i32_0 = arith.constant 0 : i32
    %c0_i32_1 = arith.constant 0 : i32
    return %arg0, %arg1, %c0_i32, %c0_i32_0 : i32, i32, i32, i32
  }
}

module attributes {stable_mosaic.version = 11 : i64} {
  func.func @_conv3x3_kernel(%arg0: i32, %arg1: i32, %arg2: memref<1x6x6x128xbf16, #tpu.memory_space<vmem>>, %arg3: memref<3x3x128x128xbf16, #tpu.memory_space<vmem>>, %arg4: memref<1x128xf32, #tpu.memory_space<vmem>>, %arg5: memref<1x4x4x128xbf16, #tpu.memory_space<vmem>>) attributes {dimension_semantics = [#tpu.dimension_semantics<parallel>, #tpu.dimension_semantics<arbitrary>], iteration_bounds = array<i64: 2, 1>, scalar_prefetch = 0 : i64, scratch_operands = 0 : i64, tpu.core_type = #tpu.core_type<tc>, window_params = [{transform_indices = @transform_0, window_bounds = array<i64: 1, 6, 6, 128>}, {pipeline_mode = #tpu.pipeline_mode<synchronous>, transform_indices = @transform_1, window_bounds = array<i64: 3, 3, 128, 128>}, {pipeline_mode = #tpu.pipeline_mode<synchronous>, transform_indices = @transform_2, window_bounds = array<i64: 1, 128>}, {transform_indices = @transform_3, window_bounds = array<i64: 1, 4, 4, 128>}]} {
    %c4_i32 = arith.constant 4 : i32
    %0 = arith.muli %arg1, %c4_i32 : i32
    %cst = arith.constant 0.000000e+00 : f32
    %1 = vector.broadcast %cst : f32 to vector<16x128xf32>
    %c0 = arith.constant 0 : index
    %c0_0 = arith.constant 0 : index
    %2 = vector.load %arg4[%c0, %c0_0] : memref<1x128xf32, #tpu.memory_space<vmem>>, vector<1x128xf32>
    %3 = vector.broadcast %2 : vector<1x128xf32> to vector<16x128xf32>
    %4 = arith.addf %1, %3 : vector<16x128xf32>
    %c0_i32 = arith.constant 0 : i32
    %5 = arith.addi %0, %c0_i32 : i32
    %c0_1 = arith.constant 0 : index
    %6 = arith.index_cast %5 : i32 to index
    %c0_2 = arith.constant 0 : index
    %c0_3 = arith.constant 0 : index
    %7 = vector.load %arg2[%c0_1, %6, %c0_2, %c0_3] : memref<1x6x6x128xbf16, #tpu.memory_space<vmem>>, vector<1x4x4x128xbf16>
    %8 = vector.shape_cast %7 : vector<1x4x4x128xbf16> to vector<4x4x128xbf16>
    %cst_4 = arith.constant 0.000000e+00 : bf16
    %9 = vector.broadcast %cst_4 : bf16 to vector<4x4x128xbf16>
    %10 = arith.maximumf %8, %9 : vector<4x4x128xbf16>
    %11 = vector.shape_cast %10 : vector<4x4x128xbf16> to vector<16x128xbf16>
    %c0_5 = arith.constant 0 : index
    %c0_6 = arith.constant 0 : index
    %c0_7 = arith.constant 0 : index
    %c0_8 = arith.constant 0 : index
    %12 = vector.load %arg3[%c0_5, %c0_6, %c0_7, %c0_8] : memref<3x3x128x128xbf16, #tpu.memory_space<vmem>>, vector<1x1x128x128xbf16>
    %13 = vector.shape_cast %12 : vector<1x1x128x128xbf16> to vector<128x128xbf16>
    %cst_9 = arith.constant dense<0.000000e+00> : vector<16x128xf32>
    %14 = tpu.matmul %11, %13, %cst_9 {dimension_numbers = #tpu.dot_dimension_numbers<[1], [0], [0], [1], [0, 0, 1, 1], [], []>} : vector<16x128xbf16>, vector<128x128xbf16>, vector<16x128xf32> -> vector<16x128xf32>
    %15 = arith.addf %4, %14 : vector<16x128xf32>
    %c0_i32_10 = arith.constant 0 : i32
    %16 = arith.addi %0, %c0_i32_10 : i32
    %c0_11 = arith.constant 0 : index
    %17 = arith.index_cast %16 : i32 to index
    %c1 = arith.constant 1 : index
    %c0_12 = arith.constant 0 : index
    %18 = vector.load %arg2[%c0_11, %17, %c1, %c0_12] : memref<1x6x6x128xbf16, #tpu.memory_space<vmem>>, vector<1x4x4x128xbf16>
    %19 = vector.shape_cast %18 : vector<1x4x4x128xbf16> to vector<4x4x128xbf16>
    %cst_13 = arith.constant 0.000000e+00 : bf16
    %20 = vector.broadcast %cst_13 : bf16 to vector<4x4x128xbf16>
    %21 = arith.maximumf %19, %20 : vector<4x4x128xbf16>
    %22 = vector.shape_cast %21 : vector<4x4x128xbf16> to vector<16x128xbf16>
    %c0_14 = arith.constant 0 : index
    %c1_15 = arith.constant 1 : index
    %c0_16 = arith.constant 0 : index
    %c0_17 = arith.constant 0 : index
    %23 = vector.load %arg3[%c0_14, %c1_15, %c0_16, %c0_17] : memref<3x3x128x128xbf16, #tpu.memory_space<vmem>>, vector<1x1x128x128xbf16>
    %24 = vector.shape_cast %23 : vector<1x1x128x128xbf16> to vector<128x128xbf16>
    %cst_18 = arith.constant dense<0.000000e+00> : vector<16x128xf32>
    %25 = tpu.matmul %22, %24, %cst_18 {dimension_numbers = #tpu.dot_dimension_numbers<[1], [0], [0], [1], [0, 0, 1, 1], [], []>} : vector<16x128xbf16>, vector<128x128xbf16>, vector<16x128xf32> -> vector<16x128xf32>
    %26 = arith.addf %15, %25 : vector<16x128xf32>
    %c0_i32_19 = arith.constant 0 : i32
    %27 = arith.addi %0, %c0_i32_19 : i32
    %c0_20 = arith.constant 0 : index
    %28 = arith.index_cast %27 : i32 to index
    %c2 = arith.constant 2 : index
    %c0_21 = arith.constant 0 : index
    %29 = vector.load %arg2[%c0_20, %28, %c2, %c0_21] : memref<1x6x6x128xbf16, #tpu.memory_space<vmem>>, vector<1x4x4x128xbf16>
    %30 = vector.shape_cast %29 : vector<1x4x4x128xbf16> to vector<4x4x128xbf16>
    %cst_22 = arith.constant 0.000000e+00 : bf16
    %31 = vector.broadcast %cst_22 : bf16 to vector<4x4x128xbf16>
    %32 = arith.maximumf %30, %31 : vector<4x4x128xbf16>
    %33 = vector.shape_cast %32 : vector<4x4x128xbf16> to vector<16x128xbf16>
    %c0_23 = arith.constant 0 : index
    %c2_24 = arith.constant 2 : index
    %c0_25 = arith.constant 0 : index
    %c0_26 = arith.constant 0 : index
    %34 = vector.load %arg3[%c0_23, %c2_24, %c0_25, %c0_26] : memref<3x3x128x128xbf16, #tpu.memory_space<vmem>>, vector<1x1x128x128xbf16>
    %35 = vector.shape_cast %34 : vector<1x1x128x128xbf16> to vector<128x128xbf16>
    %cst_27 = arith.constant dense<0.000000e+00> : vector<16x128xf32>
    %36 = tpu.matmul %33, %35, %cst_27 {dimension_numbers = #tpu.dot_dimension_numbers<[1], [0], [0], [1], [0, 0, 1, 1], [], []>} : vector<16x128xbf16>, vector<128x128xbf16>, vector<16x128xf32> -> vector<16x128xf32>
    %37 = arith.addf %26, %36 : vector<16x128xf32>
    %c1_i32 = arith.constant 1 : i32
    %38 = arith.addi %0, %c1_i32 : i32
    %c0_28 = arith.constant 0 : index
    %39 = arith.index_cast %38 : i32 to index
    %c0_29 = arith.constant 0 : index
    %c0_30 = arith.constant 0 : index
    %40 = vector.load %arg2[%c0_28, %39, %c0_29, %c0_30] : memref<1x6x6x128xbf16, #tpu.memory_space<vmem>>, vector<1x4x4x128xbf16>
    %41 = vector.shape_cast %40 : vector<1x4x4x128xbf16> to vector<4x4x128xbf16>
    %cst_31 = arith.constant 0.000000e+00 : bf16
    %42 = vector.broadcast %cst_31 : bf16 to vector<4x4x128xbf16>
    %43 = arith.maximumf %41, %42 : vector<4x4x128xbf16>
    %44 = vector.shape_cast %43 : vector<4x4x128xbf16> to vector<16x128xbf16>
    %c1_32 = arith.constant 1 : index
    %c0_33 = arith.constant 0 : index
    %c0_34 = arith.constant 0 : index
    %c0_35 = arith.constant 0 : index
    %45 = vector.load %arg3[%c1_32, %c0_33, %c0_34, %c0_35] : memref<3x3x128x128xbf16, #tpu.memory_space<vmem>>, vector<1x1x128x128xbf16>
    %46 = vector.shape_cast %45 : vector<1x1x128x128xbf16> to vector<128x128xbf16>
    %cst_36 = arith.constant dense<0.000000e+00> : vector<16x128xf32>
    %47 = tpu.matmul %44, %46, %cst_36 {dimension_numbers = #tpu.dot_dimension_numbers<[1], [0], [0], [1], [0, 0, 1, 1], [], []>} : vector<16x128xbf16>, vector<128x128xbf16>, vector<16x128xf32> -> vector<16x128xf32>
    %48 = arith.addf %37, %47 : vector<16x128xf32>
    %c1_i32_37 = arith.constant 1 : i32
    %49 = arith.addi %0, %c1_i32_37 : i32
    %c0_38 = arith.constant 0 : index
    %50 = arith.index_cast %49 : i32 to index
    %c1_39 = arith.constant 1 : index
    %c0_40 = arith.constant 0 : index
    %51 = vector.load %arg2[%c0_38, %50, %c1_39, %c0_40] : memref<1x6x6x128xbf16, #tpu.memory_space<vmem>>, vector<1x4x4x128xbf16>
    %52 = vector.shape_cast %51 : vector<1x4x4x128xbf16> to vector<4x4x128xbf16>
    %cst_41 = arith.constant 0.000000e+00 : bf16
    %53 = vector.broadcast %cst_41 : bf16 to vector<4x4x128xbf16>
    %54 = arith.maximumf %52, %53 : vector<4x4x128xbf16>
    %55 = vector.shape_cast %54 : vector<4x4x128xbf16> to vector<16x128xbf16>
    %c1_42 = arith.constant 1 : index
    %c1_43 = arith.constant 1 : index
    %c0_44 = arith.constant 0 : index
    %c0_45 = arith.constant 0 : index
    %56 = vector.load %arg3[%c1_42, %c1_43, %c0_44, %c0_45] : memref<3x3x128x128xbf16, #tpu.memory_space<vmem>>, vector<1x1x128x128xbf16>
    %57 = vector.shape_cast %56 : vector<1x1x128x128xbf16> to vector<128x128xbf16>
    %cst_46 = arith.constant dense<0.000000e+00> : vector<16x128xf32>
    %58 = tpu.matmul %55, %57, %cst_46 {dimension_numbers = #tpu.dot_dimension_numbers<[1], [0], [0], [1], [0, 0, 1, 1], [], []>} : vector<16x128xbf16>, vector<128x128xbf16>, vector<16x128xf32> -> vector<16x128xf32>
    %59 = arith.addf %48, %58 : vector<16x128xf32>
    %c1_i32_47 = arith.constant 1 : i32
    %60 = arith.addi %0, %c1_i32_47 : i32
    %c0_48 = arith.constant 0 : index
    %61 = arith.index_cast %60 : i32 to index
    %c2_49 = arith.constant 2 : index
    %c0_50 = arith.constant 0 : index
    %62 = vector.load %arg2[%c0_48, %61, %c2_49, %c0_50] : memref<1x6x6x128xbf16, #tpu.memory_space<vmem>>, vector<1x4x4x128xbf16>
    %63 = vector.shape_cast %62 : vector<1x4x4x128xbf16> to vector<4x4x128xbf16>
    %cst_51 = arith.constant 0.000000e+00 : bf16
    %64 = vector.broadcast %cst_51 : bf16 to vector<4x4x128xbf16>
    %65 = arith.maximumf %63, %64 : vector<4x4x128xbf16>
    %66 = vector.shape_cast %65 : vector<4x4x128xbf16> to vector<16x128xbf16>
    %c1_52 = arith.constant 1 : index
    %c2_53 = arith.constant 2 : index
    %c0_54 = arith.constant 0 : index
    %c0_55 = arith.constant 0 : index
    %67 = vector.load %arg3[%c1_52, %c2_53, %c0_54, %c0_55] : memref<3x3x128x128xbf16, #tpu.memory_space<vmem>>, vector<1x1x128x128xbf16>
    %68 = vector.shape_cast %67 : vector<1x1x128x128xbf16> to vector<128x128xbf16>
    %cst_56 = arith.constant dense<0.000000e+00> : vector<16x128xf32>
    %69 = tpu.matmul %66, %68, %cst_56 {dimension_numbers = #tpu.dot_dimension_numbers<[1], [0], [0], [1], [0, 0, 1, 1], [], []>} : vector<16x128xbf16>, vector<128x128xbf16>, vector<16x128xf32> -> vector<16x128xf32>
    %70 = arith.addf %59, %69 : vector<16x128xf32>
    %c2_i32 = arith.constant 2 : i32
    %71 = arith.addi %0, %c2_i32 : i32
    %c0_57 = arith.constant 0 : index
    %72 = arith.index_cast %71 : i32 to index
    %c0_58 = arith.constant 0 : index
    %c0_59 = arith.constant 0 : index
    %73 = vector.load %arg2[%c0_57, %72, %c0_58, %c0_59] : memref<1x6x6x128xbf16, #tpu.memory_space<vmem>>, vector<1x4x4x128xbf16>
    %74 = vector.shape_cast %73 : vector<1x4x4x128xbf16> to vector<4x4x128xbf16>
    %cst_60 = arith.constant 0.000000e+00 : bf16
    %75 = vector.broadcast %cst_60 : bf16 to vector<4x4x128xbf16>
    %76 = arith.maximumf %74, %75 : vector<4x4x128xbf16>
    %77 = vector.shape_cast %76 : vector<4x4x128xbf16> to vector<16x128xbf16>
    %c2_61 = arith.constant 2 : index
    %c0_62 = arith.constant 0 : index
    %c0_63 = arith.constant 0 : index
    %c0_64 = arith.constant 0 : index
    %78 = vector.load %arg3[%c2_61, %c0_62, %c0_63, %c0_64] : memref<3x3x128x128xbf16, #tpu.memory_space<vmem>>, vector<1x1x128x128xbf16>
    %79 = vector.shape_cast %78 : vector<1x1x128x128xbf16> to vector<128x128xbf16>
    %cst_65 = arith.constant dense<0.000000e+00> : vector<16x128xf32>
    %80 = tpu.matmul %77, %79, %cst_65 {dimension_numbers = #tpu.dot_dimension_numbers<[1], [0], [0], [1], [0, 0, 1, 1], [], []>} : vector<16x128xbf16>, vector<128x128xbf16>, vector<16x128xf32> -> vector<16x128xf32>
    %81 = arith.addf %70, %80 : vector<16x128xf32>
    %c2_i32_66 = arith.constant 2 : i32
    %82 = arith.addi %0, %c2_i32_66 : i32
    %c0_67 = arith.constant 0 : index
    %83 = arith.index_cast %82 : i32 to index
    %c1_68 = arith.constant 1 : index
    %c0_69 = arith.constant 0 : index
    %84 = vector.load %arg2[%c0_67, %83, %c1_68, %c0_69] : memref<1x6x6x128xbf16, #tpu.memory_space<vmem>>, vector<1x4x4x128xbf16>
    %85 = vector.shape_cast %84 : vector<1x4x4x128xbf16> to vector<4x4x128xbf16>
    %cst_70 = arith.constant 0.000000e+00 : bf16
    %86 = vector.broadcast %cst_70 : bf16 to vector<4x4x128xbf16>
    %87 = arith.maximumf %85, %86 : vector<4x4x128xbf16>
    %88 = vector.shape_cast %87 : vector<4x4x128xbf16> to vector<16x128xbf16>
    %c2_71 = arith.constant 2 : index
    %c1_72 = arith.constant 1 : index
    %c0_73 = arith.constant 0 : index
    %c0_74 = arith.constant 0 : index
    %89 = vector.load %arg3[%c2_71, %c1_72, %c0_73, %c0_74] : memref<3x3x128x128xbf16, #tpu.memory_space<vmem>>, vector<1x1x128x128xbf16>
    %90 = vector.shape_cast %89 : vector<1x1x128x128xbf16> to vector<128x128xbf16>
    %cst_75 = arith.constant dense<0.000000e+00> : vector<16x128xf32>
    %91 = tpu.matmul %88, %90, %cst_75 {dimension_numbers = #tpu.dot_dimension_numbers<[1], [0], [0], [1], [0, 0, 1, 1], [], []>} : vector<16x128xbf16>, vector<128x128xbf16>, vector<16x128xf32> -> vector<16x128xf32>
    %92 = arith.addf %81, %91 : vector<16x128xf32>
    %c2_i32_76 = arith.constant 2 : i32
    %93 = arith.addi %0, %c2_i32_76 : i32
    %c0_77 = arith.constant 0 : index
    %94 = arith.index_cast %93 : i32 to index
    %c2_78 = arith.constant 2 : index
    %c0_79 = arith.constant 0 : index
    %95 = vector.load %arg2[%c0_77, %94, %c2_78, %c0_79] : memref<1x6x6x128xbf16, #tpu.memory_space<vmem>>, vector<1x4x4x128xbf16>
    %96 = vector.shape_cast %95 : vector<1x4x4x128xbf16> to vector<4x4x128xbf16>
    %cst_80 = arith.constant 0.000000e+00 : bf16
    %97 = vector.broadcast %cst_80 : bf16 to vector<4x4x128xbf16>
    %98 = arith.maximumf %96, %97 : vector<4x4x128xbf16>
    %99 = vector.shape_cast %98 : vector<4x4x128xbf16> to vector<16x128xbf16>
    %c2_81 = arith.constant 2 : index
    %c2_82 = arith.constant 2 : index
    %c0_83 = arith.constant 0 : index
    %c0_84 = arith.constant 0 : index
    %100 = vector.load %arg3[%c2_81, %c2_82, %c0_83, %c0_84] : memref<3x3x128x128xbf16, #tpu.memory_space<vmem>>, vector<1x1x128x128xbf16>
    %101 = vector.shape_cast %100 : vector<1x1x128x128xbf16> to vector<128x128xbf16>
    %cst_85 = arith.constant dense<0.000000e+00> : vector<16x128xf32>
    %102 = tpu.matmul %99, %101, %cst_85 {dimension_numbers = #tpu.dot_dimension_numbers<[1], [0], [0], [1], [0, 0, 1, 1], [], []>} : vector<16x128xbf16>, vector<128x128xbf16>, vector<16x128xf32> -> vector<16x128xf32>
    %103 = arith.addf %92, %102 : vector<16x128xf32>
    %cst_86 = arith.constant 0.000000e+00 : f32
    %104 = vector.broadcast %cst_86 : f32 to vector<16x128xf32>
    %105 = arith.maximumf %103, %104 : vector<16x128xf32>
    %106 = vector.shape_cast %105 : vector<16x128xf32> to vector<4x4x128xf32>
    %107 = arith.truncf %106 : vector<4x4x128xf32> to vector<4x4x128xbf16>
    %c0_87 = arith.constant 0 : index
    %c0_88 = arith.constant 0 : index
    %c0_89 = arith.constant 0 : index
    %c0_90 = arith.constant 0 : index
    %108 = vector.load %arg5[%c0_87, %c0_88, %c0_89, %c0_90] : memref<1x4x4x128xbf16, #tpu.memory_space<vmem>>, vector<1x4x4x128xbf16>
    %109 = vector.shape_cast %108 : vector<1x4x4x128xbf16> to vector<4x4x128xbf16>
    %110 = vector.shape_cast %107 : vector<4x4x128xbf16> to vector<1x4x4x128xbf16>
    tpu.vector_store %arg5[%c0_87, %c0_88, %c0_89, %c0_90], %110 {strides = array<i32>} : memref<1x4x4x128xbf16, #tpu.memory_space<vmem>>, vector<1x4x4x128xbf16>,
    return
  }
  func.func @transform_0(%arg0: i32, %arg1: i32) -> (i32, i32, i32, i32) {
    %c0_i32 = arith.constant 0 : i32
    %c0_i32_0 = arith.constant 0 : i32
    %c0_i32_1 = arith.constant 0 : i32
    %c0_i32_2 = arith.constant 0 : i32
    return %arg0, %c0_i32, %c0_i32_0, %c0_i32_1 : i32, i32, i32, i32
  }
  func.func @transform_1(%arg0: i32, %arg1: i32) -> (i32, i32, i32, i32) {
    %c0_i32 = arith.constant 0 : i32
    %c0_i32_0 = arith.constant 0 : i32
    %c0_i32_1 = arith.constant 0 : i32
    %c0_i32_2 = arith.constant 0 : i32
    %c0_i32_3 = arith.constant 0 : i32
    return %c0_i32, %c0_i32_0, %c0_i32_1, %c0_i32_2 : i32, i32, i32, i32
  }
  func.func @transform_2(%arg0: i32, %arg1: i32) -> (i32, i32) {
    %c0_i32 = arith.constant 0 : i32
    %c0_i32_0 = arith.constant 0 : i32
    %c0_i32_1 = arith.constant 0 : i32
    return %c0_i32, %c0_i32_0 : i32, i32
  }
  func.func @transform_3(%arg0: i32, %arg1: i32) -> (i32, i32, i32, i32) {
    %c0_i32 = arith.constant 0 : i32
    %c0_i32_0 = arith.constant 0 : i32
    %c0_i32_1 = arith.constant 0 : i32
    return %arg0, %arg1, %c0_i32, %c0_i32_0 : i32, i32, i32, i32
  }
}

module attributes {stable_mosaic.version = 11 : i64} {
  func.func @_head_kernel(%arg0: i32, %arg1: memref<2x4x4x128xbf16, #tpu.memory_space<vmem>>, %arg2: memref<128x128xf32, #tpu.memory_space<vmem>>, %arg3: memref<1x128xf32, #tpu.memory_space<vmem>>, %arg4: memref<2x128xf32, #tpu.memory_space<vmem>>) attributes {dimension_semantics = [#tpu.dimension_semantics<arbitrary>], iteration_bounds = array<i64: 1>, scalar_prefetch = 0 : i64, scratch_operands = 0 : i64, tpu.core_type = #tpu.core_type<tc>, window_params = [{pipeline_mode = #tpu.pipeline_mode<synchronous>, transform_indices = @transform_0, window_bounds = array<i64: 2, 4, 4, 128>}, {pipeline_mode = #tpu.pipeline_mode<synchronous>, transform_indices = @transform_1, window_bounds = array<i64: 128, 128>}, {pipeline_mode = #tpu.pipeline_mode<synchronous>, transform_indices = @transform_2, window_bounds = array<i64: 1, 128>}, {pipeline_mode = #tpu.pipeline_mode<synchronous>, transform_indices = @transform_3, window_bounds = array<i64: 2, 128>}]} {
    %c0 = arith.constant 0 : index
    %c0_0 = arith.constant 0 : index
    %c0_1 = arith.constant 0 : index
    %c0_2 = arith.constant 0 : index
    %0 = vector.load %arg1[%c0, %c0_0, %c0_1, %c0_2] : memref<2x4x4x128xbf16, #tpu.memory_space<vmem>>, vector<2x4x4x128xbf16>
    %1 = arith.extf %0 : vector<2x4x4x128xbf16> to vector<2x4x4x128xf32>
    %cst = arith.constant 0.000000e+00 : f32
    %2 = vector.broadcast %cst : f32 to vector<2x4x4x128xf32>
    %3 = arith.maximumf %1, %2 : vector<2x4x4x128xf32>
    %cst_3 = arith.constant dense<0.000000e+00> : vector<2x128xf32>
    %4 = vector.multi_reduction <add>, %3, %cst_3 [1, 2] : vector<2x4x4x128xf32> to vector<2x128xf32>
    %c0_4 = arith.constant 0 : index
    %c0_5 = arith.constant 0 : index
    %5 = vector.load %arg2[%c0_4, %c0_5] : memref<128x128xf32, #tpu.memory_space<vmem>>, vector<128x128xf32>
    %cst_6 = arith.constant dense<0.000000e+00> : vector<2x128xf32>
    %6 = tpu.matmul %4, %5, %cst_6 {dimension_numbers = #tpu.dot_dimension_numbers<[1], [0], [0], [1], [0, 0, 1, 1], [], []>} : vector<2x128xf32>, vector<128x128xf32>, vector<2x128xf32> -> vector<2x128xf32>
    %c0_7 = arith.constant 0 : index
    %c0_8 = arith.constant 0 : index
    %7 = vector.load %arg3[%c0_7, %c0_8] : memref<1x128xf32, #tpu.memory_space<vmem>>, vector<1x128xf32>
    %8 = vector.broadcast %7 : vector<1x128xf32> to vector<2x128xf32>
    %9 = arith.addf %6, %8 : vector<2x128xf32>
    %c0_9 = arith.constant 0 : index
    %c0_10 = arith.constant 0 : index
    %10 = vector.load %arg4[%c0_9, %c0_10] : memref<2x128xf32, #tpu.memory_space<vmem>>, vector<2x128xf32>
    tpu.vector_store %arg4[%c0_9, %c0_10], %9 {strides = array<i32>} : memref<2x128xf32, #tpu.memory_space<vmem>>, vector<2x128xf32>,
    return
  }
  func.func @transform_0(%arg0: i32) -> (i32, i32, i32, i32) {
    %c0_i32 = arith.constant 0 : i32
    %c0_i32_0 = arith.constant 0 : i32
    %c0_i32_1 = arith.constant 0 : i32
    %c0_i32_2 = arith.constant 0 : i32
    %c0_i32_3 = arith.constant 0 : i32
    return %c0_i32, %c0_i32_0, %c0_i32_1, %c0_i32_2 : i32, i32, i32, i32
  }
  func.func @transform_1(%arg0: i32) -> (i32, i32) {
    %c0_i32 = arith.constant 0 : i32
    %c0_i32_0 = arith.constant 0 : i32
    %c0_i32_1 = arith.constant 0 : i32
    return %c0_i32, %c0_i32_0 : i32, i32
  }
  func.func @transform_2(%arg0: i32) -> (i32, i32) {
    %c0_i32 = arith.constant 0 : i32
    %c0_i32_0 = arith.constant 0 : i32
    %c0_i32_1 = arith.constant 0 : i32
    return %c0_i32, %c0_i32_0 : i32, i32
  }
  func.func @transform_3(%arg0: i32) -> (i32, i32) {
    %c0_i32 = arith.constant 0 : i32
    %c0_i32_0 = arith.constant 0 : i32
    %c0_i32_1 = arith.constant 0 : i32
    return %c0_i32, %c0_i32_0 : i32, i32
  }
}

</mosaic_0001>

<bundles_post_ra>
// kernel: discriminator_forward.13
= control target key start
LH: loop header
LB: loop body
LE: loop exit
PB: predicated region body
PF: predicated region fallthrough
CT: control target
= control target key end

     0   :  { %s632_s15 = smov 0   ;;  %s684_s0 = inlined_call_operand.vmem [shape: bf16[2,8,8,3], index: 0, kind: input, shape index: {}]   ;;  %s685_s1 = inlined_call_operand.vmem [shape: bf16[3,128], index: 1, kind: input, shape index: {}]   ;;  %s686_s2 = inlined_call_operand.vmem [shape: f32[1,128], index: 2, kind: input, shape index: {}]   ;;  %s687_s3 = inlined_call_operand.vmem [shape: bf16[2,8,2,8,256], index: 3, kind: input, shape index: {}]   ;;  %s688_s4 = inlined_call_operand.vmem [shape: bf16[2,8,8,128], index: 4, kind: output, shape index: {}]  }
   0x1 LB: > { %s512_s16 = sadd.s32 4294967295, %s604_s15   ;;  %p516_p0 = scmp.ge.s32.totalorder %s604_s15, 1  ;;  %s604_s15 = sphi %s632_s15, %s14_s15  }
   0x2   : > { %p172_p1 = scmp.lt.s32.totalorder %s604_s15, 3 }
   0x4   : > { %p173_p2 = pnand %p516_p0, %p172_p1 }
   0x5   : > { %p203_p3 = scmp.lt.s32.totalorder (!%p173_p2), %s512_s16, 1 }
   0x6   : > { %176 = sbr.rel (%p173_p2) target bundleno = 226 (0xe2), region = 36 }
   0xb   : > { %v227_v0 = vld [vmem:[%s685_s1] sm:$0x3]  ;;  %vm268_vm0 = vcmask 1040384   ;;  %vm269_vm1 = vcmask 1041408   ;;  %v606_v1 = vmov 65535   ;;  %s690_s16 = smov (!%p203_p3, %s512_s16), 1 }
   0xc   : > { %v270_v2 = vsel %vm268_vm0, 4294967295, %v606_v1  ;;  %s542_s19 = sshll.u32 %s690_s16, 5  ;;  %vm255_vm2 = vcmask 23552   ;;  %s543_s23 = sshll.u32 %s690_s16, 7 }
   0xd   : > { %v271_v3 = vsel %vm269_vm1, %v270_v2, 0  ;;  %s207_s22 = scalar_lea.vmem %s684_s0, %s542_s19  ;;  %s655_s26 = scalar_lea.vmem %s687_s3, %s543_s23 }
   0xe   : > { %v273_v4 = vand.u32 %v271_v3, %v227_v0  ;;  %v594_v5 = vld [vmem:[%s207_s22] sm:$0xff]   ;;  %v595_v6 = vld [vmem:[%s207_s22 + $0x10] sm:$0xff]   ;;  %v596_v7 = vld [vmem:[%s207_s22 + $0x8] sm:$0xff]   ;;  %s217_s5 = scalar_lea.vmem %s688_s4, %s542_s19 }
   0xf   : > { %575 = vmatprep.mubr.msk.bf16.mxu0 %vm255_vm2, %v594_v5  ;;  %579 = vmatprep.mubr.msk.bf16.mxu1 %vm255_vm2, %v595_v6  ;;  %v597_v8 = vld [vmem:[%s207_s22 + $0x18] sm:$0xff]   ;;  %v342_v9 = vld [vmem:[%s655_s26 + $0x20] sm:$0xff]  ;;  %v534_v10 = vld [vmem:[%s655_s26 + $0x28] sm:$0xff] }
  0x10   : > { %573 = vmatprep.subr.bf16.mxu0 %v273_v4  ;;  %583 = vmatprep.subr.bf16.mxu1 %v273_v4  ;;  %v346_v11 = vld [vmem:[%s655_s26 + $0x60] sm:$0xff]  ;;  %v538_v12 = vld [vmem:[%s655_s26 + $0x68] sm:$0xff]  ;;  %v352_v15 = vunpack.c.l.bf16 %v342_v9  ;;  %v353_v16 = vunpack.c.h.bf16 %v342_v9  ;;  %v377_v17 = vunpack.c.l.bf16 %v534_v10  ;;  %v378_v18 = vunpack.c.h.bf16 %v534_v10  ;;  %v343_v25 = vld [vmem:[%s655_s26 + $0x30] sm:$0xff] }
  0x11   : > { %574 = vmatpush3.bf16.msra.mxu0 %v273_v4  ;;  %584 = vmatpush3.bf16.msra.mxu1 %v273_v4  ;;  %v340_v13 = vld [vmem:[%s655_s26] sm:$0xff]  ;;  %v532_v14 = vld [vmem:[%s655_s26 + $0x8] sm:$0xff]  ;;  %v360_v21 = vunpack.c.l.bf16 %v346_v11  ;;  %v361_v22 = vunpack.c.h.bf16 %v346_v11  ;;  %v385_v23 = vunpack.c.l.bf16 %v538_v12  ;;  %v386_v24 = vunpack.c.h.bf16 %v538_v12  ;;  %v535_v26 = vld [vmem:[%s655_s26 + $0x38] sm:$0xff] }
  0x12   : > { %v344_v19 = vld [vmem:[%s655_s26 + $0x40] sm:$0xff]  ;;  %v536_v20 = vld [vmem:[%s655_s26 + $0x48] sm:$0xff]  ;;  %v348_v27 = vunpack.c.l.bf16 %v340_v13  ;;  %v349_v28 = vunpack.c.h.bf16 %v340_v13  ;;  %v373_v29 = vunpack.c.l.bf16 %v532_v14  ;;  %v374_v30 = vunpack.c.h.bf16 %v532_v14  ;;  %v347_v31 = vld [vmem:[%s655_s26 + $0x70] sm:$0xff] }
  0x13   : > { %v539_v32 = vld [vmem:[%s655_s26 + $0x78] sm:$0xff]  ;;  %v356_v33 = vunpack.c.l.bf16 %v344_v19  ;;  %v357_v34 = vunpack.c.h.bf16 %v344_v19  ;;  %v381_v35 = vunpack.c.l.bf16 %v536_v20  ;;  %v382_v36 = vunpack.c.h.bf16 %v536_v20  ;;  %v341_v37 = vld [vmem:[%s655_s26 + $0x10] sm:$0xff]  ;;  %v523_v12 = vld [vmem:[%s686_s2] ss:$0 sm:$0xff] }
  0x14   : > { %576 = vmatmul.mubr.msk.bf16.vlgmr.msra.gmra.mxu0 %vm255_vm2, %v596_v7  ;;  %580 = vmatmul.mubr.msk.bf16.vlgmr.msra.gmra.mxu1 %vm255_vm2, %v597_v8  ;;  %v533_v38 = vld [vmem:[%s655_s26 + $0x18] sm:$0xff]  ;;  %v354_v39 = vunpack.c.l.bf16 %v343_v25  ;;  %v355_v40 = vunpack.c.h.bf16 %v343_v25  ;;  %v379_v41 = vunpack.c.l.bf16 %v535_v26  ;;  %v380_v42 = vunpack.c.h.bf16 %v535_v26  ;;  %v345_v43 = vld [vmem:[%s655_s26 + $0x50] sm:$0xff] }
  0x15   : > { %v537_v44 = vld [vmem:[%s655_s26 + $0x58] sm:$0xff]  ;;  %v362_v45 = vunpack.c.l.bf16 %v347_v31  ;;  %v363_v46 = vunpack.c.h.bf16 %v347_v31  ;;  %v387_v47 = vunpack.c.l.bf16 %v539_v32  ;;  %v388_v48 = vunpack.c.h.bf16 %v539_v32 }
  0x16   : > { %v350_v49 = vunpack.c.l.bf16 %v341_v37  ;;  %v351_v50 = vunpack.c.h.bf16 %v341_v37  ;;  %v375_v51 = vunpack.c.l.bf16 %v533_v38  ;;  %v376_v52 = vunpack.c.h.bf16 %v533_v38 }
  0x17   : > { %v358_v53 = vunpack.c.l.bf16 %v345_v43  ;;  %v359_v54 = vunpack.c.h.bf16 %v345_v43  ;;  %v383_v55 = vunpack.c.l.bf16 %v537_v44  ;;  %v384_v56 = vunpack.c.h.bf16 %v537_v44 }
  0x18   : > { %v393_v57 = vadd.f32 %v377_v17, %v352_v15  ;;  %v394_v58 = vadd.f32 %v378_v18, %v353_v16  ;;  %v395_v59 = vadd.f32 %v379_v41, %v354_v39  ;;  %v396_v60 = vadd.f32 %v380_v42, %v355_v40 }
  0x19   : > { %v401_v61 = vadd.f32 %v385_v23, %v360_v21  ;;  %v402_v62 = vadd.f32 %v386_v24, %v361_v22  ;;  %v403_v63 = vadd.f32 %v387_v47, %v362_v45  ;;  %v404_v0 = vadd.f32 %v388_v48, %v363_v46 }
  0x1a   : > { %v389_v1 = vadd.f32 %v373_v29, %v348_v27  ;;  %v390_v2 = vadd.f32 %v374_v30, %v349_v28  ;;  %v391_v3 = vadd.f32 %v375_v51, %v350_v49  ;;  %v392_v4 = vadd.f32 %v376_v52, %v351_v50 }
  0x1b   : > { %v397_v5 = vadd.f32 %v381_v35, %v356_v33  ;;  %v398_v6 = vadd.f32 %v382_v36, %v357_v34  ;;  %v399_v7 = vadd.f32 %v383_v55, %v358_v53  ;;  %v400_v8 = vadd.f32 %v384_v56, %v359_v54 }
  0x1c   : > { %v407_v9 = vadd.f32 %v394_v58, %v393_v57  ;;  %v408_v10 = vadd.f32 %v396_v60, %v395_v59  ;;  %v411_v13 = vadd.f32 %v402_v62, %v401_v61  ;;  %v412_v14 = vadd.f32 %v404_v0, %v403_v63 }
  0x1d   : > { %v405_v16 = vadd.f32 %v390_v2, %v389_v1  ;;  %v406_v17 = vadd.f32 %v392_v4, %v391_v3  ;;  %v409_v19 = vadd.f32 %v398_v6, %v397_v5  ;;  %v410_v20 = vadd.f32 %v400_v8, %v399_v7 }
  0x1e   : > { %v415_v22 = vmul.f32 0.25, %v407_v9  ;;  %v416_v24 = vmul.f32 0.25, %v408_v10  ;;  %v419_v26 = vmul.f32 0.25, %v411_v13  ;;  %v420_v28 = vmul.f32 0.25, %v412_v14 }
  0x1f   : > { %v413_v30 = vmul.f32 0.25, %v405_v16  ;;  %v414_v33 = vmul.f32 0.25, %v406_v17  ;;  %v417_v35 = vmul.f32 0.25, %v409_v19  ;;  %v418_v38 = vmul.f32 0.25, %v410_v20 }
  0xd4   : > { %v577_v11 = vpop.f32.mrf.mxu0  ;;  %v581_v15 = vpop.f32.mrf.mxu1 }
  0xd5   : > { %v318_v21 = vadd.f32 %v577_v11, %v523_v12  ;;  %v334_v25 = vadd.f32 %v581_v15, %v523_v12 }
  0xd6   : > { %v309_v18 = vpop.f32.mrf.mxu0  ;;  %v325_v23 = vpop.f32.mrf.mxu1 }
  0xd7   : > { %v310_v29 = vadd.f32 %v523_v12, %v309_v18  ;;  %v326_v34 = vadd.f32 %v523_v12, %v325_v23  ;;  %v423_v39 = vadd.f32 %v415_v22, %v318_v21  ;;  %v427_v43 = vadd.f32 %v419_v26, %v334_v25 }
  0xd8   : > { %v578_v27 = vpop.f32.mrf.mxu0  ;;  %v582_v32 = vpop.f32.mrf.mxu1 }
  0xd9   : > { %v321_v31 = vadd.f32 %v578_v27, %v523_v12  ;;  %v337_v36 = vadd.f32 %v582_v32, %v523_v12  ;;  %v421_v46 = vadd.f32 %v413_v30, %v310_v29  ;;  %v425_v49 = vadd.f32 %v417_v35, %v326_v34 }
  0xda   : > { %v312_v37 = vpop.f32.mrf.mxu0  ;;  %v328_v42 = vpop.f32.mrf.mxu1 }
  0xdb   : > { %v424_v40 = vadd.f32 %v416_v24, %v321_v31  ;;  %v313_v41 = vadd.f32 %v523_v12, %v312_v37  ;;  %v428_v44 = vadd.f32 %v420_v28, %v337_v36  ;;  %v329_v45 = vadd.f32 %v523_v12, %v328_v42 }
  0xdd   : > { %v553_v47 = vpack.c.bf16 %v424_v40, %v423_v39  ;;  %v422_v48 = vadd.f32 %v414_v33, %v313_v41  ;;  %v563_v50 = vpack.c.bf16 %v428_v44, %v427_v43  ;;  %v426_v51 = vadd.f32 %v418_v38, %v329_v45 }
  0xdf   : > { %565 = vst [vmem:[%s217_s5 + $0x8] sm:$0xff] %v553_v47   ;;  %v548_v52 = vpack.c.bf16 %v422_v48, %v421_v46  ;;  %567 = vst [vmem:[%s217_s5 + $0x18] sm:$0xff] %v563_v50   ;;  %v558_v53 = vpack.c.bf16 %v426_v51, %v425_v49 }
  0xe1   : > { %549 = vst [vmem:[%s217_s5] sm:$0xff] %v548_v52   ;;  %566 = vst [vmem:[%s217_s5 + $0x10] sm:$0xff] %v558_v53  }
  0xe2 PF: > { %s14_s15 = sadd.s32 1, %s604_s15  }
  0xe3   : > { %p11_p4 = scmp.ge.s32.totalorder %s14_s15, 4  }
  0xe5   :  { %13 = sbr.rel (!%p11_p4) target bundleno = 1 (0x1), region = 70 }

// kernel: discriminator_forward.11
= control target key start
LH: loop header
LB: loop body
LE: loop exit
PB: predicated region body
PF: predicated region fallthrough
CT: control target
= control target key end

     0   :  { %s3669_s12 = smov 0   ;;  %s3671_s13 = smov 0   ;;  %s4553_s0 = inlined_call_operand.vmem [shape: bf16[2,18,18,3], index: 0, kind: input, shape index: {}]   ;;  %s4554_s1 = inlined_call_operand.vmem [shape: bf16[3,3,3,128], index: 1, kind: input, shape index: {}]   ;;  %s4555_s2 = inlined_call_operand.vmem [shape: f32[1,128], index: 2, kind: input, shape index: {}]   ;;  %s4556_s3 = inlined_call_operand.vmem [shape: bf16[2,16,16,128], index: 3, kind: output, shape index: {}]  }
   0x1   :  { %s3673_s14 = smov 0   ;;  %s3675_s15 = smov 0  }
   0x2   :  { %s3677_s16 = smov 0  }
   0x3 LB: > { %s22_s17 = sadd.s32 1, %s3638_s14  ;;  %s25_s18 = sadd.s32 1, %s3642_s15  ;;  %s3646_s16 = sphi %s3677_s16, %s13_s16   ;;  %s3642_s15 = sphi %s3675_s15, %s4600_s15   ;;  %s3638_s14 = sphi %s3673_s14, %s4599_s14   ;;  %s3634_s13 = sphi %s3671_s13, %s4598_s13   ;;  %s3630_s12 = sphi %s3669_s12, %s4597_s12  }
   0x4   : > { %p23_p0 = scmp.ge.s32.totalorder %s22_s17, 2  ;;  %p2929_p1 = scmp.ge.s32.totalorder %s3646_s16, 1 }
   0x5   : > { %p151_p2 = scmp.lt.s32.totalorder %s3646_s16, 5 }
   0x6   : > { %s4602_s17 = smov (%p23_p0, %s22_s17), 0  ;;  %s4604_s18 = smov (!%p23_p0, %s25_s18), %s3642_s15 }
   0x7   : > { %p152_p3 = pnand %p2929_p1, %p151_p2  ;;  %p27_p4 = scmp.ge.s32.totalorder %s4604_s18, 2 }
   0x9   : > { %s4606_s18 = smov (%p27_p4, %s4604_s18), 0  ;;  %155 = sbr.rel (%p152_p3) target bundleno = 383 (0x17f), region = 32 }
   0xe   : > { %v225_v0 = vld [vmem:[%s4554_s1] sm:$0x3]  ;;  %vm291_vm0 = vcmask 1040384   ;;  %vm292_vm1 = vcmask 1041408   ;;  %p180_p5 = scmp.lt.s32.totalorder %s3634_s13, 1  ;;  %v3648_v1 = vmov 65535  }
   0xf   : > { %v293_v2 = vsel %vm291_vm0, 4294967295, %v3648_v1  ;;  %v2955_v3 = vld [vmem:[%s4554_s1 + $0x2] sm:$0x3]  ;;  %v2980_v5 = vld [vmem:[%s4554_s1 + $0x4] sm:$0x3]  ;;  %s3233_s25 = smul.u32 96, %s3630_s12 }
  0x10   : > { %v294_v4 = vsel %vm292_vm1, %v293_v2, 0  ;;  %s4608_s13 = smov (!%p180_p5, %s3634_s13), 1  ;;  %vm266_vm2 = vcmask 23552   ;;  %v3015_v9 = vld [vmem:[%s4554_s1 + $0x6] sm:$0x3]  ;;  %vm828_vm5 = vcmask 1042432  }
  0x11   : > { %v296_v6 = vand.u32 %v294_v4, %v225_v0  ;;  %v681_v7 = vand.u32 %v2955_v3, %v294_v4  ;;  %v938_v8 = vand.u32 %v2980_v5, %v294_v4  ;;  %s3542_s26 = smul.u32 216, %s4608_s13  ;;  %v3056_v10 = vld [vmem:[%s4554_s1 + $0x8] sm:$0x3]  ;;  %vm435_vm3 = vsmask.f32 3328 }
  0x12   : > { %vm436_vm4 = vsmask.f32 7440  ;;  %v3731_v15 = vand.u32 %v3015_v9, %v294_v4  ;;  %v3089_v16 = vld [vmem:[%s4554_s1 + $0xa] sm:$0x3]  ;;  %v3124_v17 = vld [vmem:[%s4554_s1 + $0xc] sm:$0x3]  ;;  %v3747_v21 = vand.u32 %v3056_v10, %v294_v4 }
  0x13   : > { %3540 = vmatprep.subr.bf16.mxu1 %v296_v6  ;;  %3378 = vmatprep.subr.bf16.mxu0 %v296_v6  ;;  %s184_s29 = scalar_lea.vmem %s4553_s0, %s3542_s26  ;;  %v3165_v18 = vld [vmem:[%s4554_s1 + $0xe] sm:$0x3]  ;;  %v3198_v19 = vld [vmem:[%s4554_s1 + $0x10] sm:$0x3]  ;;  %vm829_vm6 = vcmask 1046532   ;;  %v3760_v28 = vand.u32 %v3089_v16, %v294_v4  ;;  %v3762_v29 = vand.u32 %v3124_v17, %v294_v4  ;;  %vm3785_vm8 = vmor %vm435_vm3, %vm436_vm4  ;;  %s2933_s26 = sshll.u32 %s4608_s13, 5 }
  0x14   : > { %3541 = vmatpush3.bf16.msra.mxu1 %v296_v6  ;;  %3379 = vmatpush3.bf16.msra.mxu0 %v296_v6  ;;  %s3717_s30 = scalar_lea.vmem %s184_s29, %s3233_s25  ;;  %v3764_v30 = vand.u32 %v3165_v18, %v294_v4  ;;  %v3766_v31 = vand.u32 %v3198_v19, %v294_v4  ;;  %vm3771_vm7 = vmor %vm828_vm5, %vm829_vm6  ;;  %s2931_s25 = sshll.u32 %s3630_s12, 3 }
  0x15   : > { %3396 = vmatprep.subr.bf16.mxu1 %v681_v7  ;;  %3414 = vmatprep.subr.bf16.mxu0 %v938_v8  ;;  %v3584_v11 = vld [vmem:[%s3717_s30] sm:$0xff]   ;;  %v3585_v12 = vld [vmem:[%s3717_s30 + $0x30] sm:$0xff]   ;;  %v3588_v20 = vld [vmem:[%s3717_s30 + $0x18] sm:$0xff]   ;;  %p188_p6 = scmp.lt.s32.totalorder %s2931_s25, 15 }
  0x16   : > { %3380 = vmatprep.mubr.msk.bf16.mxu0 %vm266_vm2, %v3584_v11  ;;  %v3586_v13 = vld [vmem:[%s3717_s30 + $0xc] sm:$0xff]   ;;  %3388 = vmatprep.mubr.msk.bf16.mxu1 %vm266_vm2, %v3585_v12  ;;  %v3587_v14 = vld [vmem:[%s3717_s30 + $0x3c] sm:$0xff]   ;;  %v3590_v23 = vld [vmem:[%s3717_s30 + $0x24] sm:$0xff]  }
  0x17   : > { %3381 = vmatmul.mubr.msk.bf16.vlgmr.msra.gmra.mxu0 %vm266_vm2, %v3586_v13  ;;  %3389 = vmatmul.mubr.msk.bf16.vlgmr.msra.gmra.mxu1 %vm266_vm2, %v3587_v14  ;;  %v3589_v22 = vld [vmem:[%s3717_s30 + $0x48] sm:$0xff]   ;;  %v3591_v24 = vld [vmem:[%s3717_s30 + $0x54] sm:$0xff]   ;;  %v411_v25 = vld [vmem:[%s3717_s30] sm:$0xf]  ;;  %s4610_s25 = smov (!%p188_p6, %s2931_s25), 15 }
  0x18   : > { %3415 = vmatpush3.bf16.msra.mxu0 %v938_v8  ;;  %3397 = vmatpush3.bf16.msra.mxu1 %v681_v7  ;;  %v412_v26 = vld [vmem:[%s3717_s30 + $0x4] sm:$0xf]  ;;  %v413_v27 = vld [vmem:[%s3717_s30 + $0x8] sm:$0x1]  ;;  %v439_v32 = vshrl.u32 %v411_v25, 16  ;;  %v442_v33 = vshll.u32 %v411_v25, 16 }
  0x19   : > { %3384 = vmatprep.mubr.msk.bf16.mxu0 %vm266_vm2, %v3588_v20  ;;  %3392 = vmatprep.mubr.msk.bf16.mxu1 %vm266_vm2, %v3589_v22  ;;  %v448_v34 = vshll.u32 %v412_v26, 16  ;;  %v452_v35 = vshrl.u32 %v412_v26, 16  ;;  %v796_v36 = vld [vmem:[%s3717_s30] sm:$0xe]  ;;  %v458_v38 = vshll.u32 %v413_v27, 16  ;;  %v833_v40 = vrot.slane %v412_v26, 5 }
  0x1a   : > { %3432 = vmatprep.subr.bf16.mxu1 %v3731_v15  ;;  %3450 = vmatprep.subr.bf16.mxu0 %v3747_v21  ;;  %v2972_v39 = vrot.slane %v796_v36, 9  ;;  %v836_v41 = vrot.slane %v413_v27, 5  ;;  %v414_v42 = vld [vmem:[%s3717_s30 + $0xc] sm:$0xf]  ;;  %v441_v43 = vrot.slane %v439_v32, 4  ;;  %v444_v44 = vrot.slane %v442_v33, 5 }
  0x1b   : > { %v450_v45 = vrot.slane %v448_v34, 5  ;;  %v454_v46 = vrot.slane %v452_v35, 4  ;;  %v415_v47 = vld [vmem:[%s3717_s30 + $0x10] sm:$0xf]  ;;  %v460_v48 = vrot.slane %v458_v38, 5  ;;  %v835_v50 = vrot.slane %v833_v40, 4 }
  0x1c   : > { %v834_v49 = vsel %vm3771_vm7, %v2972_v39, %v833_v40  ;;  %v416_v51 = vld [vmem:[%s3717_s30 + $0x14] sm:$0x1]  ;;  %v463_v52 = vshrl.u32 %v414_v42, 16  ;;  %v445_v53 = vor.u32 %v444_v44, %v441_v43  ;;  %v466_v55 = vshll.u32 %v414_v42, 16  ;;  %v797_v57 = vld [vmem:[%s3717_s30 + $0xc] sm:$0xe] }
  0x1d   : > { %v455_v54 = vor.u32 %v454_v46, %v450_v45  ;;  %v472_v56 = vshll.u32 %v415_v47, 16  ;;  %v837_v59 = vsel %vm3771_vm7, %v835_v50, %v836_v41  ;;  %v476_v61 = vshrl.u32 %v415_v47, 16  ;;  %v417_v3 = vld [vmem:[%s3717_s30 + $0x18] sm:$0xf]  ;;  %v418_v12 = vld [vmem:[%s3717_s30 + $0x1c] sm:$0xf] }
  0x1e   : > { %v465_v60 = vrot.slane %v463_v52, 4  ;;  %v482_v62 = vshll.u32 %v416_v51, 16  ;;  %v446_v63 = vrot.slane %v445_v53, 4  ;;  %v2981_v1 = vcombine.low %v834_v49, %v837_v59  ;;  %v419_v17 = vld [vmem:[%s3717_s30 + $0x20] sm:$0x1]  ;;  %s2932_s12 = sshll.u32 %s4610_s25, 1 }
  0x1f   : > { %3385 = vmatmul.mubr.msk.bf16.gmra.mxu0 %vm266_vm2, %v3590_v23  ;;  %3393 = vmatmul.mubr.msk.bf16.gmra.mxu1 %vm266_vm2, %v3591_v24  ;;  %v456_v0 = vrot.slane %v455_v54, 4  ;;  %v468_v2 = vrot.slane %v466_v55, 5  ;;  %v474_v4 = vrot.slane %v472_v56, 5  ;;  %v478_v5 = vrot.slane %v476_v61, 4  ;;  %v798_v32 = vld [vmem:[%s3717_s30 + $0x18] sm:$0xe]  ;;  %s192_s13 = sadd.s32 %s2933_s26, %s2932_s12 }
  0x20   : > { %v484_v6 = vrot.slane %v482_v62, 5  ;;  %v2973_v7 = vrot.slane %v797_v57, 9  ;;  %v451_v8 = vsel %vm3785_vm8, %v446_v63, %v450_v45  ;;  %3416 = vmatprep.mubr.msk.bf16.mxu0 %vm266_vm2, %v2981_v1  ;;  %v840_v11 = vrot.slane %v415_v47, 5  ;;  %v420_v38 = vld [vmem:[%s3717_s30 + $0x24] sm:$0xf]  ;;  %s2934_s27 = sshll.u32 %s192_s13, 2 }
  0x21   : > { %v461_v9 = vsel %vm3785_vm8, %v456_v0, %v460_v48  ;;  %v469_v10 = vor.u32 %v468_v2, %v465_v60  ;;  %v479_v14 = vor.u32 %v478_v5, %v474_v4  ;;  %v843_v16 = vrot.slane %v416_v51, 5  ;;  %v421_v43 = vld [vmem:[%s3717_s30 + $0x28] sm:$0xf]  ;;  %v422_v51 = vld [vmem:[%s3717_s30 + $0x2c] sm:$0x1] }
  0x22   : > { %v2956_v13 = vcombine.low %v451_v8, %v461_v9  ;;  %v487_v18 = vshrl.u32 %v417_v3, 16  ;;  %v841_v20 = vsel %vm3771_vm7, %v2973_v7, %v840_v11  ;;  %v842_v22 = vrot.slane %v840_v11, 4  ;;  %v799_v57 = vld [vmem:[%s3717_s30 + $0x24] sm:$0xe]  ;;  %v423_v2 = vld [vmem:[%s3717_s30 + $0x30] sm:$0xf] }
  0x23   : > { %v470_v19 = vrot.slane %v469_v10, 4  ;;  %v490_v23 = vshll.u32 %v417_v3, 16  ;;  %v480_v24 = vrot.slane %v479_v14, 4  ;;  %v496_v26 = vshll.u32 %v418_v12, 16 }
  0x24   : > { %3398 = vmatprep.mubr.msk.bf16.mxu1 %vm266_vm2, %v2956_v13  ;;  %v489_v25 = vrot.slane %v487_v18, 4  ;;  %v500_v27 = vshrl.u32 %v418_v12, 16  ;;  %v844_v34 = vsel %vm3771_vm7, %v842_v22, %v843_v16  ;;  %v506_v36 = vshll.u32 %v419_v17, 16  ;;  %v425_v18 = vld [vmem:[%s3717_s30 + $0x38] sm:$0x1] }
  0x25   : > { %v475_v33 = vsel %vm3785_vm8, %v470_v19, %v474_v4  ;;  %v492_v35 = vrot.slane %v490_v23, 5  ;;  %v485_v39 = vsel %vm3785_vm8, %v480_v24, %v484_v6  ;;  %v2982_v40 = vcombine.low %v841_v20, %v844_v34  ;;  %v424_v6 = vld [vmem:[%s3717_s30 + $0x34] sm:$0xf] }
  0x26   : > { %v498_v41 = vrot.slane %v496_v26, 5  ;;  %v502_v42 = vrot.slane %v500_v27, 4  ;;  %v2957_v44 = vcombine.low %v475_v33, %v485_v39  ;;  %v508_v46 = vrot.slane %v506_v36, 5  ;;  %v800_v26 = vld [vmem:[%s3717_s30 + $0x30] sm:$0xe] }
  0x27   : > { %v493_v45 = vor.u32 %v492_v35, %v489_v25  ;;  %v2974_v47 = vrot.slane %v798_v32, 9  ;;  %3417 = vmatmul.mubr.msk.bf16.vlgmr.msra.gmra.mxu0 %vm266_vm2, %v2982_v40  ;;  %v847_v49 = vrot.slane %v418_v12, 5  ;;  %v850_v50 = vrot.slane %v419_v17, 5  ;;  %v426_v35 = vld [vmem:[%s3717_s30 + $0x3c] sm:$0xf] }
  0x28   : > { %v503_v48 = vor.u32 %v502_v42, %v498_v41  ;;  %v511_v52 = vshrl.u32 %v420_v38, 16  ;;  %3399 = vmatmul.mubr.msk.bf16.vlgmr.msra.gmra.mxu1 %vm266_vm2, %v2957_v44  ;;  %3451 = vmatpush3.bf16.msra.mxu0 %v3747_v21  ;;  %v514_v54 = vshll.u32 %v420_v38, 16  ;;  %v520_v55 = vshll.u32 %v421_v43, 16 }
  0x29   : > { %v494_v53 = vrot.slane %v493_v45, 4  ;;  %v524_v56 = vshrl.u32 %v421_v43, 16  ;;  %3433 = vmatpush3.bf16.msra.mxu1 %v3731_v15  ;;  %v848_v60 = vsel %vm3771_vm7, %v2974_v47, %v847_v49  ;;  %v849_v61 = vrot.slane %v847_v49, 4  ;;  %3486 = vmatprep.subr.bf16.mxu0 %v3762_v29  ;;  %v427_v45 = vld [vmem:[%s3717_s30 + $0x40] sm:$0xf] }
  0x2a   : > { %v504_v59 = vrot.slane %v503_v48, 4  ;;  %v513_v62 = vrot.slane %v511_v52, 4  ;;  %v516_v63 = vrot.slane %v514_v54, 5  ;;  %v522_v0 = vrot.slane %v520_v55, 5  ;;  %3468 = vmatprep.subr.bf16.mxu1 %v3760_v28 }
  0x2b   : > { %v499_v21 = vsel %vm3785_vm8, %v494_v53, %v498_v41  ;;  %v526_v1 = vrot.slane %v524_v56, 4  ;;  %v851_v3 = vsel %vm3771_vm7, %v849_v61, %v850_v50  ;;  %v530_v4 = vshll.u32 %v422_v51, 16 }
  0x2c   : > { %v509_v15 = vsel %vm3785_vm8, %v504_v59, %v508_v46  ;;  %v2975_v5 = vrot.slane %v799_v57, 9  ;;  %v2983_v8 = vcombine.low %v848_v60, %v851_v3  ;;  %v517_v9 = vor.u32 %v516_v63, %v513_v62  ;;  %v428_v46 = vld [vmem:[%s3717_s30 + $0x44] sm:$0x1]  ;;  %v801_v60 = vld [vmem:[%s3717_s30 + $0x3c] sm:$0xe] }
  0x2d   : > { %v2958_v7 = vcombine.low %v499_v21, %v509_v15  ;;  %v527_v10 = vor.u32 %v526_v1, %v522_v0  ;;  %v532_v11 = vrot.slane %v530_v4, 5  ;;  %v854_v12 = vrot.slane %v421_v43, 5  ;;  %v430_v1 = vld [vmem:[%s3717_s30 + $0x4c] sm:$0xf] }
  0x2e   : > { %v857_v13 = vrot.slane %v422_v51, 5  ;;  %v535_v14 = vshrl.u32 %v423_v2, 16  ;;  %3420 = vmatprep.mubr.msk.bf16.mxu0 %vm266_vm2, %v2983_v8  ;;  %v518_v16 = vrot.slane %v517_v9, 4  ;;  %v538_v19 = vshll.u32 %v423_v2, 16  ;;  %v431_v9 = vld [vmem:[%s3717_s30 + $0x50] sm:$0x1] }
  0x2f   : > { %3402 = vmatprep.mubr.msk.bf16.mxu1 %vm266_vm2, %v2958_v7  ;;  %v528_v17 = vrot.slane %v527_v10, 4  ;;  %v544_v20 = vshll.u32 %v424_v6, 16  ;;  %v855_v22 = vsel %vm3771_vm7, %v2975_v5, %v854_v12  ;;  %v856_v23 = vrot.slane %v854_v12, 4 }
  0x30   : > { %v537_v24 = vrot.slane %v535_v14, 4  ;;  %v548_v25 = vshrl.u32 %v424_v6, 16  ;;  %v523_v27 = vsel %vm3785_vm8, %v518_v16, %v522_v0  ;;  %v540_v33 = vrot.slane %v538_v19, 5  ;;  %v429_v0 = vld [vmem:[%s3717_s30 + $0x48] sm:$0xf] }
  0x31   : > { %v533_v32 = vsel %vm3785_vm8, %v528_v17, %v532_v11  ;;  %v546_v34 = vrot.slane %v544_v20, 5  ;;  %v858_v38 = vsel %vm3771_vm7, %v856_v23, %v857_v13  ;;  %v554_v40 = vshll.u32 %v425_v18, 16  ;;  %v802_v14 = vld [vmem:[%s3717_s30 + $0x48] sm:$0xe] }
  0x32   : > { %v2959_v36 = vcombine.low %v523_v27, %v533_v32  ;;  %v550_v39 = vrot.slane %v548_v25, 4  ;;  %v2984_v41 = vcombine.low %v855_v22, %v858_v38  ;;  %v541_v42 = vor.u32 %v540_v33, %v537_v24  ;;  %v432_v33 = vld [vmem:[%s3717_s30 + $0x54] sm:$0xf] }
  0x33   : > { %v2976_v43 = vrot.slane %v800_v26, 9  ;;  %v861_v44 = vrot.slane %v424_v6, 5  ;;  %v556_v48 = vrot.slane %v554_v40, 5  ;;  %v864_v49 = vrot.slane %v425_v18, 5 }
  0x34   : > { %3403 = vmatmul.mubr.msk.bf16.gmra.mxu1 %vm266_vm2, %v2959_v36  ;;  %v551_v47 = vor.u32 %v550_v39, %v546_v34  ;;  %v559_v50 = vshrl.u32 %v426_v35, 16  ;;  %3421 = vmatmul.mubr.msk.bf16.gmra.mxu0 %vm266_vm2, %v2984_v41  ;;  %v542_v51 = vrot.slane %v541_v42, 4  ;;  %v562_v54 = vshll.u32 %v426_v35, 16  ;;  %v433_v39 = vld [vmem:[%s3717_s30 + $0x58] sm:$0xf] }
  0x35   : > { %v862_v52 = vsel %vm3771_vm7, %v2976_v43, %v861_v44  ;;  %v863_v53 = vrot.slane %v861_v44, 4  ;;  %v568_v57 = vshll.u32 %v427_v45, 16  ;;  %v572_v59 = vshrl.u32 %v427_v45, 16 }
  0x36   : > { %v552_v55 = vrot.slane %v551_v47, 4  ;;  %v561_v56 = vrot.slane %v559_v50, 4  ;;  %v547_v61 = vsel %vm3785_vm8, %v542_v51, %v546_v34  ;;  %v564_v21 = vrot.slane %v562_v54, 5  ;;  %v434_v47 = vld [vmem:[%s3717_s30 + $0x5c] sm:$0x1] }
  0x37   : > { %v865_v62 = vsel %vm3771_vm7, %v863_v53, %v864_v49  ;;  %v578_v63 = vshll.u32 %v428_v46, 16  ;;  %v570_v3 = vrot.slane %v568_v57, 5  ;;  %v574_v4 = vrot.slane %v572_v59, 4  ;;  %v803_v53 = vld [vmem:[%s3717_s30 + $0x54] sm:$0xe] }
  0x38   : > { %v557_v2 = vsel %vm3785_vm8, %v552_v55, %v556_v48  ;;  %v2985_v15 = vcombine.low %v862_v52, %v865_v62  ;;  %v565_v6 = vor.u32 %v564_v21, %v561_v56  ;;  %v2977_v8 = vrot.slane %v801_v60, 9  ;;  %v3032_v21 = vld [vmem:[%s3717_s30 + $0xc] sm:$0xf] }
  0x39   : > { %v2960_v5 = vcombine.low %v547_v61, %v557_v2  ;;  %v580_v7 = vrot.slane %v578_v63, 5  ;;  %v575_v10 = vor.u32 %v574_v4, %v570_v3  ;;  %v868_v11 = vrot.slane %v427_v45, 5 }
  0x3a   : > { %3424 = vmatprep.mubr.msk.bf16.mxu0 %vm266_vm2, %v2985_v15  ;;  %v871_v12 = vrot.slane %v428_v46, 5  ;;  %v583_v13 = vshrl.u32 %v429_v0, 16  ;;  %v566_v16 = vrot.slane %v565_v6, 4  ;;  %v586_v17 = vshll.u32 %v429_v0, 16  ;;  %v3885_v15 = vld [vmem:[%s3717_s30 + $0x10] sm:$0xf] }
  0x3b   : > { %3406 = vmatprep.mubr.msk.bf16.mxu1 %vm266_vm2, %v2960_v5  ;;  %v592_v18 = vshll.u32 %v430_v1, 16  ;;  %v596_v19 = vshrl.u32 %v430_v1, 16  ;;  %v576_v20 = vrot.slane %v575_v10, 4  ;;  %v869_v22 = vsel %vm3771_vm7, %v2977_v8, %v868_v11  ;;  %v3889_v10 = vld [vmem:[%s3717_s30 + $0x14] sm:$0x1] }
  0x3c   : > { %v870_v23 = vrot.slane %v868_v11, 4  ;;  %v585_v24 = vrot.slane %v583_v13, 4  ;;  %v571_v25 = vsel %vm3785_vm8, %v566_v16, %v570_v3  ;;  %v588_v26 = vrot.slane %v586_v17, 5  ;;  %v3035_v17 = vld [vmem:[%s3717_s30 + $0x18] sm:$0xf] }
  0x3d   : > { %v594_v27 = vrot.slane %v592_v18, 5  ;;  %v598_v32 = vrot.slane %v596_v19, 4  ;;  %v581_v34 = vsel %vm3785_vm8, %v576_v20, %v580_v7  ;;  %v602_v36 = vshll.u32 %v431_v9, 16  ;;  %v3592_v19 = vld [vmem:[%s3717_s30 + $0xc] sm:$0xff]  }
  0x3e   : > { %v872_v35 = vsel %vm3771_vm7, %v870_v23, %v871_v12  ;;  %v2978_v38 = vrot.slane %v802_v14, 9  ;;  %v2961_v40 = vcombine.low %v571_v25, %v581_v34  ;;  %v589_v42 = vor.u32 %v588_v26, %v585_v24  ;;  %v3899_v24 = vld [vmem:[%s3717_s30 + $0x1c] sm:$0xf] }
  0x3f   : > { %v2986_v41 = vcombine.low %v869_v22, %v872_v35  ;;  %v599_v43 = vor.u32 %v598_v32, %v594_v27  ;;  %v604_v44 = vrot.slane %v602_v36, 5  ;;  %v875_v45 = vrot.slane %v430_v1, 5 }
  0x40   : > { %v878_v46 = vrot.slane %v431_v9, 5  ;;  %v607_v48 = vshrl.u32 %v432_v33, 16  ;;  %3407 = vmatmul.mubr.msk.bf16.gmra.mxu1 %vm266_vm2, %v2961_v40  ;;  %v590_v49 = vrot.slane %v589_v42, 4  ;;  %v610_v51 = vshll.u32 %v432_v33, 16  ;;  %v3907_v33 = vld [vmem:[%s3717_s30 + $0x20] sm:$0x1] }
  0x41   : > { %3425 = vmatmul.mubr.msk.bf16.gmra.mxu0 %vm266_vm2, %v2986_v41  ;;  %v600_v50 = vrot.slane %v599_v43, 4  ;;  %v616_v52 = vshll.u32 %v433_v39, 16  ;;  %v876_v54 = vsel %vm3771_vm7, %v2978_v38, %v875_v45  ;;  %v877_v55 = vrot.slane %v875_v45, 4 }
  0x42   : > { %v609_v56 = vrot.slane %v607_v48, 4  ;;  %v620_v57 = vshrl.u32 %v433_v39, 16  ;;  %v595_v59 = vsel %vm3785_vm8, %v590_v49, %v594_v27  ;;  %v612_v61 = vrot.slane %v610_v51, 5  ;;  %v3919_v49 = vld [vmem:[%s3717_s30 + $0x2c] sm:$0x1] }
  0x43   : > { %v605_v60 = vsel %vm3785_vm8, %v600_v50, %v604_v44  ;;  %v618_v62 = vrot.slane %v616_v52, 5  ;;  %v879_v0 = vsel %vm3771_vm7, %v877_v55, %v878_v46  ;;  %v626_v2 = vshll.u32 %v434_v47, 16  ;;  %v3913_v44 = vld [vmem:[%s3717_s30 + $0x28] sm:$0xf] }
  0x44   : > { %v2962_v63 = vcombine.low %v595_v59, %v605_v60  ;;  %v622_v1 = vrot.slane %v620_v57, 4  ;;  %v2987_v3 = vcombine.low %v876_v54, %v879_v0  ;;  %v613_v4 = vor.u32 %v612_v61, %v609_v56  ;;  %v3041_v54 = vld [vmem:[%s3717_s30 + $0x30] sm:$0xf] }
  0x45   : > { %v2979_v5 = vrot.slane %v803_v53, 9  ;;  %v882_v6 = vrot.slane %v433_v39, 5  ;;  %v628_v8 = vrot.slane %v626_v2, 5  ;;  %v885_v9 = vrot.slane %v434_v47, 5  ;;  %v3038_v39 = vld [vmem:[%s3717_s30 + $0x24] sm:$0xf] }
  0x46   : > { %3410 = vmatprep.mubr.msk.bf16.mxu1 %vm266_vm2, %v2962_v63  ;;  %v623_v7 = vor.u32 %v622_v1, %v618_v62  ;;  %v1280_v11 = vshrl.u32 %v3032_v21, 16  ;;  %3428 = vmatprep.mubr.msk.bf16.mxu0 %vm266_vm2, %v2987_v3  ;;  %v614_v12 = vrot.slane %v613_v4, 4  ;;  %v1283_v16 = vshll.u32 %v3032_v21, 16  ;;  %v3928_v63 = vld [vmem:[%s3717_s30 + $0x34] sm:$0xf]  ;;  %v3593_v1 = vld [vmem:[%s3717_s30 + $0x18] sm:$0xff]  }
  0x47   : > { %v883_v13 = vsel %vm3771_vm7, %v2979_v5, %v882_v6  ;;  %v884_v14 = vrot.slane %v882_v6, 4  ;;  %v1289_v22 = vshll.u32 %v3885_v15, 16  ;;  %v1293_v23 = vshrl.u32 %v3885_v15, 16  ;;  %v3594_v6 = vld [vmem:[%s3717_s30 + $0x24] sm:$0xff]  }
  0x48   : > { %v624_v18 = vrot.slane %v623_v7, 4  ;;  %v1282_v20 = vrot.slane %v1280_v11, 4  ;;  %v619_v25 = vsel %vm3785_vm8, %v614_v12, %v618_v62  ;;  %v1285_v27 = vrot.slane %v1283_v16, 5  ;;  %v3938_v11 = vld [vmem:[%s3717_s30 + $0x38] sm:$0x1] }
  0x49   : > { %v886_v26 = vsel %vm3771_vm7, %v884_v14, %v885_v9  ;;  %v1299_v32 = vshll.u32 %v3889_v10, 16  ;;  %v1291_v36 = vrot.slane %v1289_v22, 5  ;;  %v1295_v38 = vrot.slane %v1293_v23, 4  ;;  %v3044_v12 = vld [vmem:[%s3717_s30 + $0x3c] sm:$0xf] }
  0x4a   : > { %v629_v34 = vsel %vm3785_vm8, %v624_v18, %v628_v8  ;;  %v2988_v35 = vcombine.low %v883_v13, %v886_v26  ;;  %v1286_v41 = vor.u32 %v1285_v27, %v1282_v20  ;;  %v1304_v43 = vshrl.u32 %v3035_v17, 16 }
  0x4b   : > { %v2963_v40 = vcombine.low %v619_v25, %v629_v34  ;;  %v1301_v42 = vrot.slane %v1299_v32, 5  ;;  %v1296_v45 = vor.u32 %v1295_v38, %v1291_v36  ;;  %v1307_v46 = vshll.u32 %v3035_v17, 16  ;;  %v3948_v32 = vld [vmem:[%s3717_s30 + $0x40] sm:$0xf] }
  0x4c   : > { %3429 = vmatmul.mubr.msk.bf16.gmra.mxu0 %vm266_vm2, %v2988_v35  ;;  %v1313_v47 = vshll.u32 %v3899_v24, 16  ;;  %v1317_v48 = vshrl.u32 %v3899_v24, 16  ;;  %v1287_v50 = vrot.slane %v1286_v41, 4  ;;  %v1306_v51 = vrot.slane %v1304_v43, 4 }
  0x4d   : > { %3411 = vmatmul.mubr.msk.bf16.gmra.mxu1 %vm266_vm2, %v2963_v40  ;;  %v1323_v52 = vshll.u32 %v3907_v33, 16  ;;  %v1328_v53 = vshrl.u32 %v3038_v39, 16  ;;  %v1297_v55 = vrot.slane %v1296_v45, 4  ;;  %v1309_v56 = vrot.slane %v1307_v46, 5  ;;  %v3047_v45 = vld [vmem:[%s3717_s30 + $0x48] sm:$0xf] }
  0x4e   : > { %3434 = vmatprep.mubr.msk.bf16.mxu1 %vm266_vm2, %v3592_v19  ;;  %v1315_v57 = vrot.slane %v1313_v47, 5  ;;  %v1319_v59 = vrot.slane %v1317_v48, 4  ;;  %v1292_v60 = vsel %vm3785_vm8, %v1287_v50, %v1291_v36  ;;  %v1331_v21 = vshll.u32 %v3038_v39, 16  ;;  %v3952_v39 = vld [vmem:[%s3717_s30 + $0x44] sm:$0x1] }
  0x4f   : > { %v1325_v61 = vrot.slane %v1323_v52, 5  ;;  %v1330_v62 = vrot.slane %v1328_v53, 4  ;;  %v1302_v0 = vsel %vm3785_vm8, %v1297_v55, %v1301_v42  ;;  %v1310_v2 = vor.u32 %v1309_v56, %v1306_v51  ;;  %v3595_v56 = vld [vmem:[%s3717_s30 + $0x30] sm:$0xff]  }
  0x50   : > { %v1320_v3 = vor.u32 %v1319_v59, %v1315_v57  ;;  %v1337_v4 = vshll.u32 %v3913_v44, 16  ;;  %v3057_v5 = vcombine.low %v1292_v60, %v1302_v0  ;;  %v1333_v7 = vrot.slane %v1331_v21, 5  ;;  %v3596_v21 = vld [vmem:[%s3717_s30 + $0x3c] sm:$0xff]  }
  0x51   : > { %v1341_v8 = vshrl.u32 %v3913_v44, 16  ;;  %v1347_v9 = vshll.u32 %v3919_v49, 16  ;;  %v1311_v13 = vrot.slane %v1310_v2, 4  ;;  %v1352_v17 = vshrl.u32 %v3041_v54, 16 }
  0x52   : > { %v1321_v14 = vrot.slane %v1320_v3, 4  ;;  %v1339_v16 = vrot.slane %v1337_v4, 5  ;;  %3452 = vmatprep.mubr.msk.bf16.mxu0 %vm266_vm2, %v3057_v5  ;;  %v1334_v18 = vor.u32 %v1333_v7, %v1330_v62  ;;  %v1355_v22 = vshll.u32 %v3041_v54, 16  ;;  %v3978_v4 = vld [vmem:[%s3717_s30 + $0x50] sm:$0x1] }
  0x53   : > { %v1343_v19 = vrot.slane %v1341_v8, 4  ;;  %v1349_v20 = vrot.slane %v1347_v9, 5  ;;  %v1316_v23 = vsel %vm3785_vm8, %v1311_v13, %v1315_v57  ;;  %v1354_v26 = vrot.slane %v1352_v17, 4  ;;  %v3050_v17 = vld [vmem:[%s3717_s30 + $0x54] sm:$0xf] }
  0x54   : > { %v1326_v25 = vsel %vm3785_vm8, %v1321_v14, %v1325_v61  ;;  %v1361_v27 = vshll.u32 %v3928_v63, 16  ;;  %v1335_v35 = vrot.slane %v1334_v18, 4  ;;  %v1357_v38 = vrot.slane %v1355_v22, 5 }
  0x55   : > { %3435 = vmatmul.mubr.msk.bf16.vlgmr.msra.gmra.mxu1 %vm266_vm2, %v3593_v1  ;;  %v3058_v34 = vcombine.low %v1316_v23, %v1326_v25  ;;  %v1344_v36 = vor.u32 %v1343_v19, %v1339_v16  ;;  %v1365_v41 = vshrl.u32 %v3928_v63, 16  ;;  %v1371_v42 = vshll.u32 %v3938_v11, 16  ;;  %v3990_v23 = vld [vmem:[%s3717_s30 + $0x58] sm:$0xf] }
  0x56   : > { %3469 = vmatpush3.bf16.msra.mxu1 %v3760_v28  ;;  %3438 = vmatprep.mubr.msk.bf16.mxu1 %vm266_vm2, %v3594_v6  ;;  %v1363_v40 = vrot.slane %v1361_v27, 5  ;;  %v1376_v43 = vshrl.u32 %v3044_v12, 16  ;;  %v1340_v46 = vsel %vm3785_vm8, %v1335_v35, %v1339_v16  ;;  %v1358_v48 = vor.u32 %v1357_v38, %v1354_v26  ;;  %v3963_v28 = vld [vmem:[%s3717_s30 + $0x4c] sm:$0xf]  ;;  %v3995_v38 = vld [vmem:[%s3717_s30 + $0x5c] sm:$0x1] }
  0x57   : > { %3453 = vmatmul.mubr.msk.bf16.vlgmr.msra.gmra.mxu0 %vm266_vm2, %v3058_v34  ;;  %v1345_v47 = vrot.slane %v1344_v36, 4  ;;  %v1379_v50 = vshll.u32 %v3044_v12, 16  ;;  %3504 = vmatprep.subr.bf16.mxu1 %v3764_v30  ;;  %v1367_v51 = vrot.slane %v1365_v41, 4  ;;  %v1373_v52 = vrot.slane %v1371_v42, 5 }
  0x58   : > { %3487 = vmatpush3.bf16.msra.mxu0 %v3762_v29  ;;  %v1378_v53 = vrot.slane %v1376_v43, 4  ;;  %v1385_v54 = vshll.u32 %v3948_v32, 16  ;;  %v1359_v57 = vrot.slane %v1358_v48, 4  ;;  %v1389_v60 = vshrl.u32 %v3948_v32, 16  ;;  %v3597_v43 = vld [vmem:[%s3717_s30 + $0x48] sm:$0xff]  }
  0x59   : > { %v1350_v55 = vsel %vm3785_vm8, %v1345_v47, %v1349_v20  ;;  %v1381_v59 = vrot.slane %v1379_v50, 5  ;;  %3522 = vmatprep.subr.bf16.mxu0 %v3766_v31  ;;  %v1368_v62 = vor.u32 %v1367_v51, %v1363_v40  ;;  %v1395_v0 = vshll.u32 %v3952_v39, 16  ;;  %v3053_v48 = vld [vmem:[%s3717_s30 + $0x60] sm:$0xf] }
  0x5a   : > { %v3059_v61 = vcombine.low %v1340_v46, %v1350_v55  ;;  %v1387_v29 = vrot.slane %v1385_v54, 5  ;;  %v1364_v1 = vsel %vm3785_vm8, %v1359_v57, %v1363_v40  ;;  %v1391_v3 = vrot.slane %v1389_v60, 4  ;;  %v4006_v55 = vld [vmem:[%s3717_s30 + $0x64] sm:$0xf] }
  0x5b   : > { %v1382_v2 = vor.u32 %v1381_v59, %v1378_v53  ;;  %v1400_v5 = vshrl.u32 %v3047_v45, 16  ;;  %v1369_v6 = vrot.slane %v1368_v62, 4  ;;  %v1397_v7 = vrot.slane %v1395_v0, 5 }
  0x5c   : > { %3456 = vmatprep.mubr.msk.bf16.mxu0 %vm266_vm2, %v3059_v61  ;;  %v1403_v8 = vshll.u32 %v3047_v45, 16  ;;  %v1409_v9 = vshll.u32 %v3963_v28, 16  ;;  %v1392_v13 = vor.u32 %v1391_v3, %v1387_v29  ;;  %v1413_v16 = vshrl.u32 %v3963_v28, 16 }
  0x5d   : > { %3439 = vmatmul.mubr.msk.bf16.gmra.mxu1 %vm266_vm2, %v3595_v56  ;;  %v1383_v12 = vrot.slane %v1382_v2, 4  ;;  %v1402_v14 = vrot.slane %v1400_v5, 4  ;;  %v1374_v18 = vsel %vm3785_vm8, %v1369_v6, %v1373_v52  ;;  %v1419_v22 = vshll.u32 %v3978_v4, 16  ;;  %v3598_v52 = vld [vmem:[%s3717_s30 + $0x54] sm:$0xff]   ;;  %v3073_v6 = vld [vmem:[%s3717_s30 + $0xc] sm:$0xe] }
  0x5e   : > { %3442 = vmatprep.mubr.msk.bf16.mxu1 %vm266_vm2, %v3596_v21  ;;  %v1405_v19 = vrot.slane %v1403_v8, 5  ;;  %v1411_v20 = vrot.slane %v1409_v9, 5  ;;  %v3060_v25 = vcombine.low %v1364_v1, %v1374_v18  ;;  %v1393_v27 = vrot.slane %v1392_v13, 4  ;;  %v4013_v21 = vld [vmem:[%s3717_s30 + $0x68] sm:$0x1] }
  0x5f   : > { %v1388_v26 = vsel %vm3785_vm8, %v1383_v12, %v1387_v29  ;;  %v1415_v34 = vrot.slane %v1413_v16, 4  ;;  %v1421_v36 = vrot.slane %v1419_v22, 5  ;;  %v1424_v40 = vshrl.u32 %v3050_v17, 16 }
  0x60   : > { %v1406_v35 = vor.u32 %v1405_v19, %v1402_v14  ;;  %v1427_v41 = vshll.u32 %v3050_v17, 16  ;;  %3457 = vmatmul.mubr.msk.bf16.gmra.mxu0 %vm266_vm2, %v3060_v25  ;;  %v1398_v42 = vsel %vm3785_vm8, %v1393_v27, %v1397_v7  ;;  %v1433_v46 = vshll.u32 %v3990_v23, 16  ;;  %v3074_v25 = vld [vmem:[%s3717_s30 + $0x18] sm:$0xe]  ;;  %v3599_v27 = vld [vmem:[%s3717_s30 + $0x60] sm:$0xff]  }
  0x61   : > { %v1416_v45 = vor.u32 %v1415_v34, %v1411_v20  ;;  %v1437_v47 = vshrl.u32 %v3990_v23, 16  ;;  %v3061_v50 = vcombine.low %v1388_v26, %v1398_v42  ;;  %v1426_v53 = vrot.slane %v1424_v40, 4  ;;  %v3075_v40 = vld [vmem:[%s3717_s30 + $0x24] sm:$0xe] }
  0x62   : > { %v1407_v51 = vrot.slane %v1406_v35, 4  ;;  %v1429_v54 = vrot.slane %v1427_v41, 5  ;;  %v1435_v57 = vrot.slane %v1433_v46, 5  ;;  %v1443_v60 = vshll.u32 %v3995_v38, 16 }
  0x63   : > { %v1417_v56 = vrot.slane %v1416_v45, 4  ;;  %v1439_v59 = vrot.slane %v1437_v47, 4  ;;  %3460 = vmatprep.mubr.msk.bf16.mxu0 %vm266_vm2, %v3061_v50  ;;  %v1448_v29 = vshrl.u32 %v3053_v48, 16  ;;  %v1451_v0 = vshll.u32 %v3053_v48, 16  ;;  %v3076_v50 = vld [vmem:[%s3717_s30 + $0x30] sm:$0xe] }
  0x64   : > { %v1412_v61 = vsel %vm3785_vm8, %v1407_v51, %v1411_v20  ;;  %v1430_v62 = vor.u32 %v1429_v54, %v1426_v53  ;;  %v1445_v3 = vrot.slane %v1443_v60, 5  ;;  %v1457_v5 = vshll.u32 %v4006_v55, 16 }
  0x65   : > { %3443 = vmatmul.mubr.msk.bf16.gmra.mxu1 %vm266_vm2, %v3597_v43  ;;  %v1422_v1 = vsel %vm3785_vm8, %v1417_v56, %v1421_v36  ;;  %v1440_v2 = vor.u32 %v1439_v59, %v1435_v57  ;;  %v1450_v9 = vrot.slane %v1448_v29, 4  ;;  %v1453_v12 = vrot.slane %v1451_v0, 5  ;;  %v3600_v29 = vld [vmem:[%s3717_s30 + $0x18] sm:$0xff]  }
  0x66   : > { %v3062_v7 = vcombine.low %v1412_v61, %v1422_v1  ;;  %3446 = vmatprep.mubr.msk.bf16.mxu1 %vm266_vm2, %v3598_v52  ;;  %v1431_v8 = vrot.slane %v1430_v62, 4  ;;  %v1459_v14 = vrot.slane %v1457_v5, 5  ;;  %v1461_v16 = vshrl.u32 %v4006_v55, 16 }
  0x67   : > { %v1441_v13 = vrot.slane %v1440_v2, 4  ;;  %v1467_v17 = vshll.u32 %v4013_v21, 16  ;;  %v1454_v19 = vor.u32 %v1453_v12, %v1450_v9  ;;  %v3081_v20 = vrot.slane %v3073_v6, 9 }
  0x68   : > { %v1436_v18 = vsel %vm3785_vm8, %v1431_v8, %v1435_v57  ;;  %v1671_v22 = vrot.slane %v3885_v15, 5  ;;  %3461 = vmatmul.mubr.msk.bf16.gmra.mxu0 %vm266_vm2, %v3062_v7  ;;  %v1463_v34 = vrot.slane %v1461_v16, 4  ;;  %v1674_v36 = vrot.slane %v3889_v10, 5  ;;  %v3077_v57 = vld [vmem:[%s3717_s30 + $0x3c] sm:$0xe] }
  0x69   : > { %v1446_v26 = vsel %vm3785_vm8, %v1441_v13, %v1445_v3  ;;  %v1469_v35 = vrot.slane %v1467_v17, 5  ;;  %v1455_v42 = vrot.slane %v1454_v19, 4  ;;  %v3082_v46 = vrot.slane %v3074_v25, 9  ;;  %v3078_v3 = vld [vmem:[%s3717_s30 + $0x48] sm:$0xe] }
  0x6a   : > { %v3063_v41 = vcombine.low %v1436_v18, %v1446_v26  ;;  %v1672_v43 = vsel %vm3771_vm7, %v3081_v20, %v1671_v22  ;;  %v1673_v45 = vrot.slane %v1671_v22, 4  ;;  %v1464_v15 = vor.u32 %v1463_v34, %v1459_v14  ;;  %v3079_v7 = vld [vmem:[%s3717_s30 + $0x54] sm:$0xe]  ;;  %v3080_v17 = vld [vmem:[%s3717_s30 + $0x60] sm:$0xe] }
  0x6b   : > { %v1678_v47 = vrot.slane %v3899_v24, 5  ;;  %v1681_v48 = vrot.slane %v3907_v33, 5  ;;  %v1460_v10 = vsel %vm3785_vm8, %v1455_v42, %v1459_v14  ;;  %v3083_v52 = vrot.slane %v3075_v40, 9  ;;  %v3141_v25 = vld [vmem:[%s3717_s30 + $0x18] sm:$0xf]  ;;  %v3601_v40 = vld [vmem:[%s3717_s30 + $0x24] sm:$0xff]  }
  0x6c   : > { %3464 = vmatprep.mubr.msk.bf16.mxu0 %vm266_vm2, %v3063_v41  ;;  %v1675_v51 = vsel %vm3771_vm7, %v1673_v45, %v1674_v36  ;;  %v1685_v53 = vrot.slane %v3913_v44, 5  ;;  %v1465_v54 = vrot.slane %v1464_v15, 4  ;;  %v1688_v61 = vrot.slane %v3919_v49, 5  ;;  %v3142_v36 = vld [vmem:[%s3717_s30 + $0x1c] sm:$0xf] }
  0x6d   : > { %3447 = vmatmul.mubr.msk.bf16.gmra.mxu1 %vm266_vm2, %v3599_v27  ;;  %v3090_v24 = vcombine.low %v1672_v43, %v1675_v51  ;;  %v1679_v33 = vsel %vm3771_vm7, %v3082_v46, %v1678_v47  ;;  %v1680_v56 = vrot.slane %v1678_v47, 4  ;;  %v3084_v62 = vrot.slane %v3076_v50, 9  ;;  %v3143_v43 = vld [vmem:[%s3717_s30 + $0x20] sm:$0x1]  ;;  %v3182_v51 = vld [vmem:[%s3717_s30 + $0x18] sm:$0xe] }
  0x6e   : > { %v1686_v59 = vsel %vm3771_vm7, %v3083_v52, %v1685_v53  ;;  %v1687_v60 = vrot.slane %v1685_v53, 4  ;;  %v1470_v44 = vsel %vm3785_vm8, %v1465_v54, %v1469_v35  ;;  %v1692_v1 = vrot.slane %v3928_v63, 5 }
  0x6f   : > { %3470 = vmatprep.mubr.msk.bf16.mxu1 %vm266_vm2, %v3090_v24  ;;  %v1682_v0 = vsel %vm3771_vm7, %v1680_v56, %v1681_v48  ;;  %v1695_v2 = vrot.slane %v3938_v11, 5  ;;  %v3064_v5 = vcombine.low %v1460_v10, %v1470_v44  ;;  %v3085_v6 = vrot.slane %v3077_v57, 9 }
  0x70   : > { %v1689_v49 = vsel %vm3771_vm7, %v1687_v60, %v1688_v61  ;;  %v3091_v8 = vcombine.low %v1679_v33, %v1682_v0  ;;  %v1694_v12 = vrot.slane %v1692_v1, 4  ;;  %v1699_v13 = vrot.slane %v3948_v32, 5  ;;  %v3145_v60 = vld [vmem:[%s3717_s30 + $0x28] sm:$0xf] }
  0x71   : > { %v3092_v9 = vcombine.low %v1686_v59, %v1689_v49  ;;  %3465 = vmatmul.mubr.msk.bf16.gmra.mxu0 %vm266_vm2, %v3064_v5  ;;  %v1702_v63 = vrot.slane %v3952_v39, 5  ;;  %v3086_v14 = vrot.slane %v3078_v3, 9  ;;  %v1706_v11 = vrot.slane %v3963_v28, 5  ;;  %v3603_v49 = vld [vmem:[%s3717_s30 + $0x3c] sm:$0xff]  }
  0x72   : > { %v1709_v16 = vrot.slane %v3978_v4, 5  ;;  %3488 = vmatprep.mubr.msk.bf16.mxu0 %vm266_vm2, %v3600_v29  ;;  %v1693_v18 = vsel %vm3771_vm7, %v3084_v62, %v1692_v1  ;;  %v1696_v32 = vsel %vm3771_vm7, %v1694_v12, %v1695_v2  ;;  %v1701_v19 = vrot.slane %v1699_v13, 4  ;;  %v3146_v2 = vld [vmem:[%s3717_s30 + $0x2c] sm:$0x1] }
  0x73   : > { %v3087_v20 = vrot.slane %v3079_v7, 9  ;;  %v1700_v39 = vsel %vm3771_vm7, %v3085_v6, %v1699_v13  ;;  %v4078_v28 = vsel %vm3771_vm7, %v3086_v14, %v1706_v11  ;;  %v1708_v4 = vrot.slane %v1706_v11, 4  ;;  %v3183_v14 = vld [vmem:[%s3717_s30 + $0x24] sm:$0xe]  ;;  %v3604_v11 = vld [vmem:[%s3717_s30 + $0x48] sm:$0xff]  }
  0x74   : > { %v1713_v22 = vrot.slane %v3990_v23, 5  ;;  %v1703_v26 = vsel %vm3771_vm7, %v1701_v19, %v1702_v63  ;;  %v1716_v27 = vrot.slane %v3995_v38, 5  ;;  %v3088_v34 = vrot.slane %v3080_v17, 9 }
  0x75   : > { %3471 = vmatmul.mubr.msk.bf16.vlgmr.msra.gmra.mxu1 %vm266_vm2, %v3091_v8  ;;  %v1720_v35 = vrot.slane %v4006_v55, 5  ;;  %v3093_v23 = vcombine.low %v1693_v18, %v1696_v32  ;;  %v4093_v41 = vsel %vm3771_vm7, %v1708_v4, %v1709_v16  ;;  %v3602_v55 = vld [vmem:[%s3717_s30 + $0x30] sm:$0xff]   ;;  %v3094_v45 = vcombine.low %v1700_v39, %v1703_v26 }
  0x76   : > { %3505 = vmatpush3.bf16.msra.mxu1 %v3764_v30  ;;  %3474 = vmatprep.mubr.msk.bf16.mxu1 %vm266_vm2, %v3092_v9  ;;  %v4097_v42 = vsel %vm3771_vm7, %v3087_v20, %v1713_v22  ;;  %v1715_v38 = vrot.slane %v1713_v22, 4  ;;  %v3095_v30 = vcombine.low %v4078_v28, %v4093_v41  ;;  %v1723_v46 = vrot.slane %v4013_v21, 5  ;;  %v3144_v21 = vld [vmem:[%s3717_s30 + $0x24] sm:$0xf]  ;;  %v3147_v22 = vld [vmem:[%s3717_s30 + $0x30] sm:$0xf] }
  0x77   : > { %v1722_v15 = vrot.slane %v1720_v35, 4  ;;  %v2118_v48 = vshrl.u32 %v3141_v25, 16  ;;  %v2121_v50 = vshll.u32 %v3141_v25, 16  ;;  %v2127_v10 = vshll.u32 %v3142_v36, 16 }
  0x78   : > { %v4106_v47 = vsel %vm3771_vm7, %v1715_v38, %v1716_v27  ;;  %v4113_v53 = vsel %vm3771_vm7, %v3088_v34, %v1720_v35  ;;  %v2131_v54 = vshrl.u32 %v3142_v36, 16  ;;  %v2137_v24 = vshll.u32 %v3143_v43, 16  ;;  %v3148_v35 = vld [vmem:[%s3717_s30 + $0x34] sm:$0xf] }
  0x79   : > { %v3096_v52 = vcombine.low %v4097_v42, %v4106_v47  ;;  %3489 = vmatmul.mubr.msk.bf16.vlgmr.msra.gmra.mxu0 %vm266_vm2, %v3601_v40  ;;  %v4119_v33 = vsel %vm3771_vm7, %v1722_v15, %v1723_v46  ;;  %v2120_v56 = vrot.slane %v2118_v48, 4  ;;  %v2123_v57 = vrot.slane %v2121_v50, 5 }
  0x7a   : > { %v2129_v59 = vrot.slane %v2127_v10, 5  ;;  %3523 = vmatpush3.bf16.msra.mxu0 %v3766_v31  ;;  %3492 = vmatprep.mubr.msk.bf16.mxu0 %vm266_vm2, %v3602_v55  ;;  %v2133_v61 = vrot.slane %v2131_v54, 4  ;;  %v2139_v62 = vrot.slane %v2137_v24, 5  ;;  %v3190_v44 = vrot.slane %v3182_v51, 9  ;;  %v3184_v54 = vld [vmem:[%s3717_s30 + $0x30] sm:$0xe] }
  0x7b   : > { %v2509_v29 = vrot.slane %v3142_v36, 5  ;;  %v2124_v0 = vor.u32 %v2123_v57, %v2120_v56  ;;  %v2512_v1 = vrot.slane %v3143_v43, 5  ;;  %v2142_v3 = vshrl.u32 %v3144_v21, 16  ;;  %v3149_v43 = vld [vmem:[%s3717_s30 + $0x38] sm:$0x1] }
  0x7c   : > { %v2145_v5 = vshll.u32 %v3144_v21, 16  ;;  %v2134_v6 = vor.u32 %v2133_v61, %v2129_v59  ;;  %v2151_v8 = vshll.u32 %v3145_v60, 16  ;;  %v2155_v63 = vshrl.u32 %v3145_v60, 16 }
  0x7d   : > { %3475 = vmatmul.mubr.msk.bf16.gmra.mxu1 %vm266_vm2, %v3093_v23  ;;  %v4129_v31 = vsel %vm3771_vm7, %v3190_v44, %v2509_v29  ;;  %v2511_v7 = vrot.slane %v2509_v29, 4  ;;  %v2125_v9 = vrot.slane %v2124_v0, 4  ;;  %v2144_v12 = vrot.slane %v2142_v3, 4  ;;  %v3606_v44 = vld [vmem:[%s3717_s30 + $0x60] sm:$0xff]  }
  0x7e   : > { %3478 = vmatprep.mubr.msk.bf16.mxu1 %vm266_vm2, %v3094_v45  ;;  %v2147_v13 = vrot.slane %v2145_v5, 5  ;;  %v2135_v16 = vrot.slane %v2134_v6, 4  ;;  %v2153_v18 = vrot.slane %v2151_v8, 5  ;;  %v2161_v32 = vshll.u32 %v3146_v2, 16 }
  0x7f   : > { %v4136_v17 = vsel %vm3771_vm7, %v2511_v7, %v2512_v1  ;;  %v3097_v19 = vcombine.low %v4113_v53, %v4119_v33  ;;  %v2130_v20 = vsel %vm3785_vm8, %v2125_v9, %v2129_v59  ;;  %v2157_v4 = vrot.slane %v2155_v63, 4  ;;  %v3150_v59 = vld [vmem:[%s3717_s30 + $0x3c] sm:$0xf] }
  0x80   : > { %v2148_v39 = vor.u32 %v2147_v13, %v2144_v12  ;;  %v2140_v25 = vsel %vm3785_vm8, %v2135_v16, %v2139_v62  ;;  %v3199_v26 = vcombine.low %v4129_v31, %v4136_v17  ;;  %v3191_v27 = vrot.slane %v3183_v14, 9  ;;  %v3151_v62 = vld [vmem:[%s3717_s30 + $0x40] sm:$0xf]  ;;  %v3185_v14 = vld [vmem:[%s3717_s30 + $0x3c] sm:$0xe] }
  0x81   : > { %v2516_v34 = vrot.slane %v3145_v60, 5  ;;  %3493 = vmatmul.mubr.msk.bf16.gmra.mxu0 %vm266_vm2, %v3603_v49  ;;  %v2158_v40 = vor.u32 %v2157_v4, %v2153_v18  ;;  %v2163_v23 = vrot.slane %v2161_v32, 5  ;;  %v2519_v38 = vrot.slane %v3146_v2, 5  ;;  %v3605_v60 = vld [vmem:[%s3717_s30 + $0x54] sm:$0xff]   ;;  %v3152_v49 = vld [vmem:[%s3717_s30 + $0x44] sm:$0x1] }
  0x82   : > { %v2149_v36 = vrot.slane %v2148_v39, 4  ;;  %3496 = vmatprep.mubr.msk.bf16.mxu0 %vm266_vm2, %v3604_v11  ;;  %v3166_v55 = vcombine.low %v2130_v20, %v2140_v25  ;;  %v2166_v15 = vshrl.u32 %v3147_v22, 16  ;;  %v2169_v46 = vshll.u32 %v3147_v22, 16  ;;  %v3153_v20 = vld [vmem:[%s3717_s30 + $0x48] sm:$0xf] }
  0x83   : > { %v2518_v45 = vrot.slane %v2516_v34, 4  ;;  %v2159_v48 = vrot.slane %v2158_v40, 4  ;;  %v4153_v50 = vsel %vm3771_vm7, %v3191_v27, %v2516_v34  ;;  %v2175_v10 = vshll.u32 %v3148_v35, 16  ;;  %v3154_v27 = vld [vmem:[%s3717_s30 + $0x4c] sm:$0xf] }
  0x84   : > { %v2179_v51 = vshrl.u32 %v3148_v35, 16  ;;  %v2168_v21 = vrot.slane %v2166_v15, 4  ;;  %v2171_v56 = vrot.slane %v2169_v46, 5  ;;  %v2185_v57 = vshll.u32 %v3149_v43, 16 }
  0x85   : > { %3479 = vmatmul.mubr.msk.bf16.gmra.mxu1 %vm266_vm2, %v3095_v30  ;;  %v4162_v24 = vsel %vm3771_vm7, %v2518_v45, %v2519_v38  ;;  %v2154_v28 = vsel %vm3785_vm8, %v2149_v36, %v2153_v18  ;;  %v2164_v41 = vsel %vm3785_vm8, %v2159_v48, %v2163_v23  ;;  %v2177_v30 = vrot.slane %v2175_v10, 5  ;;  %v3607_v23 = vld [vmem:[%s3717_s30 + $0x6c] sm:$0xff]  }
  0x86   : > { %3482 = vmatprep.mubr.msk.bf16.mxu1 %vm266_vm2, %v3096_v52  ;;  %v2181_v61 = vrot.slane %v2179_v51, 4  ;;  %v3200_v29 = vcombine.low %v4153_v50, %v4162_v24  ;;  %v2172_v0 = vor.u32 %v2171_v56, %v2168_v21  ;;  %v2187_v1 = vrot.slane %v2185_v57, 5  ;;  %v3155_v10 = vld [vmem:[%s3717_s30 + $0x50] sm:$0x1]  ;;  %v3186_v56 = vld [vmem:[%s3717_s30 + $0x48] sm:$0xe] }
  0x87   : > { %v3192_v42 = vrot.slane %v3184_v54, 9  ;;  %v2523_v52 = vrot.slane %v3148_v35, 5  ;;  %v2526_v2 = vrot.slane %v3149_v43, 5  ;;  %v2190_v3 = vshrl.u32 %v3150_v59, 16 }
  0x88   : > { %v2182_v47 = vor.u32 %v2181_v61, %v2177_v30  ;;  %v2173_v5 = vrot.slane %v2172_v0, 4  ;;  %v2193_v6 = vshll.u32 %v3150_v59, 16  ;;  %v2199_v7 = vshll.u32 %v3151_v62, 16 }
  0x89   : > { %v2203_v8 = vshrl.u32 %v3151_v62, 16  ;;  %3497 = vmatmul.mubr.msk.bf16.gmra.mxu0 %vm266_vm2, %v3605_v60  ;;  %v3167_v9 = vcombine.low %v2154_v28, %v2164_v41  ;;  %v2525_v13 = vrot.slane %v2523_v52, 4  ;;  %v2192_v63 = vrot.slane %v2190_v3, 4  ;;  %v3156_v28 = vld [vmem:[%s3717_s30 + $0x54] sm:$0xf] }
  0x8a   : > { %v2183_v12 = vrot.slane %v2182_v47, 4  ;;  %3500 = vmatprep.mubr.msk.bf16.mxu0 %vm266_vm2, %v3606_v44  ;;  %v2178_v11 = vsel %vm3785_vm8, %v2173_v5, %v2177_v30  ;;  %v2195_v16 = vrot.slane %v2193_v6, 5  ;;  %v2201_v18 = vrot.slane %v2199_v7, 5  ;;  %v3157_v47 = vld [vmem:[%s3717_s30 + $0x58] sm:$0xf] }
  0x8b   : > { %v2205_v32 = vrot.slane %v2203_v8, 4  ;;  %v4189_v4 = vsel %vm3771_vm7, %v3192_v42, %v2523_v52  ;;  %v4193_v22 = vsel %vm3771_vm7, %v2525_v13, %v2526_v2  ;;  %v2209_v25 = vshll.u32 %v3152_v49, 16  ;;  %v3158_v5 = vld [vmem:[%s3717_s30 + $0x5c] sm:$0x1] }
  0x8c   : > { %v2188_v39 = vsel %vm3785_vm8, %v2183_v12, %v2187_v1  ;;  %v2196_v35 = vor.u32 %v2195_v16, %v2192_v63  ;;  %v3193_v40 = vrot.slane %v3185_v14, 9  ;;  %v2530_v43 = vrot.slane %v3151_v62, 5  ;;  %v3187_v63 = vld [vmem:[%s3717_s30 + $0x54] sm:$0xe] }
  0x8d   : > { %3483 = vmatmul.mubr.msk.bf16.gmra.mxu1 %vm266_vm2, %v3097_v19  ;;  %v3168_v34 = vcombine.low %v2178_v11, %v2188_v39  ;;  %v2206_v36 = vor.u32 %v2205_v32, %v2201_v18  ;;  %v2211_v38 = vrot.slane %v2209_v25, 5  ;;  %v2533_v45 = vrot.slane %v3152_v49, 5 }
  0x8e   : > { %3506 = vmatprep.mubr.msk.bf16.mxu1 %vm266_vm2, %v3166_v55  ;;  %v2214_v15 = vshrl.u32 %v3153_v20, 16  ;;  %v2197_v46 = vrot.slane %v2196_v35, 4  ;;  %v2217_v51 = vshll.u32 %v3153_v20, 16  ;;  %v2223_v53 = vshll.u32 %v3154_v27, 16 }
  0x8f   : > { %v2207_v48 = vrot.slane %v2206_v36, 4  ;;  %v3201_v33 = vcombine.low %v4189_v4, %v4193_v22  ;;  %v2532_v19 = vrot.slane %v2530_v43, 4  ;;  %v2227_v21 = vshrl.u32 %v3154_v27, 16  ;;  %v3160_v22 = vld [vmem:[%s3717_s30 + $0x64] sm:$0xf] }
  0x90   : > { %v2216_v54 = vrot.slane %v2214_v15, 4  ;;  %v2202_v55 = vsel %vm3785_vm8, %v2197_v46, %v2201_v18  ;;  %v2219_v59 = vrot.slane %v2217_v51, 5  ;;  %v2225_v60 = vrot.slane %v2223_v53, 5  ;;  %v3159_v18 = vld [vmem:[%s3717_s30 + $0x60] sm:$0xf] }
  0x91   : > { %v2212_v57 = vsel %vm3785_vm8, %v2207_v48, %v2211_v38  ;;  %3501 = vmatmul.mubr.msk.bf16.gmra.mxu0 %vm266_vm2, %v3607_v23  ;;  %v4214_v41 = vsel %vm3771_vm7, %v3193_v40, %v2530_v43  ;;  %v4218_v30 = vsel %vm3771_vm7, %v2532_v19, %v2533_v45  ;;  %v2229_v61 = vrot.slane %v2227_v21, 4  ;;  %v3161_v38 = vld [vmem:[%s3717_s30 + $0x68] sm:$0x1] }
  0x92   : > { %v2233_v62 = vshll.u32 %v3155_v10, 16  ;;  %3524 = vmatprep.mubr.msk.bf16.mxu0 %vm266_vm2, %v3199_v26  ;;  %v3169_v44 = vcombine.low %v2202_v55, %v2212_v57  ;;  %v2220_v0 = vor.u32 %v2219_v59, %v2216_v54  ;;  %v3194_v1 = vrot.slane %v3186_v56, 9  ;;  %v3162_v56 = vld [vmem:[%s3717_s30 + $0x6c] sm:$0xf] }
  0x93   : > { %v2537_v42 = vrot.slane %v3154_v27, 5  ;;  %v2230_v52 = vor.u32 %v2229_v61, %v2225_v60  ;;  %v2540_v3 = vrot.slane %v3155_v10, 5  ;;  %v2238_v49 = vshrl.u32 %v3156_v28, 16  ;;  %v3188_v10 = vld [vmem:[%s3717_s30 + $0x60] sm:$0xe] }
  0x94   : > { %v2235_v2 = vrot.slane %v2233_v62, 5  ;;  %v3202_v6 = vcombine.low %v4214_v41, %v4218_v30  ;;  %v2221_v31 = vrot.slane %v2220_v0, 4  ;;  %v2241_v26 = vshll.u32 %v3156_v28, 16 }
  0x95   : > { %3507 = vmatmul.mubr.msk.bf16.vlgmr.msra.gmra.mxu1 %vm266_vm2, %v3167_v9  ;;  %v2539_v17 = vrot.slane %v2537_v42, 4  ;;  %v2231_v7 = vrot.slane %v2230_v52, 4  ;;  %v2240_v8 = vrot.slane %v2238_v49, 4  ;;  %v2247_v12 = vshll.u32 %v3157_v47, 16 }
  0x96   : > { %3510 = vmatprep.mubr.msk.bf16.mxu1 %vm266_vm2, %v3168_v34  ;;  %v2251_v13 = vshrl.u32 %v3157_v47, 16  ;;  %v2226_v14 = vsel %vm3785_vm8, %v2221_v31, %v2225_v60  ;;  %v2538_v9 = vsel %vm3771_vm7, %v3194_v1, %v2537_v42  ;;  %v2243_v11 = vrot.slane %v2241_v26, 5  ;;  %v3163_v60 = vld [vmem:[%s3717_s30 + $0x70] sm:$0xf] }
  0x97   : > { %v2257_v16 = vshll.u32 %v3158_v5, 16  ;;  %v2236_v32 = vsel %vm3785_vm8, %v2231_v7, %v2235_v2  ;;  %v2541_v20 = vsel %vm3771_vm7, %v2539_v17, %v2540_v3  ;;  %v2249_v39 = vrot.slane %v2247_v12, 5  ;;  %v3164_v3 = vld [vmem:[%s3717_s30 + $0x74] sm:$0x1] }
  0x98   : > { %v2253_v4 = vrot.slane %v2251_v13, 4  ;;  %v3170_v25 = vcombine.low %v2226_v14, %v2236_v32  ;;  %v2244_v27 = vor.u32 %v2243_v11, %v2240_v8  ;;  %v3195_v35 = vrot.slane %v3187_v63, 9 }
  0x99   : > { %v2259_v34 = vrot.slane %v2257_v16, 5  ;;  %3525 = vmatmul.mubr.msk.bf16.vlgmr.msra.gmra.mxu0 %vm266_vm2, %v3200_v29  ;;  %v2544_v40 = vrot.slane %v3157_v47, 5  ;;  %v2547_v23 = vrot.slane %v3158_v5, 5  ;;  %v2262_v43 = vshrl.u32 %v3159_v18, 16 }
  0x9a   : > { %v2254_v36 = vor.u32 %v2253_v4, %v2249_v39  ;;  %3528 = vmatprep.mubr.msk.bf16.mxu0 %vm266_vm2, %v3201_v33  ;;  %v2245_v45 = vrot.slane %v2244_v27, 4  ;;  %v2265_v15 = vshll.u32 %v3159_v18, 16  ;;  %v2271_v46 = vshll.u32 %v3160_v22, 16 }
  0x9b   : > { %v2275_v48 = vshrl.u32 %v3160_v22, 16  ;;  %v3203_v51 = vcombine.low %v2538_v9, %v2541_v20  ;;  %v2546_v19 = vrot.slane %v2544_v40, 4  ;;  %v2264_v50 = vrot.slane %v2262_v43, 4  ;;  %v3189_v9 = vld [vmem:[%s3717_s30 + $0x6c] sm:$0xe]  ;;  %s4502_s30 = scalar_lea.vmem %s4556_s3, %s2934_s27 }
  0x9c   : > { %v2255_v53 = vrot.slane %v2254_v36, 4  ;;  %v2250_v24 = vsel %vm3785_vm8, %v2245_v45, %v2249_v39  ;;  %v2267_v29 = vrot.slane %v2265_v15, 5  ;;  %v2273_v54 = vrot.slane %v2271_v46, 5 }
  0x9d   : > { %3511 = vmatmul.mubr.msk.bf16.gmra.mxu1 %vm266_vm2, %v3169_v44  ;;  %v2277_v21 = vrot.slane %v2275_v48, 4  ;;  %v2545_v55 = vsel %vm3771_vm7, %v3195_v35, %v2544_v40  ;;  %v2281_v57 = vshll.u32 %v3161_v38, 16  ;;  %v3196_v59 = vrot.slane %v3188_v10, 9 }
  0x9e   : > { %3514 = vmatprep.mubr.msk.bf16.mxu1 %vm266_vm2, %v3170_v25  ;;  %v2260_v33 = vsel %vm3785_vm8, %v2255_v53, %v2259_v34  ;;  %v2548_v61 = vsel %vm3771_vm7, %v2546_v19, %v2547_v23  ;;  %v2268_v62 = vor.u32 %v2267_v29, %v2264_v50  ;;  %v2551_v1 = vrot.slane %v3160_v22, 5 }
  0x9f   : > { %v3171_v28 = vcombine.low %v2250_v24, %v2260_v33  ;;  %v2278_v44 = vor.u32 %v2277_v21, %v2273_v54  ;;  %v2283_v0 = vrot.slane %v2281_v57, 5  ;;  %v2554_v42 = vrot.slane %v3161_v38, 5  ;;  %v4300_v33 = vld [vmem:[%s4555_s2] ss:$0 sm:$0xff] }
  0xa0   : > { %v2286_v47 = vshrl.u32 %v3162_v56, 16  ;;  %v2269_v52 = vrot.slane %v2268_v62, 4  ;;  %v2289_v5 = vshll.u32 %v3162_v56, 16  ;;  %v2295_v49 = vshll.u32 %v3163_v60, 16 }
  0xa1   : > { %v2279_v2 = vrot.slane %v2278_v44, 4  ;;  %3529 = vmatmul.mubr.msk.bf16.gmra.mxu0 %vm266_vm2, %v3202_v6  ;;  %v2552_v31 = vsel %vm3771_vm7, %v3196_v59, %v2551_v1  ;;  %v2553_v17 = vrot.slane %v2551_v1, 4  ;;  %v2299_v7 = vshrl.u32 %v3163_v60, 16 }
  0xa2   : > { %v2288_v26 = vrot.slane %v2286_v47, 4  ;;  %3532 = vmatprep.mubr.msk.bf16.mxu0 %vm266_vm2, %v3203_v51  ;;  %v2274_v8 = vsel %vm3785_vm8, %v2269_v52, %v2273_v54  ;;  %v2291_v13 = vrot.slane %v2289_v5, 5  ;;  %v2297_v63 = vrot.slane %v2295_v49, 5 }
  0xa3   : > { %v2284_v12 = vsel %vm3785_vm8, %v2279_v2, %v2283_v0  ;;  %v2555_v41 = vsel %vm3771_vm7, %v2553_v17, %v2554_v42  ;;  %v2301_v30 = vrot.slane %v2299_v7, 4  ;;  %v2305_v6 = vshll.u32 %v3164_v3, 16 }
  0xa4   : > { %v3172_v14 = vcombine.low %v2274_v8, %v2284_v12  ;;  %v2292_v11 = vor.u32 %v2291_v13, %v2288_v26  ;;  %v2558_v16 = vrot.slane %v3163_v60, 5  ;;  %v3204_v18 = vcombine.low %v2545_v55, %v2548_v61 }
  0xa5   : > { %3515 = vmatmul.mubr.msk.bf16.gmra.mxu1 %vm266_vm2, %v3171_v28  ;;  %v3205_v32 = vcombine.low %v2552_v31, %v2555_v41  ;;  %v2302_v20 = vor.u32 %v2301_v30, %v2297_v63  ;;  %v2307_v39 = vrot.slane %v2305_v6, 5  ;;  %v3197_v22 = vrot.slane %v3189_v9, 9 }
  0xa6   : > { %3518 = vmatprep.mubr.msk.bf16.mxu1 %vm266_vm2, %v3172_v14  ;;  %v2293_v4 = vrot.slane %v2292_v11, 4  ;;  %v2560_v25 = vrot.slane %v2558_v16, 4  ;;  %v2561_v27 = vrot.slane %v3164_v3, 5 }
  0xa7   : > { %v2303_v34 = vrot.slane %v2302_v20, 4  ;;  %v2559_v23 = vsel %vm3771_vm7, %v3197_v22, %v2558_v16 }
  0xa8   : > { %v2298_v35 = vsel %vm3785_vm8, %v2293_v4, %v2297_v63  ;;  %v2562_v38 = vsel %vm3771_vm7, %v2560_v25, %v2561_v27 }
  0xa9   : > { %3533 = vmatmul.mubr.msk.bf16.gmra.mxu0 %vm266_vm2, %v3204_v18  ;;  %v2308_v36 = vsel %vm3785_vm8, %v2303_v34, %v2307_v39  ;;  %v3206_v43 = vcombine.low %v2559_v23, %v2562_v38 }
  0xaa   : > { %3536 = vmatprep.mubr.msk.bf16.mxu0 %vm266_vm2, %v3205_v32  ;;  %v3173_v40 = vcombine.low %v2298_v35, %v2308_v36 }
  0xad   : > { %3519 = vmatmul.mubr.msk.bf16.gmra.mxu1 %vm266_vm2, %v3173_v40 }
  0xb1   : > { %3537 = vmatmul.mubr.msk.bf16.gmra.mxu0 %vm266_vm2, %v3206_v43 }
  0xd7   : > { %v3382_v45 = vpop.f32.mrf.mxu0  ;;  %v3390_v15 = vpop.f32.mrf.mxu1 }
  0xd8   : > { %v397_v55 = vadd.f32 %v3382_v45, %v4300_v33  ;;  %v405_v34 = vadd.f32 %v3390_v15, %v4300_v33 }
  0xd9   : > { %v332_v46 = vpop.f32.mrf.mxu0  ;;  %v364_v48 = vpop.f32.mrf.mxu1 }
  0xda   : > { %v395_v60 = vadd.f32 %v4300_v33, %v332_v46  ;;  %v403_v40 = vadd.f32 %v4300_v33, %v364_v48 }
  0xdb   : > { %v3383_v58 = vpop.f32.mrf.mxu0  ;;  %v3391_v10 = vpop.f32.mrf.mxu1 }
  0xdc   : > { %v398_v44 = vadd.f32 %v3383_v58, %v4300_v33  ;;  %v406_v45 = vadd.f32 %v3391_v10, %v4300_v33 }
  0xdd   : > { %v335_v51 = vpop.f32.mrf.mxu0  ;;  %v367_v53 = vpop.f32.mrf.mxu1 }
  0xde   : > { %v396_v52 = vadd.f32 %v4300_v33, %v335_v51 }
  0xdf   : > { %v3386_v19 = vpop.f32.mrf.mxu0  ;;  %v4289_v50 = vpop.f32.mrf.mxu1 }
  0xe0   : > { %v401_v7 = vadd.f32 %v3386_v19, %v4300_v33  ;;  %v409_v10 = vadd.f32 %v4289_v50, %v4300_v33 }
  0xe1   : > { %v348_v24 = vpop.f32.mrf.mxu0  ;;  %v4291_v29 = vpop.f32.mrf.mxu1 }
  0xe2   : > { %v399_v12 = vadd.f32 %v4300_v33, %v348_v24  ;;  %v404_v24 = vadd.f32 %v4300_v33, %v367_v53 }
  0xe3   : > { %v3387_v37 = vpop.f32.mrf.mxu0  ;;  %v4293_v54 = vpop.f32.mrf.mxu1 }
  0xe4   : > { %v402_v41 = vadd.f32 %v3387_v37, %v4300_v33 }
  0xe5   : > { %v351_v21 = vpop.f32.mrf.mxu0  ;;  %v4295_v56 = vpop.f32.mrf.mxu1 }
  0xe6   : > { %v400_v16 = vadd.f32 %v4300_v33, %v351_v21 }
  0xe7   : > { %v3418_v57 = vpop.f32.mrf.mxu0 }
  0xe8   : > { %v3400_v59 = vpop.f32.mrf.mxu1 }
  0xe9   : > { %v782_v28 = vadd.f32 %v3400_v59, %v397_v55  ;;  %v974_v61 = vpop.f32.mrf.mxu0 }
  0xea   : > { %v717_v62 = vpop.f32.mrf.mxu1 }
  0xeb   : > { %v4305_v0 = vadd.f32 %v3418_v57, %v782_v28  ;;  %v780_v1 = vadd.f32 %v717_v62, %v395_v60  ;;  %v3419_v47 = vpop.f32.mrf.mxu0 }
  0xec   : > { %v3401_v42 = vpop.f32.mrf.mxu1 }
  0xed   : > { %v4308_v2 = vadd.f32 %v974_v61, %v780_v1  ;;  %v783_v3 = vadd.f32 %v3401_v42, %v398_v44  ;;  %v977_v17 = vpop.f32.mrf.mxu0  ;;  %v407_v61 = vadd.f32 %v4300_v33, %v4291_v29  ;;  %v410_v1 = vadd.f32 %v4293_v54, %v4300_v33 }
  0xee   : > { %v720_v5 = vpop.f32.mrf.mxu1 }
  0xef   : > { %v4310_v49 = vadd.f32 %v3419_v47, %v783_v3  ;;  %v781_v31 = vadd.f32 %v720_v5, %v396_v52  ;;  %v408_v5 = vadd.f32 %v4300_v33, %v4295_v56 }
  0xf1   : > { %v4312_v26 = vadd.f32 %v977_v17, %v781_v31 }
  0xf4   : > { %v3404_v8 = vpop.f32.mrf.mxu1  ;;  %v3422_v63 = vpop.f32.mrf.mxu0 }
  0xf5   : > { %v786_v13 = vadd.f32 %v3404_v8, %v401_v7 }
  0xf6   : > { %v733_v14 = vpop.f32.mrf.mxu1  ;;  %v990_v9 = vpop.f32.mrf.mxu0 }
  0xf7   : > { %v4317_v30 = vadd.f32 %v3422_v63, %v786_v13  ;;  %v784_v6 = vadd.f32 %v733_v14, %v399_v12 }
  0xf8   : > { %v3405_v11 = vpop.f32.mrf.mxu1  ;;  %v3423_v20 = vpop.f32.mrf.mxu0 }
  0xf9   : > { %v4320_v18 = vadd.f32 %v990_v9, %v784_v6  ;;  %v787_v32 = vadd.f32 %v3405_v11, %v402_v41 }
  0xfa   : > { %v736_v39 = vpop.f32.mrf.mxu1  ;;  %v993_v25 = vpop.f32.mrf.mxu0 }
  0xfb   : > { %v4322_v4 = vadd.f32 %v3423_v20, %v787_v32  ;;  %v785_v22 = vadd.f32 %v736_v39, %v400_v16 }
  0xfd   : > { %v4324_v27 = vadd.f32 %v993_v25, %v785_v22 }
 0x100   : > { %v3408_v35 = vpop.f32.mrf.mxu1 }
 0x101   : > { %v3426_v36 = vpop.f32.mrf.mxu0  ;;  %v790_v23 = vadd.f32 %v3408_v35, %v405_v34 }
 0x102   : > { %v749_v38 = vpop.f32.mrf.mxu1 }
 0x103   : > { %v1006_v43 = vpop.f32.mrf.mxu0  ;;  %v4329_v46 = vadd.f32 %v3426_v36, %v790_v23  ;;  %v788_v58 = vadd.f32 %v749_v38, %v403_v40 }
 0x104   : > { %v3409_v51 = vpop.f32.mrf.mxu1 }
 0x105   : > { %v3427_v19 = vpop.f32.mrf.mxu0  ;;  %v4332_v37 = vadd.f32 %v1006_v43, %v788_v58  ;;  %v791_v21 = vadd.f32 %v3409_v51, %v406_v45 }
 0x106   : > { %v752_v15 = vpop.f32.mrf.mxu1 }
 0x107   : > { %v4334_v55 = vadd.f32 %v3427_v19, %v791_v21  ;;  %v789_v57 = vadd.f32 %v752_v15, %v404_v24  ;;  %v1009_v48 = vpop.f32.mrf.mxu0 }
 0x109   : > { %v4336_v59 = vadd.f32 %v1009_v48, %v789_v57 }
 0x10c   : > { %v3430_v60 = vpop.f32.mrf.mxu0 }
 0x10d   : > { %v3412_v28 = vpop.f32.mrf.mxu1 }
 0x10e   : > { %v794_v62 = vadd.f32 %v3412_v28, %v409_v10  ;;  %v1022_v53 = vpop.f32.mrf.mxu0 }
 0x10f   : > { %v765_v44 = vpop.f32.mrf.mxu1 }
 0x110   : > { %v4344_v42 = vadd.f32 %v3430_v60, %v794_v62  ;;  %v792_v47 = vadd.f32 %v765_v44, %v407_v61  ;;  %v3431_v52 = vpop.f32.mrf.mxu0 }
 0x111   : > { %v3413_v3 = vpop.f32.mrf.mxu1 }
 0x112   : > { %v4348_v50 = vadd.f32 %v1022_v53, %v792_v47  ;;  %v795_v31 = vadd.f32 %v3413_v3, %v410_v1  ;;  %v1025_v7 = vpop.f32.mrf.mxu0 }
 0x113   : > { %v768_v17 = vpop.f32.mrf.mxu1 }
 0x114   : > { %4561 = vst [vmem:[#allocation2_spill] sm:$0xff] %v4348_v50  ;;  %v4350_v29 = vadd.f32 %v3431_v52, %v795_v31  ;;  %v793_v8 = vadd.f32 %v768_v17, %v408_v5 }
 0x115   : > { %v3436_v12 = vpop.f32.mrf.mxu1 }
 0x116   : > { %4562 = vst [vmem:[#allocation3_spill] sm:$0xff] %v4350_v29  ;;  %v4352_v13 = vadd.f32 %v1025_v7, %v793_v8 }
 0x117   : > { %v3454_v54 = vpop.f32.mrf.mxu0  ;;  %v1176_v63 = vpop.f32.mrf.mxu1 }
 0x118   : > { %4563 = vst [vmem:[#allocation4_spill] sm:$0xff] %v4352_v13 }
 0x119   : > { %v4354_v14 = vpop.f32.mrf.mxu0  ;;  %v3437_v41 = vpop.f32.mrf.mxu1 }
 0x11b   : > { %v4356_v6 = vpop.f32.mrf.mxu0  ;;  %v1179_v9 = vpop.f32.mrf.mxu1 }
 0x11d   : > { %v4358_v56 = vpop.f32.mrf.mxu0  ;;  %v4360_v33 = vpop.f32.mrf.mxu1 }
 0x11f   : > { %v4362_v11 = vpop.f32.mrf.mxu1 }
 0x120   : > { %v4364_v16 = vpop.f32.mrf.mxu0 }
 0x121   : > { %v4366_v32 = vpop.f32.mrf.mxu1 }
 0x122   : > { %v4368_v20 = vpop.f32.mrf.mxu0 }
 0x123   : > { %v4370_v39 = vpop.f32.mrf.mxu1 }
 0x124   : > { %v4372_v22 = vpop.f32.mrf.mxu0 }
 0x125   : > { %v4374_v25 = vpop.f32.mrf.mxu1 }
 0x126   : > { %v4376_v34 = vpop.f32.mrf.mxu0 }
 0x127   : > { %v4378_v35 = vpop.f32.mrf.mxu1 }
 0x128   : > { %v4380_v36 = vpop.f32.mrf.mxu0 }
 0x129   : > { %v4382_v40 = vpop.f32.mrf.mxu1 }
 0x12a   : > { %v4384_v23 = vpop.f32.mrf.mxu0 }
 0x12b   : > { %v4386_v38 = vpop.f32.mrf.mxu1 }
 0x12c   : > { %v4388_v43 = vpop.f32.mrf.mxu0 }
 0x12d   : > { %v4390_v45 = vpop.f32.mrf.mxu1 }
 0x12e   : > { %v4392_v58 = vpop.f32.mrf.mxu0 }
 0x12f   : > { %4564 = vst [vmem:[#allocation5_spill] sm:$0xff] %v4392_v58  ;;  %v4394_v51 = vpop.f32.mrf.mxu1 }
 0x130   : > { %4565 = vst [vmem:[#allocation6_spill] sm:$0xff] %v4394_v51  ;;  %v1239_v51 = vadd.f32 %v1176_v63, %v4308_v2 }
 0x131   : > { %v4396_v19 = vpop.f32.mrf.mxu1  ;;  %v4398_v24 = vpop.f32.mrf.mxu0 }
 0x132   : > { %4566 = vst [vmem:[#allocation7_spill] sm:$0xff] %v4396_v19  ;;  %4567 = vst [vmem:[#allocation8_spill] sm:$0xff] %v4398_v24  ;;  %v1241_v19 = vadd.f32 %v3436_v12, %v4305_v0  ;;  %v1621_v0 = vadd.f32 %v4354_v14, %v1239_v51  ;;  %v1243_v14 = vadd.f32 %v4362_v11, %v4320_v18 }
 0x133   : > { %v4400_v21 = vpop.f32.mrf.mxu1  ;;  %v4402_v15 = vpop.f32.mrf.mxu0  ;;  %v1249_v11 = vadd.f32 %v4374_v25, %v4329_v46 }
 0x134   : > { %4568 = vst [vmem:[#allocation9_spill] sm:$0xff] %v4400_v21  ;;  %4569 = vst [vmem:[#allocation10_spill] sm:$0xff] %v4402_v15  ;;  %v1625_v18 = vadd.f32 %v4368_v20, %v1243_v14 }
 0x135   : > { %v3472_v57 = vpop.f32.mrf.mxu1  ;;  %v4404_v48 = vpop.f32.mrf.mxu0 }
 0x136   : > { %4570 = vst [vmem:[#allocation11_spill] sm:$0xff] %v4404_v48 }
 0x137   : > { %v1812_v10 = vpop.f32.mrf.mxu1  ;;  %v4406_v60 = vpop.f32.mrf.mxu0 }
 0x138   : > { %4571 = vst [vmem:[#allocation12_spill] sm:$0xff] %v4406_v60 }
 0x139   : > { %v3473_v28 = vpop.f32.mrf.mxu1  ;;  %v3490_v61 = vpop.f32.mrf.mxu0 }
 0x13b   : > { %v1815_v62 = vpop.f32.mrf.mxu1  ;;  %v2014_v53 = vpop.f32.mrf.mxu0 }
 0x13d   : > { %v3476_v44 = vpop.f32.mrf.mxu1  ;;  %v3491_v1 = vpop.f32.mrf.mxu0 }
 0x13f   : > { %v4408_v47 = vpop.f32.mrf.mxu1  ;;  %v2017_v52 = vpop.f32.mrf.mxu0 }
 0x140   : > { %v1879_v20 = vadd.f32 %v4408_v47, %v1625_v18 }
 0x141   : > { %v4410_v3 = vpop.f32.mrf.mxu1  ;;  %v4412_v5 = vpop.f32.mrf.mxu0 }
 0x143   : > { %v4414_v31 = vpop.f32.mrf.mxu1  ;;  %v4416_v17 = vpop.f32.mrf.mxu0 }
 0x145   : > { %v4418_v7 = vpop.f32.mrf.mxu1  ;;  %v4420_v8 = vpop.f32.mrf.mxu0 }
 0x146   : > { %4572 = vst [vmem:[#allocation13_spill] sm:$0xff] %v4418_v7 }
 0x147   : > { %v4422_v60 = vpop.f32.mrf.mxu1  ;;  %v4424_v48 = vpop.f32.mrf.mxu0 }
 0x148   : > { %4573 = vst [vmem:[#allocation14_spill] sm:$0xff] %v4422_v60  ;;  %v1242_v60 = vadd.f32 %v3437_v41, %v4310_v49  ;;  %v1875_v49 = vadd.f32 %v1812_v10, %v1621_v0 }
 0x149   : > { %v4426_v21 = vpop.f32.mrf.mxu1  ;;  %v4428_v13 = vpop.f32.mrf.mxu0 }
 0x14a   : > { %4574 = vst [vmem:[#allocation15_spill] sm:$0xff] %v4426_v21  ;;  %4575 = vst [vmem:[#allocation16_spill] sm:$0xff] %v4428_v13  ;;  %v1623_v13 = vadd.f32 %v3454_v54, %v1241_v19  ;;  %v1624_v2 = vadd.f32 %v4356_v6, %v1242_v60 }
 0x14b   : > { %v4430_v15 = vpop.f32.mrf.mxu1  ;;  %v4432_v24 = vpop.f32.mrf.mxu0 }
 0x14c   : > { %4576 = vst [vmem:[#allocation17_spill] sm:$0xff] %v4430_v15  ;;  %v1240_v15 = vadd.f32 %v1179_v9, %v4312_v26  ;;  %v1877_v63 = vadd.f32 %v3472_v57, %v1623_v13  ;;  %v1245_v26 = vadd.f32 %v4360_v33, %v4317_v30  ;;  %v1878_v54 = vadd.f32 %v3473_v28, %v1624_v2 }
 0x14d   : > { %v4435_v29 = vpop.f32.mrf.mxu1  ;;  %v4438_v50 = vpop.f32.mrf.mxu0  ;;  %v1246_v13 = vadd.f32 %v4366_v32, %v4322_v4  ;;  %v1244_v30 = vadd.f32 %v4370_v39, %v4324_v27  ;;  %v2077_v33 = vadd.f32 %v2014_v53, %v1875_v49  ;;  %v1247_v27 = vadd.f32 %v4378_v35, %v4332_v37 }
 0x14e   : > { %4577 = vst [vmem:[#allocation18_spill] sm:$0xff] %v4435_v29  ;;  %v2079_v51 = vadd.f32 %v3490_v61, %v1877_v63  ;;  %v1627_v57 = vadd.f32 %v4364_v16, %v1245_v26  ;;  %v2080_v10 = vadd.f32 %v3491_v1, %v1878_v54  ;;  %v1250_v1 = vadd.f32 %v4382_v40, %v4334_v55 }
 0x14f   : > { %v4442_v58 = vpop.f32.mrf.mxu1  ;;  %v4444_v21 = vpop.f32.mrf.mxu0  ;;  %v1628_v4 = vadd.f32 %v4372_v22, %v1246_v13  ;;  %v1626_v53 = vadd.f32 %v4376_v34, %v1244_v30  ;;  %v1629_v34 = vadd.f32 %v4384_v23, %v1247_v27  ;;  %v2081_v49 = vadd.f32 %v4416_v17, %v1879_v20  ;;  %v4588_v20 = vld [vmem:[#allocation8_spill] sm:$0xff] }
 0x150   : > { %4578 = vst [vmem:[#allocation19_spill] sm:$0xff] %v4442_v58  ;;  %v1622_v58 = vadd.f32 %v4358_v56, %v1240_v15  ;;  %v1881_v61 = vadd.f32 %v3476_v44, %v1627_v57  ;;  %v1632_v47 = vadd.f32 %v4388_v43, %v1250_v1 }
 0x151   : > { %v4447_v7 = vpop.f32.mrf.mxu1  ;;  %v4450_v12 = vpop.f32.mrf.mxu0  ;;  %v1882_v22 = vadd.f32 %v4410_v3, %v1628_v4  ;;  %v1880_v37 = vadd.f32 %v4414_v31, %v1626_v53  ;;  %v1248_v3 = vadd.f32 %v4386_v38, %v4336_v59 }
 0x152   : > { %v1876_v19 = vadd.f32 %v1815_v62, %v1622_v58  ;;  %v2083_v63 = vadd.f32 %v4412_v5, %v1881_v61  ;;  %v1253_v5 = vadd.f32 %v4390_v45, %v4344_v42  ;;  %v4581_v45 = vld [vmem:[#allocation2_spill] sm:$0xff]  ;;  %v4586_v61 = vld [vmem:[#allocation7_spill] sm:$0xff] }
 0x153   : > { %v4453_v29 = vpop.f32.mrf.mxu1  ;;  %v4455_v41 = vpop.f32.mrf.mxu0  ;;  %v2084_v31 = vadd.f32 %v4420_v8, %v1882_v22  ;;  %v2082_v13 = vadd.f32 %v4424_v48, %v1880_v37  ;;  %v4582_v48 = vld [vmem:[#allocation6_spill] sm:$0xff] }
 0x154   : > { %v2078_v39 = vadd.f32 %v2017_v52, %v1876_v19  ;;  %v1631_v52 = vadd.f32 %v4380_v36, %v1249_v11  ;;  %v1251_v57 = vadd.f32 %v4582_v48, %v4581_v45  ;;  %v1635_v22 = vadd.f32 %v4588_v20, %v1253_v5 }
 0x155   : > { %v3508_v9 = vpop.f32.mrf.mxu1  ;;  %v4466_v6 = vpop.f32.mrf.mxu0 }
 0x156   : > { %v2461_v60 = vadd.f32 %v3508_v9, %v2079_v51  ;;  %v4579_v51 = vld [vmem:[#allocation13_spill] sm:$0xff] }
 0x157   : > { %v2396_v56 = vpop.f32.mrf.mxu1  ;;  %v4470_v15 = vpop.f32.mrf.mxu0  ;;  %v1885_v43 = vadd.f32 %v4579_v51, %v1631_v52  ;;  %v4591_v52 = vld [vmem:[#allocation4_spill] sm:$0xff] }
 0x158   : > { %v2459_v58 = vadd.f32 %v2396_v56, %v2077_v33  ;;  %v4580_v33 = vld [vmem:[#allocation5_spill] sm:$0xff] }
 0x159   : > { %v3509_v28 = vpop.f32.mrf.mxu1  ;;  %v3526_v32 = vpop.f32.mrf.mxu0  ;;  %v1630_v42 = vadd.f32 %v4580_v33, %v1248_v3 }
 0x15a   : > { %v2462_v16 = vadd.f32 %v3509_v28, %v2080_v10  ;;  %v2715_v46 = vadd.f32 %v3526_v32, %v2461_v60  ;;  %v4583_v10 = vld [vmem:[#allocation14_spill] sm:$0xff]  ;;  %v4584_v28 = vld [vmem:[#allocation15_spill] sm:$0xff] }
 0x15b   : > { %v2399_v62 = vpop.f32.mrf.mxu1  ;;  %v2650_v0 = vpop.f32.mrf.mxu0  ;;  %v1883_v60 = vadd.f32 %v4583_v10, %v1629_v34  ;;  %v1886_v18 = vadd.f32 %v4584_v28, %v1632_v47  ;;  %v4592_v34 = vld [vmem:[#allocation9_spill] sm:$0xff] }
 0x15c   : > { %v2460_v25 = vadd.f32 %v2399_v62, %v2078_v39  ;;  %v2713_v35 = vadd.f32 %v2650_v0, %v2459_v58  ;;  %v2731_v54 = vmax.f32 %v2715_v46, 0.0  ;;  %v4585_v39 = vld [vmem:[#allocation3_spill] sm:$0xff]  ;;  %v4587_v62 = vld [vmem:[#allocation17_spill] sm:$0xff]  ;;  %v4589_v0 = vld [vmem:[#allocation16_spill] sm:$0xff] }
 0x15d   : > { %v3512_v2 = vpop.f32.mrf.mxu1  ;;  %v3527_v44 = vpop.f32.mrf.mxu0  ;;  %v1884_v53 = vadd.f32 %v4587_v62, %v1630_v42  ;;  %v2087_v46 = vadd.f32 %v4589_v0, %v1885_v43 }
 0x15e   : > { %v2716_v55 = vadd.f32 %v3527_v44, %v2462_v16  ;;  %v2465_v14 = vadd.f32 %v3512_v2, %v2083_v63  ;;  %v2729_v19 = vmax.f32 %v2713_v35, 0.0  ;;  %v1254_v16 = vadd.f32 %v4586_v61, %v4585_v39  ;;  %v4590_v35 = vld [vmem:[#allocation10_spill] sm:$0xff] }
 0x15f   : > { %v2412_v40 = vpop.f32.mrf.mxu1  ;;  %v2653_v26 = vpop.f32.mrf.mxu0  ;;  %v1633_v44 = vadd.f32 %v4590_v35, %v1251_v57  ;;  %v1252_v63 = vadd.f32 %v4592_v34, %v4591_v52 }
 0x160   : > { %v2732_v9 = vmax.f32 %v2716_v55, 0.0  ;;  %v2714_v36 = vadd.f32 %v2653_v26, %v2460_v25  ;;  %v2463_v8 = vadd.f32 %v2412_v40, %v2081_v49  ;;  %v2085_v55 = vadd.f32 %v4432_v24, %v1883_v60 }
 0x161   : > { %v3513_v23 = vpop.f32.mrf.mxu1  ;;  %v3530_v59 = vpop.f32.mrf.mxu0  ;;  %v2088_v40 = vadd.f32 %v4438_v50, %v1886_v18 }
 0x162   : > { %v3258_v38 = vpack.c.bf16 %v2732_v9, %v2731_v54  ;;  %v2730_v17 = vmax.f32 %v2714_v36, 0.0  ;;  %v2466_v56 = vadd.f32 %v3513_v23, %v2084_v31  ;;  %v2719_v32 = vadd.f32 %v3530_v59, %v2465_v14  ;;  %v4593_v9 = vld [vmem:[#allocation11_spill] sm:$0xff]  ;;  %v4594_v23 = vld [vmem:[#allocation18_spill] sm:$0xff] }
 0x163   : > { %v2415_v30 = vpop.f32.mrf.mxu1  ;;  %v2666_v4 = vpop.f32.mrf.mxu0  ;;  %v1636_v36 = vadd.f32 %v4593_v9, %v1254_v16  ;;  %v2086_v14 = vadd.f32 %v4444_v21, %v1884_v53  ;;  %v1889_v5 = vadd.f32 %v4594_v23, %v1635_v22 }
 0x164   : > { %3290 = vst [vmem:[%s4502_s30 + $0x8] sm:$0xff] %v3258_v38   ;;  %v3253_v11 = vpack.c.bf16 %v2730_v17, %v2729_v19  ;;  %v2464_v58 = vadd.f32 %v2415_v30, %v2082_v13  ;;  %v2717_v25 = vadd.f32 %v2666_v4, %v2463_v8  ;;  %v2735_v3 = vmax.f32 %v2719_v32, 0.0  ;;  %v4595_v38 = vld [vmem:[#allocation12_spill] sm:$0xff]  ;;  %v4596_v8 = vld [vmem:[#allocation19_spill] sm:$0xff] }
 0x165   : > { %v3516_v27 = vpop.f32.mrf.mxu1  ;;  %v3531_v1 = vpop.f32.mrf.mxu0  ;;  %v1634_v17 = vadd.f32 %v4595_v38, %v1252_v63  ;;  %v1890_v30 = vadd.f32 %v4447_v7, %v1636_v36  ;;  %v2091_v28 = vadd.f32 %v4450_v12, %v1889_v5 }
 0x166   : > { %3254 = vst [vmem:[%s4502_s30] sm:$0xff] %v3253_v11   ;;  %v2720_v2 = vadd.f32 %v3531_v1, %v2466_v56  ;;  %v2469_v26 = vadd.f32 %v3516_v27, %v2087_v46  ;;  %v2733_v43 = vmax.f32 %v2717_v25, 0.0  ;;  %v1887_v56 = vadd.f32 %v4596_v8, %v1633_v44 }
 0x167   : > { %v2428_v37 = vpop.f32.mrf.mxu1  ;;  %v2669_v47 = vpop.f32.mrf.mxu0  ;;  %v1888_v57 = vadd.f32 %v4453_v29, %v1634_v17  ;;  %v2092_v32 = vadd.f32 %v4466_v6, %v1890_v30 }
 0x168   : > { %v2736_v49 = vmax.f32 %v2720_v2, 0.0  ;;  %v2718_v31 = vadd.f32 %v2669_v47, %v2464_v58  ;;  %v2467_v51 = vadd.f32 %v2428_v37, %v2085_v55  ;;  %v2089_v11 = vadd.f32 %v4455_v41, %v1887_v56 }
 0x169   : > { %v3517_v54 = vpop.f32.mrf.mxu1  ;;  %v3534_v13 = vpop.f32.mrf.mxu0  ;;  %v2090_v29 = vadd.f32 %v4470_v15, %v1888_v57 }
 0x16a   : > { %v3268_v19 = vpack.c.bf16 %v2736_v49, %v2735_v3  ;;  %v2734_v24 = vmax.f32 %v2718_v31, 0.0  ;;  %v2470_v50 = vadd.f32 %v3517_v54, %v2088_v40  ;;  %v2723_v21 = vadd.f32 %v3534_v13, %v2469_v26 }
 0x16b   : > { %v2431_v59 = vpop.f32.mrf.mxu1  ;;  %v2682_v33 = vpop.f32.mrf.mxu0 }
 0x16c   : > { %3292 = vst [vmem:[%s4502_s30 + $0x18] sm:$0xff] %v3268_v19   ;;  %v3263_v42 = vpack.c.bf16 %v2734_v24, %v2733_v43  ;;  %v2468_v45 = vadd.f32 %v2431_v59, %v2086_v14  ;;  %v2721_v10 = vadd.f32 %v2682_v33, %v2467_v51  ;;  %v2739_v58 = vmax.f32 %v2723_v21, 0.0 }
 0x16d   : > { %v3520_v48 = vpop.f32.mrf.mxu1  ;;  %v3535_v60 = vpop.f32.mrf.mxu0 }
 0x16e   : > { %3291 = vst [vmem:[%s4502_s30 + $0x10] sm:$0xff] %v3263_v42   ;;  %v2724_v18 = vadd.f32 %v3535_v60, %v2470_v50  ;;  %v2473_v61 = vadd.f32 %v3520_v48, %v2091_v28  ;;  %v2737_v62 = vmax.f32 %v2721_v10, 0.0 }
 0x16f   : > { %v2444_v4 = vpop.f32.mrf.mxu1  ;;  %v2685_v7 = vpop.f32.mrf.mxu0 }
 0x170   : > { %v2740_v27 = vmax.f32 %v2724_v18, 0.0  ;;  %v2722_v39 = vadd.f32 %v2685_v7, %v2468_v45  ;;  %v2471_v20 = vadd.f32 %v2444_v4, %v2089_v11 }
 0x171   : > { %v3521_v16 = vpop.f32.mrf.mxu1  ;;  %v3538_v53 = vpop.f32.mrf.mxu0 }
 0x172   : > { %v3278_v12 = vpack.c.bf16 %v2740_v27, %v2739_v58  ;;  %v2738_v1 = vmax.f32 %v2722_v39, 0.0  ;;  %v2474_v22 = vadd.f32 %v3521_v16, %v2092_v32  ;;  %v2727_v46 = vadd.f32 %v3538_v53, %v2473_v61 }
 0x173   : > { %v2447_v0 = vpop.f32.mrf.mxu1  ;;  %v2698_v41 = vpop.f32.mrf.mxu0 }
 0x174   : > { %3294 = vst [vmem:[%s4502_s30 + $0x28] sm:$0xff] %v3278_v12   ;;  %v3273_v6 = vpack.c.bf16 %v2738_v1, %v2737_v62  ;;  %v2472_v25 = vadd.f32 %v2447_v0, %v2090_v29  ;;  %v2725_v37 = vadd.f32 %v2698_v41, %v2471_v20  ;;  %v2743_v15 = vmax.f32 %v2727_v46, 0.0 }
 0x175   : > { %v3539_v2 = vpop.f32.mrf.mxu0 }
 0x176   : > { %3293 = vst [vmem:[%s4502_s30 + $0x20] sm:$0xff] %v3273_v6   ;;  %v2728_v35 = vadd.f32 %v3539_v2, %v2474_v22  ;;  %v2741_v63 = vmax.f32 %v2725_v37, 0.0 }
 0x177   : > { %v2701_v44 = vpop.f32.mrf.mxu0 }
 0x178   : > { %v2744_v52 = vmax.f32 %v2728_v35, 0.0  ;;  %v2726_v34 = vadd.f32 %v2701_v44, %v2472_v25 }
 0x17a   : > { %v3288_v55 = vpack.c.bf16 %v2744_v52, %v2743_v15  ;;  %v2742_v40 = vmax.f32 %v2726_v34, 0.0 }
 0x17c   : > { %3296 = vst [vmem:[%s4502_s30 + $0x38] sm:$0xff] %v3288_v55   ;;  %v3283_v47 = vpack.c.bf16 %v2742_v40, %v2741_v63 }
 0x17e   : > { %3295 = vst [vmem:[%s4502_s30 + $0x30] sm:$0xff] %v3283_v47  }
 0x17f PF: > { %s13_s16 = sadd.s32 1, %s3646_s16   ;;  %s4597_s12 = smov %s3638_s14 }
 0x180   : > { %p10_p7 = scmp.ge.s32.totalorder %s13_s16, 6   ;;  %s4598_s13 = smov %s3642_s15 }
 0x181   : > { %s4599_s14 = smov %s4602_s17  ;;  %s4600_s15 = smov %s4606_s18 }
 0x182   :  { %12 = sbr.rel (!%p10_p7) target bundleno = 3 (0x3), region = 73 }

// kernel: discriminator_forward.12
= control target key start
LH: loop header
LB: loop body
LE: loop exit
PB: predicated region body
PF: predicated region fallthrough
CT: control target
= control target key end

     0   :  { %s4437_s12 = smov 0   ;;  %s4439_s13 = smov 0   ;;  %s5459_s0 = inlined_call_operand.vmem [shape: bf16[2,18,18,128], index: 0, kind: input, shape index: {}]   ;;  %s5460_s1 = inlined_call_operand.vmem [shape: bf16[3,3,128,128], index: 1, kind: input, shape index: {}]   ;;  %s5461_s2 = inlined_call_operand.vmem [shape: f32[1,128], index: 2, kind: input, shape index: {}]   ;;  %s5462_s3 = inlined_call_operand.vmem [shape: bf16[2,16,16,128], index: 3, kind: output, shape index: {}]  }
   0x1   :  { %s4441_s14 = smov 0   ;;  %s4443_s15 = smov 0  }
   0x2   :  { %s4445_s16 = smov 0  }
   0x3 LB: > { %s22_s17 = sadd.s32 1, %s4407_s14  ;;  %s25_s18 = sadd.s32 1, %s4411_s15  ;;  %s4415_s16 = sphi %s4445_s16, %s13_s16   ;;  %s4411_s15 = sphi %s4443_s15, %s5504_s15   ;;  %s4407_s14 = sphi %s4441_s14, %s5503_s14   ;;  %s4403_s13 = sphi %s4439_s13, %s5502_s13   ;;  %s4399_s12 = sphi %s4437_s12, %s5501_s12  }
   0x4   : > { %p23_p0 = scmp.ge.s32.totalorder %s22_s17, 2  ;;  %p3304_p1 = scmp.ge.s32.totalorder %s4415_s16, 1 }
   0x5   : > { %p151_p2 = scmp.lt.s32.totalorder %s4415_s16, 5 }
   0x6   : > { %s5506_s17 = smov (%p23_p0, %s22_s17), 0  ;;  %s5508_s18 = smov (!%p23_p0, %s25_s18), %s4411_s15 }
   0x7   : > { %p152_p3 = pnand %p3304_p1, %p151_p2  ;;  %p27_p4 = scmp.ge.s32.totalorder %s5508_s18, 2 }
   0x9   : > { %s5510_s18 = smov (%p27_p4, %s5508_s18), 0  ;;  %155 = sbr.rel (%p152_p3) target bundleno = 398 (0x18e), region = 32 }
   0xe   : > { %v4281_v0 = vld [vmem:[%s5460_s1 + $0x38] sm:$0xff]   ;;  %p180_p5 = scmp.lt.s32.totalorder %s4403_s13, 1  ;;  %v4283_v2 = vld [vmem:[%s5460_s1 + $0x30] sm:$0xff]   ;;  %v4285_v4 = vld [vmem:[%s5460_s1 + $0x28] sm:$0xff]   ;;  %s3728_s9 = smul.u32 96, %s4399_s12  ;;  %vm911_vm3 = vcmask 1042432  }
   0xf   : > { %v4282_v1 = vld [vmem:[%s5460_s1 + $0x78] sm:$0xff]   ;;  %3936 = vmatprep.subr.bf16.mxu0 %v4281_v0  ;;  %v4284_v3 = vld [vmem:[%s5460_s1 + $0x70] sm:$0xff]   ;;  %v4286_v5 = vld [vmem:[%s5460_s1 + $0x68] sm:$0xff]   ;;  %vm474_vm0 = vsmask.f32 3328  ;;  %vm912_vm4 = vcmask 1046532  }
  0x10   : > { %3968 = vmatprep.subr.bf16.mxu1 %v4282_v1  ;;  %3937 = vmatpush3.bf16.msra.mxu0 %v4281_v0  ;;  %s5512_s13 = smov (!%p180_p5, %s4403_s13), 1  ;;  %v4287_v6 = vld [vmem:[%s5460_s1 + $0x20] sm:$0xff]   ;;  %v4289_v8 = vld [vmem:[%s5460_s1 + $0x18] sm:$0xff]   ;;  %v4291_v10 = vld [vmem:[%s5460_s1 + $0x10] sm:$0xff]   ;;  %vm475_vm1 = vsmask.f32 7440 }
  0x11   : > { %3969 = vmatpush3.bf16.msra.mxu1 %v4282_v1  ;;  %3938 = vmatprep.subr.bf16.mxu0 %v4283_v2  ;;  %s4240_s4 = smul.u32 216, %s5512_s13  ;;  %v4288_v7 = vld [vmem:[%s5460_s1 + $0x60] sm:$0xff]   ;;  %v4290_v9 = vld [vmem:[%s5460_s1 + $0x58] sm:$0xff]   ;;  %v4292_v11 = vld [vmem:[%s5460_s1 + $0x50] sm:$0xff]   ;;  %s3308_s10 = sshll.u32 %s5512_s13, 5 }
  0x12   : > { %3970 = vmatprep.subr.bf16.mxu1 %v4284_v3  ;;  %v4293_v18 = vld [vmem:[%s5460_s1 + $0x8] sm:$0xff]   ;;  %v4295_v29 = vld [vmem:[%s5460_s1] sm:$0xff]   ;;  %vm4546_vm2 = vmor %vm474_vm0, %vm475_vm1 }
  0x13   : > { %s184_s19 = scalar_lea.vmem %s5459_s0, %s4240_s4  ;;  %v4294_v24 = vld [vmem:[%s5460_s1 + $0x48] sm:$0xff]   ;;  %v4296_v35 = vld [vmem:[%s5460_s1 + $0x40] sm:$0xff]   ;;  %v4299_v52 = vld [vmem:[%s5460_s1 + $0xb8] sm:$0xff]  }
  0x14   : > { %3939 = vmatpush3.bf16.msra.mxu0 %v4283_v2  ;;  %s4509_s26 = scalar_lea.vmem %s184_s19, %s3728_s9  ;;  %v4300_v55 = vld [vmem:[%s5460_s1 + $0xf8] sm:$0xff]   ;;  %v4301_v1 = vld [vmem:[%s5460_s1 + $0xb0] sm:$0xff]   ;;  %vm4697_vm5 = vmor %vm911_vm3, %vm912_vm4  ;;  %s3306_s9 = sshll.u32 %s4399_s12, 3 }
  0x15   : > { %3971 = vmatpush3.bf16.msra.mxu1 %v4284_v3  ;;  %3940 = vmatprep.subr.bf16.mxu0 %v4285_v4  ;;  %v4297_v12 = vld [vmem:[%s4509_s26] sm:$0xff]   ;;  %v4520_v15 = vld [vmem:[%s4509_s26 + $0x8] sm:$0x1]  ;;  %v453_v28 = vld [vmem:[%s4509_s26 + $0xc] sm:$0xf]  ;;  %p188_p6 = scmp.lt.s32.totalorder %s3306_s9, 15 }
  0x16   : > { %3972 = vmatprep.subr.bf16.mxu1 %v4286_v5  ;;  %v450_v13 = vld [vmem:[%s4509_s26] sm:$0xf]  ;;  %v4517_v14 = vld [vmem:[%s4509_s26 + $0x4] sm:$0xf]  ;;  %3952 = vmatprep.mubr.bf16.mxu0 %v4297_v12  ;;  %v497_v21 = vshll.u32 %v4520_v15, 16  ;;  %v502_v33 = vshrl.u32 %v453_v28, 16 }
  0x17   : > { %v478_v16 = vshrl.u32 %v450_v13, 16  ;;  %v481_v17 = vshll.u32 %v450_v13, 16  ;;  %v487_v19 = vshll.u32 %v4517_v14, 16  ;;  %v491_v20 = vshrl.u32 %v4517_v14, 16  ;;  %v4536_v31 = vld [vmem:[%s4509_s26 + $0x10] sm:$0xf] }
  0x18   : > { %3941 = vmatpush3.bf16.msra.mxu0 %v4285_v4  ;;  %v499_v27 = vrot.slane %v497_v21, 5  ;;  %v4539_v32 = vld [vmem:[%s4509_s26 + $0x14] sm:$0x1]  ;;  %v505_v34 = vshll.u32 %v453_v28, 16  ;;  %v511_v38 = vshll.u32 %v4536_v31, 16  ;;  %v515_v39 = vshrl.u32 %v4536_v31, 16 }
  0x19   : > { %3973 = vmatpush3.bf16.msra.mxu1 %v4286_v5  ;;  %3942 = vmatprep.subr.bf16.mxu0 %v4287_v6  ;;  %v480_v22 = vrot.slane %v478_v16, 4  ;;  %v483_v23 = vrot.slane %v481_v17, 5  ;;  %v489_v25 = vrot.slane %v487_v19, 5  ;;  %v493_v26 = vrot.slane %v491_v20, 4  ;;  %v4298_v57 = vld [vmem:[%s4509_s26 + $0xc] sm:$0xff]   ;;  %s5514_s9 = smov (!%p188_p6, %s3306_s9), 15 }
  0x1a   : > { %3974 = vmatprep.subr.bf16.mxu1 %v4288_v7  ;;  %v521_v40 = vshll.u32 %v4539_v32, 16  ;;  %v504_v42 = vrot.slane %v502_v33, 4  ;;  %v507_v43 = vrot.slane %v505_v34, 5  ;;  %v923_v44 = vrot.slane %v4536_v31, 5  ;;  %v456_v62 = vld [vmem:[%s4509_s26 + $0x18] sm:$0xf] }
  0x1b   : > { %v484_v30 = vor.u32 %v483_v23, %v480_v22  ;;  %v494_v37 = vor.u32 %v493_v26, %v489_v25  ;;  %v919_v46 = vrot.slane %v4520_v15, 5  ;;  %v513_v47 = vrot.slane %v511_v38, 5  ;;  %v4573_v63 = vld [vmem:[%s4509_s26 + $0x1c] sm:$0xf]  ;;  %v4581_v2 = vld [vmem:[%s4509_s26 + $0x20] sm:$0x1] }
  0x1c   : > { %3943 = vmatpush3.bf16.msra.mxu0 %v4287_v6  ;;  %v517_v48 = vrot.slane %v515_v39, 4  ;;  %v508_v50 = vor.u32 %v507_v43, %v504_v42  ;;  %v523_v51 = vrot.slane %v521_v40, 5  ;;  %v4568_v59 = vrot.slane %v923_v44, 4  ;;  %v459_v17 = vld [vmem:[%s4509_s26 + $0x24] sm:$0xf]  ;;  %v4305_v26 = vld [vmem:[%s5460_s1 + $0xa8] sm:$0xff]  }
  0x1d   : > { %3975 = vmatpush3.bf16.msra.mxu1 %v4288_v7  ;;  %3944 = vmatprep.subr.bf16.mxu0 %v4289_v8  ;;  %v485_v41 = vrot.slane %v484_v30, 4  ;;  %v495_v45 = vrot.slane %v494_v37, 4  ;;  %v926_v61 = vrot.slane %v4539_v32, 5  ;;  %v526_v3 = vshrl.u32 %v456_v62, 16  ;;  %v4302_v7 = vld [vmem:[%s5460_s1 + $0xf0] sm:$0xff]   ;;  %v4304_v38 = vld [vmem:[%s4509_s26 + $0x24] sm:$0xff]  }
  0x1e   : > { %3976 = vmatprep.subr.bf16.mxu1 %v4290_v9  ;;  %v518_v54 = vor.u32 %v517_v48, %v513_v47  ;;  %v509_v58 = vrot.slane %v508_v50, 4  ;;  %v529_v4 = vshll.u32 %v456_v62, 16  ;;  %v535_v5 = vshll.u32 %v4573_v63, 16  ;;  %v4594_v20 = vld [vmem:[%s4509_s26 + $0x28] sm:$0xf]  ;;  %v4307_v43 = vld [vmem:[%s5460_s1 + $0xa0] sm:$0xff]  }
  0x1f   : > { %v490_v49 = vsel %vm4546_vm2, %v485_v41, %v489_v25  ;;  %v500_v53 = vsel %vm4546_vm2, %v495_v45, %v499_v27  ;;  %v528_v12 = vrot.slane %v526_v3, 4  ;;  %v4597_v21 = vld [vmem:[%s4509_s26 + $0x2c] sm:$0x1]  ;;  %v550_v23 = vshrl.u32 %v459_v17, 16  ;;  %s3307_s12 = sshll.u32 %s5514_s9, 1 }
  0x20   : > { %3945 = vmatpush3.bf16.msra.mxu0 %v4289_v8  ;;  %v3346_v56 = vcombine.low %v490_v49, %v500_v53  ;;  %v519_v60 = vrot.slane %v518_v54, 4  ;;  %v514_v0 = vsel %vm4546_vm2, %v509_v58, %v513_v47  ;;  %v539_v8 = vshrl.u32 %v4573_v63, 16  ;;  %v4306_v40 = vld [vmem:[%s5460_s1 + $0xe8] sm:$0xff]   ;;  %v4308_v49 = vld [vmem:[%s5460_s1 + $0xe0] sm:$0xff]   ;;  %v462_v53 = vld [vmem:[%s4509_s26 + $0x30] sm:$0xf]  ;;  %s5380_s13 = sadd.s32 %s3308_s10, %s3307_s12 }
  0x21   : > { %3977 = vmatpush3.bf16.msra.mxu1 %v4290_v9  ;;  %3946 = vmatprep.subr.bf16.mxu0 %v4291_v10  ;;  %v545_v9 = vshll.u32 %v4581_v2, 16  ;;  %v531_v13 = vrot.slane %v529_v4, 5  ;;  %v537_v16 = vrot.slane %v535_v5, 5  ;;  %v559_v25 = vshll.u32 %v4594_v20, 16  ;;  %v4622_v54 = vld [vmem:[%s4509_s26 + $0x34] sm:$0xf] }
  0x22   : > { %3978 = vmatprep.subr.bf16.mxu1 %v4292_v11  ;;  %3984 = vmatprep.mubr.bf16.mxu1 %v3346_v56  ;;  %v524_v6 = vsel %vm4546_vm2, %v519_v60, %v523_v51  ;;  %v563_v28 = vshrl.u32 %v4594_v20, 16  ;;  %v552_v33 = vrot.slane %v550_v23, 4  ;;  %v4625_v56 = vld [vmem:[%s4509_s26 + $0x38] sm:$0x1]  ;;  %v577_v58 = vshll.u32 %v462_v53, 16  ;;  %s3309_s11 = sshll.u32 %s5380_s13, 2 }
  0x23   : > { %v547_v19 = vrot.slane %v545_v9, 5  ;;  %v532_v22 = vor.u32 %v531_v13, %v528_v12  ;;  %v583_v60 = vshll.u32 %v4622_v54, 16  ;;  %v4637_v12 = vld [vmem:[%s4509_s26 + $0x40] sm:$0xf]  ;;  %v4640_v13 = vld [vmem:[%s4509_s26 + $0x44] sm:$0x1]  ;;  %s5411_s21 = scalar_lea.vmem %s5462_s3, %s3309_s11 }
  0x24   : > { %3947 = vmatpush3.bf16.msra.mxu0 %v4291_v10  ;;  %v3347_v10 = vcombine.low %v514_v0, %v524_v6  ;;  %v565_v39 = vrot.slane %v563_v28, 4  ;;  %v587_v0 = vshrl.u32 %v4622_v54, 16  ;;  %v579_v5 = vrot.slane %v577_v58, 5 }
  0x25   : > { %3979 = vmatpush3.bf16.msra.mxu1 %v4292_v11  ;;  %3948 = vmatprep.subr.bf16.mxu0 %v4293_v18  ;;  %v4303_v11 = vld [vmem:[%s4509_s26 + $0x18] sm:$0xff]   ;;  %v533_v30 = vrot.slane %v532_v22, 4  ;;  %v585_v6 = vrot.slane %v583_v60, 5  ;;  %v937_v32 = vrot.slane %v4594_v20, 5  ;;  %v4325_v20 = vld [vmem:[%s5460_s1 + $0x130] sm:$0xff]   ;;  %v944_v31 = vrot.slane %v4622_v54, 5 }
  0x26   : > { %3980 = vmatprep.subr.bf16.mxu1 %v4294_v24  ;;  %v589_v9 = vrot.slane %v587_v0, 4  ;;  %v4311_v22 = vld [vmem:[%s5460_s1 + $0x98] sm:$0xff]  }
  0x27   : > { %v538_v41 = vsel %vm4546_vm2, %v533_v30, %v537_v16  ;;  %v4316_v0 = vld [vmem:[%s4509_s26 + $0x54] sm:$0xff]  }
  0x28   : > { %3949 = vmatpush3.bf16.msra.mxu0 %v4293_v18  ;;  %v541_v18 = vrot.slane %v539_v8, 4  ;;  %v590_v23 = vor.u32 %v589_v9, %v585_v6 }
  0x29   : > { %3981 = vmatpush3.bf16.msra.mxu1 %v4294_v24  ;;  %3950 = vmatprep.subr.bf16.mxu0 %v4295_v29  ;;  %v553_v24 = vshll.u32 %v459_v17, 16 }
  0x2a   : > { %3982 = vmatprep.subr.bf16.mxu1 %v4296_v35  ;;  %v542_v27 = vor.u32 %v541_v18, %v537_v16  ;;  %v591_v30 = vrot.slane %v590_v23, 4 }
  0x2b   : > { %v555_v34 = vrot.slane %v553_v24, 5  ;;  %v611_v24 = vshrl.u32 %v4637_v12, 16 }
  0x2c   : > { %3951 = vmatpush3.bf16.msra.mxu0 %v4295_v29  ;;  %v569_v29 = vshll.u32 %v4597_v21, 16  ;;  %v543_v37 = vrot.slane %v542_v27, 4 }
  0x2d   : > { %3983 = vmatpush3.bf16.msra.mxu1 %v4296_v35  ;;  %4000 = vmatprep.subr.bf16.mxu0 %v4299_v52  ;;  %v561_v35 = vrot.slane %v559_v25, 5  ;;  %v556_v42 = vor.u32 %v555_v34, %v552_v33  ;;  %v617_v25 = vshll.u32 %v4640_v13, 16  ;;  %v613_v33 = vrot.slane %v611_v24, 4  ;;  %v4312_v34 = vld [vmem:[%s5460_s1 + $0xd8] sm:$0xff]  }
  0x2e   : > { %4032 = vmatprep.subr.bf16.mxu1 %v4300_v55  ;;  %v548_v45 = vsel %vm4546_vm2, %v543_v37, %v547_v19  ;;  %v571_v48 = vrot.slane %v569_v29, 5  ;;  %v607_v19 = vshll.u32 %v4637_v12, 16 }
  0x2f   : > { %3953 = vmatmul.mubr.bf16.vlgmr.msra.gmra.mxu0 %v4298_v57  ;;  %v566_v47 = vor.u32 %v565_v39, %v561_v35  ;;  %v3348_v50 = vcombine.low %v538_v41, %v548_v45  ;;  %v557_v51 = vrot.slane %v556_v42, 4  ;;  %v574_v57 = vshrl.u32 %v462_v53, 16  ;;  %v4669_v53 = vld [vmem:[%s4509_s26 + $0x50] sm:$0x1] }
  0x30   : > { %3985 = vmatmul.mubr.bf16.vlgmr.msra.gmra.mxu1 %v3347_v10  ;;  %4001 = vmatpush3.bf16.msra.mxu0 %v4299_v52  ;;  %v4309_v52 = vld [vmem:[%s4509_s26 + $0x30] sm:$0xff]   ;;  %v609_v29 = vrot.slane %v607_v19, 5  ;;  %v619_v39 = vrot.slane %v617_v25, 5  ;;  %v930_v45 = vrot.slane %v4573_v63, 5 }
  0x31   : > { %4033 = vmatpush3.bf16.msra.mxu1 %v4300_v55  ;;  %4002 = vmatprep.subr.bf16.mxu0 %v4301_v1  ;;  %v567_v55 = vrot.slane %v566_v47, 4  ;;  %v562_v62 = vsel %vm4546_vm2, %v557_v51, %v561_v35  ;;  %v576_v4 = vrot.slane %v574_v57, 4  ;;  %v916_v35 = vrot.slane %v4517_v14, 5  ;;  %v4324_v14 = vld [vmem:[%s5460_s1 + $0x178] sm:$0xff]   ;;  %v4326_v63 = vld [vmem:[%s5460_s1 + $0x170] sm:$0xff]  }
  0x32   : > { %4034 = vmatprep.subr.bf16.mxu1 %v4302_v7  ;;  %3956 = vmatprep.mubr.bf16.mxu0 %v4303_v11  ;;  %v4310_v11 = vld [vmem:[%s4509_s26 + $0x3c] sm:$0xff]   ;;  %v614_v42 = vor.u32 %v613_v33, %v609_v29 }
  0x33   : > { %3988 = vmatprep.mubr.bf16.mxu1 %v3348_v50  ;;  %v572_v3 = vsel %vm4546_vm2, %v567_v55, %v571_v48  ;;  %v580_v16 = vor.u32 %v579_v5, %v576_v4  ;;  %v468_v50 = vld [vmem:[%s4509_s26 + $0x48] sm:$0xf]  ;;  %v641_v4 = vshll.u32 %v4669_v53, 16  ;;  %v471_v5 = vld [vmem:[%s4509_s26 + $0x54] sm:$0xf] }
  0x34   : > { %4003 = vmatpush3.bf16.msra.mxu0 %v4301_v1  ;;  %v593_v1 = vshll.u32 %v4625_v56, 16  ;;  %v3349_v8 = vcombine.low %v562_v62, %v572_v3  ;;  %v615_v51 = vrot.slane %v614_v42, 4  ;;  %v622_v55 = vshrl.u32 %v468_v50, 16  ;;  %v4319_v42 = vld [vmem:[%s5460_s1 + $0x80] sm:$0xff]  }
  0x35   : > { %4035 = vmatpush3.bf16.msra.mxu1 %v4302_v7  ;;  %4004 = vmatprep.subr.bf16.mxu0 %v4305_v26  ;;  %v465_v7 = vld [vmem:[%s4509_s26 + $0x3c] sm:$0xf]  ;;  %v625_v58 = vshll.u32 %v468_v50, 16  ;;  %v649_v19 = vshll.u32 %v471_v5, 16  ;;  %v932_v50 = vrot.slane %v930_v45, 4 }
  0x36   : > { %4036 = vmatprep.subr.bf16.mxu1 %v4306_v40  ;;  %v595_v10 = vrot.slane %v593_v1, 5  ;;  %v598_v17 = vshrl.u32 %v465_v7, 16  ;;  %v601_v18 = vshll.u32 %v465_v7, 16  ;;  %v620_v1 = vsel %vm4546_vm2, %v615_v51, %v619_v39 }
  0x37   : > { %3957 = vmatmul.mubr.bf16.gmra.mxu0 %v4304_v38  ;;  %v624_v3 = vrot.slane %v622_v55, 4  ;;  %v627_v7 = vrot.slane %v625_v58, 5  ;;  %v918_v39 = vrot.slane %v916_v35, 4  ;;  %v933_v58 = vrot.slane %v4581_v2, 5 }
  0x38   : > { %4005 = vmatpush3.bf16.msra.mxu0 %v4305_v26  ;;  %3960 = vmatprep.mubr.bf16.mxu0 %v4309_v52  ;;  %v581_v26 = vrot.slane %v580_v16, 4  ;;  %v600_v27 = vrot.slane %v598_v17, 4  ;;  %v603_v28 = vrot.slane %v601_v18, 5  ;;  %v596_v41 = vsel %vm4546_vm2, %v591_v30, %v595_v10  ;;  %v4666_v52 = vld [vmem:[%s4509_s26 + $0x4c] sm:$0xf] }
  0x39   : > { %4037 = vmatpush3.bf16.msra.mxu1 %v4306_v40  ;;  %4006 = vmatprep.subr.bf16.mxu0 %v4307_v43  ;;  %v4313_v40 = vld [vmem:[%s5460_s1 + $0x90] sm:$0xff]   ;;  %v631_v60 = vshll.u32 %v4666_v52, 16  ;;  %v635_v62 = vshrl.u32 %v4666_v52, 16  ;;  %v4681_v10 = vld [vmem:[%s4509_s26 + $0x58] sm:$0xf]  ;;  %v643_v16 = vrot.slane %v641_v4, 5  ;;  %v628_v23 = vor.u32 %v627_v7, %v624_v3 }
  0x3a   : > { %4038 = vmatprep.subr.bf16.mxu1 %v4308_v49  ;;  %3989 = vmatmul.mubr.bf16.gmra.mxu1 %v3349_v8  ;;  %v586_v37 = vsel %vm4546_vm2, %v581_v26, %v585_v6  ;;  %v604_v38 = vor.u32 %v603_v28, %v600_v27  ;;  %v4687_v17 = vld [vmem:[%s4509_s26 + $0x5c] sm:$0x1]  ;;  %v646_v18 = vshrl.u32 %v471_v5, 16  ;;  %v659_v25 = vshrl.u32 %v4681_v10, 16  ;;  %v4318_v30 = vld [vmem:[%s5460_s1 + $0xc8] sm:$0xff]  }
  0x3b   : > { %v3350_v47 = vcombine.low %v586_v37, %v596_v41  ;;  %v633_v8 = vrot.slane %v631_v60, 5  ;;  %v637_v9 = vrot.slane %v635_v62, 4  ;;  %v665_v26 = vshll.u32 %v4687_v17, 16  ;;  %v4321_v4 = vld [vmem:[%s4509_s26 + $0xc] sm:$0xff]  }
  0x3c   : > { %4007 = vmatpush3.bf16.msra.mxu0 %v4307_v43  ;;  %v4314_v43 = vld [vmem:[%s5460_s1 + $0xd0] sm:$0xff]   ;;  %v605_v48 = vrot.slane %v604_v38, 4  ;;  %v648_v27 = vrot.slane %v646_v18, 4  ;;  %v651_v28 = vrot.slane %v649_v19, 5  ;;  %v629_v33 = vrot.slane %v628_v23, 4  ;;  %v4322_v18 = vld [vmem:[%s4509_s26 + $0x18] sm:$0xff]  }
  0x3d   : > { %4039 = vmatpush3.bf16.msra.mxu1 %v4308_v49  ;;  %4008 = vmatprep.subr.bf16.mxu0 %v4311_v22  ;;  %v4315_v49 = vld [vmem:[%s4509_s26 + $0x48] sm:$0xff]   ;;  %v638_v24 = vor.u32 %v637_v9, %v633_v8  ;;  %v661_v37 = vrot.slane %v659_v25, 4  ;;  %v667_v41 = vrot.slane %v665_v26, 5  ;;  %v927_v2 = vsel %vm4697_vm5, %v4568_v59, %v926_v61 }
  0x3e   : > { %4040 = vmatprep.subr.bf16.mxu1 %v4312_v34  ;;  %3992 = vmatprep.mubr.bf16.mxu1 %v3350_v47  ;;  %v610_v57 = vsel %vm4546_vm2, %v605_v48, %v609_v29  ;;  %v940_v61 = vrot.slane %v4597_v21, 5  ;;  %v939_v9 = vrot.slane %v937_v32, 4  ;;  %v934_v21 = vsel %vm4697_vm5, %v932_v50, %v933_v58  ;;  %v4329_v23 = vld [vmem:[%s5460_s1 + $0x128] sm:$0xff]  }
  0x3f   : > { %3961 = vmatmul.mubr.bf16.gmra.mxu0 %v4310_v11  ;;  %v3351_v6 = vcombine.low %v610_v57, %v620_v1  ;;  %v4317_v11 = vld [vmem:[%s5460_s1 + $0x88] sm:$0xff]   ;;  %v879_v57 = vld [vmem:[%s4509_s26] sm:$0xe]  ;;  %v958_v50 = vrot.slane %v4666_v52, 5  ;;  %v4337_v52 = vld [vmem:[%s5460_s1 + $0x110] sm:$0xff]  }
  0x40   : > { %4009 = vmatpush3.bf16.msra.mxu0 %v4311_v22  ;;  %3964 = vmatprep.mubr.bf16.mxu0 %v4315_v49  ;;  %v655_v22 = vshll.u32 %v4681_v10, 16  ;;  %v4320_v49 = vld [vmem:[%s5460_s1 + $0xc0] sm:$0xff]   ;;  %v3362_v62 = vrot.slane %v879_v57, 9  ;;  %v880_v1 = vld [vmem:[%s4509_s26 + $0xc] sm:$0xe] }
  0x41   : > { %4041 = vmatpush3.bf16.msra.mxu1 %v4312_v34  ;;  %4010 = vmatprep.subr.bf16.mxu0 %v4313_v40  ;;  %v639_v34 = vrot.slane %v638_v24, 4  ;;  %v3363_v5 = vrot.slane %v880_v1, 9  ;;  %v946_v24 = vrot.slane %v944_v31, 4  ;;  %v4327_v26 = vld [vmem:[%s4509_s26 + $0x24] sm:$0xff]   ;;  %v886_v1 = vld [vmem:[%s4509_s26 + $0x54] sm:$0xe] }
  0x42   : > { %4042 = vmatprep.subr.bf16.mxu1 %v4314_v43  ;;  %3993 = vmatmul.mubr.bf16.gmra.mxu1 %v3351_v6  ;;  %v657_v29 = vrot.slane %v655_v22, 5  ;;  %v917_v15 = vsel %vm4697_vm5, %v3362_v62, %v916_v35  ;;  %v941_v22 = vsel %vm4697_vm5, %v939_v9, %v940_v61  ;;  %v4332_v57 = vld [vmem:[%s5460_s1 + $0x160] sm:$0xff]   ;;  %v960_v62 = vrot.slane %v958_v50, 4  ;;  %v3452_v61 = vld [vmem:[%s4509_s26 + $0xc] sm:$0xf] }
  0x43   : > { %v644_v47 = vsel %vm4546_vm2, %v639_v34, %v643_v16  ;;  %v924_v59 = vsel %vm4697_vm5, %v3363_v5, %v923_v44  ;;  %v881_v44 = vld [vmem:[%s4509_s26 + $0x18] sm:$0xe]  ;;  %v882_v16 = vld [vmem:[%s4509_s26 + $0x24] sm:$0xe]  ;;  %v968_v5 = vrot.slane %v4687_v17, 5  ;;  %v1451_v9 = vshrl.u32 %v3452_v61, 16 }
  0x44   : > { %4011 = vmatpush3.bf16.msra.mxu0 %v4313_v40  ;;  %v652_v40 = vor.u32 %v651_v28, %v648_v27  ;;  %v662_v48 = vor.u32 %v661_v37, %v657_v29  ;;  %v3387_v35 = vcombine.low %v924_v59, %v927_v2  ;;  %v3365_v19 = vrot.slane %v882_v16, 9  ;;  %v4331_v34 = vld [vmem:[%s5460_s1 + $0x120] sm:$0xff]   ;;  %v4339_v59 = vld [vmem:[%s4509_s26 + $0x54] sm:$0xff]  }
  0x45   : > { %4043 = vmatpush3.bf16.msra.mxu1 %v4314_v43  ;;  %4012 = vmatprep.subr.bf16.mxu0 %v4317_v11  ;;  %v634_v43 = vsel %vm4546_vm2, %v629_v33, %v633_v8  ;;  %v947_v28 = vrot.slane %v4625_v56, 5  ;;  %v954_v33 = vrot.slane %v4640_v13, 5  ;;  %v4330_v13 = vld [vmem:[%s5460_s1 + $0x168] sm:$0xff]  }
  0x46   : > { %4044 = vmatprep.subr.bf16.mxu1 %v4318_v30  ;;  %v3352_v51 = vcombine.low %v634_v43, %v644_v47  ;;  %v653_v55 = vrot.slane %v652_v40, 4  ;;  %v663_v60 = vrot.slane %v662_v48, 4  ;;  %v938_v27 = vsel %vm4697_vm5, %v3365_v19, %v937_v32  ;;  %v4338_v32 = vld [vmem:[%s5460_s1 + $0x150] sm:$0xff]  }
  0x47   : > { %3965 = vmatmul.mubr.bf16.gmra.mxu0 %v4316_v0  ;;  %v920_v0 = vsel %vm4697_vm5, %v918_v39, %v919_v46  ;;  %v4323_v46 = vld [vmem:[%s5460_s1 + $0x138] sm:$0xff]   ;;  %v948_v37 = vsel %vm4697_vm5, %v946_v24, %v947_v28 }
  0x48   : > { %4013 = vmatpush3.bf16.msra.mxu0 %v4317_v11  ;;  %3996 = vmatprep.mubr.bf16.mxu1 %v3352_v51  ;;  %v658_v3 = vsel %vm4546_vm2, %v653_v55, %v657_v29  ;;  %v668_v6 = vsel %vm4546_vm2, %v663_v60, %v667_v41  ;;  %v3386_v8 = vcombine.low %v917_v15, %v920_v0  ;;  %v3364_v11 = vrot.slane %v881_v44, 9  ;;  %v884_v39 = vld [vmem:[%s4509_s26 + $0x3c] sm:$0xe]  ;;  %v885_v60 = vld [vmem:[%s4509_s26 + $0x48] sm:$0xe] }
  0x49   : > { %4045 = vmatpush3.bf16.msra.mxu1 %v4318_v30  ;;  %4014 = vmatprep.subr.bf16.mxu0 %v4319_v42  ;;  %v3353_v7 = vcombine.low %v658_v3, %v668_v6  ;;  %v3389_v29 = vcombine.low %v938_v27, %v941_v22  ;;  %v883_v30 = vld [vmem:[%s4509_s26 + $0x30] sm:$0xe]  ;;  %v4333_v51 = vld [vmem:[%s4509_s26 + $0x3c] sm:$0xff]   ;;  %v961_v55 = vrot.slane %v4669_v53, 5  ;;  %v3368_v0 = vrot.slane %v885_v60, 9 }
  0x4a   : > { %4046 = vmatprep.subr.bf16.mxu1 %v4320_v49  ;;  %4016 = vmatprep.mubr.bf16.mxu0 %v3386_v8  ;;  %v931_v54 = vsel %vm4697_vm5, %v3364_v11, %v930_v45  ;;  %v951_v45 = vrot.slane %v4637_v12, 5  ;;  %v3366_v56 = vrot.slane %v883_v30, 9  ;;  %v4328_v12 = vld [vmem:[%s4509_s26 + $0x30] sm:$0xff]   ;;  %v3369_v3 = vrot.slane %v886_v1, 9  ;;  %v4336_v6 = vld [vmem:[%s5460_s1 + $0x158] sm:$0xff]   ;;  %v4341_v8 = vld [vmem:[%s5460_s1 + $0x108] sm:$0xff]  }
  0x4b   : > { %3997 = vmatmul.mubr.bf16.gmra.mxu1 %v3353_v7  ;;  %v3388_v25 = vcombine.low %v931_v54, %v934_v21  ;;  %v962_v53 = vsel %vm4697_vm5, %v960_v62, %v961_v55  ;;  %v959_v2 = vsel %vm4697_vm5, %v3368_v0, %v958_v50  ;;  %v4343_v21 = vld [vmem:[%s5460_s1 + $0x100] sm:$0xff]   ;;  %v4342_v54 = vld [vmem:[%s5460_s1 + $0x148] sm:$0xff]   ;;  %v3455_v27 = vld [vmem:[%s4509_s26 + $0x18] sm:$0xf] }
  0x4c   : > { %4015 = vmatpush3.bf16.msra.mxu0 %v4319_v42  ;;  %4048 = vmatprep.mubr.bf16.mxu1 %v4321_v4  ;;  %v953_v40 = vrot.slane %v951_v45, 4  ;;  %v945_v41 = vsel %vm4697_vm5, %v3366_v56, %v944_v31  ;;  %v3367_v42 = vrot.slane %v884_v39, 9  ;;  %v965_v4 = vrot.slane %v4681_v10, 5  ;;  %v4344_v62 = vld [vmem:[%s5460_s1 + $0x140] sm:$0xff]  }
  0x4d   : > { %4047 = vmatpush3.bf16.msra.mxu1 %v4320_v49  ;;  %4064 = vmatprep.subr.bf16.mxu0 %v4323_v46  ;;  %v3390_v43 = vcombine.low %v945_v41, %v948_v37  ;;  %v4335_v49 = vld [vmem:[%s5460_s1 + $0x118] sm:$0xff]   ;;  %v3392_v15 = vcombine.low %v959_v2, %v962_v53  ;;  %v1454_v31 = vshll.u32 %v3452_v61, 16  ;;  %v1475_v30 = vshrl.u32 %v3455_v27, 16  ;;  %v3457_v37 = vld [vmem:[%s4509_s26 + $0x20] sm:$0x1] }
  0x4e   : > { %4096 = vmatprep.subr.bf16.mxu1 %v4324_v14  ;;  %v955_v47 = vsel %vm4697_vm5, %v953_v40, %v954_v33  ;;  %v952_v48 = vsel %vm4697_vm5, %v3367_v42, %v951_v45  ;;  %v966_v10 = vsel %vm4697_vm5, %v3369_v3, %v965_v4  ;;  %v967_v17 = vrot.slane %v965_v4, 4  ;;  %v3456_v45 = vld [vmem:[%s4509_s26 + $0x1c] sm:$0xf]  ;;  %v4340_v33 = vld [vmem:[%s4509_s26 + $0x60] sm:$0xff]  }
  0x4f   : > { %4017 = vmatmul.mubr.bf16.vlgmr.msra.gmra.mxu0 %v3387_v35  ;;  %v3391_v58 = vcombine.low %v952_v48, %v955_v47  ;;  %v3453_v35 = vld [vmem:[%s4509_s26 + $0x10] sm:$0xf]  ;;  %v1456_v24 = vrot.slane %v1454_v31, 5  ;;  %v1478_v39 = vshll.u32 %v3455_v27, 16  ;;  %v1484_v40 = vshll.u32 %v3456_v45, 16  ;;  %v4346_v61 = vld [vmem:[%s5460_s1 + $0x1f8] sm:$0xff]  }
  0x50   : > { %4065 = vmatpush3.bf16.msra.mxu0 %v4323_v46  ;;  %4020 = vmatprep.mubr.bf16.mxu0 %v3388_v25  ;;  %v4334_v46 = vld [vmem:[%s4509_s26 + $0x48] sm:$0xff]   ;;  %v969_v7 = vsel %vm4697_vm5, %v967_v17, %v968_v5  ;;  %v1460_v44 = vshll.u32 %v3453_v35, 16  ;;  %v1464_v11 = vshrl.u32 %v3453_v35, 16  ;;  %v1886_v19 = vrot.slane %v3453_v35, 5  ;;  %v3458_v17 = vld [vmem:[%s4509_s26 + $0x24] sm:$0xf] }
  0x51   : > { %4066 = vmatprep.subr.bf16.mxu0 %v4325_v20  ;;  %v1477_v42 = vrot.slane %v1475_v30, 4  ;;  %v1480_v50 = vrot.slane %v1478_v39, 5  ;;  %v1486_v55 = vrot.slane %v1484_v40, 5  ;;  %v1893_v53 = vrot.slane %v3456_v45, 5  ;;  %v4347_v35 = vld [vmem:[%s5460_s1 + $0x1b0] sm:$0xff]  }
  0x52   : > { %v1462_v25 = vrot.slane %v1460_v44, 5  ;;  %v1896_v2 = vrot.slane %v3457_v37, 5  ;;  %v3510_v31 = vld [vmem:[%s4509_s26 + $0x24] sm:$0xe] }
  0x53   : > { %4049 = vmatmul.mubr.bf16.vlgmr.msra.gmra.mxu1 %v4322_v18  ;;  %v3508_v18 = vld [vmem:[%s4509_s26 + $0xc] sm:$0xe] }
  0x54   : > { %4067 = vmatpush3.bf16.msra.mxu0 %v4325_v20  ;;  %4097 = vmatpush3.bf16.msra.mxu1 %v4324_v14  ;;  %v3393_v14 = vcombine.low %v966_v10, %v969_v7  ;;  %v3454_v20 = vld [vmem:[%s4509_s26 + $0x14] sm:$0x1]  ;;  %v1895_v10 = vrot.slane %v1893_v53, 4  ;;  %v3460_v7 = vld [vmem:[%s4509_s26 + $0x2c] sm:$0x1] }
  0x55   : > { %4068 = vmatprep.subr.bf16.mxu0 %v4329_v23  ;;  %4052 = vmatprep.mubr.bf16.mxu1 %v4327_v26  ;;  %v1470_v16 = vshll.u32 %v3454_v20, 16  ;;  %v1889_v22 = vrot.slane %v3454_v20, 5  ;;  %v1466_v26 = vrot.slane %v1464_v11, 4  ;;  %v1502_v20 = vshll.u32 %v3458_v17, 16 }
  0x56   : > { %4098 = vmatprep.subr.bf16.mxu1 %v4326_v63 }
  0x57   : > { %4021 = vmatmul.mubr.bf16.gmra.mxu0 %v3389_v29  ;;  %v1472_v28 = vrot.slane %v1470_v16, 5  ;;  %v1888_v29 = vrot.slane %v1886_v19, 4  ;;  %v1467_v56 = vor.u32 %v1466_v26, %v1462_v25  ;;  %v4880_v26 = vld [vmem:[%s4509_s26 + $0x38] sm:$0x1] }
  0x58   : > { %4069 = vmatpush3.bf16.msra.mxu0 %v4329_v23  ;;  %4099 = vmatpush3.bf16.msra.mxu1 %v4326_v63  ;;  %v1453_v23 = vrot.slane %v1451_v9, 4  ;;  %v3516_v63 = vrot.slane %v3508_v18, 9  ;;  %v3461_v18 = vld [vmem:[%s4509_s26 + $0x30] sm:$0xf] }
  0x59   : > { %4070 = vmatprep.subr.bf16.mxu0 %v4331_v34  ;;  %4024 = vmatprep.mubr.bf16.mxu0 %v3390_v43  ;;  %v1890_v41 = vsel %vm4697_vm5, %v1888_v29, %v1889_v22  ;;  %v1488_v43 = vshrl.u32 %v3456_v45, 16  ;;  %v1468_v48 = vrot.slane %v1467_v56, 4  ;;  %v1903_v29 = vrot.slane %v3460_v7, 5  ;;  %v3511_v56 = vld [vmem:[%s4509_s26 + $0x30] sm:$0xe] }
  0x5a   : > { %4100 = vmatprep.subr.bf16.mxu1 %v4330_v13 }
  0x5b   : > { %4053 = vmatmul.mubr.bf16.gmra.mxu1 %v4328_v12  ;;  %v3509_v12 = vld [vmem:[%s4509_s26 + $0x18] sm:$0xe]  ;;  %v1473_v1 = vsel %vm4546_vm2, %v1468_v48, %v1472_v28  ;;  %v3518_v28 = vrot.slane %v3510_v31, 9 }
  0x5c   : > { %4071 = vmatpush3.bf16.msra.mxu0 %v4331_v34  ;;  %4101 = vmatpush3.bf16.msra.mxu1 %v4330_v13  ;;  %v1457_v34 = vor.u32 %v1456_v24, %v1453_v23  ;;  %v1887_v13 = vsel %vm4697_vm5, %v3516_v63, %v1886_v19  ;;  %v3517_v60 = vrot.slane %v3509_v12, 9  ;;  %v3462_v19 = vld [vmem:[%s4509_s26 + $0x34] sm:$0xf]  ;;  %v1504_v23 = vrot.slane %v1502_v20, 5 }
  0x5d   : > { %4072 = vmatprep.subr.bf16.mxu0 %v4335_v49  ;;  %4056 = vmatprep.mubr.bf16.mxu1 %v4333_v51  ;;  %v4345_v51 = vld [vmem:[%s5460_s1 + $0x1b8] sm:$0xff]  }
  0x5e   : > { %4102 = vmatprep.subr.bf16.mxu1 %v4332_v57  ;;  %v1458_v47 = vrot.slane %v1457_v34, 4  ;;  %v1526_v34 = vshll.u32 %v3461_v18, 16 }
  0x5f   : > { %4025 = vmatmul.mubr.bf16.gmra.mxu0 %v3391_v58  ;;  %v1494_v58 = vshll.u32 %v3457_v37, 16  ;;  %v4349_v37 = vld [vmem:[%s5460_s1 + $0x1a8] sm:$0xff]  }
  0x60   : > { %4073 = vmatpush3.bf16.msra.mxu0 %v4335_v49  ;;  %4028 = vmatprep.mubr.bf16.mxu0 %v3392_v15  ;;  %v3540_v49 = vcombine.low %v1887_v13, %v1890_v41  ;;  %v1463_v0 = vsel %vm4546_vm2, %v1458_v47, %v1462_v25  ;;  %v1894_v15 = vsel %vm4697_vm5, %v3517_v60, %v1893_v53  ;;  %v1518_v25 = vshll.u32 %v3460_v7, 16 }
  0x61   : > { %4074 = vmatprep.subr.bf16.mxu0 %v4337_v52  ;;  %4103 = vmatpush3.bf16.msra.mxu1 %v4332_v57  ;;  %v1490_v57 = vrot.slane %v1488_v43, 4  ;;  %v3492_v3 = vcombine.low %v1463_v0, %v1473_v1  ;;  %v1496_v5 = vrot.slane %v1494_v58, 5  ;;  %v1532_v13 = vshll.u32 %v3462_v19, 16 }
  0x62   : > { %4104 = vmatprep.subr.bf16.mxu1 %v4336_v6  ;;  %v1520_v30 = vrot.slane %v1518_v25, 5  ;;  %v1528_v43 = vrot.slane %v1526_v34, 5  ;;  %v1536_v47 = vshrl.u32 %v3462_v19, 16  ;;  %v1907_v53 = vrot.slane %v3462_v19, 5 }
  0x63   : > { %4057 = vmatmul.mubr.bf16.gmra.mxu1 %v4334_v46  ;;  %v1491_v4 = vor.u32 %v1490_v57, %v1486_v55 }
  0x64   : > { %4075 = vmatpush3.bf16.msra.mxu0 %v4337_v52  ;;  %4060 = vmatprep.mubr.bf16.mxu1 %v4339_v59  ;;  %v1481_v52 = vor.u32 %v1480_v50, %v1477_v42  ;;  %v1534_v50 = vrot.slane %v1532_v13, 5  ;;  %v1538_v60 = vrot.slane %v1536_v47, 4 }
  0x65   : > { %4076 = vmatprep.subr.bf16.mxu0 %v4341_v8  ;;  %4105 = vmatpush3.bf16.msra.mxu1 %v4336_v6  ;;  %v1492_v46 = vrot.slane %v1491_v4, 4  ;;  %v3464_v4 = vld [vmem:[%s4509_s26 + $0x3c] sm:$0xf] }
  0x66   : > { %4106 = vmatprep.subr.bf16.mxu1 %v4338_v32  ;;  %v1482_v6 = vrot.slane %v1481_v52, 4  ;;  %v3519_v52 = vrot.slane %v3511_v56, 9  ;;  %v1547_v7 = vshrl.u32 %v3464_v4, 16  ;;  %v4354_v56 = vld [vmem:[%s5460_s1 + $0x1d8] sm:$0xff]  }
  0x67   : > { %4029 = vmatmul.mubr.bf16.gmra.mxu0 %v3393_v14  ;;  %v1897_v14 = vsel %vm4697_vm5, %v1895_v10, %v1896_v2  ;;  %v1497_v44 = vsel %vm4546_vm2, %v1492_v46, %v1496_v5  ;;  %v3465_v10 = vld [vmem:[%s4509_s26 + $0x40] sm:$0xf] }
  0x68   : > { %4077 = vmatpush3.bf16.msra.mxu0 %v4341_v8  ;;  %4080 = vmatprep.mubr.bf16.mxu0 %v3492_v3  ;;  %v1499_v8 = vshrl.u32 %v3458_v17, 16  ;;  %v1487_v59 = vsel %vm4546_vm2, %v1482_v6, %v1486_v55  ;;  %v3541_v11 = vcombine.low %v1894_v15, %v1897_v14  ;;  %v4351_v3 = vld [vmem:[%s5460_s1 + $0x1a0] sm:$0xff]   ;;  %v1539_v6 = vor.u32 %v1538_v60, %v1534_v50 }
  0x69   : > { %4078 = vmatprep.subr.bf16.mxu0 %v4343_v21  ;;  %4107 = vmatpush3.bf16.msra.mxu1 %v4338_v32  ;;  %v3459_v32 = vld [vmem:[%s4509_s26 + $0x28] sm:$0xf]  ;;  %v3493_v22 = vcombine.low %v1487_v59, %v1497_v44  ;;  %v1910_v15 = vrot.slane %v4880_v26, 5  ;;  %v3466_v17 = vld [vmem:[%s4509_s26 + $0x44] sm:$0x1]  ;;  %v1908_v46 = vsel %vm4697_vm5, %v3519_v52, %v1907_v53  ;;  %v1560_v20 = vshrl.u32 %v3465_v10, 16 }
  0x6a   : > { %4108 = vmatprep.subr.bf16.mxu1 %v4342_v54  ;;  %v1508_v9 = vshll.u32 %v3459_v32, 16  ;;  %v1512_v16 = vshrl.u32 %v3459_v32, 16  ;;  %v1900_v63 = vrot.slane %v3459_v32, 5  ;;  %v1909_v32 = vrot.slane %v1907_v53, 4  ;;  %v4356_v53 = vld [vmem:[%s5460_s1 + $0x1d0] sm:$0xff]  }
  0x6b   : > { %4061 = vmatmul.mubr.bf16.gmra.mxu1 %v4340_v33  ;;  %v1523_v33 = vshrl.u32 %v3461_v18, 16  ;;  %v1540_v14 = vrot.slane %v1539_v6, 4  ;;  %v1549_v44 = vrot.slane %v1547_v7, 4 }
  0x6c   : > { %4079 = vmatpush3.bf16.msra.mxu0 %v4343_v21  ;;  %4112 = vmatprep.mubr.bf16.mxu1 %v3540_v49  ;;  %v1501_v21 = vrot.slane %v1499_v8, 4  ;;  %v1510_v24 = vrot.slane %v1508_v9, 5  ;;  %v1514_v27 = vrot.slane %v1512_v16, 4  ;;  %v1901_v40 = vsel %vm4697_vm5, %v3518_v28, %v1900_v63  ;;  %v3512_v9 = vld [vmem:[%s4509_s26 + $0x3c] sm:$0xe] }
  0x6d   : > { %4128 = vmatprep.subr.bf16.mxu0 %v4345_v51  ;;  %4109 = vmatpush3.bf16.msra.mxu1 %v4342_v54  ;;  %v4348_v54 = vld [vmem:[%s5460_s1 + $0x1f0] sm:$0xff]   ;;  %v1902_v12 = vrot.slane %v1900_v63, 4  ;;  %v1525_v42 = vrot.slane %v1523_v33, 4  ;;  %v1550_v8 = vshll.u32 %v3464_v4, 16  ;;  %v1911_v31 = vsel %vm4697_vm5, %v1909_v32, %v1910_v15  ;;  %v3467_v16 = vld [vmem:[%s4509_s26 + $0x48] sm:$0xf] }
  0x6e   : > { %4110 = vmatprep.subr.bf16.mxu1 %v4344_v62  ;;  %v1505_v45 = vor.u32 %v1504_v23, %v1501_v21  ;;  %v1515_v39 = vor.u32 %v1514_v27, %v1510_v24  ;;  %v1566_v21 = vshll.u32 %v3466_v17, 16  ;;  %v3543_v19 = vcombine.low %v1908_v46, %v1911_v31  ;;  %v3468_v23 = vld [vmem:[%s4509_s26 + $0x4c] sm:$0xf]  ;;  %v4923_v63 = vld [vmem:[%s4509_s26 + $0x50] sm:$0x1] }
  0x6f   : > { %4081 = vmatmul.mubr.bf16.vlgmr.msra.gmra.mxu0 %v3493_v22  ;;  %v1904_v49 = vsel %vm4697_vm5, %v1902_v12, %v1903_v29  ;;  %v1529_v58 = vor.u32 %v1528_v43, %v1525_v42  ;;  %v3520_v28 = vrot.slane %v3512_v9, 9  ;;  %v3513_v29 = vld [vmem:[%s4509_s26 + $0x48] sm:$0xe]  ;;  %v1917_v33 = vrot.slane %v3466_v17, 5  ;;  %v3471_v4 = vld [vmem:[%s4509_s26 + $0x58] sm:$0xf] }
  0x70   : > { %4129 = vmatpush3.bf16.msra.mxu0 %v4345_v51  ;;  %v1506_v41 = vrot.slane %v1505_v45, 4  ;;  %v1516_v48 = vrot.slane %v1515_v39, 4  ;;  %v1542_v51 = vshll.u32 %v4880_v26, 16  ;;  %v3542_v57 = vcombine.low %v1901_v40, %v1904_v49  ;;  %v3472_v32 = vld [vmem:[%s4509_s26 + $0x5c] sm:$0x1]  ;;  %v4358_v9 = vld [vmem:[%s5460_s1 + $0x1c8] sm:$0xff]  }
  0x71   : > { %4111 = vmatpush3.bf16.msra.mxu1 %v4344_v62  ;;  %4130 = vmatprep.subr.bf16.mxu0 %v4347_v35  ;;  %v4350_v62 = vld [vmem:[%s5460_s1 + $0x1e8] sm:$0xff]   ;;  %v1530_v2 = vrot.slane %v1529_v58, 4  ;;  %v1568_v27 = vrot.slane %v1566_v21, 5  ;;  %v1571_v34 = vshrl.u32 %v3467_v16, 16  ;;  %v1574_v39 = vshll.u32 %v3467_v16, 16 }
  0x72   : > { %4160 = vmatprep.subr.bf16.mxu1 %v4346_v61  ;;  %v1511_v55 = vsel %vm4546_vm2, %v1506_v41, %v1510_v24  ;;  %v1521_v0 = vsel %vm4546_vm2, %v1516_v48, %v1520_v30  ;;  %v1544_v1 = vrot.slane %v1542_v51, 5  ;;  %v4353_v24 = vld [vmem:[%s5460_s1 + $0x198] sm:$0xff]   ;;  %v1914_v30 = vrot.slane %v3465_v10, 5  ;;  %v4355_v51 = vld [vmem:[%s5460_s1 + $0x190] sm:$0xff]   ;;  %v3473_v16 = vld [vmem:[%s4509_s26 + $0x60] sm:$0xf] }
  0x73   : > { %v3494_v5 = vcombine.low %v1511_v55, %v1521_v0  ;;  %v1535_v59 = vsel %vm4546_vm2, %v1530_v2, %v1534_v50  ;;  %v1580_v40 = vshll.u32 %v3468_v23, 16  ;;  %v1584_v12 = vshrl.u32 %v3468_v23, 16 }
  0x74   : > { %4113 = vmatmul.mubr.bf16.vlgmr.msra.gmra.mxu1 %v3541_v11  ;;  %4131 = vmatpush3.bf16.msra.mxu0 %v4347_v35  ;;  %v1556_v35 = vshll.u32 %v3465_v10, 16  ;;  %v1552_v11 = vrot.slane %v1550_v8, 5  ;;  %v1545_v18 = vsel %vm4546_vm2, %v1540_v14, %v1544_v1  ;;  %v1915_v41 = vsel %vm4697_vm5, %v3520_v28, %v1914_v30  ;;  %v4357_v10 = vld [vmem:[%s5460_s1 + $0x188] sm:$0xff]  }
  0x75   : > { %4161 = vmatpush3.bf16.msra.mxu1 %v4346_v61  ;;  %4116 = vmatprep.mubr.bf16.mxu1 %v3542_v57  ;;  %v4352_v61 = vld [vmem:[%s5460_s1 + $0x1e0] sm:$0xff]   ;;  %v3495_v25 = vcombine.low %v1535_v59, %v1545_v18  ;;  %v1916_v42 = vrot.slane %v1914_v30, 4  ;;  %v1573_v43 = vrot.slane %v1571_v34, 4  ;;  %v1576_v48 = vrot.slane %v1574_v39, 5 }
  0x76   : > { %4162 = vmatprep.subr.bf16.mxu1 %v4348_v54  ;;  %4132 = vmatprep.subr.bf16.mxu0 %v4349_v37  ;;  %v1558_v22 = vrot.slane %v1556_v35, 5  ;;  %v1553_v26 = vor.u32 %v1552_v11, %v1549_v44  ;;  %v1582_v49 = vrot.slane %v1580_v40, 5  ;;  %v1586_v50 = vrot.slane %v1584_v12, 4  ;;  %v4963_v18 = vld [vmem:[%s4509_s26 + $0x64] sm:$0xf] }
  0x77   : > { %4084 = vmatprep.mubr.bf16.mxu0 %v3494_v5  ;;  %v1918_v57 = vsel %vm4697_vm5, %v1916_v42, %v1917_v33  ;;  %v1590_v58 = vshll.u32 %v4923_v63, 16  ;;  %v3521_v60 = vrot.slane %v3513_v29, 9  ;;  %v1577_v1 = vor.u32 %v1576_v48, %v1573_v43  ;;  %v3515_v34 = vld [vmem:[%s4509_s26 + $0x60] sm:$0xe] }
  0x78   : > { %4133 = vmatpush3.bf16.msra.mxu0 %v4349_v37  ;;  %v1554_v37 = vrot.slane %v1553_v26, 4  ;;  %v3544_v0 = vcombine.low %v1915_v41, %v1918_v57  ;;  %v1587_v52 = vor.u32 %v1586_v50, %v1582_v49  ;;  %v1921_v2 = vrot.slane %v3468_v23, 5 }
  0x79   : > { %4163 = vmatpush3.bf16.msra.mxu1 %v4348_v54  ;;  %4134 = vmatprep.subr.bf16.mxu0 %v4351_v3  ;;  %v1562_v54 = vrot.slane %v1560_v20, 4  ;;  %v1592_v5 = vrot.slane %v1590_v58, 5  ;;  %v1924_v6 = vrot.slane %v4923_v63, 5  ;;  %v1578_v17 = vrot.slane %v1577_v1, 4  ;;  %v3514_v20 = vld [vmem:[%s4509_s26 + $0x54] sm:$0xe] }
  0x7a   : > { %4164 = vmatprep.subr.bf16.mxu1 %v4350_v62  ;;  %4085 = vmatmul.mubr.bf16.gmra.mxu0 %v3495_v25  ;;  %v1559_v47 = vsel %vm4546_vm2, %v1554_v37, %v1558_v22  ;;  %v1588_v46 = vrot.slane %v1587_v52, 4  ;;  %v1604_v8 = vshll.u32 %v3471_v4, 16  ;;  %v1922_v59 = vsel %vm4697_vm5, %v3521_v60, %v1921_v2  ;;  %v4971_v25 = vld [vmem:[%s4509_s26 + $0x68] sm:$0x1] }
  0x7b   : > { %v1563_v45 = vor.u32 %v1562_v54, %v1558_v22  ;;  %v1923_v14 = vrot.slane %v1921_v2, 4  ;;  %v1608_v35 = vshrl.u32 %v3471_v4, 16  ;;  %v1583_v31 = vsel %vm4546_vm2, %v1578_v17, %v1582_v49 }
  0x7c   : > { %4117 = vmatmul.mubr.bf16.gmra.mxu1 %v3543_v19  ;;  %4135 = vmatpush3.bf16.msra.mxu0 %v4351_v3  ;;  %v3470_v3 = vld [vmem:[%s4509_s26 + $0x54] sm:$0xf]  ;;  %v1593_v44 = vsel %vm4546_vm2, %v1588_v46, %v1592_v5  ;;  %v1606_v21 = vrot.slane %v1604_v8, 5  ;;  %v4359_v19 = vld [vmem:[%s5460_s1 + $0x180] sm:$0xff]   ;;  %v3522_v28 = vrot.slane %v3514_v20, 9  ;;  %v1928_v63 = vrot.slane %v3471_v4, 5 }
  0x7d   : > { %4165 = vmatpush3.bf16.msra.mxu1 %v4350_v62  ;;  %v1564_v13 = vrot.slane %v1563_v45, 4  ;;  %4136 = vmatprep.subr.bf16.mxu0 %v4353_v24  ;;  %v1595_v15 = vshrl.u32 %v3470_v3, 16  ;;  %v1598_v7 = vshll.u32 %v3470_v3, 16  ;;  %v3497_v22 = vcombine.low %v1583_v31, %v1593_v44  ;;  %v4995_v3 = vld [vmem:[%s4509_s26 + $0x1c] sm:$0xf] }
  0x7e   : > { %4166 = vmatprep.subr.bf16.mxu1 %v4352_v61  ;;  %4120 = vmatprep.mubr.bf16.mxu1 %v3544_v0  ;;  %v1925_v54 = vsel %vm4697_vm5, %v1923_v14, %v1924_v6  ;;  %v1610_v23 = vrot.slane %v1608_v35, 4  ;;  %v1931_v30 = vrot.slane %v3472_v32, 5  ;;  %v1619_v33 = vshrl.u32 %v3473_v16, 16  ;;  %v4998_v4 = vld [vmem:[%s4509_s26 + $0x20] sm:$0x1]  ;;  %v4361_v20 = vld [vmem:[%s4509_s26 + $0x18] sm:$0xff]  }
  0x7f   : > { %v1569_v55 = vsel %vm4546_vm2, %v1564_v13, %v1568_v27  ;;  %v1600_v11 = vrot.slane %v1598_v7, 5  ;;  %v3545_v26 = vcombine.low %v1922_v59, %v1925_v54  ;;  %v1929_v39 = vsel %vm4697_vm5, %v3522_v28, %v1928_v63  ;;  %v4982_v13 = vld [vmem:[%s5460_s1 + $0x238] sm:$0xff]  }
  0x80   : > { %v3496_v62 = vcombine.low %v1559_v47, %v1569_v55  ;;  %4137 = vmatpush3.bf16.msra.mxu0 %v4353_v24  ;;  %v1614_v24 = vshll.u32 %v3472_v32, 16  ;;  %v1611_v29 = vor.u32 %v1610_v23, %v1606_v21  ;;  %v1930_v40 = vrot.slane %v1928_v63, 4 }
  0x81   : > { %4167 = vmatpush3.bf16.msra.mxu1 %v4352_v61  ;;  %4138 = vmatprep.subr.bf16.mxu0 %v4355_v51  ;;  %v1597_v61 = vrot.slane %v1595_v15, 4  ;;  %v1622_v12 = vshll.u32 %v3473_v16, 16  ;;  %v1621_v42 = vrot.slane %v1619_v33, 4  ;;  %v1628_v43 = vshll.u32 %v4963_v18, 16 }
  0x82   : > { %4168 = vmatprep.subr.bf16.mxu1 %v4354_v56  ;;  %4088 = vmatprep.mubr.bf16.mxu0 %v3496_v62  ;;  %v1616_v45 = vrot.slane %v1614_v24, 5  ;;  %v1612_v41 = vrot.slane %v1611_v29, 4  ;;  %v1632_v47 = vshrl.u32 %v4963_v18, 16  ;;  %v1932_v49 = vsel %vm4697_vm5, %v1930_v40, %v1931_v30  ;;  %v3606_v62 = vld [vmem:[%s4509_s26 + $0x18] sm:$0xf] }
  0x83   : > { %v1601_v27 = vor.u32 %v1600_v11, %v1597_v61  ;;  %4089 = vmatmul.mubr.bf16.gmra.mxu0 %v3497_v22  ;;  %v1624_v50 = vrot.slane %v1622_v12, 5  ;;  %v3546_v57 = vcombine.low %v1929_v39, %v1932_v49  ;;  %v1630_v58 = vrot.slane %v1628_v43, 5  ;;  %v3609_v61 = vld [vmem:[%s4509_s26 + $0x24] sm:$0xf]  ;;  %v5012_v11 = vld [vmem:[%s4509_s26 + $0x28] sm:$0xf] }
  0x84   : > { %4139 = vmatpush3.bf16.msra.mxu0 %v4355_v51  ;;  %4121 = vmatmul.mubr.bf16.gmra.mxu1 %v3545_v26  ;;  %v1638_v51 = vshll.u32 %v4971_v25, 16  ;;  %v1617_v55 = vsel %vm4546_vm2, %v1612_v41, %v1616_v45  ;;  %v1634_v60 = vrot.slane %v1632_v47, 4  ;;  %v1935_v2 = vrot.slane %v4963_v18, 5  ;;  %v5028_v39 = vld [vmem:[%s4509_s26 + $0x34] sm:$0xf]  ;;  %v4362_v41 = vld [vmem:[%s4509_s26 + $0x24] sm:$0xff]  }
  0x85   : > { %4169 = vmatpush3.bf16.msra.mxu1 %v4354_v56  ;;  %4140 = vmatprep.subr.bf16.mxu0 %v4357_v10  ;;  %v4360_v56 = vld [vmem:[%s5460_s1 + $0x1c0] sm:$0xff]   ;;  %v1602_v37 = vrot.slane %v1601_v27, 4  ;;  %v1625_v1 = vor.u32 %v1624_v50, %v1621_v42  ;;  %v1938_v6 = vrot.slane %v4971_v25, 5  ;;  %v2421_v15 = vshrl.u32 %v3606_v62, 16  ;;  %v5036_v47 = vld [vmem:[%s4509_s26 + $0x38] sm:$0x1] }
  0x86   : > { %4170 = vmatprep.subr.bf16.mxu1 %v4356_v53  ;;  %v1640_v52 = vrot.slane %v1638_v51, 5  ;;  %4124 = vmatprep.mubr.bf16.mxu1 %v3546_v57  ;;  %v1635_v5 = vor.u32 %v1634_v60, %v1630_v58  ;;  %v2424_v17 = vshll.u32 %v3606_v62, 16  ;;  %v2430_v46 = vshll.u32 %v4995_v3, 16  ;;  %v4365_v60 = vld [vmem:[%s4509_s26 + $0x30] sm:$0xff]  }
  0x87   : > { %v1607_v48 = vsel %vm4546_vm2, %v1602_v37, %v1606_v21  ;;  %v2434_v32 = vshrl.u32 %v4995_v3, 16  ;;  %v1937_v59 = vrot.slane %v1935_v2, 4  ;;  %v2423_v14 = vrot.slane %v2421_v15, 4  ;;  %v3612_v37 = vld [vmem:[%s4509_s26 + $0x30] sm:$0xf] }
  0x88   : > { %4141 = vmatpush3.bf16.msra.mxu0 %v4357_v10  ;;  %v3498_v0 = vcombine.low %v1607_v48, %v1617_v55  ;;  %v1626_v10 = vrot.slane %v1625_v1, 4  ;;  %v1636_v7 = vrot.slane %v1635_v5, 4  ;;  %v2432_v31 = vrot.slane %v2430_v46, 5  ;;  %v3615_v55 = vld [vmem:[%s4509_s26 + $0x3c] sm:$0xf] }
  0x89   : > { %4171 = vmatpush3.bf16.msra.mxu1 %v4356_v53  ;;  %4142 = vmatprep.subr.bf16.mxu0 %v4359_v19  ;;  %v3523_v53 = vrot.slane %v3515_v34, 9  ;;  %v2436_v44 = vrot.slane %v2434_v32, 4  ;;  %v1939_v16 = vsel %vm4697_vm5, %v1937_v59, %v1938_v6  ;;  %v2440_v18 = vshll.u32 %v4998_v4, 16  ;;  %v5052_v6 = vld [vmem:[%s4509_s26 + $0x44] sm:$0x1] }
  0x8a   : > { %4172 = vmatprep.subr.bf16.mxu1 %v4358_v9  ;;  %4092 = vmatprep.mubr.bf16.mxu0 %v3498_v0  ;;  %v1631_v35 = vsel %vm4546_vm2, %v1626_v10, %v1630_v58  ;;  %v1641_v21 = vsel %vm4546_vm2, %v1636_v7, %v1640_v52  ;;  %v2445_v22 = vshrl.u32 %v3609_v61, 16  ;;  %v2448_v28 = vshll.u32 %v3609_v61, 16  ;;  %v5042_v58 = vld [vmem:[%s5460_s1 + $0x230] sm:$0xff]   ;;  %v5049_v52 = vld [vmem:[%s4509_s26 + $0x40] sm:$0xf] }
  0x8b   : > { %v1936_v8 = vsel %vm4697_vm5, %v3523_v53, %v1935_v2  ;;  %v3499_v54 = vcombine.low %v1631_v35, %v1641_v21  ;;  %v2437_v25 = vor.u32 %v2436_v44, %v2432_v31  ;;  %v2442_v26 = vrot.slane %v2440_v18, 5 }
  0x8c   : > { %4143 = vmatpush3.bf16.msra.mxu0 %v4359_v19  ;;  %v5021_v19 = vld [vmem:[%s4509_s26 + $0x2c] sm:$0x1]  ;;  %v3547_v23 = vcombine.low %v1936_v8, %v1939_v16  ;;  %v2447_v27 = vrot.slane %v2445_v22, 4  ;;  %v2454_v63 = vshll.u32 %v5012_v11, 16  ;;  %v2458_v30 = vshrl.u32 %v5012_v11, 16 }
  0x8d   : > { %4173 = vmatpush3.bf16.msra.mxu1 %v4358_v9  ;;  %4192 = vmatprep.subr.bf16.mxu0 %v4982_v13  ;;  %v2426_v9 = vrot.slane %v2424_v17, 5  ;;  %v2438_v45 = vrot.slane %v2437_v25, 4  ;;  %v2464_v33 = vshll.u32 %v5021_v19, 16  ;;  %v2450_v34 = vrot.slane %v2448_v28, 5  ;;  %v4366_v25 = vld [vmem:[%s4509_s26 + $0x3c] sm:$0xff]  }
  0x8e   : > { %4174 = vmatprep.subr.bf16.mxu1 %v4360_v56  ;;  %4093 = vmatmul.mubr.bf16.gmra.mxu0 %v3499_v54  ;;  %v2460_v42 = vrot.slane %v2458_v30, 4  ;;  %v2469_v50 = vshrl.u32 %v3612_v37, 16  ;;  %v2472_v51 = vshll.u32 %v3612_v37, 16  ;;  %v2478_v62 = vshll.u32 %v5028_v39, 16  ;;  %v3618_v28 = vld [vmem:[%s4509_s26 + $0x48] sm:$0xf] }
  0x8f   : > { %v2427_v24 = vor.u32 %v2426_v9, %v2423_v14  ;;  %4125 = vmatmul.mubr.bf16.gmra.mxu1 %v3547_v23  ;;  %4144 = vmatprep.mubr.bf16.mxu0 %v4361_v20  ;;  %v2443_v12 = vsel %vm4546_vm2, %v2438_v45, %v2442_v26  ;;  %v2466_v43 = vrot.slane %v2464_v33, 5  ;;  %v2451_v49 = vor.u32 %v2450_v34, %v2447_v27  ;;  %v4367_v23 = vld [vmem:[%s5460_s1 + $0x228] sm:$0xff]   ;;  %v5079_v30 = vld [vmem:[%s5460_s1 + $0x220] sm:$0xff]   ;;  %v5082_v33 = vld [vmem:[%s4509_s26 + $0x50] sm:$0x1] }
  0x90   : > { %v2482_v0 = vshrl.u32 %v5028_v39, 16  ;;  %v2488_v1 = vshll.u32 %v5036_v47, 16  ;;  %v2471_v5 = vrot.slane %v2469_v50, 4  ;;  %v2474_v2 = vrot.slane %v2472_v51, 5  ;;  %v3621_v50 = vld [vmem:[%s4509_s26 + $0x54] sm:$0xf] }
  0x91   : > { %4175 = vmatpush3.bf16.msra.mxu1 %v4360_v56  ;;  %v2428_v29 = vrot.slane %v2427_v24, 4  ;;  %v2456_v56 = vrot.slane %v2454_v63, 5  ;;  %v2452_v53 = vrot.slane %v2451_v49, 4  ;;  %v2493_v15 = vshrl.u32 %v3615_v55, 16  ;;  %v5071_v63 = vld [vmem:[%s4509_s26 + $0x4c] sm:$0xf] }
  0x92   : > { %4224 = vmatprep.subr.bf16.mxu1 %v4982_v13  ;;  %v2480_v17 = vrot.slane %v2478_v62, 5  ;;  %v2484_v46 = vrot.slane %v2482_v0, 4  ;;  %v2490_v32 = vrot.slane %v2488_v1, 5  ;;  %v2475_v8 = vor.u32 %v2474_v2, %v2471_v5  ;;  %v5097_v62 = vld [vmem:[%s4509_s26 + $0x5c] sm:$0x1] }
  0x93   : > { %v2433_v40 = vsel %vm4546_vm2, %v2428_v29, %v2432_v31  ;;  %v2461_v57 = vor.u32 %v2460_v42, %v2456_v56  ;;  %v2457_v7 = vsel %vm4546_vm2, %v2452_v53, %v2456_v56  ;;  %v2495_v59 = vrot.slane %v2493_v15, 4  ;;  %v5105_v2 = vld [vmem:[%s5460_s1 + $0x218] sm:$0xff]  }
  0x94   : > { %v3646_v48 = vcombine.low %v2433_v40, %v2443_v12  ;;  %v2496_v14 = vshll.u32 %v3615_v55, 16  ;;  %v2485_v35 = vor.u32 %v2484_v46, %v2480_v17  ;;  %v2502_v20 = vshll.u32 %v5049_v52, 16  ;;  %v4369_v40 = vld [vmem:[%s4509_s26 + $0x48] sm:$0xff]  }
  0x95   : > { %v2462_v10 = vrot.slane %v2461_v57, 4  ;;  %v2506_v9 = vshrl.u32 %v5049_v52, 16  ;;  %v2476_v44 = vrot.slane %v2475_v8, 4  ;;  %v2512_v16 = vshll.u32 %v5052_v6, 16 }
  0x96   : > { %4176 = vmatprep.mubr.bf16.mxu1 %v3646_v48  ;;  %4145 = vmatmul.mubr.bf16.vlgmr.msra.gmra.mxu0 %v4362_v41  ;;  %v2498_v21 = vrot.slane %v2496_v14, 5  ;;  %v2486_v18 = vrot.slane %v2485_v35, 4  ;;  %v2504_v22 = vrot.slane %v2502_v20, 5  ;;  %v2517_v34 = vshrl.u32 %v3618_v28, 16  ;;  %v4370_v14 = vld [vmem:[%s4509_s26 + $0x54] sm:$0xff]  }
  0x97   : > { %v2467_v61 = vsel %vm4546_vm2, %v2462_v10, %v2466_v43  ;;  %4193 = vmatpush3.bf16.msra.mxu0 %v4982_v13  ;;  %4148 = vmatprep.mubr.bf16.mxu0 %v4365_v60  ;;  %v2508_v54 = vrot.slane %v2506_v9, 4  ;;  %v2481_v24 = vsel %vm4546_vm2, %v2476_v44, %v2480_v17  ;;  %v2514_v27 = vrot.slane %v2512_v16, 5  ;;  %v5094_v60 = vld [vmem:[%s4509_s26 + $0x58] sm:$0xf]  ;;  %v3624_v16 = vld [vmem:[%s4509_s26 + $0x60] sm:$0xf] }
  0x98   : > { %v3647_v31 = vcombine.low %v2457_v7, %v2467_v61  ;;  %4194 = vmatprep.subr.bf16.mxu0 %v5042_v58  ;;  %v2499_v26 = vor.u32 %v2498_v21, %v2495_v59  ;;  %v2491_v29 = vsel %vm4546_vm2, %v2486_v18, %v2490_v32  ;;  %v2520_v56 = vshll.u32 %v3618_v28, 16  ;;  %v4373_v21 = vld [vmem:[%s4509_s26 + $0x60] sm:$0xff]  }
  0x99   : > { %v2509_v45 = vor.u32 %v2508_v54, %v2504_v22  ;;  %v2526_v12 = vshll.u32 %v5071_v63, 16  ;;  %v2530_v41 = vshrl.u32 %v5071_v63, 16  ;;  %v2519_v43 = vrot.slane %v2517_v34, 4 }
  0x9a   : > { %4177 = vmatmul.mubr.bf16.vlgmr.msra.gmra.mxu1 %v3647_v31  ;;  %v2500_v37 = vrot.slane %v2499_v26, 4  ;;  %v2522_v48 = vrot.slane %v2520_v56, 5  ;;  %v2536_v49 = vshll.u32 %v5082_v33, 16  ;;  %v2541_v5 = vshrl.u32 %v3621_v50, 16 }
  0x9b   : > { %4232 = vmatpush3.bf16.msra.mxu1 %v4982_v13  ;;  %4195 = vmatpush3.bf16.msra.mxu0 %v5042_v58  ;;  %v3648_v13 = vcombine.low %v2481_v24, %v2491_v29  ;;  %v2510_v42 = vrot.slane %v2509_v45, 4  ;;  %v2528_v55 = vrot.slane %v2526_v12, 5  ;;  %v2532_v57 = vrot.slane %v2530_v41, 4  ;;  %v5128_v24 = vld [vmem:[%s4509_s26 + $0x64] sm:$0xf] }
  0x9c   : > { %4225 = vmatprep.subr.bf16.mxu1 %v5042_v58  ;;  %4196 = vmatprep.subr.bf16.mxu0 %v4367_v23  ;;  %v2505_v51 = vsel %vm4546_vm2, %v2500_v37, %v2504_v22  ;;  %v2523_v1 = vor.u32 %v2522_v48, %v2519_v43  ;;  %v2538_v53 = vrot.slane %v2536_v49, 5  ;;  %v2544_v17 = vshll.u32 %v3621_v50, 16  ;;  %v5140_v43 = vld [vmem:[%s4509_s26 + $0x70] sm:$0xf] }
  0x9d   : > { %4180 = vmatprep.mubr.bf16.mxu1 %v3648_v13  ;;  %v2515_v0 = vsel %vm4546_vm2, %v2510_v42, %v2514_v27  ;;  %v2533_v10 = vor.u32 %v2532_v57, %v2528_v55  ;;  %v2543_v32 = vrot.slane %v2541_v5, 4  ;;  %v2554_v7 = vshrl.u32 %v5094_v60, 16 }
  0x9e   : > { %4149 = vmatmul.mubr.bf16.gmra.mxu0 %v4366_v25  ;;  %v3649_v15 = vcombine.low %v2505_v51, %v2515_v0  ;;  %v2524_v46 = vrot.slane %v2523_v1, 4  ;;  %v2560_v8 = vshll.u32 %v5097_v62, 16  ;;  %v2546_v61 = vrot.slane %v2544_v17, 5  ;;  %v5131_v25 = vld [vmem:[%s4509_s26 + $0x68] sm:$0x1] }
  0x9f   : > { %4233 = vmatpush3.bf16.msra.mxu1 %v5042_v58  ;;  %4197 = vmatpush3.bf16.msra.mxu0 %v4367_v23  ;;  %v2550_v58 = vshll.u32 %v5094_v60, 16  ;;  %v2534_v59 = vrot.slane %v2533_v10, 4  ;;  %v2556_v9 = vrot.slane %v2554_v7, 4  ;;  %v2891_v44 = vrot.slane %v5094_v60, 5 }
  0xa0   : > { %4226 = vmatprep.subr.bf16.mxu1 %v4367_v23  ;;  %4198 = vmatprep.subr.bf16.mxu0 %v5079_v30  ;;  %v2529_v20 = vsel %vm4546_vm2, %v2524_v46, %v2528_v55  ;;  %v2562_v31 = vrot.slane %v2560_v8, 5  ;;  %v2547_v22 = vor.u32 %v2546_v61, %v2543_v32  ;;  %v2894_v54 = vrot.slane %v5097_v62, 5  ;;  %v5146_v55 = vld [vmem:[%s4509_s26 + $0x74] sm:$0x1]  ;;  %v4374_v61 = vld [vmem:[%s4509_s26 + $0x6c] sm:$0xff]  }
  0xa1   : > { %4152 = vmatprep.mubr.bf16.mxu0 %v4369_v40  ;;  %v2552_v35 = vrot.slane %v2550_v58, 5  ;;  %v2539_v18 = vsel %vm4546_vm2, %v2534_v59, %v2538_v53  ;;  %v2565_v26 = vshrl.u32 %v3624_v16, 16  ;;  %v2568_v29 = vshll.u32 %v3624_v16, 16  ;;  %v3627_v40 = vld [vmem:[%s4509_s26 + $0x6c] sm:$0xf] }
  0xa2   : > { %4181 = vmatmul.mubr.bf16.gmra.mxu1 %v3649_v15  ;;  %v3650_v27 = vcombine.low %v2529_v20, %v2539_v18  ;;  %v2574_v45 = vshll.u32 %v5128_v24, 16  ;;  %v2548_v34 = vrot.slane %v2547_v22, 4  ;;  %v2578_v13 = vshrl.u32 %v5128_v24, 16  ;;  %v3662_v59 = vld [vmem:[%s4509_s26 + $0x18] sm:$0xe] }
  0xa3   : > { %4234 = vmatpush3.bf16.msra.mxu1 %v4367_v23  ;;  %4199 = vmatpush3.bf16.msra.mxu0 %v5079_v30  ;;  %v5125_v23 = vld [vmem:[%s5460_s1 + $0x210] sm:$0xff]   ;;  %v2557_v28 = vor.u32 %v2556_v9, %v2552_v35  ;;  %v2567_v56 = vrot.slane %v2565_v26, 4  ;;  %v2584_v37 = vshll.u32 %v5131_v25, 16  ;;  %v2570_v41 = vrot.slane %v2568_v29, 5  ;;  %v3663_v22 = vld [vmem:[%s4509_s26 + $0x24] sm:$0xe] }
  0xa4   : > { %4227 = vmatprep.subr.bf16.mxu1 %v5079_v30  ;;  %4200 = vmatprep.subr.bf16.mxu0 %v5105_v2  ;;  %v2576_v42 = vrot.slane %v2574_v45, 5  ;;  %v2589_v48 = vshrl.u32 %v3627_v40, 16  ;;  %v2553_v49 = vsel %vm4546_vm2, %v2548_v34, %v2552_v35  ;;  %v2580_v50 = vrot.slane %v2578_v13, 4  ;;  %v4376_v29 = vld [vmem:[%s5460_s1 + $0x200] sm:$0xff]   ;;  %v3667_v13 = vld [vmem:[%s4509_s26 + $0x54] sm:$0xe] }
  0xa5   : > { %4184 = vmatprep.mubr.bf16.mxu1 %v3650_v27  ;;  %v2558_v12 = vrot.slane %v2557_v28, 4  ;;  %v2586_v51 = vrot.slane %v2584_v37, 5  ;;  %v2592_v57 = vshll.u32 %v3627_v40, 16  ;;  %v2571_v1 = vor.u32 %v2570_v41, %v2567_v56 }
  0xa6   : > { %4153 = vmatmul.mubr.bf16.gmra.mxu0 %v4370_v14  ;;  %v2591_v53 = vrot.slane %v2589_v48, 4  ;;  %v2598_v5 = vshll.u32 %v5140_v43, 16  ;;  %v2581_v10 = vor.u32 %v2580_v50, %v2576_v42  ;;  %v2602_v58 = vshrl.u32 %v5140_v43, 16 }
  0xa7   : > { %4235 = vmatpush3.bf16.msra.mxu1 %v5079_v30  ;;  %v5151_v30 = vld [vmem:[%s5460_s1 + $0x208] sm:$0xff]   ;;  %v2563_v0 = vsel %vm4546_vm2, %v2558_v12, %v2562_v31  ;;  %4201 = vmatpush3.bf16.msra.mxu0 %v5105_v2  ;;  %v2594_v17 = vrot.slane %v2592_v57, 5  ;;  %v2893_v46 = vrot.slane %v2891_v44, 4  ;;  %v2572_v32 = vrot.slane %v2571_v1, 4 }
  0xa8   : > { %4228 = vmatprep.subr.bf16.mxu1 %v5105_v2  ;;  %4156 = vmatprep.mubr.bf16.mxu0 %v4373_v21  ;;  %v3651_v15 = vcombine.low %v2553_v49, %v2563_v0  ;;  %v2600_v7 = vrot.slane %v2598_v5, 5  ;;  %v2608_v8 = vshll.u32 %v5146_v55, 16  ;;  %v2582_v14 = vrot.slane %v2581_v10, 4  ;;  %v3666_v31 = vld [vmem:[%s4509_s26 + $0x48] sm:$0xe] }
  0xa9   : > { %4202 = vmatprep.subr.bf16.mxu0 %v5125_v23  ;;  %v2595_v35 = vor.u32 %v2594_v17, %v2591_v53  ;;  %v2604_v20 = vrot.slane %v2602_v58, 4  ;;  %v3670_v9 = vrot.slane %v3662_v59, 9  ;;  %v2856_v16 = vrot.slane %v4995_v3, 5  ;;  %v3664_v49 = vld [vmem:[%s4509_s26 + $0x30] sm:$0xe] }
  0xaa   : > { %4185 = vmatmul.mubr.bf16.gmra.mxu1 %v3651_v15  ;;  %v2610_v21 = vrot.slane %v2608_v8, 5  ;;  %v2859_v18 = vrot.slane %v4998_v4, 5  ;;  %v2587_v26 = vsel %vm4546_vm2, %v2582_v14, %v2586_v51  ;;  %v3674_v45 = vrot.slane %v3666_v31, 9  ;;  %v3668_v0 = vld [vmem:[%s4509_s26 + $0x60] sm:$0xe] }
  0xab   : > { %4236 = vmatpush3.bf16.msra.mxu1 %v5105_v2  ;;  %4203 = vmatpush3.bf16.msra.mxu0 %v5125_v23  ;;  %v2577_v2 = vsel %vm4546_vm2, %v2572_v32, %v2576_v42  ;;  %v2596_v27 = vrot.slane %v2595_v35, 4  ;;  %v2605_v28 = vor.u32 %v2604_v20, %v2600_v7  ;;  %v2857_v3 = vsel %vm4697_vm5, %v3670_v9, %v2856_v16  ;;  %v3665_v17 = vld [vmem:[%s4509_s26 + $0x3c] sm:$0xe] }
  0xac   : > { %4229 = vmatprep.subr.bf16.mxu1 %v5125_v23  ;;  %4204 = vmatprep.subr.bf16.mxu0 %v5151_v30  ;;  %v3652_v34 = vcombine.low %v2577_v2, %v2587_v26  ;;  %v2858_v4 = vrot.slane %v2856_v16, 4  ;;  %v2884_v56 = vrot.slane %v5071_v63, 5  ;;  %v2887_v12 = vrot.slane %v5082_v33, 5 }
  0xad   : > { %v2601_v37 = vsel %vm4546_vm2, %v2596_v27, %v2600_v7  ;;  %v2606_v40 = vrot.slane %v2605_v28, 4  ;;  %v2863_v48 = vrot.slane %v5012_v11, 5  ;;  %v2866_v51 = vrot.slane %v5021_v19, 5 }
  0xae   : > { %4157 = vmatmul.mubr.bf16.gmra.mxu0 %v4374_v61  ;;  %4188 = vmatprep.mubr.bf16.mxu1 %v3652_v34  ;;  %v2860_v41 = vsel %vm4697_vm5, %v2858_v4, %v2859_v18  ;;  %v2885_v63 = vsel %vm4697_vm5, %v3674_v45, %v2884_v56  ;;  %v2886_v42 = vrot.slane %v2884_v56, 4  ;;  %v3675_v57 = vrot.slane %v3667_v13, 9 }
  0xaf   : > { %4237 = vmatpush3.bf16.msra.mxu1 %v5125_v23  ;;  %v3671_v23 = vrot.slane %v3663_v22, 9  ;;  %4205 = vmatpush3.bf16.msra.mxu0 %v5151_v30  ;;  %v2611_v50 = vsel %vm4546_vm2, %v2606_v40, %v2610_v21  ;;  %v3694_v33 = vcombine.low %v2857_v3, %v2860_v41  ;;  %v2865_v5 = vrot.slane %v2863_v48, 4 }
  0xb0   : > { %4230 = vmatprep.subr.bf16.mxu1 %v5151_v30  ;;  %4206 = vmatprep.subr.bf16.mxu0 %v4376_v29  ;;  %v3653_v1 = vcombine.low %v2601_v37, %v2611_v50  ;;  %v2888_v53 = vsel %vm4697_vm5, %v2886_v42, %v2887_v12  ;;  %v2895_v19 = vsel %vm4697_vm5, %v2893_v46, %v2894_v54  ;;  %v3672_v15 = vrot.slane %v3664_v49, 9 }
  0xb1   : > { %v2864_v11 = vsel %vm4697_vm5, %v3671_v23, %v2863_v48  ;;  %4208 = vmatprep.mubr.bf16.mxu0 %v3694_v33  ;;  %v3698_v36 = vcombine.low %v2885_v63, %v2888_v53  ;;  %v2870_v10 = vrot.slane %v5028_v39, 5  ;;  %v2892_v58 = vsel %vm4697_vm5, %v3675_v57, %v2891_v44  ;;  %v3669_v44 = vld [vmem:[%s4509_s26 + $0x6c] sm:$0xe] }
  0xb2   : > { %4189 = vmatmul.mubr.bf16.gmra.mxu1 %v3653_v1  ;;  %v2873_v62 = vrot.slane %v5036_v47, 5  ;;  %v3676_v32 = vrot.slane %v3668_v0, 9  ;;  %v2898_v7 = vrot.slane %v5128_v24, 5  ;;  %v2901_v8 = vrot.slane %v5131_v25, 5 }
  0xb3   : > { %4238 = vmatpush3.bf16.msra.mxu1 %v5151_v30  ;;  %4207 = vmatpush3.bf16.msra.mxu0 %v4376_v29  ;;  %v2867_v30 = vsel %vm4697_vm5, %v2865_v5, %v2866_v51  ;;  %v2871_v39 = vsel %vm4697_vm5, %v3672_v15, %v2870_v10  ;;  %v2872_v46 = vrot.slane %v2870_v10, 4  ;;  %v3673_v59 = vrot.slane %v3665_v17, 9 }
  0xb4   : > { %4231 = vmatprep.subr.bf16.mxu1 %v4376_v29  ;;  %4216 = vmatprep.mubr.bf16.mxu1 %v3698_v36  ;;  %v3695_v54 = vcombine.low %v2864_v11, %v2867_v30  ;;  %v2877_v60 = vrot.slane %v5049_v52, 5  ;;  %v2880_v14 = vrot.slane %v5052_v6, 5  ;;  %v3699_v47 = vcombine.low %v2892_v58, %v2895_v19 }
  0xb5   : > { %v2874_v61 = vsel %vm4697_vm5, %v2872_v46, %v2873_v62  ;;  %v2899_v35 = vsel %vm4697_vm5, %v3676_v32, %v2898_v7  ;;  %v2900_v20 = vrot.slane %v2898_v7, 4  ;;  %v2905_v31 = vrot.slane %v5140_v43, 5 }
  0xb6   : > { %4209 = vmatmul.mubr.bf16.vlgmr.msra.gmra.mxu0 %v3695_v54  ;;  %v3696_v9 = vcombine.low %v2871_v39, %v2874_v61  ;;  %v2878_v24 = vsel %vm4697_vm5, %v3673_v59, %v2877_v60  ;;  %v2879_v25 = vrot.slane %v2877_v60, 4  ;;  %v3677_v6 = vrot.slane %v3669_v44, 9 }
  0xb7   : > { %4239 = vmatpush3.bf16.msra.mxu1 %v4376_v29  ;;  %v2902_v52 = vsel %vm4697_vm5, %v2900_v20, %v2901_v8  ;;  %v2908_v2 = vrot.slane %v5146_v55, 5  ;;  %v2907_v18 = vrot.slane %v2905_v31, 4  ;;  %v3311_v55 = vld [vmem:[%s5461_s2] ss:$0 sm:$0xff] }
  0xb8   : > { %4212 = vmatprep.mubr.bf16.mxu0 %v3696_v9  ;;  %v3700_v21 = vcombine.low %v2899_v35, %v2902_v52  ;;  %v2881_v16 = vsel %vm4697_vm5, %v2879_v25, %v2880_v14  ;;  %v2906_v26 = vsel %vm4697_vm5, %v3677_v6, %v2905_v31 }
  0xb9   : > { %v3697_v22 = vcombine.low %v2878_v24, %v2881_v16  ;;  %v2909_v43 = vsel %vm4697_vm5, %v2907_v18, %v2908_v2 }
  0xba   : > { %4217 = vmatmul.mubr.bf16.vlgmr.msra.gmra.mxu1 %v3699_v47  ;;  %v3701_v27 = vcombine.low %v2906_v26, %v2909_v43 }
  0xbb   : > { %4220 = vmatprep.mubr.bf16.mxu1 %v3700_v21 }
  0xbe   : > { %4213 = vmatmul.mubr.bf16.gmra.mxu0 %v3697_v22 }
  0xc2   : > { %4221 = vmatmul.mubr.bf16.gmra.mxu1 %v3701_v27 }
  0xef   : > { %v3954_v28 = vpop.f32.mrf.mxu0 }
  0xf0   : > { %v436_v29 = vadd.f32 %v3954_v28, %v3311_v55  ;;  %v3986_v45 = vpop.f32.mrf.mxu1 }
  0xf1   : > { %v371_v34 = vpop.f32.mrf.mxu0 }
  0xf2   : > { %v865_v3 = vadd.f32 %v3986_v45, %v436_v29  ;;  %v434_v4 = vadd.f32 %v3311_v55, %v371_v34  ;;  %v800_v56 = vpop.f32.mrf.mxu1 }
  0xf3   : > { %v3955_v13 = vpop.f32.mrf.mxu0 }
  0xf4   : > { %v863_v37 = vadd.f32 %v800_v56, %v434_v4  ;;  %v437_v40 = vadd.f32 %v3955_v13, %v3311_v55  ;;  %v3987_v12 = vpop.f32.mrf.mxu1 }
  0xf5   : > { %v374_v38 = vpop.f32.mrf.mxu0 }
  0xf6   : > { %v866_v23 = vadd.f32 %v3987_v12, %v437_v40  ;;  %v435_v41 = vadd.f32 %v3311_v55, %v374_v38  ;;  %v803_v63 = vpop.f32.mrf.mxu1 }
  0xf7   : > { %v3958_v42 = vpop.f32.mrf.mxu0 }
  0xf8   : > { %v864_v48 = vadd.f32 %v803_v63, %v435_v41  ;;  %v440_v49 = vadd.f32 %v3958_v42, %v3311_v55 }
  0xf9   : > { %v387_v50 = vpop.f32.mrf.mxu0 }
  0xfa   : > { %v438_v33 = vadd.f32 %v3311_v55, %v387_v50  ;;  %v3990_v51 = vpop.f32.mrf.mxu1 }
  0xfb   : > { %v3959_v57 = vpop.f32.mrf.mxu0  ;;  %v869_v0 = vadd.f32 %v3990_v51, %v440_v49 }
  0xfc   : > { %v441_v1 = vadd.f32 %v3959_v57, %v3311_v55  ;;  %v816_v53 = vpop.f32.mrf.mxu1 }
  0xfd   : > { %v390_v11 = vpop.f32.mrf.mxu0  ;;  %v867_v5 = vadd.f32 %v816_v53, %v438_v33 }
  0xfe   : > { %v439_v36 = vadd.f32 %v3311_v55, %v390_v11  ;;  %v3991_v19 = vpop.f32.mrf.mxu1 }
  0xff   : > { %v3962_v15 = vpop.f32.mrf.mxu0  ;;  %v870_v10 = vadd.f32 %v3991_v19, %v441_v1 }
 0x100   : > { %v819_v17 = vpop.f32.mrf.mxu1  ;;  %v444_v62 = vadd.f32 %v3962_v15, %v3311_v55 }
 0x101   : > { %v403_v30 = vpop.f32.mrf.mxu0  ;;  %v868_v58 = vadd.f32 %v819_v17, %v439_v36 }
 0x102   : > { %v442_v54 = vadd.f32 %v3311_v55, %v403_v30  ;;  %v3994_v46 = vpop.f32.mrf.mxu1 }
 0x103   : > { %v3963_v32 = vpop.f32.mrf.mxu0  ;;  %v873_v7 = vadd.f32 %v3994_v46, %v444_v62 }
 0x104   : > { %v445_v8 = vadd.f32 %v3963_v32, %v3311_v55  ;;  %v832_v60 = vpop.f32.mrf.mxu1 }
 0x105   : > { %v406_v39 = vpop.f32.mrf.mxu0  ;;  %v871_v14 = vadd.f32 %v832_v60, %v442_v54 }
 0x106   : > { %v443_v44 = vadd.f32 %v3311_v55, %v406_v39  ;;  %v3995_v61 = vpop.f32.mrf.mxu1 }
 0x107   : > { %v3966_v59 = vpop.f32.mrf.mxu0  ;;  %v874_v35 = vadd.f32 %v3995_v61, %v445_v8 }
 0x108   : > { %v835_v9 = vpop.f32.mrf.mxu1  ;;  %v448_v25 = vadd.f32 %v3966_v59, %v3311_v55 }
 0x109   : > { %v419_v47 = vpop.f32.mrf.mxu0  ;;  %v872_v24 = vadd.f32 %v835_v9, %v443_v44 }
 0x10a   : > { %v446_v52 = vadd.f32 %v3311_v55, %v419_v47 }
 0x10b   : > { %v3967_v20 = vpop.f32.mrf.mxu0  ;;  %v3998_v6 = vpop.f32.mrf.mxu1 }
 0x10c   : > { %v877_v2 = vadd.f32 %v3998_v6, %v448_v25  ;;  %v449_v21 = vadd.f32 %v3967_v20, %v3311_v55 }
 0x10d   : > { %v422_v31 = vpop.f32.mrf.mxu0  ;;  %v848_v18 = vpop.f32.mrf.mxu1 }
 0x10e   : > { %v875_v26 = vadd.f32 %v848_v18, %v446_v52  ;;  %v447_v43 = vadd.f32 %v3311_v55, %v422_v31 }
 0x10f   : > { %v4018_v16 = vpop.f32.mrf.mxu0  ;;  %v3999_v28 = vpop.f32.mrf.mxu1 }
 0x110   : > { %v1166_v22 = vadd.f32 %v4018_v16, %v865_v3  ;;  %v878_v45 = vadd.f32 %v3999_v28, %v449_v21 }
 0x111   : > { %v1101_v27 = vpop.f32.mrf.mxu0  ;;  %v851_v4 = vpop.f32.mrf.mxu1 }
 0x112   : > { %v1164_v29 = vadd.f32 %v1101_v27, %v863_v37  ;;  %v876_v13 = vadd.f32 %v851_v4, %v447_v43 }
 0x113   : > { %v4019_v34 = vpop.f32.mrf.mxu0  ;;  %v4050_v12 = vpop.f32.mrf.mxu1 }
 0x114   : > { %v1167_v56 = vadd.f32 %v4019_v34, %v866_v23  ;;  %v5243_v41 = vadd.f32 %v4050_v12, %v1166_v22 }
 0x115   : > { %v1104_v40 = vpop.f32.mrf.mxu0  ;;  %v1347_v63 = vpop.f32.mrf.mxu1 }
 0x116   : > { %v1165_v38 = vadd.f32 %v1104_v40, %v864_v48  ;;  %v5245_v49 = vadd.f32 %v1347_v63, %v1164_v29 }
 0x117   : > { %v4022_v42 = vpop.f32.mrf.mxu0  ;;  %v4051_v50 = vpop.f32.mrf.mxu1 }
 0x118   : > { %v1170_v3 = vadd.f32 %v4022_v42, %v869_v0  ;;  %v5247_v33 = vadd.f32 %v4051_v50, %v1167_v56 }
 0x119   : > { %v1117_v55 = vpop.f32.mrf.mxu0  ;;  %v1350_v51 = vpop.f32.mrf.mxu1 }
 0x11a   : > { %v1168_v37 = vadd.f32 %v1117_v55, %v867_v5  ;;  %v5249_v1 = vadd.f32 %v1350_v51, %v1165_v38 }
 0x11b   : > { %v4023_v57 = vpop.f32.mrf.mxu0  ;;  %v4054_v53 = vpop.f32.mrf.mxu1 }
 0x11c   : > { %v1171_v23 = vadd.f32 %v4023_v57, %v870_v10  ;;  %v5251_v48 = vadd.f32 %v4054_v53, %v1170_v3 }
 0x11d   : > { %v1120_v11 = vpop.f32.mrf.mxu0  ;;  %v1363_v19 = vpop.f32.mrf.mxu1 }
 0x11e   : > { %v1169_v36 = vadd.f32 %v1120_v11, %v868_v58  ;;  %v5253_v17 = vadd.f32 %v1363_v19, %v1168_v37 }
 0x11f   : > { %v4026_v15 = vpop.f32.mrf.mxu0  ;;  %v4055_v30 = vpop.f32.mrf.mxu1 }
 0x120   : > { %v1174_v0 = vadd.f32 %v4026_v15, %v873_v7  ;;  %v5255_v32 = vadd.f32 %v4055_v30, %v1171_v23 }
 0x121   : > { %v1133_v62 = vpop.f32.mrf.mxu0  ;;  %v1366_v54 = vpop.f32.mrf.mxu1 }
 0x122   : > { %v1172_v5 = vadd.f32 %v1133_v62, %v871_v14  ;;  %v5257_v46 = vadd.f32 %v1366_v54, %v1169_v36 }
 0x123   : > { %v4027_v39 = vpop.f32.mrf.mxu0  ;;  %v4058_v8 = vpop.f32.mrf.mxu1 }
 0x124   : > { %v1175_v10 = vadd.f32 %v4027_v39, %v874_v35  ;;  %v5259_v60 = vadd.f32 %v4058_v8, %v1174_v0 }
 0x125   : > { %v1136_v59 = vpop.f32.mrf.mxu0  ;;  %v1379_v44 = vpop.f32.mrf.mxu1 }
 0x126   : > { %v1173_v58 = vadd.f32 %v1136_v59, %v872_v24  ;;  %v5261_v61 = vadd.f32 %v1379_v44, %v1172_v5 }
 0x127   : > { %v4030_v47 = vpop.f32.mrf.mxu0  ;;  %v4059_v20 = vpop.f32.mrf.mxu1 }
 0x128   : > { %v1178_v7 = vadd.f32 %v4030_v47, %v877_v2  ;;  %v5263_v25 = vadd.f32 %v4059_v20, %v1175_v10 }
 0x129   : > { %v1149_v9 = vpop.f32.mrf.mxu0  ;;  %v1382_v31 = vpop.f32.mrf.mxu1 }
 0x12a   : > { %v1176_v14 = vadd.f32 %v1149_v9, %v875_v26  ;;  %v5265_v6 = vadd.f32 %v1382_v31, %v1173_v58 }
 0x12b   : > { %v4031_v52 = vpop.f32.mrf.mxu0  ;;  %v4062_v21 = vpop.f32.mrf.mxu1 }
 0x12c   : > { %v1179_v35 = vadd.f32 %v4031_v52, %v878_v45  ;;  %v5267_v18 = vadd.f32 %v4062_v21, %v1178_v7 }
 0x12d   : > { %v1152_v16 = vpop.f32.mrf.mxu0  ;;  %v1395_v22 = vpop.f32.mrf.mxu1 }
 0x12e   : > { %v1177_v24 = vadd.f32 %v1152_v16, %v876_v13  ;;  %v5269_v43 = vadd.f32 %v1395_v22, %v1176_v14 }
 0x12f   : > { %v4063_v27 = vpop.f32.mrf.mxu1  ;;  %v4082_v29 = vpop.f32.mrf.mxu0 }
 0x130   : > { %v5271_v2 = vadd.f32 %v4063_v27, %v1179_v35 }
 0x131   : > { %v1398_v28 = vpop.f32.mrf.mxu1  ;;  %v1773_v4 = vpop.f32.mrf.mxu0 }
 0x132   : > { %v5273_v34 = vadd.f32 %v1398_v28, %v1177_v24 }
 0x133   : > { %v4083_v45 = vpop.f32.mrf.mxu0 }
 0x134   : > { %v5275_v26 = vpop.f32.mrf.mxu1 }
 0x135   : > { %v1776_v13 = vpop.f32.mrf.mxu0 }
 0x136   : > { %v5277_v56 = vpop.f32.mrf.mxu1 }
 0x138   : > { %v5279_v40 = vpop.f32.mrf.mxu1 }
 0x13a   : > { %v5281_v12 = vpop.f32.mrf.mxu1  ;;  %v4086_v63 = vpop.f32.mrf.mxu0 }
 0x13c   : > { %v5283_v38 = vpop.f32.mrf.mxu1  ;;  %v1789_v3 = vpop.f32.mrf.mxu0 }
 0x13e   : > { %v5285_v42 = vpop.f32.mrf.mxu1  ;;  %v4087_v50 = vpop.f32.mrf.mxu0 }
 0x140   : > { %v5287_v55 = vpop.f32.mrf.mxu1  ;;  %v1792_v37 = vpop.f32.mrf.mxu0 }
 0x142   : > { %v5289_v51 = vpop.f32.mrf.mxu1 }
 0x143   : > { %v4090_v57 = vpop.f32.mrf.mxu0 }
 0x144   : > { %v5291_v23 = vpop.f32.mrf.mxu1 }
 0x145   : > { %v1805_v53 = vpop.f32.mrf.mxu0 }
 0x146   : > { %v5293_v11 = vpop.f32.mrf.mxu1 }
 0x147   : > { %v4091_v36 = vpop.f32.mrf.mxu0 }
 0x148   : > { %v5295_v19 = vpop.f32.mrf.mxu1 }
 0x149   : > { %v1808_v15 = vpop.f32.mrf.mxu0 }
 0x14a   : > { %v5297_v0 = vpop.f32.mrf.mxu1 }
 0x14e   : > { %v5299_v30 = vpop.f32.mrf.mxu0 }
 0x14f   : > { %v5301_v62 = vpop.f32.mrf.mxu1 }
 0x150   : > { %5467 = vst [vmem:[#allocation2_spill] sm:$0xff] %v5301_v62  ;;  %v5303_v5 = vpop.f32.mrf.mxu0 }
 0x151   : > { %v5305_v54 = vpop.f32.mrf.mxu1 }
 0x152   : > { %5468 = vst [vmem:[#allocation3_spill] sm:$0xff] %v5305_v54  ;;  %v5307_v39 = vpop.f32.mrf.mxu0 }
 0x153   : > { %v5309_v10 = vpop.f32.mrf.mxu1 }
 0x154   : > { %5469 = vst [vmem:[#allocation4_spill] sm:$0xff] %v5309_v10  ;;  %v5311_v8 = vpop.f32.mrf.mxu0 }
 0x155   : > { %v5313_v59 = vpop.f32.mrf.mxu1 }
 0x156   : > { %5470 = vst [vmem:[#allocation5_spill] sm:$0xff] %v5313_v59  ;;  %v4146_v58 = vpop.f32.mrf.mxu0 }
 0x158   : > { %v2317_v44 = vpop.f32.mrf.mxu0 }
 0x15a   : > { %v5315_v47 = vpop.f32.mrf.mxu1  ;;  %v4147_v7 = vpop.f32.mrf.mxu0 }
 0x15c   : > { %v5317_v20 = vpop.f32.mrf.mxu1  ;;  %v2320_v9 = vpop.f32.mrf.mxu0 }
 0x15e   : > { %v5319_v14 = vpop.f32.mrf.mxu1  ;;  %v5321_v31 = vpop.f32.mrf.mxu0 }
 0x15f   : > { %5471 = vst [vmem:[#allocation6_spill] sm:$0xff] %v5321_v31  ;;  %v1837_v31 = vadd.f32 %v1776_v13, %v5249_v1  ;;  %v1841_v1 = vadd.f32 %v1792_v37, %v5257_v46 }
 0x160   : > { %v5323_v52 = vpop.f32.mrf.mxu1  ;;  %v5325_v35 = vpop.f32.mrf.mxu0 }
 0x161   : > { %5472 = vst [vmem:[#allocation7_spill] sm:$0xff] %v5325_v35 }
 0x162   : > { %v5327_v21 = vpop.f32.mrf.mxu1  ;;  %v5329_v16 = vpop.f32.mrf.mxu0 }
 0x163   : > { %5473 = vst [vmem:[#allocation8_spill] sm:$0xff] %v5327_v21  ;;  %5474 = vst [vmem:[#allocation9_spill] sm:$0xff] %v5329_v16  ;;  %v1838_v16 = vadd.f32 %v4082_v29, %v5243_v41  ;;  %v1842_v41 = vadd.f32 %v4086_v63, %v5251_v48  ;;  %v1844_v48 = vadd.f32 %v1805_v53, %v5261_v61 }
 0x164   : > { %v5331_v24 = vpop.f32.mrf.mxu1  ;;  %v5333_v22 = vpop.f32.mrf.mxu0 }
 0x165   : > { %5475 = vst [vmem:[#allocation10_spill] sm:$0xff] %v5331_v24  ;;  %5476 = vst [vmem:[#allocation11_spill] sm:$0xff] %v5333_v22 }
 0x166   : > { %v5335_v27 = vpop.f32.mrf.mxu1  ;;  %v4154_v59 = vpop.f32.mrf.mxu0 }
 0x167   : > { %5477 = vst [vmem:[#allocation12_spill] sm:$0xff] %v5335_v27  ;;  %v1839_v27 = vadd.f32 %v4083_v45, %v5247_v33  ;;  %v1843_v33 = vadd.f32 %v4087_v50, %v5255_v32  ;;  %v1847_v45 = vadd.f32 %v4091_v36, %v5263_v25 }
 0x168   : > { %v5337_v28 = vpop.f32.mrf.mxu1  ;;  %v5339_v10 = vpop.f32.mrf.mxu0 }
 0x169   : > { %5478 = vst [vmem:[#allocation13_spill] sm:$0xff] %v5337_v28  ;;  %5479 = vst [vmem:[#allocation14_spill] sm:$0xff] %v5339_v10  ;;  %v1836_v28 = vadd.f32 %v1773_v4, %v5245_v49  ;;  %v1840_v49 = vadd.f32 %v1789_v3, %v5253_v17  ;;  %v1845_v17 = vadd.f32 %v1808_v15, %v5265_v6 }
 0x16a   : > { %v5342_v54 = vpop.f32.mrf.mxu1  ;;  %v4155_v62 = vpop.f32.mrf.mxu0  ;;  %v2140_v3 = vadd.f32 %v5283_v38, %v1842_v41  ;;  %v2139_v6 = vadd.f32 %v5289_v51, %v1841_v1  ;;  %v2145_v38 = vadd.f32 %v5295_v19, %v1847_v45  ;;  %v1848_v51 = vadd.f32 %v5303_v5, %v5269_v43 }
 0x16b   : > { %5480 = vst [vmem:[#allocation15_spill] sm:$0xff] %v5342_v54  ;;  %v2138_v46 = vadd.f32 %v5285_v42, %v1840_v49  ;;  %v2143_v36 = vadd.f32 %v5297_v0, %v1845_v17  ;;  %v1850_v42 = vadd.f32 %v5299_v30, %v5267_v18 }
 0x16c   : > { %v5344_v35 = vpop.f32.mrf.mxu1  ;;  %v2352_v21 = vpop.f32.mrf.mxu0  ;;  %v2391_v19 = vadd.f32 %v4155_v62, %v2145_v38  ;;  %v5486_v62 = vld [vmem:[#allocation9_spill] sm:$0xff]  ;;  %v5493_v45 = vld [vmem:[#allocation11_spill] sm:$0xff]  ;;  %v5496_v38 = vld [vmem:[#allocation8_spill] sm:$0xff] }
 0x16d   : > { %5481 = vst [vmem:[#allocation16_spill] sm:$0xff] %v5344_v35  ;;  %v2136_v35 = vadd.f32 %v5275_v26, %v1838_v16  ;;  %v1846_v26 = vadd.f32 %v4090_v57, %v5259_v60  ;;  %v2141_v60 = vadd.f32 %v5287_v55, %v1843_v33  ;;  %v2142_v57 = vadd.f32 %v5293_v11, %v1844_v48  ;;  %v5491_v33 = vld [vmem:[#allocation4_spill] sm:$0xff] }
 0x16e   : > { %v5347_v24 = vpop.f32.mrf.mxu1  ;;  %v5349_v22 = vpop.f32.mrf.mxu0  ;;  %v2389_v5 = vadd.f32 %v2352_v21, %v2143_v36  ;;  %v5497_v36 = vld [vmem:[#allocation12_spill] sm:$0xff] }
 0x16f   : > { %5482 = vst [vmem:[#allocation17_spill] sm:$0xff] %v5347_v24  ;;  %5483 = vst [vmem:[#allocation18_spill] sm:$0xff] %v5349_v22  ;;  %v2134_v22 = vadd.f32 %v5277_v56, %v1836_v28  ;;  %v2137_v24 = vadd.f32 %v5279_v40, %v1839_v27  ;;  %v2135_v56 = vadd.f32 %v5281_v12, %v1837_v31 }
 0x170   : > { %v5353_v10 = vpop.f32.mrf.mxu1  ;;  %v5355_v54 = vpop.f32.mrf.mxu0  ;;  %v2382_v40 = vadd.f32 %v4146_v58, %v2136_v35  ;;  %v2144_v12 = vadd.f32 %v5291_v23, %v1846_v26  ;;  %v1851_v23 = vadd.f32 %v5307_v39, %v5271_v2  ;;  %v5485_v35 = vld [vmem:[#allocation14_spill] sm:$0xff]  ;;  %v2387_v39 = vadd.f32 %v5486_v62, %v2141_v60  ;;  %v5492_v26 = vld [vmem:[#allocation7_spill] sm:$0xff] }
 0x171   : > { %v2383_v32 = vadd.f32 %v4147_v7, %v2137_v24  ;;  %v2380_v61 = vadd.f32 %v2317_v44, %v2134_v22  ;;  %v2381_v25 = vadd.f32 %v2320_v9, %v2135_v56  ;;  %v1849_v9 = vadd.f32 %v5311_v8, %v5273_v34  ;;  %v5487_v24 = vld [vmem:[#allocation2_spill] sm:$0xff]  ;;  %v5488_v8 = vld [vmem:[#allocation3_spill] sm:$0xff] }
 0x172   : > { %v5360_v29 = vpop.f32.mrf.mxu0  ;;  %v5366_v4 = vpop.f32.mrf.mxu1  ;;  %v2808_v55 = vadd.f32 %v5315_v47, %v2382_v40  ;;  %v2390_v11 = vadd.f32 %v4154_v59, %v2144_v12  ;;  %v2388_v43 = vadd.f32 %v5485_v35, %v2142_v57  ;;  %v2148_v34 = vadd.f32 %v5487_v24, %v1850_v42  ;;  %v5489_v27 = vld [vmem:[#allocation15_spill] sm:$0xff]  ;;  %v5495_v12 = vld [vmem:[#allocation5_spill] sm:$0xff] }
 0x173   : > { %v2809_v15 = vadd.f32 %v5319_v14, %v2383_v32  ;;  %v2806_v0 = vadd.f32 %v5317_v20, %v2380_v61  ;;  %v2807_v18 = vadd.f32 %v5323_v52, %v2381_v25  ;;  %v5484_v14 = vld [vmem:[#allocation6_spill] sm:$0xff]  ;;  %v2146_v22 = vadd.f32 %v5488_v8, %v1848_v51 }
 0x174   : > { %v5373_v13 = vpop.f32.mrf.mxu0  ;;  %v5377_v63 = vpop.f32.mrf.mxu1  ;;  %v2386_v31 = vadd.f32 %v5484_v14, %v2140_v3  ;;  %v2816_v28 = vadd.f32 %v5489_v27, %v2390_v11  ;;  %v2149_v1 = vadd.f32 %v5491_v33, %v1851_v23  ;;  %v2384_v48 = vadd.f32 %v5492_v26, %v2138_v46  ;;  %v5494_v32 = vld [vmem:[#allocation16_spill] sm:$0xff] }
 0x175   : > { %v2385_v56 = vadd.f32 %v5493_v45, %v2139_v6  ;;  %v2814_v3 = vadd.f32 %v5494_v32, %v2388_v43  ;;  %v2147_v57 = vadd.f32 %v5495_v12, %v1849_v9  ;;  %v2813_v42 = vadd.f32 %v5497_v36, %v2387_v39 }
 0x176   : > { %v4210_v50 = vpop.f32.mrf.mxu0  ;;  %v5384_v37 = vpop.f32.mrf.mxu1  ;;  %v5490_v21 = vld [vmem:[#allocation17_spill] sm:$0xff]  ;;  %v2392_v9 = vadd.f32 %v5355_v54, %v2146_v22 }
 0x177   : > { %v3106_v30 = vadd.f32 %v4210_v50, %v2808_v55  ;;  %v2817_v41 = vadd.f32 %v5490_v21, %v2391_v19  ;;  %v2815_v50 = vadd.f32 %v5353_v10, %v2389_v5  ;;  %v5498_v55 = vld [vmem:[#allocation18_spill] sm:$0xff]  ;;  %v2393_v14 = vadd.f32 %v5373_v13, %v2147_v57 }
 0x178   : > { %v3041_v53 = vpop.f32.mrf.mxu0  ;;  %v5395_v58 = vpop.f32.mrf.mxu1  ;;  %v2394_v46 = vadd.f32 %v5498_v55, %v2148_v34  ;;  %v5499_v19 = vld [vmem:[#allocation10_spill] sm:$0xff]  ;;  %v2818_v13 = vadd.f32 %v5377_v63, %v2392_v9 }
 0x179   : > { %v3104_v59 = vadd.f32 %v3041_v53, %v2806_v0  ;;  %v2812_v53 = vadd.f32 %v5496_v38, %v2386_v31  ;;  %v5500_v0 = vld [vmem:[#allocation13_spill] sm:$0xff] }
 0x17a   : > { %v4211_v44 = vpop.f32.mrf.mxu0  ;;  %v4218_v47 = vpop.f32.mrf.mxu1  ;;  %v2820_v62 = vadd.f32 %v5366_v4, %v2394_v46 }
 0x17b   : > { %v3107_v7 = vadd.f32 %v4211_v44, %v2809_v15  ;;  %v3114_v60 = vadd.f32 %v4218_v47, %v2816_v28  ;;  %v2395_v15 = vadd.f32 %v5360_v29, %v2149_v1  ;;  %v2810_v44 = vadd.f32 %v5499_v19, %v2384_v48 }
 0x17c   : > { %v3044_v2 = vpop.f32.mrf.mxu0  ;;  %v3073_v20 = vpop.f32.mrf.mxu1 }
 0x17d   : > { %v3753_v52 = vpack.c.bf16 %v3107_v7, %v3106_v30  ;;  %v3105_v16 = vadd.f32 %v3044_v2, %v2807_v18  ;;  %v3112_v51 = vadd.f32 %v3073_v20, %v2814_v3  ;;  %v2811_v18 = vadd.f32 %v5500_v0, %v2385_v56 }
 0x17e   : > { %v4214_v49 = vpop.f32.mrf.mxu0  ;;  %v4219_v17 = vpop.f32.mrf.mxu1  ;;  %v2821_v39 = vadd.f32 %v5384_v37, %v2395_v15  ;;  %v2819_v20 = vadd.f32 %v5395_v58, %v2393_v14 }
 0x17f   : > { %3785 = vst [vmem:[%s5411_s21 + $0x8] sm:$0xff] %v3753_v52   ;;  %v3748_v40 = vpack.c.bf16 %v3105_v16, %v3104_v59  ;;  %v3115_v61 = vadd.f32 %v4219_v17, %v2817_v41  ;;  %v3110_v30 = vadd.f32 %v4214_v49, %v2812_v53 }
 0x180   : > { %v3057_v25 = vpop.f32.mrf.mxu0  ;;  %v3076_v6 = vpop.f32.mrf.mxu1 }
 0x181   : > { %3749 = vst [vmem:[%s5411_s21] sm:$0xff] %v3748_v40   ;;  %v3773_v23 = vpack.c.bf16 %v3115_v61, %v3114_v60  ;;  %v3113_v11 = vadd.f32 %v3076_v6, %v2815_v50  ;;  %v3108_v35 = vadd.f32 %v3057_v25, %v2810_v44 }
 0x182   : > { %v4215_v10 = vpop.f32.mrf.mxu0  ;;  %v4222_v47 = vpop.f32.mrf.mxu1 }
 0x183   : > { %v3111_v7 = vadd.f32 %v4215_v10, %v2813_v42  ;;  %3789 = vst [vmem:[%s5411_s21 + $0x28] sm:$0xff] %v3773_v23   ;;  %v3768_v31 = vpack.c.bf16 %v3113_v11, %v3112_v51  ;;  %v3118_v52 = vadd.f32 %v4222_v47, %v2820_v62 }
 0x184   : > { %v3060_v29 = vpop.f32.mrf.mxu0  ;;  %v3089_v43 = vpop.f32.mrf.mxu1 }
 0x185   : > { %v3763_v5 = vpack.c.bf16 %v3111_v7, %v3110_v30  ;;  %v3109_v2 = vadd.f32 %v3060_v29, %v2811_v18  ;;  %3788 = vst [vmem:[%s5411_s21 + $0x20] sm:$0xff] %v3768_v31   ;;  %v3116_v34 = vadd.f32 %v3089_v43, %v2818_v13 }
 0x186   : > { %v4223_v59 = vpop.f32.mrf.mxu1 }
 0x187   : > { %3787 = vst [vmem:[%s5411_s21 + $0x18] sm:$0xff] %v3763_v5   ;;  %v3758_v54 = vpack.c.bf16 %v3109_v2, %v3108_v35  ;;  %v3119_v16 = vadd.f32 %v4223_v59, %v2821_v39 }
 0x188   : > { %v3092_v24 = vpop.f32.mrf.mxu1 }
 0x189   : > { %3786 = vst [vmem:[%s5411_s21 + $0x10] sm:$0xff] %v3758_v54   ;;  %v3783_v8 = vpack.c.bf16 %v3119_v16, %v3118_v52  ;;  %v3117_v22 = vadd.f32 %v3092_v24, %v2819_v20 }
 0x18b   : > { %3791 = vst [vmem:[%s5411_s21 + $0x38] sm:$0xff] %v3783_v8   ;;  %v3778_v4 = vpack.c.bf16 %v3117_v22, %v3116_v34 }
 0x18d   : > { %3790 = vst [vmem:[%s5411_s21 + $0x30] sm:$0xff] %v3778_v4  }
 0x18e PF: > { %s13_s16 = sadd.s32 1, %s4415_s16   ;;  %s5501_s12 = smov %s4407_s14 }
 0x18f   : > { %p10_p7 = scmp.ge.s32.totalorder %s13_s16, 6   ;;  %s5502_s13 = smov %s4411_s15 }
 0x190   : > { %s5503_s14 = smov %s5506_s17  ;;  %s5504_s15 = smov %s5510_s18 }
 0x191   :  { %12 = sbr.rel (!%p10_p7) target bundleno = 3 (0x3), region = 73 }

// kernel: discriminator_forward.14
= control target key start
LH: loop header
LB: loop body
LE: loop exit
PB: predicated region body
PF: predicated region fallthrough
CT: control target
= control target key end

     0   :  { %s3259_s12 = smov 0   ;;  %s3261_s13 = smov 0   ;;  %s4005_s0 = inlined_call_operand.vmem [shape: bf16[2,10,10,128], index: 0, kind: input, shape index: {}]   ;;  %s4006_s1 = inlined_call_operand.vmem [shape: bf16[3,3,128,128], index: 1, kind: input, shape index: {}]   ;;  %s4007_s2 = inlined_call_operand.vmem [shape: f32[1,128], index: 2, kind: input, shape index: {}]   ;;  %s4008_s3 = inlined_call_operand.vmem [shape: bf16[2,8,8,128], index: 3, kind: output, shape index: {}]  }
   0x1   :  { %s3263_s14 = smov 0  }
   0x2 LB: > { %s25_s15 = sadd.s32 1, %s3232_s13  ;;  %p2421_p0 = scmp.ge.s32.totalorder %s3236_s14, 1  ;;  %s3236_s14 = sphi %s3263_s14, %s13_s14   ;;  %s3232_s13 = sphi %s3261_s13, %s4034_s13   ;;  %s3228_s12 = sphi %s3259_s12, %s4033_s12  }
   0x3   : > { %p27_p1 = scmp.ge.s32.totalorder %s25_s15, 2  ;;  %p151_p2 = scmp.lt.s32.totalorder %s3236_s14, 3 }
   0x5   : > { %s4036_s15 = smov (%p27_p1, %s25_s15), 0  ;;  %p152_p3 = pnand %p2421_p0, %p151_p2 }
   0x7   : > { %155 = sbr.rel (%p152_p3) target bundleno = 381 (0x17d), region = 32 }
   0xc   : > { %v3142_v0 = vld [vmem:[%s4006_s1 + $0x38] sm:$0xff]   ;;  %p179_p4 = scmp.lt.s32.totalorder %s3228_s12, 1  ;;  %v3144_v2 = vld [vmem:[%s4006_s1 + $0x30] sm:$0xff]   ;;  %v3146_v4 = vld [vmem:[%s4006_s1 + $0x28] sm:$0xff]   ;;  %v3238_v15 = vmov 0   ;;  %vm717_vm3 = vcmask 1042432  }
   0xd   : > { %v3143_v1 = vld [vmem:[%s4006_s1 + $0x78] sm:$0xff]   ;;  %2884 = vmatprep.subr.bf16.mxu0 %v3142_v0  ;;  %v3145_v3 = vld [vmem:[%s4006_s1 + $0x70] sm:$0xff]   ;;  %v3147_v5 = vld [vmem:[%s4006_s1 + $0x68] sm:$0xff]   ;;  %vm416_vm0 = vsmask.f32 3328  ;;  %vm718_vm4 = vcmask 1046532  }
   0xe   : > { %2908 = vmatprep.subr.bf16.mxu1 %v3143_v1  ;;  %2885 = vmatpush3.bf16.msra.mxu0 %v3142_v0  ;;  %s4038_s12 = smov (!%p179_p4, %s3228_s12), 1  ;;  %v3148_v6 = vld [vmem:[%s4006_s1 + $0x20] sm:$0xff]   ;;  %v3150_v8 = vld [vmem:[%s4006_s1 + $0x18] sm:$0xff]   ;;  %v3152_v10 = vld [vmem:[%s4006_s1 + $0x10] sm:$0xff]   ;;  %vm417_vm1 = vsmask.f32 7440 }
   0xf   : > { %2909 = vmatpush3.bf16.msra.mxu1 %v3143_v1  ;;  %2886 = vmatprep.subr.bf16.mxu0 %v3144_v2  ;;  %v3149_v7 = vld [vmem:[%s4006_s1 + $0x60] sm:$0xff]   ;;  %s3116_s5 = smul.u32 80, %s4038_s12  ;;  %v3151_v9 = vld [vmem:[%s4006_s1 + $0x58] sm:$0xff]   ;;  %v3153_v11 = vld [vmem:[%s4006_s1 + $0x50] sm:$0xff]  }
  0x10   : > { %2910 = vmatprep.subr.bf16.mxu1 %v3145_v3  ;;  %v3154_v22 = vld [vmem:[%s4006_s1 + $0x8] sm:$0xff]   ;;  %v3156_v42 = vld [vmem:[%s4006_s1] sm:$0xff]   ;;  %vm3365_vm2 = vmor %vm416_vm0, %vm417_vm1 }
  0x11   : > { %s3313_s16 = scalar_lea.vmem %s4005_s0, %s3116_s5  ;;  %v3155_v28 = vld [vmem:[%s4006_s1 + $0x48] sm:$0xff]   ;;  %v3157_v47 = vld [vmem:[%s4006_s1 + $0x40] sm:$0xff]   ;;  %vm3467_vm5 = vmor %vm717_vm3, %vm718_vm4  ;;  %s2752_s5 = sshll.u32 %s4038_s12, 5 }
  0x12   : > { %2887 = vmatpush3.bf16.msra.mxu0 %v3144_v2  ;;  %v207_v12 = vld [vmem:[%s3313_s16] sm:$0xf]  ;;  %v208_v13 = vld [vmem:[%s3313_s16 + $0x8] sm:$0xf]  ;;  %v385_v18 = vld [vmem:[%s3313_s16 + $0x4] sm:$0x1]  ;;  %s192_s8 = scalar_lea.vmem %s4008_s3, %s2752_s5 }
  0x13   : > { %2911 = vmatpush3.bf16.msra.mxu1 %v3145_v3  ;;  %2888 = vmatprep.subr.bf16.mxu0 %v3146_v4  ;;  %v384_v14 = vld [vmem:[%s3313_s16] sm:$0xf]  ;;  %v215_v16 = vmax.bf16 %v3238_v15, %v207_v12  ;;  %v216_v17 = vmax.bf16 %v3238_v15, %v208_v13  ;;  %v386_v19 = vld [vmem:[%s3313_s16 + $0x8] sm:$0xf]  ;;  %v387_v20 = vld [vmem:[%s3313_s16 + $0xc] sm:$0x1]  ;;  %v3334_v23 = vmax.bf16 %v3238_v15, %v385_v18 }
  0x14   : > { %2912 = vmatprep.subr.bf16.mxu1 %v3147_v5  ;;  %v400_v21 = vmax.bf16 %v3238_v15, %v384_v14  ;;  %v402_v24 = vmax.bf16 %v3238_v15, %v386_v19  ;;  %v3338_v25 = vmax.bf16 %v3238_v15, %v387_v20  ;;  %v209_v26 = vld [vmem:[%s3313_s16 + $0x10] sm:$0xf]  ;;  %v210_v27 = vld [vmem:[%s3313_s16 + $0x18] sm:$0xf]  ;;  %v389_v37 = vld [vmem:[%s3313_s16 + $0x14] sm:$0x1] }
  0x15   : > { %v2426_v29 = vcombine.low %v215_v16, %v216_v17  ;;  %v388_v32 = vld [vmem:[%s3313_s16 + $0x10] sm:$0xf]  ;;  %v429_v33 = vshll.u32 %v3334_v23, 16  ;;  %v390_v40 = vld [vmem:[%s3313_s16 + $0x18] sm:$0xf]  ;;  %v217_v45 = vmax.bf16 %v3238_v15, %v209_v26  ;;  %v218_v46 = vmax.bf16 %v3238_v15, %v210_v27 }
  0x16   : > { %2889 = vmatpush3.bf16.msra.mxu0 %v3146_v4  ;;  %v420_v30 = vshrl.u32 %v400_v21, 16  ;;  %v423_v31 = vshll.u32 %v400_v21, 16  ;;  %v434_v34 = vshrl.u32 %v402_v24, 16  ;;  %v437_v35 = vshll.u32 %v402_v24, 16  ;;  %v391_v41 = vld [vmem:[%s3313_s16 + $0x1c] sm:$0x1] }
  0x17   : > { %2913 = vmatpush3.bf16.msra.mxu1 %v3147_v5  ;;  %2890 = vmatprep.subr.bf16.mxu0 %v3148_v6  ;;  %v443_v36 = vshll.u32 %v3338_v25, 16  ;;  %v431_v49 = vrot.slane %v429_v33, 5  ;;  %v404_v50 = vmax.bf16 %v3238_v15, %v388_v32  ;;  %v3361_v51 = vmax.bf16 %v3238_v15, %v389_v37  ;;  %v3160_v18 = vld [vmem:[%s4006_s1 + $0xb0] sm:$0xff]   ;;  %v211_v19 = vld [vmem:[%s3313_s16 + $0x20] sm:$0xf] }
  0x18   : > { %2914 = vmatprep.subr.bf16.mxu1 %v3149_v7  ;;  %2900 = vmatprep.mubr.bf16.mxu0 %v2426_v29  ;;  %v422_v38 = vrot.slane %v420_v30, 4  ;;  %v425_v39 = vrot.slane %v423_v31, 5  ;;  %v436_v43 = vrot.slane %v434_v34, 4  ;;  %v439_v44 = vrot.slane %v437_v35, 5  ;;  %v212_v21 = vld [vmem:[%s3313_s16 + $0x28] sm:$0xf] }
  0x19   : > { %v445_v54 = vrot.slane %v443_v36, 5  ;;  %v406_v55 = vmax.bf16 %v3238_v15, %v390_v40  ;;  %v3371_v56 = vmax.bf16 %v3238_v15, %v391_v41  ;;  %v448_v58 = vshrl.u32 %v404_v50, 16  ;;  %v3161_v26 = vld [vmem:[%s4006_s1 + $0xf0] sm:$0xff]   ;;  %v3162_v30 = vld [vmem:[%s4006_s1 + $0xa8] sm:$0xff]   ;;  %v214_v32 = vld [vmem:[%s3313_s16 + $0x38] sm:$0xf] }
  0x1a   : > { %2891 = vmatpush3.bf16.msra.mxu0 %v3148_v6  ;;  %v426_v48 = vor.u32 %v425_v39, %v422_v38  ;;  %v440_v53 = vor.u32 %v439_v44, %v436_v43  ;;  %v451_v59 = vshll.u32 %v404_v50, 16  ;;  %v457_v60 = vshll.u32 %v3361_v51, 16  ;;  %v213_v31 = vld [vmem:[%s3313_s16 + $0x30] sm:$0xf]  ;;  %v392_v37 = vld [vmem:[%s3313_s16 + $0x20] sm:$0xf] }
  0x1b   : > { %2915 = vmatpush3.bf16.msra.mxu1 %v3149_v7  ;;  %2892 = vmatprep.subr.bf16.mxu0 %v3150_v8  ;;  %v462_v62 = vshrl.u32 %v406_v55, 16  ;;  %v465_v63 = vshll.u32 %v406_v55, 16  ;;  %v471_v0 = vshll.u32 %v3371_v56, 16  ;;  %v450_v2 = vrot.slane %v448_v58, 4  ;;  %v3158_v7 = vld [vmem:[%s4006_s1 + $0xb8] sm:$0xff]   ;;  %v3163_v40 = vld [vmem:[%s4006_s1 + $0xe8] sm:$0xff]  }
  0x1c   : > { %2916 = vmatprep.subr.bf16.mxu1 %v3151_v9  ;;  %v427_v57 = vrot.slane %v426_v48, 4  ;;  %v441_v61 = vrot.slane %v440_v53, 4  ;;  %v453_v3 = vrot.slane %v451_v59, 5  ;;  %v2427_v13 = vcombine.low %v217_v45, %v218_v46  ;;  %v393_v38 = vld [vmem:[%s3313_s16 + $0x24] sm:$0x1] }
  0x1d   : > { %v464_v5 = vrot.slane %v462_v62, 4  ;;  %v467_v6 = vrot.slane %v465_v63, 5  ;;  %v473_v12 = vrot.slane %v471_v0, 5  ;;  %v220_v27 = vmax.bf16 %v3238_v15, %v212_v21  ;;  %v394_v39 = vld [vmem:[%s3313_s16 + $0x28] sm:$0xf]  ;;  %v3164_v59 = vld [vmem:[%s4006_s1 + $0xa0] sm:$0xff]  }
  0x1e   : > { %2893 = vmatpush3.bf16.msra.mxu0 %v3150_v8  ;;  %v432_v1 = vsel %vm3365_vm2, %v427_v57, %v431_v49  ;;  %v446_v4 = vsel %vm3365_vm2, %v441_v61, %v445_v54  ;;  %v3159_v8 = vld [vmem:[%s4006_s1 + $0xf8] sm:$0xff]   ;;  %v726_v33 = vrot.slane %v3338_v25, 5  ;;  %v221_v35 = vmax.bf16 %v3238_v15, %v213_v31  ;;  %v395_v41 = vld [vmem:[%s3313_s16 + $0x2c] sm:$0x1]  ;;  %v396_v45 = vld [vmem:[%s3313_s16 + $0x30] sm:$0xf] }
  0x1f   : > { %2917 = vmatpush3.bf16.msra.mxu1 %v3151_v9  ;;  %2894 = vmatprep.subr.bf16.mxu0 %v3152_v10  ;;  %v2454_v9 = vcombine.low %v432_v1, %v446_v4  ;;  %v468_v14 = vor.u32 %v467_v6, %v464_v5  ;;  %v222_v36 = vmax.bf16 %v3238_v15, %v214_v32  ;;  %v397_v46 = vld [vmem:[%s3313_s16 + $0x34] sm:$0x1]  ;;  %v398_v49 = vld [vmem:[%s3313_s16 + $0x38] sm:$0xf]  ;;  %v399_v50 = vld [vmem:[%s3313_s16 + $0x3c] sm:$0x1] }
  0x20   : > { %2918 = vmatprep.subr.bf16.mxu1 %v3153_v11  ;;  %v3417_v43 = vmax.bf16 %v3238_v15, %v393_v38  ;;  %v410_v44 = vmax.bf16 %v3238_v15, %v394_v39  ;;  %v3423_v48 = vmax.bf16 %v3238_v15, %v395_v41  ;;  %v412_v53 = vmax.bf16 %v3238_v15, %v396_v45  ;;  %v2502_v38 = vld [vmem:[%s3313_s16 + $0x8] sm:$0xf]  ;;  %v687_v45 = vld [vmem:[%s3313_s16 + $0x10] sm:$0xe] }
  0x21   : > { %2924 = vmatprep.mubr.bf16.mxu1 %v2454_v9  ;;  %v469_v17 = vrot.slane %v468_v14, 4  ;;  %v3434_v62 = vmax.bf16 %v3238_v15, %v397_v46  ;;  %v414_v63 = vmax.bf16 %v3238_v15, %v398_v49  ;;  %v3438_v6 = vmax.bf16 %v3238_v15, %v399_v50 }
  0x22   : > { %2895 = vmatpush3.bf16.msra.mxu0 %v3152_v10  ;;  %v454_v10 = vor.u32 %v453_v3, %v450_v2  ;;  %v485_v57 = vshll.u32 %v3417_v43, 16  ;;  %v490_v58 = vshrl.u32 %v410_v44, 16  ;;  %v499_v61 = vshll.u32 %v3423_v48, 16 }
  0x23   : > { %2919 = vmatpush3.bf16.msra.mxu1 %v3153_v11  ;;  %2896 = vmatprep.subr.bf16.mxu0 %v3154_v22  ;;  %v459_v11 = vrot.slane %v457_v60, 5  ;;  %v474_v24 = vsel %vm3365_vm2, %v469_v17, %v473_v12  ;;  %v493_v60 = vshll.u32 %v410_v44, 16  ;;  %v518_v12 = vshrl.u32 %v414_v63, 16  ;;  %v2503_v44 = vld [vmem:[%s3313_s16 + $0x10] sm:$0xf] }
  0x24   : > { %2920 = vmatprep.subr.bf16.mxu1 %v3155_v28  ;;  %v455_v16 = vrot.slane %v454_v10, 4  ;;  %v487_v2 = vrot.slane %v485_v57, 5  ;;  %v492_v3 = vrot.slane %v490_v58, 4  ;;  %v501_v5 = vrot.slane %v499_v61, 5  ;;  %v3170_v61 = vld [vmem:[%s4006_s1 + $0x88] sm:$0xff]  }
  0x25   : > { %v495_v4 = vrot.slane %v493_v60, 5  ;;  %v507_v10 = vshll.u32 %v412_v53, 16  ;;  %v521_v17 = vshll.u32 %v414_v63, 16  ;;  %v918_v49 = vmax.bf16 %v3238_v15, %v2502_v38 }
  0x26   : > { %2897 = vmatpush3.bf16.msra.mxu0 %v3154_v22  ;;  %v460_v20 = vsel %vm3365_vm2, %v455_v16, %v459_v11  ;;  %v219_v22 = vmax.bf16 %v3238_v15, %v211_v19  ;;  %v513_v11 = vshll.u32 %v3434_v62, 16  ;;  %v3167_v19 = vld [vmem:[%s4006_s1 + $0xd8] sm:$0xff]   ;;  %v919_v50 = vmax.bf16 %v3238_v15, %v2503_v44  ;;  %v2509_v44 = vld [vmem:[%s3313_s16 + $0x40] sm:$0xf] }
  0x27   : > { %2921 = vmatpush3.bf16.msra.mxu1 %v3155_v28  ;;  %2898 = vmatprep.subr.bf16.mxu0 %v3156_v42  ;;  %v722_v28 = vrot.slane %v3334_v23, 5  ;;  %v2455_v29 = vcombine.low %v460_v20, %v474_v24  ;;  %v496_v14 = vor.u32 %v495_v4, %v492_v3  ;;  %v509_v21 = vrot.slane %v507_v10, 5  ;;  %v3172_v23 = vld [vmem:[%s4006_s1 + $0x80] sm:$0xff]  }
  0x28   : > { %2922 = vmatprep.subr.bf16.mxu1 %v3157_v47  ;;  %v2428_v34 = vcombine.low %v219_v22, %v220_v27  ;;  %v520_v22 = vrot.slane %v518_v12, 4  ;;  %v523_v27 = vrot.slane %v521_v17, 5  ;;  %v695_v63 = vmax.bf16 %v3238_v15, %v687_v45  ;;  %v2505_v10 = vld [vmem:[%s3313_s16 + $0x20] sm:$0xf]  ;;  %v691_v12 = vld [vmem:[%s3313_s16 + $0x30] sm:$0xe] }
  0x29   : > { %v497_v24 = vrot.slane %v496_v14, 4  ;;  %v2526_v4 = vcombine.low %v918_v49, %v919_v50  ;;  %v738_v14 = vrot.slane %v3417_v43, 5 }
  0x2a   : > { %2899 = vmatpush3.bf16.msra.mxu0 %v3156_v42  ;;  %v408_v42 = vmax.bf16 %v3238_v15, %v392_v37  ;;  %v686_v37 = vld [vmem:[%s3313_s16 + $0x8] sm:$0xe]  ;;  %v2468_v25 = vrot.slane %v695_v63, 9  ;;  %v2541_v63 = vld [vmem:[%s3313_s16 + $0x14] sm:$0x1] }
  0x2b   : > { %2923 = vmatpush3.bf16.msra.mxu1 %v3157_v47  ;;  %2932 = vmatprep.subr.bf16.mxu0 %v3158_v7  ;;  %v2429_v47 = vcombine.low %v221_v35, %v222_v36  ;;  %v524_v35 = vor.u32 %v523_v27, %v520_v22  ;;  %v685_v36 = vld [vmem:[%s3313_s16] sm:$0xe]  ;;  %v2506_v22 = vld [vmem:[%s3313_s16 + $0x28] sm:$0xf]  ;;  %v750_v27 = vrot.slane %v3438_v6, 5 }
  0x2c   : > { %2956 = vmatprep.subr.bf16.mxu1 %v3159_v8  ;;  %v476_v54 = vshrl.u32 %v408_v42, 16  ;;  %v479_v55 = vshll.u32 %v408_v42, 16  ;;  %v693_v41 = vmax.bf16 %v3238_v15, %v685_v36  ;;  %v694_v42 = vmax.bf16 %v3238_v15, %v686_v37  ;;  %v3176_v37 = vld [vmem:[%s4006_s1 + $0x130] sm:$0xff]  }
  0x2d   : > { %2901 = vmatmul.mubr.bf16.vlgmr.msra.gmra.mxu0 %v2427_v13  ;;  %v3166_v13 = vld [vmem:[%s4006_s1 + $0x98] sm:$0xff]   ;;  %v525_v46 = vrot.slane %v524_v35, 4 }
  0x2e   : > { %2933 = vmatpush3.bf16.msra.mxu0 %v3158_v7  ;;  %2925 = vmatmul.mubr.bf16.vlgmr.msra.gmra.mxu1 %v2455_v29  ;;  %v478_v0 = vrot.slane %v476_v54, 4  ;;  %v481_v1 = vrot.slane %v479_v55, 5  ;;  %v504_v7 = vshrl.u32 %v412_v53, 16  ;;  %v688_v53 = vld [vmem:[%s3313_s16 + $0x18] sm:$0xe]  ;;  %v3169_v55 = vld [vmem:[%s4006_s1 + $0xd0] sm:$0xff]  }
  0x2f   : > { %2934 = vmatprep.subr.bf16.mxu0 %v3160_v18  ;;  %2957 = vmatpush3.bf16.msra.mxu1 %v3159_v8  ;;  %v3165_v8 = vld [vmem:[%s4006_s1 + $0xe0] sm:$0xff]   ;;  %v2466_v57 = vrot.slane %v693_v41, 9  ;;  %v2467_v58 = vrot.slane %v694_v42, 9  ;;  %v2508_v41 = vld [vmem:[%s3313_s16 + $0x38] sm:$0xf] }
  0x30   : > { %2904 = vmatprep.mubr.bf16.mxu0 %v2428_v34  ;;  %2958 = vmatprep.subr.bf16.mxu1 %v3161_v26  ;;  %v482_v9 = vor.u32 %v481_v1, %v478_v0  ;;  %v506_v16 = vrot.slane %v504_v7, 4  ;;  %v502_v34 = vsel %vm3365_vm2, %v497_v24, %v501_v5  ;;  %v696_v0 = vmax.bf16 %v3238_v15, %v688_v53  ;;  %v3174_v24 = vld [vmem:[%s4006_s1 + $0x138] sm:$0xff]  }
  0x31   : > { %v727_v3 = vsel %vm3467_vm5, %v2467_v58, %v726_v33  ;;  %v734_v7 = vrot.slane %v3371_v56, 5  ;;  %v2504_v33 = vld [vmem:[%s3313_s16 + $0x18] sm:$0xf]  ;;  %v924_v53 = vmax.bf16 %v3238_v15, %v2508_v41  ;;  %v2538_v58 = vld [vmem:[%s3313_s16 + $0x8] sm:$0xf] }
  0x32   : > { %2935 = vmatpush3.bf16.msra.mxu0 %v3160_v18  ;;  %v527_v18 = vshll.u32 %v3438_v6, 16  ;;  %v483_v20 = vrot.slane %v482_v9, 4  ;;  %v510_v32 = vor.u32 %v509_v21, %v506_v16  ;;  %v2469_v9 = vrot.slane %v696_v0, 9  ;;  %v2585_v41 = vld [vmem:[%s3313_s16 + $0x20] sm:$0xe] }
  0x33   : > { %2936 = vmatprep.subr.bf16.mxu0 %v3162_v30  ;;  %2959 = vmatpush3.bf16.msra.mxu1 %v3161_v26  ;;  %v515_v26 = vrot.slane %v513_v11, 5  ;;  %v742_v16 = vrot.slane %v3423_v48, 5  ;;  %v922_v6 = vmax.bf16 %v3238_v15, %v2506_v22  ;;  %v1104_v0 = vmax.bf16 %v3238_v15, %v2538_v58 }
  0x34   : > { %2960 = vmatprep.subr.bf16.mxu1 %v3163_v40  ;;  %v529_v29 = vrot.slane %v527_v18, 5  ;;  %v488_v31 = vsel %vm3365_vm2, %v483_v20, %v487_v2  ;;  %v723_v2 = vsel %vm3467_vm5, %v2466_v57, %v722_v28  ;;  %v689_v28 = vld [vmem:[%s3313_s16 + $0x20] sm:$0xe]  ;;  %v699_v20 = vmax.bf16 %v3238_v15, %v691_v12  ;;  %v3179_v57 = vld [vmem:[%s4006_s1 + $0x168] sm:$0xff]  }
  0x35   : > { %2905 = vmatmul.mubr.bf16.gmra.mxu0 %v2429_v47  ;;  %v2456_v39 = vcombine.low %v488_v31, %v502_v34  ;;  %v2490_v5 = vcombine.low %v723_v2, %v727_v3  ;;  %v697_v11 = vmax.bf16 %v3238_v15, %v689_v28  ;;  %v3173_v18 = vld [vmem:[%s4006_s1 + $0xc0] sm:$0xff]   ;;  %v735_v48 = vsel %vm3467_vm5, %v2469_v9, %v734_v7  ;;  %v2583_v7 = vld [vmem:[%s3313_s16 + $0x10] sm:$0xe]  ;;  %v2542_v28 = vld [vmem:[%s3313_s16 + $0x18] sm:$0xf] }
  0x36   : > { %2937 = vmatpush3.bf16.msra.mxu0 %v3162_v30  ;;  %v3168_v30 = vld [vmem:[%s4006_s1 + $0x90] sm:$0xff]   ;;  %v530_v60 = vsel %vm3365_vm2, %v525_v46, %v529_v29  ;;  %v921_v31 = vmax.bf16 %v3238_v15, %v2505_v10  ;;  %v2472_v38 = vrot.slane %v699_v20, 9  ;;  %v3180_v3 = vld [vmem:[%s4006_s1 + $0x120] sm:$0xff]   ;;  %v1124_v9 = vshll.u32 %v1104_v0, 16 }
  0x37   : > { %2938 = vmatprep.subr.bf16.mxu0 %v3164_v59  ;;  %2961 = vmatpush3.bf16.msra.mxu1 %v3163_v40  ;;  %v511_v40 = vrot.slane %v510_v32, 4  ;;  %v2470_v17 = vrot.slane %v697_v11, 9  ;;  %v2507_v29 = vld [vmem:[%s3313_s16 + $0x30] sm:$0xf]  ;;  %v3175_v32 = vld [vmem:[%s4006_s1 + $0x178] sm:$0xff]   ;;  %v1395_v10 = vmax.bf16 %v3238_v15, %v2583_v7  ;;  %v1397_v7 = vmax.bf16 %v3238_v15, %v2585_v41 }
  0x38   : > { %2962 = vmatprep.subr.bf16.mxu1 %v3165_v8  ;;  %2928 = vmatprep.mubr.bf16.mxu1 %v2456_v39  ;;  %v923_v35 = vmax.bf16 %v3238_v15, %v2507_v29  ;;  %v3177_v46 = vld [vmem:[%s4006_s1 + $0x170] sm:$0xff]   ;;  %v2543_v11 = vld [vmem:[%s3313_s16 + $0x1c] sm:$0x1] }
  0x39   : > { %v516_v54 = vsel %vm3365_vm2, %v511_v40, %v515_v26  ;;  %2948 = vmatprep.mubr.bf16.mxu0 %v2490_v5  ;;  %v746_v26 = vrot.slane %v3434_v62, 5  ;;  %v739_v34 = vsel %vm3467_vm5, %v2470_v17, %v738_v14  ;;  %v1107_v5 = vmax.bf16 %v3238_v15, %v2541_v63  ;;  %v3185_v63 = vld [vmem:[%s4006_s1 + $0x150] sm:$0xff]  }
  0x3a   : > { %2939 = vmatpush3.bf16.msra.mxu0 %v3164_v59  ;;  %v730_v59 = vrot.slane %v3361_v51, 5  ;;  %v2457_v1 = vcombine.low %v516_v54, %v530_v60  ;;  %v3171_v51 = vld [vmem:[%s4006_s1 + $0xc8] sm:$0xff]   ;;  %v2528_v45 = vcombine.low %v922_v6, %v923_v35  ;;  %v925_v54 = vmax.bf16 %v3238_v15, %v2509_v44  ;;  %v2584_v35 = vld [vmem:[%s3313_s16 + $0x18] sm:$0xe] }
  0x3b   : > { %2940 = vmatprep.subr.bf16.mxu0 %v3166_v13  ;;  %2963 = vmatpush3.bf16.msra.mxu1 %v3165_v8  ;;  %v690_v8 = vld [vmem:[%s3313_s16 + $0x28] sm:$0xe]  ;;  %v747_v49 = vsel %vm3467_vm5, %v2472_v38, %v746_v26  ;;  %v3182_v26 = vld [vmem:[%s4006_s1 + $0x118] sm:$0xff]  }
  0x3c   : > { %2964 = vmatprep.subr.bf16.mxu1 %v3167_v19  ;;  %2929 = vmatmul.mubr.bf16.gmra.mxu1 %v2457_v1  ;;  %v698_v56 = vmax.bf16 %v3238_v15, %v690_v8  ;;  %v731_v43 = vsel %vm3467_vm5, %v2468_v25, %v730_v59  ;;  %v2539_v59 = vld [vmem:[%s3313_s16 + $0xc] sm:$0x1]  ;;  %v2529_v2 = vcombine.low %v924_v53, %v925_v54  ;;  %v3181_v8 = vld [vmem:[%s4006_s1 + $0x160] sm:$0xff]   ;;  %v1121_v25 = vshrl.u32 %v1104_v0, 16 }
  0x3d   : > { %2972 = vmatprep.mubr.bf16.mxu1 %v2526_v4  ;;  %v2491_v36 = vcombine.low %v731_v43, %v735_v48  ;;  %v1105_v1 = vmax.bf16 %v3238_v15, %v2539_v59 }
  0x3e   : > { %2941 = vmatpush3.bf16.msra.mxu0 %v3166_v13  ;;  %v692_v13 = vld [vmem:[%s3313_s16 + $0x38] sm:$0xe]  ;;  %v1123_v17 = vrot.slane %v1121_v25, 4  ;;  %v3186_v25 = vld [vmem:[%s4006_s1 + $0x108] sm:$0xff]  }
  0x3f   : > { %2942 = vmatprep.subr.bf16.mxu0 %v3168_v30  ;;  %2965 = vmatpush3.bf16.msra.mxu1 %v3167_v19  ;;  %v2471_v19 = vrot.slane %v698_v56, 9  ;;  %v700_v21 = vmax.bf16 %v3238_v15, %v692_v13  ;;  %v1144_v56 = vshll.u32 %v1107_v5, 16  ;;  %v1420_v20 = vrot.slane %v1105_v1, 5 }
  0x40   : > { %2966 = vmatprep.subr.bf16.mxu1 %v3169_v55 }
  0x41   : > { %v743_v62 = vsel %vm3467_vm5, %v2471_v19, %v742_v16  ;;  %v2473_v39 = vrot.slane %v700_v21, 9  ;;  %v2544_v16 = vld [vmem:[%s3313_s16 + $0x20] sm:$0xf]  ;;  %v2545_v21 = vld [vmem:[%s3313_s16 + $0x24] sm:$0x1]  ;;  %v1146_v48 = vrot.slane %v1144_v56, 5 }
  0x42   : > { %2943 = vmatpush3.bf16.msra.mxu0 %v3168_v30  ;;  %v920_v30 = vmax.bf16 %v3238_v15, %v2504_v33  ;;  %v2492_v40 = vcombine.low %v739_v34, %v743_v62  ;;  %v1130_v33 = vshll.u32 %v1105_v1, 16  ;;  %v3588_v34 = vmax.bf16 %v3238_v15, %v2543_v11 }
  0x43   : > { %2944 = vmatprep.subr.bf16.mxu0 %v3170_v61  ;;  %2967 = vmatpush3.bf16.msra.mxu1 %v3169_v55  ;;  %v751_v50 = vsel %vm3467_vm5, %v2473_v39, %v750_v27  ;;  %v3178_v55 = vld [vmem:[%s4006_s1 + $0x128] sm:$0xff]   ;;  %v1110_v62 = vmax.bf16 %v3238_v15, %v2544_v16  ;;  %v3592_v6 = vmax.bf16 %v3238_v15, %v2545_v21 }
  0x44   : > { %2968 = vmatprep.subr.bf16.mxu1 %v3171_v51  ;;  %v2527_v42 = vcombine.low %v920_v30, %v921_v31  ;;  %v2493_v60 = vcombine.low %v747_v49, %v751_v50  ;;  %v1132_v19 = vrot.slane %v1130_v33, 5  ;;  %v1424_v30 = vrot.slane %v1107_v5, 5  ;;  %v3184_v49 = vld [vmem:[%s4006_s1 + $0x110] sm:$0xff]  }
  0x45   : > { %v1108_v31 = vmax.bf16 %v3238_v15, %v2542_v28  ;;  %v1432_v28 = vrot.slane %v3592_v6, 5 }
  0x46   : > { %2945 = vmatpush3.bf16.msra.mxu0 %v3170_v61  ;;  %v2540_v61 = vld [vmem:[%s3313_s16 + $0x10] sm:$0xf] }
  0x47   : > { %2946 = vmatprep.subr.bf16.mxu0 %v3172_v23  ;;  %2969 = vmatpush3.bf16.msra.mxu1 %v3171_v51  ;;  %v2582_v51 = vld [vmem:[%s3313_s16 + $0x8] sm:$0xe]  ;;  %v1106_v4 = vmax.bf16 %v3238_v15, %v2540_v61  ;;  %v1149_v39 = vshrl.u32 %v1108_v31, 16 }
  0x48   : > { %2970 = vmatprep.subr.bf16.mxu1 %v3173_v18  ;;  %v2546_v61 = vld [vmem:[%s3313_s16 + $0x28] sm:$0xf] }
  0x49   : > { %v1135_v12 = vshrl.u32 %v1106_v4, 16  ;;  %v1138_v13 = vshll.u32 %v1106_v4, 16  ;;  %v1151_v53 = vrot.slane %v1149_v39, 4  ;;  %v2548_v4 = vld [vmem:[%s3313_s16 + $0x30] sm:$0xf]  ;;  %v1112_v11 = vmax.bf16 %v3238_v15, %v2546_v61  ;;  %v3189_v39 = vld [vmem:[%s4006_s1 + $0x140] sm:$0xff]  }
  0x4a   : > { %2947 = vmatpush3.bf16.msra.mxu0 %v3172_v23  ;;  %v1394_v23 = vmax.bf16 %v3238_v15, %v2582_v51 }
  0x4b   : > { %2980 = vmatprep.subr.bf16.mxu0 %v3174_v24  ;;  %2971 = vmatpush3.bf16.msra.mxu1 %v3173_v18  ;;  %v1126_v18 = vrot.slane %v1124_v9, 5  ;;  %v1137_v22 = vrot.slane %v1135_v12, 4  ;;  %v1140_v43 = vrot.slane %v1138_v13, 5  ;;  %v3187_v12 = vld [vmem:[%s4006_s1 + $0x148] sm:$0xff]   ;;  %v2593_v13 = vrot.slane %v1397_v7, 9 }
  0x4c   : > { %3004 = vmatprep.subr.bf16.mxu1 %v3175_v32  ;;  %v2590_v14 = vrot.slane %v1394_v23, 9  ;;  %v1428_v23 = vrot.slane %v3588_v34, 5  ;;  %v2589_v7 = vld [vmem:[%s3313_s16 + $0x40] sm:$0xe] }
  0x4d   : > { %2949 = vmatmul.mubr.bf16.vlgmr.msra.gmra.mxu0 %v2491_v36  ;;  %v1127_v27 = vor.u32 %v1126_v18, %v1123_v17  ;;  %v3183_v36 = vld [vmem:[%s4006_s1 + $0x158] sm:$0xff]  }
  0x4e   : > { %2981 = vmatpush3.bf16.msra.mxu0 %v3174_v24  ;;  %2952 = vmatprep.mubr.bf16.mxu0 %v2492_v40  ;;  %v2591_v24 = vrot.slane %v1395_v10, 9  ;;  %v1421_v29 = vsel %vm3467_vm5, %v2590_v14, %v1420_v20  ;;  %v1152_v40 = vshll.u32 %v1108_v31, 16  ;;  %v1114_v14 = vmax.bf16 %v3238_v15, %v2548_v4  ;;  %v2550_v17 = vld [vmem:[%s3313_s16 + $0x38] sm:$0xf]  ;;  %v2551_v18 = vld [vmem:[%s3313_s16 + $0x3c] sm:$0x1] }
  0x4f   : > { %2973 = vmatmul.mubr.bf16.vlgmr.msra.gmra.mxu1 %v2527_v42  ;;  %2982 = vmatprep.subr.bf16.mxu0 %v3176_v37 }
  0x50   : > { %3005 = vmatpush3.bf16.msra.mxu1 %v3175_v32  ;;  %2976 = vmatprep.mubr.bf16.mxu1 %v2528_v45  ;;  %v1141_v32 = vor.u32 %v1140_v43, %v1137_v22  ;;  %v1425_v38 = vsel %vm3467_vm5, %v2591_v24, %v1424_v30  ;;  %v1158_v45 = vshll.u32 %v3588_v34, 16  ;;  %v1154_v54 = vrot.slane %v1152_v40, 5  ;;  %v2552_v43 = vld [vmem:[%s3313_s16 + $0x40] sm:$0xf]  ;;  %v3190_v40 = vld [vmem:[%s4006_s1 + $0x1b8] sm:$0xff]  }
  0x51   : > { %3006 = vmatprep.subr.bf16.mxu1 %v3177_v46  ;;  %v2614_v44 = vcombine.low %v1421_v29, %v1425_v38  ;;  %v1177_v22 = vshrl.u32 %v1112_v11, 16  ;;  %v3188_v24 = vld [vmem:[%s4006_s1 + $0x100] sm:$0xff]   ;;  %v1191_v30 = vshrl.u32 %v1114_v14, 16 }
  0x52   : > { %2983 = vmatpush3.bf16.msra.mxu0 %v3176_v37  ;;  %v1128_v37 = vrot.slane %v1127_v27, 4  ;;  %v1142_v42 = vrot.slane %v1141_v32, 4  ;;  %v1160_v58 = vrot.slane %v1158_v45, 5  ;;  %v1155_v1 = vor.u32 %v1154_v54, %v1151_v53  ;;  %v2587_v53 = vld [vmem:[%s3313_s16 + $0x30] sm:$0xe] }
  0x53   : > { %2984 = vmatprep.subr.bf16.mxu0 %v3178_v55  ;;  %v1180_v27 = vshll.u32 %v1112_v11, 16  ;;  %v1179_v34 = vrot.slane %v1177_v22, 4  ;;  %v1193_v38 = vrot.slane %v1191_v30, 4  ;;  %v3667_v45 = vmax.bf16 %v3238_v15, %v2551_v18  ;;  %v3194_v22 = vld [vmem:[%s4006_s1 + $0x1a8] sm:$0xff]  }
  0x54   : > { %3007 = vmatpush3.bf16.msra.mxu1 %v3177_v46  ;;  %v1163_v46 = vshrl.u32 %v1110_v62, 16  ;;  %v1133_v50 = vsel %vm3365_vm2, %v1128_v37, %v1132_v19  ;;  %v1156_v9 = vrot.slane %v1155_v1, 4 }
  0x55   : > { %2953 = vmatmul.mubr.bf16.gmra.mxu0 %v2493_v60  ;;  %3008 = vmatprep.subr.bf16.mxu1 %v3179_v57  ;;  %v1172_v60 = vshll.u32 %v3592_v6, 16  ;;  %v2586_v6 = vld [vmem:[%s3313_s16 + $0x28] sm:$0xe]  ;;  %v1444_v30 = vrot.slane %v3667_v45, 5 }
  0x56   : > { %2985 = vmatpush3.bf16.msra.mxu0 %v3178_v55  ;;  %v1166_v55 = vshll.u32 %v1110_v62, 16  ;;  %v1165_v59 = vrot.slane %v1163_v46, 4  ;;  %v1161_v19 = vsel %vm3365_vm2, %v1156_v9, %v1160_v58  ;;  %v1194_v62 = vshll.u32 %v1114_v14, 16 }
  0x57   : > { %2977 = vmatmul.mubr.bf16.gmra.mxu1 %v2529_v2  ;;  %2986 = vmatprep.subr.bf16.mxu0 %v3180_v3  ;;  %v1396_v2 = vmax.bf16 %v3238_v15, %v2584_v35  ;;  %v1174_v5 = vrot.slane %v1172_v60, 5  ;;  %v1398_v54 = vmax.bf16 %v3238_v15, %v2586_v6 }
  0x58   : > { %3009 = vmatpush3.bf16.msra.mxu1 %v3179_v57  ;;  %v1147_v57 = vsel %vm3365_vm2, %v1142_v42, %v1146_v48  ;;  %3020 = vmatprep.mubr.bf16.mxu1 %v2614_v44  ;;  %v1168_v51 = vrot.slane %v1166_v55, 5  ;;  %v2553_v48 = vld [vmem:[%s3313_s16 + $0x44] sm:$0x1]  ;;  %v1196_v41 = vrot.slane %v1194_v62, 5  ;;  %v1116_v44 = vmax.bf16 %v3238_v15, %v2550_v17  ;;  %v3191_v55 = vld [vmem:[%s4006_s1 + $0x1f8] sm:$0xff]  }
  0x59   : > { %3010 = vmatprep.subr.bf16.mxu1 %v3181_v8  ;;  %v2570_v0 = vcombine.low %v1133_v50, %v1147_v57  ;;  %v2592_v10 = vrot.slane %v1396_v2, 9  ;;  %v3671_v50 = vmax.bf16 %v3238_v15, %v2553_v48  ;;  %v2594_v18 = vrot.slane %v1398_v54, 9 }
  0x5a   : > { %2987 = vmatpush3.bf16.msra.mxu0 %v3180_v3  ;;  %v2547_v3 = vld [vmem:[%s3313_s16 + $0x2c] sm:$0x1]  ;;  %v1169_v33 = vor.u32 %v1168_v51, %v1165_v59  ;;  %v1197_v57 = vor.u32 %v1196_v41, %v1193_v38  ;;  %v1205_v59 = vshrl.u32 %v1116_v44, 16  ;;  %v1208_v60 = vshll.u32 %v1116_v44, 16  ;;  %v2588_v51 = vld [vmem:[%s3313_s16 + $0x38] sm:$0xe] }
  0x5b   : > { %2988 = vmatprep.subr.bf16.mxu0 %v3182_v26  ;;  %2996 = vmatprep.mubr.bf16.mxu0 %v2570_v0  ;;  %v3629_v56 = vmax.bf16 %v3238_v15, %v2547_v3  ;;  %v3641_v21 = vsel %vm3467_vm5, %v2592_v10, %v1428_v23  ;;  %v3192_v23 = vld [vmem:[%s4006_s1 + $0x1b0] sm:$0xff]   ;;  %v1448_v62 = vrot.slane %v3671_v50, 5 }
  0x5c   : > { %3011 = vmatpush3.bf16.msra.mxu1 %v3181_v8  ;;  %v2549_v8 = vld [vmem:[%s3313_s16 + $0x34] sm:$0x1]  ;;  %v1170_v20 = vrot.slane %v1169_v33, 4  ;;  %v1198_v2 = vrot.slane %v1197_v57, 4  ;;  %v1207_v3 = vrot.slane %v1205_v59, 4  ;;  %v1210_v4 = vrot.slane %v1208_v60, 5 }
  0x5d   : > { %3012 = vmatprep.subr.bf16.mxu1 %v3183_v36  ;;  %v3633_v16 = vmax.bf16 %v3238_v15, %v2549_v8  ;;  %v1186_v29 = vshll.u32 %v3629_v56, 16  ;;  %v3193_v33 = vld [vmem:[%s4006_s1 + $0x1f0] sm:$0xff]   ;;  %v2629_v59 = vld [vmem:[%s3313_s16 + $0x28] sm:$0xf]  ;;  %v2666_v60 = vld [vmem:[%s3313_s16 + $0x20] sm:$0xf] }
  0x5e   : > { %2989 = vmatpush3.bf16.msra.mxu0 %v3182_v26  ;;  %v3650_v26 = vsel %vm3467_vm5, %v2593_v13, %v1432_v28  ;;  %v1175_v31 = vsel %vm3365_vm2, %v1170_v20, %v1174_v5  ;;  %v1228_v5 = vshll.u32 %v3671_v50, 16  ;;  %v1211_v11 = vor.u32 %v1210_v4, %v1207_v3  ;;  %v2626_v38 = vld [vmem:[%s3313_s16 + $0x10] sm:$0xf]  ;;  %v2663_v44 = vld [vmem:[%s3313_s16 + $0x14] sm:$0x1] }
  0x5f   : > { %2990 = vmatprep.subr.bf16.mxu0 %v3184_v49  ;;  %v2615_v32 = vcombine.low %v3641_v21, %v3650_v26  ;;  %v2571_v35 = vcombine.low %v1161_v19, %v1175_v31  ;;  %v1188_v37 = vrot.slane %v1186_v29, 5  ;;  %v1200_v42 = vshll.u32 %v3633_v16, 16  ;;  %v3195_v21 = vld [vmem:[%s4006_s1 + $0x1e8] sm:$0xff]   ;;  %v2665_v50 = vld [vmem:[%s3313_s16 + $0x1c] sm:$0x1] }
  0x60   : > { %3013 = vmatpush3.bf16.msra.mxu1 %v3183_v36  ;;  %v1182_v36 = vrot.slane %v1180_v27, 5  ;;  %v1399_v13 = vmax.bf16 %v3238_v15, %v2587_v53  ;;  %v1436_v19 = vrot.slane %v3629_v56, 5  ;;  %v1212_v20 = vrot.slane %v1211_v11, 4  ;;  %v2668_v3 = vld [vmem:[%s3313_s16 + $0x28] sm:$0xf] }
  0x61   : > { %3014 = vmatprep.subr.bf16.mxu1 %v3185_v63  ;;  %v1202_v58 = vrot.slane %v1200_v42, 5  ;;  %v1440_v48 = vrot.slane %v3633_v16, 5  ;;  %v1401_v56 = vmax.bf16 %v3238_v15, %v2589_v7  ;;  %v1616_v41 = vmax.bf16 %v3238_v15, %v2626_v38  ;;  %v2662_v42 = vld [vmem:[%s3313_s16 + $0x10] sm:$0xf] }
  0x62   : > { %2991 = vmatpush3.bf16.msra.mxu0 %v3184_v49  ;;  %v1183_v46 = vor.u32 %v1182_v36, %v1179_v34  ;;  %v1118_v49 = vmax.bf16 %v3238_v15, %v2552_v43  ;;  %v2595_v43 = vrot.slane %v1399_v13, 9  ;;  %v1437_v29 = vsel %vm3467_vm5, %v2594_v18, %v1436_v19 }
  0x63   : > { %2992 = vmatprep.subr.bf16.mxu0 %v3186_v25  ;;  %v1203_v10 = vsel %vm3365_vm2, %v1198_v2, %v1202_v58  ;;  %v1802_v53 = vmax.bf16 %v3238_v15, %v2662_v42  ;;  %v3733_v54 = vmax.bf16 %v3238_v15, %v2663_v44  ;;  %v3738_v58 = vmax.bf16 %v3238_v15, %v2665_v50 }
  0x64   : > { %3015 = vmatpush3.bf16.msra.mxu1 %v3185_v63  ;;  %v1184_v61 = vrot.slane %v1183_v46, 4  ;;  %v1214_v63 = vshll.u32 %v3667_v45, 16  ;;  %v1219_v0 = vshrl.u32 %v1118_v49, 16  ;;  %v1222_v1 = vshll.u32 %v1118_v49, 16  ;;  %v2664_v49 = vld [vmem:[%s3313_s16 + $0x18] sm:$0xf] }
  0x65   : > { %3016 = vmatprep.subr.bf16.mxu1 %v3187_v12  ;;  %v1441_v31 = vsel %vm3467_vm5, %v2595_v43, %v1440_v48  ;;  %v1804_v57 = vmax.bf16 %v3238_v15, %v2664_v49  ;;  %v1828_v2 = vshll.u32 %v3733_v54, 16  ;;  %v1842_v7 = vshll.u32 %v3738_v58, 16  ;;  %v2671_v49 = vld [vmem:[%s3313_s16 + $0x34] sm:$0x1] }
  0x66   : > { %2993 = vmatpush3.bf16.msra.mxu0 %v3186_v25  ;;  %v1189_v28 = vsel %vm3365_vm2, %v1184_v61, %v1188_v37  ;;  %v1216_v8 = vrot.slane %v1214_v63, 5  ;;  %v1221_v25 = vrot.slane %v1219_v0, 4  ;;  %v1224_v9 = vrot.slane %v1222_v1, 5  ;;  %v3196_v37 = vld [vmem:[%s4006_s1 + $0x1a0] sm:$0xff]  }
  0x67   : > { %2994 = vmatprep.subr.bf16.mxu0 %v3188_v24  ;;  %v2572_v14 = vcombine.low %v1189_v28, %v1203_v10  ;;  %v2616_v26 = vcombine.low %v1437_v29, %v1441_v31  ;;  %v2667_v61 = vld [vmem:[%s3313_s16 + $0x24] sm:$0x1]  ;;  %v1819_v1 = vshrl.u32 %v1802_v53, 16  ;;  %v1833_v4 = vshrl.u32 %v1804_v57, 16  ;;  %v3198_v28 = vld [vmem:[%s4006_s1 + $0x198] sm:$0xff]  }
  0x68   : > { %3017 = vmatpush3.bf16.msra.mxu1 %v3187_v12  ;;  %v1230_v12 = vrot.slane %v1228_v5, 5  ;;  %v1225_v17 = vor.u32 %v1224_v9, %v1221_v25  ;;  %v1217_v16 = vsel %vm3365_vm2, %v1212_v20, %v1216_v8  ;;  %v3197_v63 = vld [vmem:[%s4006_s1 + $0x1e0] sm:$0xff]   ;;  %v1836_v5 = vshll.u32 %v1804_v57, 16  ;;  %v2630_v29 = vld [vmem:[%s3313_s16 + $0x30] sm:$0xf] }
  0x69   : > { %3018 = vmatprep.subr.bf16.mxu1 %v3189_v39  ;;  %v1821_v8 = vrot.slane %v1819_v1, 4  ;;  %v1830_v10 = vrot.slane %v1828_v2, 5  ;;  %v1835_v11 = vrot.slane %v1833_v4, 4  ;;  %v3758_v13 = vmax.bf16 %v3238_v15, %v2629_v59  ;;  %v2672_v59 = vld [vmem:[%s3313_s16 + $0x38] sm:$0xf] }
  0x6a   : > { %2995 = vmatpush3.bf16.msra.mxu0 %v3188_v24  ;;  %v1400_v24 = vmax.bf16 %v3238_v15, %v2588_v51  ;;  %v1226_v27 = vrot.slane %v1225_v17, 4  ;;  %v1822_v51 = vshll.u32 %v1802_v53, 16  ;;  %v3764_v18 = vmax.bf16 %v3238_v15, %v2667_v61  ;;  %v3203_v61 = vld [vmem:[%s4006_s1 + $0x1c8] sm:$0xff]   ;;  %v2674_v2 = vld [vmem:[%s3313_s16 + $0x40] sm:$0xf] }
  0x6b   : > { %3028 = vmatprep.subr.bf16.mxu0 %v3190_v40  ;;  %v1808_v19 = vmax.bf16 %v3238_v15, %v2668_v3  ;;  %v1844_v48 = vrot.slane %v1842_v7, 5  ;;  %v3791_v44 = vmax.bf16 %v3238_v15, %v2630_v29  ;;  %v1812_v4 = vmax.bf16 %v3238_v15, %v2672_v59  ;;  %v2675_v7 = vld [vmem:[%s3313_s16 + $0x44] sm:$0x1]  ;;  %v3843_v29 = vld [vmem:[%s4006_s1 + $0x238] sm:$0xff]  }
  0x6c   : > { %3019 = vmatpush3.bf16.msra.mxu1 %v3189_v39  ;;  %v2596_v34 = vrot.slane %v1400_v24, 9  ;;  %v1231_v6 = vsel %vm3365_vm2, %v1226_v27, %v1230_v12  ;;  %v1824_v25 = vrot.slane %v1822_v51, 5  ;;  %v1838_v12 = vrot.slane %v1836_v5, 5 }
  0x6d   : > { %2997 = vmatmul.mubr.bf16.vlgmr.msra.gmra.mxu0 %v2571_v35  ;;  %3052 = vmatprep.subr.bf16.mxu1 %v3191_v55  ;;  %v2573_v35 = vcombine.low %v1217_v16, %v1231_v6  ;;  %v1856_v16 = vshll.u32 %v3764_v18, 16  ;;  %v1861_v31 = vshrl.u32 %v1808_v19, 16  ;;  %v3812_v51 = vmax.bf16 %v3238_v15, %v2671_v49 }
  0x6e   : > { %3029 = vmatpush3.bf16.msra.mxu0 %v3190_v40  ;;  %3000 = vmatprep.mubr.bf16.mxu0 %v2572_v14  ;;  %v1445_v36 = vsel %vm3467_vm5, %v2596_v34, %v1444_v30  ;;  %v2627_v40 = vld [vmem:[%s3313_s16 + $0x18] sm:$0xf]  ;;  %v1825_v17 = vor.u32 %v1824_v25, %v1821_v8  ;;  %v1839_v43 = vor.u32 %v1838_v12, %v1835_v11  ;;  %v1864_v34 = vshll.u32 %v1808_v19, 16  ;;  %v3204_v8 = vld [vmem:[%s4006_s1 + $0x180] sm:$0xff]  }
  0x6f   : > { %3021 = vmatmul.mubr.bf16.vlgmr.msra.gmra.mxu1 %v2615_v32  ;;  %3030 = vmatprep.subr.bf16.mxu0 %v3192_v23  ;;  %v2597_v32 = vrot.slane %v1401_v56, 9  ;;  %v1617_v46 = vmax.bf16 %v3238_v15, %v2627_v40  ;;  %v3199_v14 = vld [vmem:[%s4006_s1 + $0x1d8] sm:$0xff]   ;;  %v3201_v56 = vld [vmem:[%s4006_s1 + $0x1d0] sm:$0xff]   ;;  %v3796_v53 = vrot.slane %v1856_v16, 5  ;;  %v1884_v11 = vshll.u32 %v3812_v51, 16 }
  0x70   : > { %3053 = vmatpush3.bf16.msra.mxu1 %v3191_v55  ;;  %3024 = vmatprep.mubr.bf16.mxu1 %v2616_v26  ;;  %v2628_v55 = vld [vmem:[%s3313_s16 + $0x20] sm:$0xf]  ;;  %v1826_v30 = vrot.slane %v1825_v17, 4  ;;  %v1840_v6 = vrot.slane %v1839_v43, 4  ;;  %v1866_v38 = vrot.slane %v1864_v34, 5  ;;  %v1892_v17 = vshll.u32 %v1812_v4, 16 }
  0x71   : > { %3054 = vmatprep.subr.bf16.mxu1 %v3193_v33  ;;  %v1449_v39 = vsel %vm3467_vm5, %v2597_v32, %v1448_v62  ;;  %v2650_v0 = vcombine.low %v1616_v41, %v1617_v46  ;;  %v3754_v9 = vmax.bf16 %v3238_v15, %v2628_v55  ;;  %v2631_v62 = vld [vmem:[%s3313_s16 + $0x38] sm:$0xf]  ;;  %v2670_v46 = vld [vmem:[%s3313_s16 + $0x30] sm:$0xf] }
  0x72   : > { %3031 = vmatpush3.bf16.msra.mxu0 %v3192_v23  ;;  %v2617_v45 = vcombine.low %v1445_v36, %v1449_v39  ;;  %v2669_v23 = vld [vmem:[%s3313_s16 + $0x2c] sm:$0x1]  ;;  %v1831_v36 = vsel %vm3365_vm2, %v1826_v30, %v1830_v10  ;;  %v2632_v39 = vld [vmem:[%s3313_s16 + $0x40] sm:$0xf]  ;;  %v1845_v40 = vsel %vm3365_vm2, %v1840_v6, %v1844_v48  ;;  %v1810_v1 = vmax.bf16 %v3238_v15, %v2670_v46 }
  0x73   : > { %3032 = vmatprep.subr.bf16.mxu0 %v3194_v22  ;;  %v3768_v20 = vmax.bf16 %v3238_v15, %v2669_v23  ;;  %v2651_v41 = vcombine.low %v3754_v9, %v3758_v13  ;;  %v2694_v50 = vcombine.low %v1831_v36, %v1845_v40  ;;  %v3816_v3 = vmax.bf16 %v3238_v15, %v2632_v39  ;;  %v2676_v23 = vld [vmem:[%s3313_s16 + $0x48] sm:$0xf] }
  0x74   : > { %3055 = vmatpush3.bf16.msra.mxu1 %v3193_v33  ;;  %v1806_v33 = vmax.bf16 %v3238_v15, %v2666_v60  ;;  %v2673_v60 = vld [vmem:[%s3313_s16 + $0x3c] sm:$0x1]  ;;  %v1878_v10 = vshll.u32 %v1810_v1, 16  ;;  %v1816_v6 = vmax.bf16 %v3238_v15, %v2676_v23  ;;  %v3208_v9 = vld [vmem:[%s4006_s1 + $0x228] sm:$0xff]  }
  0x75   : > { %3001 = vmatmul.mubr.bf16.gmra.mxu0 %v2573_v35  ;;  %3056 = vmatprep.subr.bf16.mxu1 %v3195_v21  ;;  %v1870_v32 = vshll.u32 %v3768_v20, 16  ;;  %v3202_v35 = vld [vmem:[%s4006_s1 + $0x188] sm:$0xff]   ;;  %v3820_v5 = vmax.bf16 %v3238_v15, %v2673_v60  ;;  %v2707_v60 = vld [vmem:[%s3313_s16 + $0x18] sm:$0xe] }
  0x76   : > { %3033 = vmatpush3.bf16.msra.mxu0 %v3194_v22  ;;  %3044 = vmatprep.mubr.bf16.mxu0 %v2650_v0  ;;  %v3200_v22 = vld [vmem:[%s4006_s1 + $0x190] sm:$0xff]   ;;  %v1847_v24 = vshrl.u32 %v1806_v33, 16  ;;  %v1850_v27 = vshll.u32 %v1806_v33, 16  ;;  %v3808_v0 = vmax.bf16 %v3238_v15, %v2631_v62  ;;  %v1875_v33 = vshrl.u32 %v1810_v1, 16 }
  0x77   : > { %3025 = vmatmul.mubr.bf16.gmra.mxu1 %v2617_v45  ;;  %3034 = vmatprep.subr.bf16.mxu0 %v3196_v37  ;;  %v2633_v45 = vld [vmem:[%s3313_s16 + $0x48] sm:$0xf]  ;;  %v3798_v57 = vrot.slane %v1870_v32, 5  ;;  %v1898_v19 = vshll.u32 %v3820_v5, 16  ;;  %v3847_v62 = vmax.bf16 %v3238_v15, %v2675_v7  ;;  %v1917_v39 = vshrl.u32 %v1816_v6, 16 }
  0x78   : > { %3057 = vmatpush3.bf16.msra.mxu1 %v3195_v21  ;;  %v1849_v21 = vrot.slane %v1847_v24, 4  ;;  %v1852_v26 = vrot.slane %v1850_v27, 5  ;;  %3068 = vmatprep.mubr.bf16.mxu1 %v2694_v50  ;;  %v3829_v25 = vmax.bf16 %v3238_v15, %v2633_v45  ;;  %v1877_v48 = vrot.slane %v1875_v33, 4  ;;  %v2706_v50 = vld [vmem:[%s3313_s16 + $0x10] sm:$0xe] }
  0x79   : > { %3058 = vmatprep.subr.bf16.mxu1 %v3197_v63  ;;  %v1880_v24 = vrot.slane %v1878_v10, 5  ;;  %v1886_v27 = vrot.slane %v1884_v11, 5  ;;  %v1900_v16 = vrot.slane %v1898_v19, 5  ;;  %v1920_v40 = vshll.u32 %v1816_v6, 16  ;;  %v2710_v7 = vld [vmem:[%s3313_s16 + $0x30] sm:$0xe] }
  0x7a   : > { %3035 = vmatpush3.bf16.msra.mxu0 %v3196_v37  ;;  %v1863_v37 = vrot.slane %v1861_v31, 4  ;;  %v1853_v42 = vor.u32 %v1852_v26, %v1849_v21  ;;  %v1814_v31 = vmax.bf16 %v3238_v15, %v2674_v2  ;;  %v2093_v10 = vmax.bf16 %v3238_v15, %v2707_v60  ;;  %v2709_v6 = vld [vmem:[%s3313_s16 + $0x28] sm:$0xe] }
  0x7b   : > { %3036 = vmatprep.subr.bf16.mxu0 %v3198_v28  ;;  %v1881_v34 = vor.u32 %v1880_v24, %v1877_v48  ;;  %v1922_v59 = vrot.slane %v1920_v40, 5  ;;  %v2118_v11 = vrot.slane %v3733_v54, 5  ;;  %v2096_v19 = vmax.bf16 %v3238_v15, %v2710_v7 }
  0x7c   : > { %3059 = vmatpush3.bf16.msra.mxu1 %v3197_v63  ;;  %v1867_v55 = vor.u32 %v1866_v38, %v1863_v37  ;;  %v3805_v63 = vrot.slane %v1853_v42, 4  ;;  %v1903_v36 = vshrl.u32 %v1814_v31, 16  ;;  %v1906_v37 = vshll.u32 %v1814_v31, 16  ;;  %v3211_v31 = vld [vmem:[%s4006_s1 + $0x210] sm:$0xff]  }
  0x7d   : > { %3060 = vmatprep.subr.bf16.mxu1 %v3199_v14  ;;  %v1912_v38 = vshll.u32 %v3847_v62, 16  ;;  %v2715_v13 = vrot.slane %v2093_v10, 9  ;;  %v2718_v24 = vrot.slane %v2096_v19, 9 }
  0x7e   : > { %3037 = vmatpush3.bf16.msra.mxu0 %v3198_v28  ;;  %v2677_v28 = vld [vmem:[%s3313_s16 + $0x4c] sm:$0x1]  ;;  %v1868_v12 = vrot.slane %v1867_v55, 4  ;;  %v1859_v43 = vsel %vm3365_vm2, %v3805_v63, %v3796_v53  ;;  %v1905_v45 = vrot.slane %v1903_v36, 4  ;;  %v1908_v46 = vrot.slane %v1906_v37, 5  ;;  %v3207_v63 = vld [vmem:[%s4006_s1 + $0x230] sm:$0xff]  }
  0x7f   : > { %3038 = vmatprep.subr.bf16.mxu0 %v3200_v22  ;;  %v3851_v21 = vmax.bf16 %v3238_v15, %v2677_v28  ;;  %v2652_v53 = vcombine.low %v3791_v44, %v3808_v0  ;;  %v2711_v44 = vld [vmem:[%s3313_s16 + $0x38] sm:$0xe]  ;;  %v2095_v37 = vmax.bf16 %v3238_v15, %v2709_v6 }
  0x80   : > { %3061 = vmatpush3.bf16.msra.mxu1 %v3199_v14  ;;  %v1889_v14 = vshrl.u32 %v1812_v4, 16  ;;  %v1873_v26 = vsel %vm3365_vm2, %v1868_v12, %v3798_v57  ;;  %v1919_v57 = vrot.slane %v1917_v39, 4  ;;  %v1909_v2 = vor.u32 %v1908_v46, %v1905_v45 }
  0x81   : > { %3062 = vmatprep.subr.bf16.mxu1 %v3201_v56  ;;  %v1926_v49 = vshll.u32 %v3851_v21, 16  ;;  %v1914_v4 = vrot.slane %v1912_v38, 5  ;;  %v2122_v12 = vrot.slane %v3738_v58, 5  ;;  %v2134_v58 = vrot.slane %v3812_v51, 5 }
  0x82   : > { %3039 = vmatpush3.bf16.msra.mxu0 %v3200_v22  ;;  %v3205_v22 = vld [vmem:[%s4006_s1 + $0x1c0] sm:$0xff]   ;;  %v1891_v30 = vrot.slane %v1889_v14, 4  ;;  %v1923_v23 = vor.u32 %v1922_v59, %v1919_v57  ;;  %v1910_v33 = vrot.slane %v1909_v2, 4  ;;  %v2717_v45 = vrot.slane %v2095_v37, 9 }
  0x83   : > { %3040 = vmatprep.subr.bf16.mxu0 %v3202_v35  ;;  %v1928_v28 = vrot.slane %v1926_v49, 5  ;;  %v2123_v51 = vsel %vm3467_vm5, %v2715_v13, %v2122_v12  ;;  %v2130_v46 = vrot.slane %v3768_v20, 5  ;;  %v3213_v49 = vld [vmem:[%s4006_s1 + $0x200] sm:$0xff]  }
  0x84   : > { %3063 = vmatpush3.bf16.msra.mxu1 %v3201_v56  ;;  %v1894_v56 = vrot.slane %v1892_v17, 5  ;;  %v1924_v14 = vrot.slane %v1923_v23, 4  ;;  %v1915_v54 = vsel %vm3365_vm2, %v1910_v33, %v1914_v4 }
  0x85   : > { %3064 = vmatprep.subr.bf16.mxu1 %v3203_v61  ;;  %v2131_v20 = vsel %vm3467_vm5, %v2717_v45, %v2130_v46  ;;  %v2425_v45 = vld [vmem:[%s4007_s2] ss:$0 sm:$0xff] }
  0x86   : > { %3041 = vmatpush3.bf16.msra.mxu0 %v3202_v35  ;;  %v1895_v32 = vor.u32 %v1894_v56, %v1891_v30  ;;  %v1882_v35 = vrot.slane %v1881_v34, 4  ;;  %v2653_v30 = vcombine.low %v3816_v3, %v3829_v25  ;;  %v3210_v25 = vld [vmem:[%s4006_s1 + $0x218] sm:$0xff]   ;;  %v2708_v34 = vld [vmem:[%s3313_s16 + $0x20] sm:$0xe] }
  0x87   : > { %3042 = vmatprep.subr.bf16.mxu0 %v3204_v8  ;;  %v2094_v36 = vmax.bf16 %v3238_v15, %v2708_v34 }
  0x88   : > { %3065 = vmatpush3.bf16.msra.mxu1 %v3203_v61  ;;  %v1896_v42 = vrot.slane %v1895_v32, 4  ;;  %v1887_v55 = vsel %vm3365_vm2, %v1882_v35, %v1886_v27  ;;  %v2695_v61 = vcombine.low %v1859_v43, %v1873_v26  ;;  %v1929_v43 = vsel %vm3365_vm2, %v1924_v14, %v1928_v28  ;;  %v2712_v26 = vld [vmem:[%s3313_s16 + $0x40] sm:$0xe]  ;;  %v2713_v32 = vld [vmem:[%s3313_s16 + $0x48] sm:$0xe] }
  0x89   : > { %3066 = vmatprep.subr.bf16.mxu1 %v3205_v22  ;;  %v2697_v56 = vcombine.low %v1915_v54, %v1929_v43  ;;  %v3212_v35 = vld [vmem:[%s4006_s1 + $0x208] sm:$0xff]   ;;  %v2098_v38 = vmax.bf16 %v3238_v15, %v2712_v26  ;;  %v2099_v39 = vmax.bf16 %v3238_v15, %v2713_v32  ;;  %v2716_v40 = vrot.slane %v2094_v36, 9 }
  0x8a   : > { %3043 = vmatpush3.bf16.msra.mxu0 %v3204_v8  ;;  %v1901_v1 = vsel %vm3365_vm2, %v1896_v42, %v1900_v16  ;;  %v2092_v8 = vmax.bf16 %v3238_v15, %v2706_v50  ;;  %v3209_v16 = vld [vmem:[%s4006_s1 + $0x220] sm:$0xff]   ;;  %v2126_v42 = vrot.slane %v3764_v18, 5  ;;  %v2142_v50 = vrot.slane %v3847_v62, 5 }
  0x8b   : > { %3076 = vmatprep.subr.bf16.mxu0 %v3843_v29  ;;  %v2696_v0 = vcombine.low %v1887_v55, %v1901_v1  ;;  %v2720_v55 = vrot.slane %v2098_v38, 9 }
  0x8c   : > { %3067 = vmatpush3.bf16.msra.mxu1 %v3205_v22  ;;  %v2714_v17 = vrot.slane %v2092_v8, 9  ;;  %v2097_v22 = vmax.bf16 %v3238_v15, %v2711_v44  ;;  %v2721_v15 = vrot.slane %v2099_v39, 9  ;;  %v2127_v18 = vsel %vm3467_vm5, %v2716_v40, %v2126_v42 }
  0x8d   : > { %3045 = vmatmul.mubr.bf16.vlgmr.msra.gmra.mxu0 %v2651_v41  ;;  %3100 = vmatprep.subr.bf16.mxu1 %v3843_v29  ;;  %v2138_v41 = vrot.slane %v3820_v5, 5  ;;  %v2143_v57 = vsel %vm3467_vm5, %v2720_v55, %v2142_v50 }
  0x8e   : > { %3077 = vmatpush3.bf16.msra.mxu0 %v3843_v29  ;;  %3048 = vmatprep.mubr.bf16.mxu0 %v2652_v53  ;;  %v2119_v48 = vsel %vm3467_vm5, %v2714_v17, %v2118_v11  ;;  %v2719_v27 = vrot.slane %v2097_v22, 9  ;;  %v2146_v53 = vrot.slane %v3851_v21, 5  ;;  %v2739_v21 = vcombine.low %v2127_v18, %v2131_v20 }
  0x8f   : > { %3069 = vmatmul.mubr.bf16.vlgmr.msra.gmra.mxu1 %v2695_v61  ;;  %3078 = vmatprep.subr.bf16.mxu0 %v3207_v63  ;;  %v2738_v5 = vcombine.low %v2119_v48, %v2123_v51 }
  0x90   : > { %3108 = vmatpush3.bf16.msra.mxu1 %v3843_v29  ;;  %3072 = vmatprep.mubr.bf16.mxu1 %v2696_v0  ;;  %v2135_v29 = vsel %vm3467_vm5, %v2718_v24, %v2134_v58  ;;  %v2139_v52 = vsel %vm3467_vm5, %v2719_v27, %v2138_v41  ;;  %v2147_v62 = vsel %vm3467_vm5, %v2721_v15, %v2146_v53 }
  0x91   : > { %3101 = vmatprep.subr.bf16.mxu1 %v3207_v63  ;;  %v2740_v3 = vcombine.low %v2135_v29, %v2139_v52  ;;  %v2741_v59 = vcombine.low %v2143_v57, %v2147_v62 }
  0x92   : > { %3079 = vmatpush3.bf16.msra.mxu0 %v3207_v63 }
  0x93   : > { %3080 = vmatprep.subr.bf16.mxu0 %v3208_v9 }
  0x94   : > { %3109 = vmatpush3.bf16.msra.mxu1 %v3207_v63 }
  0x95   : > { %3049 = vmatmul.mubr.bf16.gmra.mxu0 %v2653_v30  ;;  %3102 = vmatprep.subr.bf16.mxu1 %v3208_v9 }
  0x96   : > { %3081 = vmatpush3.bf16.msra.mxu0 %v3208_v9  ;;  %3092 = vmatprep.mubr.bf16.mxu0 %v2738_v5 }
  0x97   : > { %3073 = vmatmul.mubr.bf16.gmra.mxu1 %v2697_v56  ;;  %3082 = vmatprep.subr.bf16.mxu0 %v3209_v16 }
  0x98   : > { %3110 = vmatpush3.bf16.msra.mxu1 %v3208_v9  ;;  %3096 = vmatprep.mubr.bf16.mxu1 %v2740_v3 }
  0x99   : > { %3103 = vmatprep.subr.bf16.mxu1 %v3209_v16 }
  0x9a   : > { %3083 = vmatpush3.bf16.msra.mxu0 %v3209_v16 }
  0x9b   : > { %3084 = vmatprep.subr.bf16.mxu0 %v3210_v25 }
  0x9c   : > { %3111 = vmatpush3.bf16.msra.mxu1 %v3209_v16 }
  0x9d   : > { %3104 = vmatprep.subr.bf16.mxu1 %v3210_v25 }
  0x9e   : > { %3085 = vmatpush3.bf16.msra.mxu0 %v3210_v25 }
  0x9f   : > { %3086 = vmatprep.subr.bf16.mxu0 %v3211_v31 }
  0xa0   : > { %3112 = vmatpush3.bf16.msra.mxu1 %v3210_v25 }
  0xa1   : > { %3105 = vmatprep.subr.bf16.mxu1 %v3211_v31 }
  0xa2   : > { %3087 = vmatpush3.bf16.msra.mxu0 %v3211_v31 }
  0xa3   : > { %3088 = vmatprep.subr.bf16.mxu0 %v3212_v35 }
  0xa4   : > { %3113 = vmatpush3.bf16.msra.mxu1 %v3211_v31 }
  0xa5   : > { %3106 = vmatprep.subr.bf16.mxu1 %v3212_v35 }
  0xa6   : > { %3089 = vmatpush3.bf16.msra.mxu0 %v3212_v35 }
  0xa7   : > { %3090 = vmatprep.subr.bf16.mxu0 %v3213_v49 }
  0xa8   : > { %3114 = vmatpush3.bf16.msra.mxu1 %v3212_v35 }
  0xa9   : > { %3107 = vmatprep.subr.bf16.mxu1 %v3213_v49 }
  0xaa   : > { %3091 = vmatpush3.bf16.msra.mxu0 %v3213_v49 }
  0xac   : > { %3115 = vmatpush3.bf16.msra.mxu1 %v3213_v49 }
  0xad   : > { %3093 = vmatmul.mubr.bf16.vlgmr.msra.gmra.mxu0 %v2739_v21 }
  0xaf   : > { %3097 = vmatmul.mubr.bf16.vlgmr.msra.gmra.mxu1 %v2741_v59 }
  0xed   : > { %v2902_v60 = vpop.f32.mrf.mxu0 }
  0xee   : > { %v2926_v63 = vpop.f32.mrf.mxu1  ;;  %v378_v46 = vadd.f32 %v2902_v60, %v2425_v45 }
  0xef   : > { %v345_v61 = vpop.f32.mrf.mxu0 }
  0xf0   : > { %v646_v2 = vpop.f32.mrf.mxu1  ;;  %v376_v53 = vadd.f32 %v2425_v45, %v345_v61  ;;  %v679_v18 = vadd.f32 %v2926_v63, %v378_v46 }
  0xf1   : > { %v2903_v1 = vpop.f32.mrf.mxu0 }
  0xf2   : > { %v2927_v44 = vpop.f32.mrf.mxu1  ;;  %v379_v15 = vadd.f32 %v2903_v1, %v2425_v45 }
  0xf3   : > { %v348_v4 = vpop.f32.mrf.mxu0 }
  0xf4   : > { %v3938_v23 = vpop.f32.mrf.mxu1  ;;  %v377_v62 = vadd.f32 %v2425_v45, %v348_v4 }
  0xf5   : > { %v2906_v7 = vpop.f32.mrf.mxu0 }
  0xf6   : > { %v382_v55 = vadd.f32 %v2906_v7, %v2425_v45  ;;  %v678_v61 = vadd.f32 %v3938_v23, %v377_v62 }
  0xf7   : > { %v361_v0 = vpop.f32.mrf.mxu0 }
  0xf8   : > { %v380_v21 = vadd.f32 %v2425_v45, %v361_v0 }
  0xf9   : > { %v2907_v28 = vpop.f32.mrf.mxu0 }
  0xfa   : > { %v383_v59 = vadd.f32 %v2907_v28, %v2425_v45 }
  0xfb   : > { %v364_v33 = vpop.f32.mrf.mxu0 }
  0xfc   : > { %v2930_v47 = vpop.f32.mrf.mxu1 }
  0xfe   : > { %v662_v8 = vpop.f32.mrf.mxu1 }
  0xff   : > { %v681_v7 = vadd.f32 %v662_v8, %v380_v21 }
 0x100   : > { %v2931_v11 = vpop.f32.mrf.mxu1 }
 0x101   : > { %v684_v1 = vadd.f32 %v2931_v11, %v383_v59 }
 0x102   : > { %v665_v14 = vpop.f32.mrf.mxu1 }
 0x10d   : > { %v2950_v10 = vpop.f32.mrf.mxu0 }
 0x10f   : > { %v867_v12 = vpop.f32.mrf.mxu0  ;;  %v2974_v17 = vpop.f32.mrf.mxu1 }
 0x111   : > { %v2951_v19 = vpop.f32.mrf.mxu0  ;;  %v3940_v22 = vpop.f32.mrf.mxu1 }
 0x113   : > { %v870_v9 = vpop.f32.mrf.mxu0  ;;  %v3942_v54 = vpop.f32.mrf.mxu1 }
 0x114   : > { %v899_v4 = vadd.f32 %v870_v9, %v678_v61 }
 0x115   : > { %v2954_v13 = vpop.f32.mrf.mxu0  ;;  %v3944_v58 = vpop.f32.mrf.mxu1 }
 0x116   : > { %v1081_v8 = vadd.f32 %v3944_v58, %v899_v4 }
 0x117   : > { %v883_v41 = vpop.f32.mrf.mxu0  ;;  %v2978_v43 = vpop.f32.mrf.mxu1 }
 0x118   : > { %v902_v0 = vadd.f32 %v883_v41, %v681_v7 }
 0x119   : > { %v2955_v48 = vpop.f32.mrf.mxu0  ;;  %v3946_v24 = vpop.f32.mrf.mxu1 }
 0x11a   : > { %v905_v28 = vadd.f32 %v2955_v48, %v684_v1  ;;  %v1084_v11 = vadd.f32 %v3946_v24, %v902_v0 }
 0x11b   : > { %v886_v27 = vpop.f32.mrf.mxu0  ;;  %v3948_v30 = vpop.f32.mrf.mxu1 }
 0x11d   : > { %v3950_v5 = vpop.f32.mrf.mxu1 }
 0x12d   : > { %v2998_v51 = vpop.f32.mrf.mxu0 }
 0x12f   : > { %v1347_v29 = vpop.f32.mrf.mxu0  ;;  %v3952_v52 = vpop.f32.mrf.mxu1 }
 0x130   : > { %4013 = vst [vmem:[#allocation2_spill] sm:$0xff] %v3952_v52 }
 0x131   : > { %v2999_v56 = vpop.f32.mrf.mxu0  ;;  %v3954_v16 = vpop.f32.mrf.mxu1 }
 0x132   : > { %4014 = vst [vmem:[#allocation3_spill] sm:$0xff] %v3954_v16 }
 0x133   : > { %v1350_v3 = vpop.f32.mrf.mxu0  ;;  %v3956_v25 = vpop.f32.mrf.mxu1 }
 0x134   : > { %4015 = vst [vmem:[#allocation4_spill] sm:$0xff] %v3956_v25 }
 0x135   : > { %v3002_v31 = vpop.f32.mrf.mxu0  ;;  %v3958_v34 = vpop.f32.mrf.mxu1 }
 0x136   : > { %4016 = vst [vmem:[#allocation5_spill] sm:$0xff] %v3958_v34  ;;  %v680_v34 = vadd.f32 %v2927_v44, %v379_v15 }
 0x137   : > { %v1363_v6 = vpop.f32.mrf.mxu0  ;;  %v3026_v26 = vpop.f32.mrf.mxu1  ;;  %v4023_v9 = vld [vmem:[#allocation2_spill] sm:$0xff] }
 0x138   : > { %v901_v63 = vadd.f32 %v2951_v19, %v680_v34  ;;  %v1382_v48 = vadd.f32 %v1363_v6, %v1084_v11 }
 0x139   : > { %v3003_v32 = vpop.f32.mrf.mxu0  ;;  %v3960_v36 = vpop.f32.mrf.mxu1 }
 0x13a   : > { %4017 = vst [vmem:[#allocation6_spill] sm:$0xff] %v3960_v36  ;;  %v900_v36 = vadd.f32 %v2950_v10, %v679_v18 }
 0x13b   : > { %v1366_v37 = vpop.f32.mrf.mxu0  ;;  %v3962_v35 = vpop.f32.mrf.mxu1  ;;  %v4025_v58 = vld [vmem:[#allocation4_spill] sm:$0xff] }
 0x13c   : > { %4018 = vst [vmem:[#allocation7_spill] sm:$0xff] %v3962_v35  ;;  %v381_v35 = vadd.f32 %v2425_v45, %v364_v33 }
 0x13d   : > { %v3964_v39 = vpop.f32.mrf.mxu1 }
 0x13e   : > { %4019 = vst [vmem:[#allocation8_spill] sm:$0xff] %v3964_v39  ;;  %v683_v39 = vadd.f32 %v2930_v47, %v382_v55  ;;  %v682_v46 = vadd.f32 %v665_v14, %v381_v35  ;;  %v1087_v14 = vadd.f32 %v3948_v30, %v905_v28 }
 0x140   : > { %v904_v60 = vadd.f32 %v2954_v13, %v683_v39  ;;  %v903_v33 = vadd.f32 %v886_v27, %v682_v46  ;;  %v1385_v27 = vadd.f32 %v3003_v32, %v1087_v14 }
 0x142   : > { %v1086_v47 = vadd.f32 %v2978_v43, %v904_v60  ;;  %v1085_v19 = vadd.f32 %v3950_v5, %v903_v33  ;;  %v1379_v43 = vadd.f32 %v1350_v3, %v1081_v8  ;;  %v4027_v5 = vld [vmem:[#allocation6_spill] sm:$0xff] }
 0x143   : > { %v1600_v45 = vadd.f32 %v4027_v5, %v1382_v48 }
 0x144   : > { %v1384_v39 = vadd.f32 %v3002_v31, %v1086_v47 }
 0x145   : > { %v4029_v6 = vld [vmem:[#allocation8_spill] sm:$0xff] }
 0x14d   : > { %v3046_v38 = vpop.f32.mrf.mxu0 }
 0x14f   : > { %v3966_v40 = vpop.f32.mrf.mxu1  ;;  %v1747_v42 = vpop.f32.mrf.mxu0 }
 0x150   : > { %4020 = vst [vmem:[#allocation9_spill] sm:$0xff] %v3966_v40  ;;  %v677_v40 = vadd.f32 %v646_v2, %v376_v53  ;;  %v4028_v53 = vld [vmem:[#allocation7_spill] sm:$0xff] }
 0x151   : > { %v3971_v49 = vpop.f32.mrf.mxu1  ;;  %v3047_v50 = vpop.f32.mrf.mxu0  ;;  %v1603_v55 = vadd.f32 %v4028_v53, %v1385_v27 }
 0x152   : > { %4021 = vst [vmem:[#allocation10_spill] sm:$0xff] %v3971_v49  ;;  %v898_v25 = vadd.f32 %v867_v12, %v677_v40  ;;  %v1083_v12 = vadd.f32 %v3942_v54, %v901_v63 }
 0x153   : > { %v3973_v20 = vpop.f32.mrf.mxu1  ;;  %v1750_v57 = vpop.f32.mrf.mxu0 }
 0x154   : > { %4022 = vst [vmem:[#allocation11_spill] sm:$0xff] %v3973_v20  ;;  %v1082_v20 = vadd.f32 %v2974_v17, %v900_v36  ;;  %v1080_v2 = vadd.f32 %v3940_v22, %v898_v25  ;;  %v1381_v17 = vadd.f32 %v2999_v56, %v1083_v12  ;;  %v1383_v25 = vadd.f32 %v1366_v37, %v1085_v19  ;;  %v4026_v56 = vld [vmem:[#allocation5_spill] sm:$0xff] }
 0x155   : > { %v2048_v16 = vpop.f32.mrf.mxu1  ;;  %v3050_v49 = vpop.f32.mrf.mxu0  ;;  %v1597_v40 = vadd.f32 %v4026_v56, %v1379_v43 }
 0x156   : > { %v1380_v44 = vadd.f32 %v2998_v51, %v1082_v20  ;;  %v1378_v13 = vadd.f32 %v1347_v29, %v1080_v2  ;;  %v4024_v51 = vld [vmem:[#allocation3_spill] sm:$0xff]  ;;  %v1602_v29 = vadd.f32 %v3026_v26, %v1384_v39  ;;  %v1599_v36 = vadd.f32 %v4025_v58, %v1381_v17 }
 0x157   : > { %v3074_v52 = vpop.f32.mrf.mxu1  ;;  %v1763_v10 = vpop.f32.mrf.mxu0  ;;  %v1601_v32 = vadd.f32 %v4029_v6, %v1383_v25  ;;  %v4030_v15 = vld [vmem:[#allocation9_spill] sm:$0xff] }
 0x158   : > { %v1598_v22 = vadd.f32 %v4023_v9, %v1380_v44  ;;  %v1596_v54 = vadd.f32 %v4024_v51, %v1378_v13  ;;  %v1784_v35 = vadd.f32 %v3050_v49, %v1602_v29  ;;  %v1781_v3 = vadd.f32 %v3047_v50, %v1599_v36 }
 0x159   : > { %v2061_v23 = vpop.f32.mrf.mxu1  ;;  %v3051_v41 = vpop.f32.mrf.mxu0  ;;  %v1782_v20 = vadd.f32 %v1763_v10, %v1600_v45 }
 0x15a   : > { %v1780_v31 = vadd.f32 %v3046_v38, %v1598_v22  ;;  %v1778_v24 = vadd.f32 %v1747_v42, %v1596_v54  ;;  %v1779_v38 = vadd.f32 %v1750_v57, %v1597_v40  ;;  %v1785_v62 = vadd.f32 %v3051_v41, %v1603_v55  ;;  %v4031_v42 = vld [vmem:[#allocation10_spill] sm:$0xff] }
 0x15b   : > { %v3075_v34 = vpop.f32.mrf.mxu1  ;;  %v1766_v30 = vpop.f32.mrf.mxu0  ;;  %v2082_v21 = vadd.f32 %v3074_v52, %v1784_v35  ;;  %v4032_v1 = vld [vmem:[#allocation11_spill] sm:$0xff]  ;;  %v2080_v2 = vadd.f32 %v2061_v23, %v1782_v20 }
 0x15c   : > { %v2078_v18 = vadd.f32 %v4030_v15, %v1780_v31  ;;  %v2076_v49 = vadd.f32 %v4031_v42, %v1778_v24  ;;  %v1783_v59 = vadd.f32 %v1766_v30, %v1601_v32  ;;  %v2079_v63 = vadd.f32 %v4032_v1, %v1781_v3 }
 0x15d   : > { %v2064_v26 = vpop.f32.mrf.mxu1  ;;  %v2077_v28 = vadd.f32 %v2048_v16, %v1779_v38  ;;  %v2083_v47 = vadd.f32 %v3075_v34, %v1785_v62 }
 0x15e   : > { %v2081_v33 = vadd.f32 %v2064_v26, %v1783_v59 }
 0x16d   : > { %v3094_v37 = vpop.f32.mrf.mxu0 }
 0x16e   : > { %v2296_v60 = vadd.f32 %v3094_v37, %v2078_v18 }
 0x16f   : > { %v3098_v61 = vpop.f32.mrf.mxu1  ;;  %v2263_v7 = vpop.f32.mrf.mxu0 }
 0x170   : > { %v2300_v50 = vadd.f32 %v3098_v61, %v2082_v21  ;;  %v2294_v46 = vadd.f32 %v2263_v7, %v2076_v49  ;;  %v2304_v44 = vmax.f32 %v2296_v60, 0.0 }
 0x171   : > { %v2279_v4 = vpop.f32.mrf.mxu1  ;;  %v3095_v0 = vpop.f32.mrf.mxu0 }
 0x172   : > { %v2297_v57 = vadd.f32 %v3095_v0, %v2079_v63  ;;  %v2298_v52 = vadd.f32 %v2279_v4, %v2080_v2  ;;  %v2308_v11 = vmax.f32 %v2300_v50, 0.0  ;;  %v2302_v14 = vmax.f32 %v2294_v46, 0.0 }
 0x173   : > { %v3099_v10 = vpop.f32.mrf.mxu1  ;;  %v2266_v12 = vpop.f32.mrf.mxu0 }
 0x174   : > { %v2305_v13 = vmax.f32 %v2297_v57, 0.0  ;;  %v2301_v39 = vadd.f32 %v3099_v10, %v2083_v47  ;;  %v2295_v8 = vadd.f32 %v2266_v12, %v2077_v28  ;;  %v2306_v22 = vmax.f32 %v2298_v52, 0.0 }
 0x175   : > { %v2282_v17 = vpop.f32.mrf.mxu1 }
 0x176   : > { %v2761_v16 = vpack.c.bf16 %v2305_v13, %v2304_v44  ;;  %v2309_v23 = vmax.f32 %v2301_v39, 0.0  ;;  %v2303_v19 = vmax.f32 %v2295_v8, 0.0  ;;  %v2299_v9 = vadd.f32 %v2282_v17, %v2081_v33 }
 0x178   : > { %2773 = vst [vmem:[%s192_s8 + $0x8] sm:$0xff] %v2761_v16   ;;  %v2771_v41 = vpack.c.bf16 %v2309_v23, %v2308_v11  ;;  %v2756_v43 = vpack.c.bf16 %v2303_v19, %v2302_v14  ;;  %v2307_v48 = vmax.f32 %v2299_v9, 0.0 }
 0x17a   : > { %2775 = vst [vmem:[%s192_s8 + $0x18] sm:$0xff] %v2771_v41   ;;  %2757 = vst [vmem:[%s192_s8] sm:$0xff] %v2756_v43   ;;  %v2766_v27 = vpack.c.bf16 %v2307_v48, %v2306_v22 }
 0x17c   : > { %2774 = vst [vmem:[%s192_s8 + $0x10] sm:$0xff] %v2766_v27  }
 0x17d PF: > { %s13_s14 = sadd.s32 1, %s3236_s14   ;;  %s4033_s12 = smov %s3232_s13 }
 0x17e   : > { %p10_p5 = scmp.ge.s32.totalorder %s13_s14, 4   ;;  %s4034_s13 = smov %s4036_s15 }
 0x180   :  { %12 = sbr.rel (!%p10_p5) target bundleno = 2 (0x2), region = 73 }

// kernel: discriminator_forward.16
= control target key start
LH: loop header
LB: loop body
LE: loop exit
PB: predicated region body
PF: predicated region fallthrough
CT: control target
= control target key end

     0   :  { %s596_s15 = smov 0   ;;  %s651_s0 = inlined_call_operand.vmem [shape: bf16[2,4,4,128], index: 0, kind: input, shape index: {}]   ;;  %s652_s1 = inlined_call_operand.vmem [shape: bf16[128,128], index: 1, kind: input, shape index: {}]   ;;  %s653_s2 = inlined_call_operand.vmem [shape: f32[1,128], index: 2, kind: input, shape index: {}]   ;;  %s654_s3 = inlined_call_operand.vmem [shape: bf16[2,4,2,4,256], index: 3, kind: input, shape index: {}]   ;;  %s655_s4 = inlined_call_operand.vmem [shape: bf16[2,4,4,128], index: 4, kind: output, shape index: {}]  }
   0x1 LB: > { %s483_s16 = sadd.s32 4294967295, %s566_s15   ;;  %p487_p0 = scmp.ge.s32.totalorder %s566_s15, 1  ;;  %s566_s15 = sphi %s596_s15, %s14_s15  }
   0x2   : > { %p172_p1 = scmp.lt.s32.totalorder %s566_s15, 3 }
   0x4   : > { %p173_p2 = pnand %p487_p0, %p172_p1 }
   0x5   : > { %p203_p3 = scmp.lt.s32.totalorder (!%p173_p2), %s483_s16, 1 }
   0x6   : > { %176 = sbr.rel (%p173_p2) target bundleno = 250 (0xfa), region = 36 }
   0xb   : > { %v552_v0 = vld [vmem:[%s652_s1 + $0x38] sm:$0xff]   ;;  %v568_v1 = vmov 0.0   ;;  %v553_v2 = vld [vmem:[%s652_s1 + $0x30] sm:$0xff]   ;;  %vm569_vm0 = vmmov 0   ;;  %v554_v3 = vld [vmem:[%s652_s1 + $0x28] sm:$0xff]   ;;  %s657_s16 = smov (!%p203_p3, %s483_s16), 1  ;;  %v255_v7 = vlaneseq }
   0xc   : > { %521 = vmatprep.subr.bf16.mxu0 %v568_v1  ;;  %537 = vmatprep.mubr.msk.bf16.mxu0 %vm569_vm0, %v568_v1  ;;  %v555_v4 = vld [vmem:[%s652_s1 + $0x20] sm:$0xff]   ;;  %s509_s25 = sshll.u32 %s657_s16, 3  ;;  %v570_v5 = vmov 1983009808   ;;  %v556_v8 = vld [vmem:[%s652_s1 + $0x18] sm:$0xff]   ;;  %v557_v9 = vld [vmem:[%s652_s1 + $0x10] sm:$0xff]  }
   0xd   : > { %522 = vmatpush3.bf16.msra.mxu0 %v552_v0  ;;  %v253_v6 = vunpack.c.l.s4 %v570_v5  ;;  %s207_s30 = scalar_lea.vmem %s651_s0, %s509_s25  ;;  %v256_v12 = vshrl.u32 %v255_v7, 7  ;;  %v558_v19 = vld [vmem:[%s652_s1 + $0x8] sm:$0xff]   ;;  %v559_v22 = vld [vmem:[%s652_s1] sm:$0xff]   ;;  %s510_s11 = sshll.u32 %s657_s16, 5 }
   0xe   : > { %523 = vmatprep.subr.bf16.mxu0 %v568_v1  ;;  %v219_v10 = vld [vmem:[%s207_s30] sm:$0x3]  ;;  %v220_v13 = vld [vmem:[%s207_s30 + $0x2] sm:$0x3]  ;;  %v221_v14 = vld [vmem:[%s207_s30 + $0x4] sm:$0x3]  ;;  %s212_s14 = scalar_lea.vmem %s654_s3, %s510_s11  ;;  %s217_s21 = scalar_lea.vmem %s655_s4, %s509_s25 }
   0xf   : > { %v254_v11 = vunpack.c.0.s8 %v253_v6  ;;  %v222_v15 = vld [vmem:[%s207_s30 + $0x6] sm:$0x3]  ;;  %v250_v16 = vcombine.low %v219_v10, %v220_v13  ;;  %v358_v25 = vld [vmem:[%s212_s14 + $0x8] sm:$0xff]   ;;  %v359_v28 = vld [vmem:[%s212_s14 + $0x10] sm:$0xff]  }
  0x10   : > { %v251_v17 = vcombine.low %v221_v14, %v222_v15  ;;  %v357_v24 = vld [vmem:[%s212_s14] sm:$0xff]   ;;  %v362_v29 = vunpack.c.l.bf16 %v358_v25  ;;  %v371_v30 = vunpack.c.h.bf16 %v358_v25  ;;  %v360_v31 = vld [vmem:[%s212_s14 + $0x18] sm:$0xff]   ;;  %v363_v33 = vunpack.c.l.bf16 %v359_v28 }
  0x11   : > { %524 = vmatpush3.bf16.msra.mxu0 %v553_v2  ;;  %v257_v18 = vsub.s32 %v254_v11, %v256_v12  ;;  %v361_v26 = vunpack.c.l.bf16 %v357_v24  ;;  %v370_v27 = vunpack.c.h.bf16 %v357_v24  ;;  %v372_v34 = vunpack.c.h.bf16 %v359_v28  ;;  %v494_v46 = vld [vmem:[%s653_s2] ss:$0 sm:$0xff] }
  0x12   : > { %525 = vmatprep.subr.bf16.mxu0 %v568_v1  ;;  %v375_v35 = vadd.f32 %v371_v30, %v362_v29  ;;  %v364_v36 = vunpack.c.l.bf16 %v360_v31  ;;  %v373_v37 = vunpack.c.h.bf16 %v360_v31 }
  0x13   : > { %v258_v20 = vrot.slane %v250_v16, %v257_v18  ;;  %v265_v21 = vrot.slane %v251_v17, %v257_v18  ;;  %v374_v32 = vadd.f32 %v370_v27, %v361_v26  ;;  %v376_v39 = vadd.f32 %v372_v34, %v363_v33 }
  0x14   : > { %v383_v40 = vrot.slane %v375_v35, 4  ;;  %v377_v41 = vadd.f32 %v373_v37, %v364_v36 }
  0x15   : > { %526 = vmatpush3.bf16.msra.mxu0 %v554_v3  ;;  %v266_v23 = vcombine.low %v258_v20, %v265_v21  ;;  %v382_v38 = vrot.slane %v374_v32, 4  ;;  %v384_v43 = vrot.slane %v376_v39, 4 }
  0x16   : > { %527 = vmatprep.subr.bf16.mxu0 %v568_v1  ;;  %v391_v44 = vadd.f32 %v383_v40, %v375_v35  ;;  %v385_v45 = vrot.slane %v377_v41, 4 }
  0x17   : > { %v390_v42 = vadd.f32 %v382_v38, %v374_v32  ;;  %v392_v48 = vadd.f32 %v384_v43, %v376_v39 }
  0x18   : > { %v395_v51 = vmul.f32 0.25, %v391_v44  ;;  %v393_v52 = vadd.f32 %v385_v45, %v377_v41 }
  0x19   : > { %528 = vmatpush3.bf16.msra.mxu0 %v555_v4  ;;  %v394_v47 = vmul.f32 0.25, %v390_v42  ;;  %v396_v56 = vmul.f32 0.25, %v392_v48 }
  0x1a   : > { %529 = vmatprep.subr.bf16.mxu0 %v568_v1  ;;  %v397_v61 = vmul.f32 0.25, %v393_v52 }
  0x1d   : > { %530 = vmatpush3.bf16.msra.mxu0 %v556_v8 }
  0x1e   : > { %531 = vmatprep.subr.bf16.mxu0 %v568_v1 }
  0x21   : > { %532 = vmatpush3.bf16.msra.mxu0 %v557_v9 }
  0x22   : > { %533 = vmatprep.subr.bf16.mxu0 %v568_v1 }
  0x25   : > { %534 = vmatpush3.bf16.msra.mxu0 %v558_v19 }
  0x26   : > { %535 = vmatprep.subr.bf16.mxu0 %v568_v1 }
  0x29   : > { %536 = vmatpush3.bf16.msra.mxu0 %v559_v22 }
  0x2c   : > { %538 = vmatmul.mubr.bf16.vlgmr.msra.gmra.mxu0 %v266_v23 }
  0xec   : > { %v350_v49 = vpop.f32.mrf.mxu0 }
  0xed   : > { %v351_v50 = vadd.f32 %v494_v46, %v350_v49 }
  0xee   : > { %v539_v53 = vpop.f32.mrf.mxu0 }
  0xef   : > { %v400_v54 = vcombine.high %v351_v50, %v351_v50  ;;  %v404_v55 = vadd.f32 %v394_v47, %v351_v50 }
  0xf0   : > { %v353_v57 = vpop.f32.mrf.mxu0 }
  0xf1   : > { %v405_v58 = vadd.f32 %v400_v54, %v395_v51  ;;  %v408_v59 = vpack.c.bf16 %v404_v55, %v404_v55  ;;  %v354_v60 = vadd.f32 %v494_v46, %v353_v57 }
  0xf2   : > { %v540_v62 = vpop.f32.mrf.mxu0 }
  0xf3   : > { %v409_v63 = vpack.c.bf16 %v405_v58, %v405_v58  ;;  %412 = vst [vmem:[%s217_s21] sm:$0x3] %v408_v59  ;;  %v401_v0 = vcombine.high %v354_v60, %v354_v60  ;;  %v406_v1 = vadd.f32 %v396_v56, %v354_v60 }
  0xf5   : > { %413 = vst [vmem:[%s217_s21 + $0x2] sm:$0x3] %v409_v63  ;;  %v407_v2 = vadd.f32 %v401_v0, %v397_v61  ;;  %v410_v3 = vpack.c.bf16 %v406_v1, %v406_v1 }
  0xf7   : > { %v411_v4 = vpack.c.bf16 %v407_v2, %v407_v2  ;;  %414 = vst [vmem:[%s217_s21 + $0x4] sm:$0x3] %v410_v3 }
  0xf9   : > { %415 = vst [vmem:[%s217_s21 + $0x6] sm:$0x3] %v411_v4 }
  0xfa PF: > { %s14_s15 = sadd.s32 1, %s566_s15  }
  0xfb   : > { %p11_p4 = scmp.ge.s32.totalorder %s14_s15, 4  }
  0xfd   :  { %13 = sbr.rel (!%p11_p4) target bundleno = 1 (0x1), region = 70 }

// kernel: discriminator_forward.15
= control target key start
LH: loop header
LB: loop body
LE: loop exit
PB: predicated region body
PF: predicated region fallthrough
CT: control target
= control target key end

     0   :  { %s3165_s12 = smov 0   ;;  %s3167_s13 = smov 0   ;;  %s3769_s0 = inlined_call_operand.vmem [shape: bf16[2,10,10,128], index: 0, kind: input, shape index: {}]   ;;  %s3770_s1 = inlined_call_operand.vmem [shape: bf16[3,3,128,128], index: 1, kind: input, shape index: {}]   ;;  %s3771_s2 = inlined_call_operand.vmem [shape: f32[1,128], index: 2, kind: input, shape index: {}]   ;;  %s3772_s3 = inlined_call_operand.vmem [shape: bf16[2,8,8,128], index: 3, kind: output, shape index: {}]  }
   0x1   :  { %s3169_s14 = smov 0  }
   0x2 LB: > { %s25_s15 = sadd.s32 1, %s3139_s13  ;;  %p2317_p0 = scmp.ge.s32.totalorder %s3143_s14, 1  ;;  %s3143_s14 = sphi %s3169_s14, %s13_s14   ;;  %s3139_s13 = sphi %s3167_s13, %s3796_s13   ;;  %s3135_s12 = sphi %s3165_s12, %s3795_s12  }
   0x3   : > { %p27_p1 = scmp.ge.s32.totalorder %s25_s15, 2  ;;  %p151_p2 = scmp.lt.s32.totalorder %s3143_s14, 3 }
   0x5   : > { %s3798_s15 = smov (%p27_p1, %s25_s15), 0  ;;  %p152_p3 = pnand %p2317_p0, %p151_p2 }
   0x7   : > { %155 = sbr.rel (%p152_p3) target bundleno = 378 (0x17a), region = 32 }
   0xc   : > { %v3037_v0 = vld [vmem:[%s3770_s1 + $0x38] sm:$0xff]   ;;  %v3039_v2 = vld [vmem:[%s3770_s1 + $0x30] sm:$0xff]   ;;  %p179_p4 = scmp.lt.s32.totalorder %s3135_s12, 1  ;;  %v3041_v4 = vld [vmem:[%s3770_s1 + $0x28] sm:$0xff]   ;;  %vm392_vm0 = vsmask.f32 3328 }
   0xd   : > { %v3038_v1 = vld [vmem:[%s3770_s1 + $0x78] sm:$0xff]   ;;  %2780 = vmatprep.subr.bf16.mxu0 %v3037_v0  ;;  %v3040_v3 = vld [vmem:[%s3770_s1 + $0x70] sm:$0xff]   ;;  %v3042_v5 = vld [vmem:[%s3770_s1 + $0x68] sm:$0xff]   ;;  %vm393_vm1 = vsmask.f32 7440  ;;  %vm685_vm3 = vcmask 1042432  }
   0xe   : > { %2804 = vmatprep.subr.bf16.mxu1 %v3038_v1  ;;  %2781 = vmatpush3.bf16.msra.mxu0 %v3037_v0  ;;  %s3800_s12 = smov (!%p179_p4, %s3135_s12), 1  ;;  %v3043_v6 = vld [vmem:[%s3770_s1 + $0x20] sm:$0xff]   ;;  %v3045_v8 = vld [vmem:[%s3770_s1 + $0x18] sm:$0xff]   ;;  %v3047_v10 = vld [vmem:[%s3770_s1 + $0x10] sm:$0xff]   ;;  %vm686_vm4 = vcmask 1046532  }
   0xf   : > { %2805 = vmatpush3.bf16.msra.mxu1 %v3038_v1  ;;  %2782 = vmatprep.subr.bf16.mxu0 %v3039_v2  ;;  %v3044_v7 = vld [vmem:[%s3770_s1 + $0x60] sm:$0xff]   ;;  %s3012_s5 = smul.u32 80, %s3800_s12  ;;  %v3046_v9 = vld [vmem:[%s3770_s1 + $0x58] sm:$0xff]   ;;  %v3048_v11 = vld [vmem:[%s3770_s1 + $0x50] sm:$0xff]  }
  0x10   : > { %2806 = vmatprep.subr.bf16.mxu1 %v3040_v3  ;;  %v3049_v16 = vld [vmem:[%s3770_s1 + $0x8] sm:$0xff]   ;;  %v3051_v29 = vld [vmem:[%s3770_s1] sm:$0xff]   ;;  %vm3260_vm2 = vmor %vm392_vm0, %vm393_vm1 }
  0x11   : > { %s3222_s18 = scalar_lea.vmem %s3769_s0, %s3012_s5  ;;  %v3050_v24 = vld [vmem:[%s3770_s1 + $0x48] sm:$0xff]   ;;  %v3052_v39 = vld [vmem:[%s3770_s1 + $0x40] sm:$0xff]   ;;  %v3055_v59 = vld [vmem:[%s3770_s1 + $0xb8] sm:$0xff]   ;;  %s2648_s5 = sshll.u32 %s3800_s12, 5 }
  0x12   : > { %2783 = vmatpush3.bf16.msra.mxu0 %v3039_v2  ;;  %v3053_v12 = vld [vmem:[%s3222_s18] ss:$8 sps:$4 sm:$0xff]   ;;  %v3230_v14 = vld [vmem:[%s3222_s18 + $0x4] sm:$0x1]  ;;  %v3237_v17 = vld [vmem:[%s3222_s18 + $0xc] sm:$0x1]  ;;  %s192_s8 = scalar_lea.vmem %s3772_s3, %s2648_s5 }
  0x13   : > { %2807 = vmatpush3.bf16.msra.mxu1 %v3040_v3  ;;  %2784 = vmatprep.subr.bf16.mxu0 %v3041_v4  ;;  %v376_v13 = vld [vmem:[%s3222_s18] sm:$0xf]  ;;  %v378_v15 = vld [vmem:[%s3222_s18 + $0x8] sm:$0xf]  ;;  %v405_v20 = vshll.u32 %v3230_v14, 16  ;;  %v419_v23 = vshll.u32 %v3237_v17, 16  ;;  %vm3333_vm5 = vmor %vm685_vm3, %vm686_vm4 }
  0x14   : > { %2808 = vmatprep.subr.bf16.mxu1 %v3042_v5  ;;  %2796 = vmatprep.mubr.bf16.mxu0 %v3053_v12  ;;  %v396_v18 = vshrl.u32 %v376_v13, 16  ;;  %v399_v19 = vshll.u32 %v376_v13, 16  ;;  %v410_v21 = vshrl.u32 %v378_v15, 16  ;;  %v413_v22 = vshll.u32 %v378_v15, 16  ;;  %v380_v32 = vld [vmem:[%s3222_s18 + $0x10] sm:$0xf] }
  0x15   : > { %v407_v27 = vrot.slane %v405_v20, 5  ;;  %v421_v31 = vrot.slane %v419_v23, 5  ;;  %v3249_v33 = vld [vmem:[%s3222_s18 + $0x14] sm:$0x1]  ;;  %v382_v35 = vld [vmem:[%s3222_s18 + $0x18] sm:$0xf] }
  0x16   : > { %2785 = vmatpush3.bf16.msra.mxu0 %v3041_v4  ;;  %v398_v25 = vrot.slane %v396_v18, 4  ;;  %v401_v26 = vrot.slane %v399_v19, 5  ;;  %v412_v28 = vrot.slane %v410_v21, 4  ;;  %v415_v30 = vrot.slane %v413_v22, 5  ;;  %v3253_v36 = vld [vmem:[%s3222_s18 + $0x1c] sm:$0x1] }
  0x17   : > { %2809 = vmatpush3.bf16.msra.mxu1 %v3042_v5  ;;  %2786 = vmatprep.subr.bf16.mxu0 %v3043_v6  ;;  %v424_v37 = vshrl.u32 %v380_v32, 16  ;;  %v427_v38 = vshll.u32 %v380_v32, 16  ;;  %v433_v42 = vshll.u32 %v3249_v33, 16  ;;  %v438_v43 = vshrl.u32 %v382_v35, 16  ;;  %v3054_v56 = vld [vmem:[%s3222_s18 + $0x10] ss:$8 sps:$4 sm:$0xff]  }
  0x18   : > { %2810 = vmatprep.subr.bf16.mxu1 %v3044_v7  ;;  %v402_v34 = vor.u32 %v401_v26, %v398_v25  ;;  %v416_v41 = vor.u32 %v415_v30, %v412_v28  ;;  %v441_v44 = vshll.u32 %v382_v35, 16  ;;  %v447_v48 = vshll.u32 %v3253_v36, 16  ;;  %v3056_v62 = vld [vmem:[%s3770_s1 + $0xf8] sm:$0xff]   ;;  %v3057_v2 = vld [vmem:[%s3770_s1 + $0xb0] sm:$0xff]   ;;  %v3063_v5 = vld [vmem:[%s3222_s18 + $0x20] ss:$8 sps:$4 sm:$0xff]  }
  0x19   : > { %v426_v46 = vrot.slane %v424_v37, 4  ;;  %v429_v47 = vrot.slane %v427_v38, 5  ;;  %v440_v50 = vrot.slane %v438_v43, 4  ;;  %v435_v54 = vrot.slane %v433_v42, 5  ;;  %v3058_v4 = vld [vmem:[%s3770_s1 + $0xf0] sm:$0xff]   ;;  %v3064_v43 = vld [vmem:[%s3770_s1 + $0x98] sm:$0xff]  }
  0x1a   : > { %2787 = vmatpush3.bf16.msra.mxu0 %v3043_v6  ;;  %v403_v45 = vrot.slane %v402_v34, 4  ;;  %v417_v49 = vrot.slane %v416_v41, 4  ;;  %v443_v51 = vrot.slane %v441_v44, 5  ;;  %v449_v58 = vrot.slane %v447_v48, 5  ;;  %v3059_v6 = vld [vmem:[%s3770_s1 + $0xa8] sm:$0xff]   ;;  %v3065_v48 = vld [vmem:[%s3770_s1 + $0xd8] sm:$0xff]  }
  0x1b   : > { %2811 = vmatpush3.bf16.msra.mxu1 %v3044_v7  ;;  %2788 = vmatprep.subr.bf16.mxu0 %v3045_v8  ;;  %v430_v53 = vor.u32 %v429_v47, %v426_v46  ;;  %v690_v7 = vrot.slane %v3230_v14, 5  ;;  %v3301_v12 = vld [vmem:[%s3222_s18 + $0x24] sm:$0x1]  ;;  %v386_v13 = vld [vmem:[%s3222_s18 + $0x28] sm:$0xf] }
  0x1c   : > { %2812 = vmatprep.subr.bf16.mxu1 %v3046_v9  ;;  %v408_v52 = vsel %vm3260_vm2, %v403_v45, %v407_v27  ;;  %v422_v55 = vsel %vm3260_vm2, %v417_v49, %v421_v31  ;;  %v444_v57 = vor.u32 %v443_v51, %v440_v50  ;;  %v3305_v15 = vld [vmem:[%s3222_s18 + $0x2c] sm:$0x1]  ;;  %v461_v20 = vshll.u32 %v3301_v12, 16  ;;  %v388_v22 = vld [vmem:[%s3222_s18 + $0x30] sm:$0xf]  ;;  %v3071_v14 = vld [vmem:[%s3770_s1 + $0x80] sm:$0xff]  }
  0x1d   : > { %v2350_v60 = vcombine.low %v408_v52, %v422_v55  ;;  %v431_v61 = vrot.slane %v430_v53, 4  ;;  %v466_v21 = vshrl.u32 %v386_v13, 16  ;;  %v469_v23 = vshll.u32 %v386_v13, 16  ;;  %v3314_v25 = vld [vmem:[%s3222_s18 + $0x34] sm:$0x1] }
  0x1e   : > { %2789 = vmatpush3.bf16.msra.mxu0 %v3045_v8  ;;  %v445_v63 = vrot.slane %v444_v57, 4  ;;  %v3060_v8 = vld [vmem:[%s3770_s1 + $0xe8] sm:$0xff]   ;;  %v390_v26 = vld [vmem:[%s3222_s18 + $0x38] sm:$0xf]  ;;  %v3318_v31 = vld [vmem:[%s3222_s18 + $0x3c] sm:$0x1] }
  0x1f   : > { %2813 = vmatpush3.bf16.msra.mxu1 %v3046_v9  ;;  %2790 = vmatprep.subr.bf16.mxu0 %v3047_v10  ;;  %v436_v0 = vsel %vm3260_vm2, %v431_v61, %v435_v54  ;;  %v3066_v9 = vld [vmem:[%s3222_s18 + $0x30] ss:$8 sps:$4 sm:$0xff]   ;;  %v468_v30 = vrot.slane %v466_v21, 4  ;;  %v471_v32 = vrot.slane %v469_v23, 5  ;;  %v480_v35 = vshrl.u32 %v388_v22, 16 }
  0x20   : > { %2814 = vmatprep.subr.bf16.mxu1 %v3048_v11  ;;  %2820 = vmatprep.mubr.bf16.mxu1 %v2350_v60  ;;  %v450_v1 = vsel %vm3260_vm2, %v445_v63, %v449_v58  ;;  %v483_v37 = vshll.u32 %v388_v22, 16  ;;  %v494_v41 = vshrl.u32 %v390_v26, 16  ;;  %v497_v42 = vshll.u32 %v390_v26, 16  ;;  %v3067_v61 = vld [vmem:[%s3770_s1 + $0x90] sm:$0xff]   ;;  %v664_v13 = vld [vmem:[%s3222_s18 + $0x18] sm:$0xe] }
  0x21   : > { %v2351_v3 = vcombine.low %v436_v0, %v450_v1  ;;  %v472_v44 = vor.u32 %v471_v32, %v468_v30  ;;  %v482_v45 = vrot.slane %v480_v35, 4  ;;  %v503_v47 = vshll.u32 %v3318_v31, 16  ;;  %v3068_v0 = vld [vmem:[%s3770_s1 + $0xd0] sm:$0xff]   ;;  %v3075_v30 = vld [vmem:[%s3770_s1 + $0x138] sm:$0xff]  }
  0x22   : > { %2791 = vmatpush3.bf16.msra.mxu0 %v3047_v10  ;;  %v384_v10 = vld [vmem:[%s3222_s18 + $0x20] sm:$0xf]  ;;  %v485_v46 = vrot.slane %v483_v37, 5  ;;  %v496_v50 = vrot.slane %v494_v41, 4  ;;  %v499_v51 = vrot.slane %v497_v42, 5  ;;  %v694_v55 = vrot.slane %v3237_v17, 5 }
  0x23   : > { %2815 = vmatpush3.bf16.msra.mxu1 %v3048_v11  ;;  %2792 = vmatprep.subr.bf16.mxu0 %v3049_v16  ;;  %v3061_v11 = vld [vmem:[%s3770_s1 + $0xa0] sm:$0xff]   ;;  %v452_v18 = vshrl.u32 %v384_v10, 16  ;;  %v455_v19 = vshll.u32 %v384_v10, 16  ;;  %v473_v52 = vrot.slane %v472_v44, 4  ;;  %v505_v58 = vrot.slane %v503_v47, 5 }
  0x24   : > { %2816 = vmatprep.subr.bf16.mxu1 %v3050_v24  ;;  %v486_v53 = vor.u32 %v485_v46, %v482_v45  ;;  %v500_v57 = vor.u32 %v499_v51, %v496_v50  ;;  %v3073_v10 = vld [vmem:[%s3222_s18 + $0x8] ss:$8 sps:$4 sm:$0xff]   ;;  %v702_v21 = vrot.slane %v3253_v36, 5  ;;  %v665_v36 = vld [vmem:[%s3222_s18 + $0x20] sm:$0xe]  ;;  %v706_v26 = vrot.slane %v3301_v12, 5 }
  0x25   : > { %v454_v27 = vrot.slane %v452_v18, 4  ;;  %v457_v28 = vrot.slane %v455_v19, 5  ;;  %v2366_v32 = vrot.slane %v665_v36, 9  ;;  %v667_v35 = vld [vmem:[%s3222_s18 + $0x30] sm:$0xe]  ;;  %v3079_v50 = vld [vmem:[%s3770_s1 + $0x128] sm:$0xff]  }
  0x26   : > { %2793 = vmatpush3.bf16.msra.mxu0 %v3049_v16  ;;  %v3062_v16 = vld [vmem:[%s3770_s1 + $0xe0] sm:$0xff]   ;;  %v487_v17 = vrot.slane %v486_v53, 4  ;;  %v501_v63 = vrot.slane %v500_v57, 4  ;;  %v668_v37 = vld [vmem:[%s3222_s18 + $0x38] sm:$0xe]  ;;  %v2368_v44 = vrot.slane %v667_v35, 9 }
  0x27   : > { %2817 = vmatpush3.bf16.msra.mxu1 %v3050_v24  ;;  %2794 = vmatprep.subr.bf16.mxu0 %v3051_v29  ;;  %v475_v24 = vshll.u32 %v3305_v15, 16  ;;  %v458_v38 = vor.u32 %v457_v28, %v454_v27  ;;  %v710_v27 = vrot.slane %v3305_v15, 5  ;;  %v3074_v12 = vld [vmem:[%s3222_s18 + $0x18] ss:$8 sps:$4 sm:$0xff]   ;;  %v707_v41 = vsel %vm3333_vm5, %v2366_v32, %v706_v26  ;;  %v3077_v46 = vld [vmem:[%s3770_s1 + $0x130] sm:$0xff]   ;;  %v3080_v51 = vld [vmem:[%s3770_s1 + $0x168] sm:$0xff]  }
  0x28   : > { %2818 = vmatprep.subr.bf16.mxu1 %v3052_v39  ;;  %v3076_v15 = vld [vmem:[%s3770_s1 + $0x178] sm:$0xff]   ;;  %v2369_v45 = vrot.slane %v668_v37, 9  ;;  %v2434_v57 = vld [vmem:[%s3222_s18 + $0x8] sm:$0xf] }
  0x29   : > { %v477_v34 = vrot.slane %v475_v24, 5  ;;  %v459_v49 = vrot.slane %v458_v38, 4  ;;  %v2365_v24 = vrot.slane %v664_v13, 9  ;;  %v714_v38 = vrot.slane %v3314_v25, 5  ;;  %v3082_v53 = vld [vmem:[%s3222_s18 + $0x38] ss:$8 sps:$4 sm:$0xff]  }
  0x2a   : > { %2795 = vmatpush3.bf16.msra.mxu0 %v3051_v29  ;;  %v463_v29 = vrot.slane %v461_v20, 5  ;;  %v698_v20 = vrot.slane %v3249_v33, 5  ;;  %v3072_v33 = vld [vmem:[%s3770_s1 + $0xc0] sm:$0xff]   ;;  %v2480_v37 = vld [vmem:[%s3222_s18 + $0x18] sm:$0xe] }
  0x2b   : > { %2819 = vmatpush3.bf16.msra.mxu1 %v3052_v39  ;;  %2828 = vmatprep.subr.bf16.mxu0 %v3055_v59  ;;  %v489_v39 = vshll.u32 %v3314_v25, 16  ;;  %v478_v60 = vsel %vm3260_vm2, %v473_v52, %v477_v34  ;;  %v3078_v25 = vld [vmem:[%s3770_s1 + $0x170] sm:$0xff]  }
  0x2c   : > { %2852 = vmatprep.subr.bf16.mxu1 %v3056_v62 }
  0x2d   : > { %2797 = vmatmul.mubr.bf16.vlgmr.msra.gmra.mxu0 %v3054_v56  ;;  %v491_v54 = vrot.slane %v489_v39, 5  ;;  %v464_v56 = vsel %vm3260_vm2, %v459_v49, %v463_v29  ;;  %v703_v29 = vsel %vm3333_vm5, %v2365_v24, %v702_v21  ;;  %v2439_v24 = vld [vmem:[%s3222_s18 + $0x1c] sm:$0x1] }
  0x2e   : > { %2821 = vmatmul.mubr.bf16.vlgmr.msra.gmra.mxu1 %v2351_v3  ;;  %2829 = vmatpush3.bf16.msra.mxu0 %v3055_v59  ;;  %v661_v3 = vld [vmem:[%s3222_s18] sm:$0xe] }
  0x2f   : > { %2853 = vmatpush3.bf16.msra.mxu1 %v3056_v62  ;;  %2830 = vmatprep.subr.bf16.mxu0 %v3057_v2  ;;  %v2352_v62 = vcombine.low %v464_v56, %v478_v60  ;;  %v492_v1 = vsel %vm3260_vm2, %v487_v17, %v491_v54  ;;  %v3083_v54 = vld [vmem:[%s3770_s1 + $0x120] sm:$0xff]   ;;  %v3085_v56 = vld [vmem:[%s3770_s1 + $0x118] sm:$0xff]   ;;  %v2436_v17 = vld [vmem:[%s3222_s18 + $0x10] sm:$0xf] }
  0x30   : > { %2854 = vmatprep.subr.bf16.mxu1 %v3058_v4  ;;  %2800 = vmatprep.mubr.bf16.mxu0 %v3063_v5  ;;  %v506_v5 = vsel %vm3260_vm2, %v501_v63, %v505_v58  ;;  %v2435_v58 = vld [vmem:[%s3222_s18 + $0xc] sm:$0x1]  ;;  %v3086_v60 = vld [vmem:[%s3770_s1 + $0x158] sm:$0xff]   ;;  %v1068_v63 = vshll.u32 %v2434_v57, 16 }
  0x31   : > { %2824 = vmatprep.mubr.bf16.mxu1 %v2352_v62  ;;  %v1065_v62 = vshrl.u32 %v2434_v57, 16 }
  0x32   : > { %2831 = vmatpush3.bf16.msra.mxu0 %v3057_v2  ;;  %v3069_v2 = vld [vmem:[%s3770_s1 + $0x88] sm:$0xff]  }
  0x33   : > { %2855 = vmatpush3.bf16.msra.mxu1 %v3058_v4  ;;  %2832 = vmatprep.subr.bf16.mxu0 %v3059_v6  ;;  %v662_v4 = vld [vmem:[%s3222_s18 + $0x8] sm:$0xe] }
  0x34   : > { %2856 = vmatprep.subr.bf16.mxu1 %v3060_v8 }
  0x35   : > { %2801 = vmatmul.mubr.bf16.gmra.mxu0 %v3066_v9  ;;  %v2353_v9 = vcombine.low %v492_v1, %v506_v5  ;;  %v1079_v1 = vshrl.u32 %v2436_v17, 16  ;;  %v1067_v5 = vrot.slane %v1065_v62, 4 }
  0x36   : > { %2833 = vmatpush3.bf16.msra.mxu0 %v3059_v6  ;;  %v2362_v6 = vrot.slane %v661_v3, 9 }
  0x37   : > { %2857 = vmatpush3.bf16.msra.mxu1 %v3060_v8  ;;  %2834 = vmatprep.subr.bf16.mxu0 %v3061_v11  ;;  %v2363_v8 = vrot.slane %v662_v4, 9  ;;  %v2478_v4 = vld [vmem:[%s3222_s18 + $0x8] sm:$0xe]  ;;  %v1081_v13 = vrot.slane %v1079_v1, 4  ;;  %v2444_v1 = vld [vmem:[%s3222_s18 + $0x30] sm:$0xf] }
  0x38   : > { %2858 = vmatprep.subr.bf16.mxu1 %v3062_v16  ;;  %v691_v18 = vsel %vm3333_vm5, %v2362_v6, %v690_v7  ;;  %2825 = vmatmul.mubr.bf16.gmra.mxu1 %v2353_v9  ;;  %v666_v7 = vld [vmem:[%s3222_s18 + $0x28] sm:$0xe]  ;;  %v1070_v6 = vrot.slane %v1068_v63, 5  ;;  %v2486_v9 = vrot.slane %v2478_v4, 9  ;;  %v3485_v4 = vld [vmem:[%s3222_s18 + $0x34] sm:$0x1] }
  0x39   : > { %v695_v19 = vsel %vm3333_vm5, %v2363_v8, %v694_v55  ;;  %2868 = vmatprep.mubr.bf16.mxu1 %v3073_v10  ;;  %v2367_v34 = vrot.slane %v666_v7, 9  ;;  %v3084_v55 = vld [vmem:[%s3770_s1 + $0x160] sm:$0xff]   ;;  %v2479_v8 = vld [vmem:[%s3222_s18 + $0x10] sm:$0xe]  ;;  %v1356_v10 = vrot.slane %v2435_v58, 5 }
  0x3a   : > { %2835 = vmatpush3.bf16.msra.mxu0 %v3061_v11  ;;  %v663_v11 = vld [vmem:[%s3222_s18 + $0x10] sm:$0xe]  ;;  %v2386_v22 = vcombine.low %v691_v18, %v695_v19  ;;  %v2438_v19 = vld [vmem:[%s3222_s18 + $0x18] sm:$0xf]  ;;  %v2441_v7 = vld [vmem:[%s3222_s18 + $0x24] sm:$0x1] }
  0x3b   : > { %2859 = vmatpush3.bf16.msra.mxu1 %v3062_v16  ;;  %2836 = vmatprep.subr.bf16.mxu0 %v3064_v43  ;;  %v3070_v16 = vld [vmem:[%s3770_s1 + $0xc8] sm:$0xff]   ;;  %v2364_v23 = vrot.slane %v663_v11, 9  ;;  %v711_v42 = vsel %vm3333_vm5, %v2367_v34, %v710_v27  ;;  %v1357_v21 = vsel %vm3333_vm5, %v2486_v9, %v1356_v10  ;;  %v1093_v26 = vshrl.u32 %v2438_v19, 16  ;;  %v3093_v10 = vld [vmem:[%s3770_s1 + $0x1b8] sm:$0xff]  }
  0x3c   : > { %2860 = vmatprep.subr.bf16.mxu1 %v3065_v48  ;;  %2844 = vmatprep.mubr.bf16.mxu0 %v2386_v22  ;;  %v2388_v47 = vcombine.low %v707_v41, %v711_v42  ;;  %v2487_v22 = vrot.slane %v2479_v8, 9  ;;  %v1096_v27 = vshll.u32 %v2438_v19, 16  ;;  %v2481_v42 = vld [vmem:[%s3222_s18 + $0x20] sm:$0xe]  ;;  %v1368_v57 = vrot.slane %v2441_v7, 5 }
  0x3d   : > { %v699_v28 = vsel %vm3333_vm5, %v2364_v23, %v698_v20  ;;  %v1071_v20 = vor.u32 %v1070_v6, %v1067_v5  ;;  %v2442_v63 = vld [vmem:[%s3222_s18 + $0x28] sm:$0xf]  ;;  %v2446_v8 = vld [vmem:[%s3222_s18 + $0x38] sm:$0xf] }
  0x3e   : > { %2837 = vmatpush3.bf16.msra.mxu0 %v3064_v43  ;;  %v2387_v39 = vcombine.low %v699_v28, %v703_v29  ;;  %v718_v43 = vrot.slane %v3318_v31, 5  ;;  %v715_v31 = vsel %vm3333_vm5, %v2368_v44, %v714_v38  ;;  %v1102_v28 = vshll.u32 %v2439_v24, 16  ;;  %v3088_v29 = vld [vmem:[%s3770_s1 + $0x150] sm:$0xff]  }
  0x3f   : > { %2861 = vmatpush3.bf16.msra.mxu1 %v3065_v48  ;;  %2838 = vmatprep.subr.bf16.mxu0 %v3067_v61  ;;  %v3081_v48 = vld [vmem:[%s3222_s18 + $0x28] ss:$8 sps:$4 sm:$0xff]   ;;  %v1098_v41 = vrot.slane %v1096_v27, 5  ;;  %v1121_v5 = vshrl.u32 %v2442_v63, 16  ;;  %v1124_v6 = vshll.u32 %v2442_v63, 16 }
  0x40   : > { %2862 = vmatprep.subr.bf16.mxu1 %v3068_v0  ;;  %v719_v49 = vsel %vm3333_vm5, %v2369_v45, %v718_v43  ;;  %v3090_v43 = vld [vmem:[%s3770_s1 + $0x148] sm:$0xff]   ;;  %v1104_v45 = vrot.slane %v1102_v28, 5 }
  0x41   : > { %v2389_v52 = vcombine.low %v715_v31, %v719_v49  ;;  %v1116_v31 = vshll.u32 %v2441_v7, 16  ;;  %v2488_v49 = vrot.slane %v2480_v37, 9  ;;  %v1123_v19 = vrot.slane %v1121_v5, 4 }
  0x42   : > { %2839 = vmatpush3.bf16.msra.mxu0 %v3067_v61  ;;  %v2437_v61 = vld [vmem:[%s3222_s18 + $0x14] sm:$0x1]  ;;  %v1152_v7 = vshll.u32 %v2446_v8, 16 }
  0x43   : > { %2863 = vmatpush3.bf16.msra.mxu1 %v3068_v0  ;;  %2840 = vmatprep.subr.bf16.mxu0 %v3069_v2  ;;  %v1074_v0 = vshll.u32 %v2435_v58, 16  ;;  %v1088_v3 = vshll.u32 %v2437_v61, 16  ;;  %v1360_v23 = vrot.slane %v2437_v61, 5  ;;  %v3092_v58 = vld [vmem:[%s3770_s1 + $0x140] sm:$0xff]  }
  0x44   : > { %2864 = vmatprep.subr.bf16.mxu1 %v3070_v16 }
  0x45   : > { %v1076_v11 = vrot.slane %v1074_v0, 5  ;;  %v1090_v18 = vrot.slane %v1088_v3, 5  ;;  %v1361_v32 = vsel %vm3333_vm5, %v2487_v22, %v1360_v23  ;;  %v3477_v0 = vld [vmem:[%s3222_s18 + $0x2c] sm:$0x1]  ;;  %v2448_v22 = vld [vmem:[%s3222_s18 + $0x40] sm:$0xf] }
  0x46   : > { %2841 = vmatpush3.bf16.msra.mxu0 %v3069_v2  ;;  %v1082_v2 = vshll.u32 %v2436_v17, 16  ;;  %v2510_v38 = vcombine.low %v1357_v21, %v1361_v32  ;;  %v1144_v21 = vshll.u32 %v3485_v4, 16  ;;  %v1149_v23 = vshrl.u32 %v2446_v8, 16  ;;  %v3095_v32 = vld [vmem:[%s3770_s1 + $0x1b0] sm:$0xff]   ;;  %v3099_v8 = vld [vmem:[%s3770_s1 + $0x1a0] sm:$0xff]  }
  0x47   : > { %2865 = vmatpush3.bf16.msra.mxu1 %v3070_v16  ;;  %2842 = vmatprep.subr.bf16.mxu0 %v3071_v14  ;;  %v1163_v37 = vshrl.u32 %v2448_v22, 16 }
  0x48   : > { %2866 = vmatprep.subr.bf16.mxu1 %v3072_v33  ;;  %v1084_v16 = vrot.slane %v1082_v2, 5  ;;  %v1146_v28 = vrot.slane %v1144_v21, 5  ;;  %v3556_v21 = vld [vmem:[%s3222_s18 + $0x14] sm:$0x1] }
  0x4a   : > { %2843 = vmatpush3.bf16.msra.mxu0 %v3071_v14  ;;  %v2440_v14 = vld [vmem:[%s3222_s18 + $0x20] sm:$0xf]  ;;  %v1085_v36 = vor.u32 %v1084_v16, %v1081_v13  ;;  %v1135_v13 = vshrl.u32 %v2444_v1, 16  ;;  %v1138_v16 = vshll.u32 %v2444_v1, 16  ;;  %v3098_v1 = vld [vmem:[%s3770_s1 + $0x1e8] sm:$0xff]  }
  0x4b   : > { %2867 = vmatpush3.bf16.msra.mxu1 %v3072_v33  ;;  %2876 = vmatprep.subr.bf16.mxu0 %v3075_v30  ;;  %v3087_v33 = vld [vmem:[%s3770_s1 + $0x110] sm:$0xff]   ;;  %v1107_v34 = vshrl.u32 %v2440_v14, 16  ;;  %v1110_v35 = vshll.u32 %v2440_v14, 16 }
  0x4c   : > { %2900 = vmatprep.subr.bf16.mxu1 %v3076_v15  ;;  %v1137_v14 = vrot.slane %v1135_v13, 4  ;;  %v3100_v13 = vld [vmem:[%s3770_s1 + $0x1e0] sm:$0xff]  }
  0x4d   : > { %2845 = vmatmul.mubr.bf16.vlgmr.msra.gmra.mxu0 %v2387_v39  ;;  %v1095_v39 = vrot.slane %v1093_v26, 4  ;;  %v3094_v26 = vld [vmem:[%s3770_s1 + $0x1f8] sm:$0xff]  }
  0x4e   : > { %2869 = vmatmul.mubr.bf16.vlgmr.msra.gmra.mxu1 %v3074_v12  ;;  %2877 = vmatpush3.bf16.msra.mxu0 %v3075_v30  ;;  %v1072_v30 = vrot.slane %v1071_v20, 4  ;;  %v3089_v12 = vld [vmem:[%s3770_s1 + $0x108] sm:$0xff]   ;;  %v1126_v20 = vrot.slane %v1124_v6, 5 }
  0x4f   : > { %2901 = vmatpush3.bf16.msra.mxu1 %v3076_v15  ;;  %2878 = vmatprep.subr.bf16.mxu0 %v3077_v46  ;;  %v1086_v15 = vrot.slane %v1085_v36, 4  ;;  %v3498_v36 = vld [vmem:[%s3222_s18 + $0x44] sm:$0x1] }
  0x50   : > { %2902 = vmatprep.subr.bf16.mxu1 %v3078_v25  ;;  %2848 = vmatprep.mubr.bf16.mxu0 %v2388_v47  ;;  %v1077_v44 = vsel %vm3260_vm2, %v1072_v30, %v1076_v11  ;;  %v1130_v11 = vshll.u32 %v3477_v0, 16  ;;  %v1127_v27 = vor.u32 %v1126_v20, %v1123_v19  ;;  %v3109_v19 = vld [vmem:[%s3222_s18 + $0x10] ss:$8 sps:$4 sm:$0xff]  }
  0x51   : > { %2872 = vmatprep.mubr.bf16.mxu1 %v3081_v48  ;;  %v1091_v47 = vsel %vm3260_vm2, %v1086_v15, %v1090_v18  ;;  %v1099_v48 = vor.u32 %v1098_v41, %v1095_v39  ;;  %v3493_v18 = vld [vmem:[%s3222_s18 + $0x3c] sm:$0x1]  ;;  %v1172_v39 = vshll.u32 %v3498_v36, 16  ;;  %v1372_v41 = vrot.slane %v3477_v0, 5  ;;  %v2558_v20 = vld [vmem:[%s3222_s18 + $0x10] sm:$0xf] }
  0x52   : > { %2879 = vmatpush3.bf16.msra.mxu0 %v3077_v46  ;;  %v1109_v46 = vrot.slane %v1107_v34, 4  ;;  %v1158_v30 = vshll.u32 %v3493_v18, 16  ;;  %v1128_v15 = vrot.slane %v1127_v27, 4  ;;  %v3103_v27 = vld [vmem:[%s3770_s1 + $0x190] sm:$0xff]  }
  0x53   : > { %2903 = vmatpush3.bf16.msra.mxu1 %v3078_v25  ;;  %2880 = vmatprep.subr.bf16.mxu0 %v3079_v50  ;;  %v1112_v25 = vrot.slane %v1110_v35, 5  ;;  %v1154_v35 = vrot.slane %v1152_v7, 5 }
  0x54   : > { %2904 = vmatprep.subr.bf16.mxu1 %v3080_v51 }
  0x55   : > { %2849 = vmatmul.mubr.bf16.gmra.mxu0 %v2389_v52  ;;  %v1364_v52 = vrot.slane %v2439_v24, 5  ;;  %v1132_v24 = vrot.slane %v1130_v11, 5 }
  0x56   : > { %2881 = vmatpush3.bf16.msra.mxu0 %v3079_v50  ;;  %2873 = vmatmul.mubr.bf16.gmra.mxu1 %v3082_v53  ;;  %v2466_v50 = vcombine.low %v1077_v44, %v1091_v47  ;;  %v2489_v53 = vrot.slane %v2481_v42, 9  ;;  %v3096_v42 = vld [vmem:[%s3770_s1 + $0x1f0] sm:$0xff]   ;;  %v1174_v47 = vrot.slane %v1172_v39, 5  ;;  %v2564_v39 = vld [vmem:[%s3222_s18 + $0x28] sm:$0xf] }
  0x57   : > { %2905 = vmatpush3.bf16.msra.mxu1 %v3080_v51  ;;  %2882 = vmatprep.subr.bf16.mxu0 %v3083_v54  ;;  %v1113_v51 = vor.u32 %v1112_v25, %v1109_v46  ;;  %v3467_v17 = vsel %vm3333_vm5, %v2488_v49, %v1364_v52  ;;  %v1133_v25 = vsel %vm3260_vm2, %v1128_v15, %v1132_v24  ;;  %v1376_v49 = vrot.slane %v3485_v4, 5 }
  0x58   : > { %2906 = vmatprep.subr.bf16.mxu1 %v3084_v55  ;;  %2916 = vmatprep.mubr.bf16.mxu1 %v2510_v38  ;;  %v3473_v62 = vsel %vm3333_vm5, %v2489_v53, %v1368_v57  ;;  %v1160_v38 = vrot.slane %v1158_v30, 5  ;;  %v3097_v57 = vld [vmem:[%s3770_s1 + $0x1a8] sm:$0xff]   ;;  %v1384_v4 = vrot.slane %v3498_v36, 5  ;;  %v1731_v24 = vshrl.u32 %v2558_v20, 16 }
  0x59   : > { %2892 = vmatprep.mubr.bf16.mxu0 %v2466_v50  ;;  %v2511_v3 = vcombine.low %v3467_v17, %v3473_v62  ;;  %v1380_v17 = vrot.slane %v3493_v18, 5  ;;  %v3102_v18 = vld [vmem:[%s3770_s1 + $0x1d8] sm:$0xff]  }
  0x5a   : > { %2883 = vmatpush3.bf16.msra.mxu0 %v3083_v54  ;;  %v3091_v54 = vld [vmem:[%s3770_s1 + $0x100] sm:$0xff]  }
  0x5b   : > { %2907 = vmatpush3.bf16.msra.mxu1 %v3084_v55  ;;  %2884 = vmatprep.subr.bf16.mxu0 %v3085_v56  ;;  %v1100_v55 = vrot.slane %v1099_v48, 4  ;;  %v2482_v48 = vld [vmem:[%s3222_s18 + $0x28] sm:$0xe] }
  0x5c   : > { %2908 = vmatprep.subr.bf16.mxu1 %v3086_v60  ;;  %v2490_v53 = vrot.slane %v2482_v48, 9  ;;  %v1776_v48 = vshll.u32 %v2564_v39, 16 }
  0x5d   : > { %v1105_v61 = vsel %vm3260_vm2, %v1100_v55, %v1104_v45  ;;  %v1165_v45 = vrot.slane %v1163_v37, 4  ;;  %v2485_v55 = vld [vmem:[%s3222_s18 + $0x40] sm:$0xe] }
  0x5e   : > { %2885 = vmatpush3.bf16.msra.mxu0 %v3085_v56  ;;  %v1118_v56 = vrot.slane %v1116_v31, 5  ;;  %v2483_v31 = vld [vmem:[%s3222_s18 + $0x30] sm:$0xe]  ;;  %v1373_v63 = vsel %vm3333_vm5, %v2490_v53, %v1372_v41  ;;  %v2493_v0 = vrot.slane %v2485_v55, 9  ;;  %v3576_v41 = vld [vmem:[%s3222_s18 + $0x2c] sm:$0x1] }
  0x5f   : > { %2909 = vmatpush3.bf16.msra.mxu1 %v3086_v60  ;;  %2886 = vmatprep.subr.bf16.mxu0 %v3087_v33  ;;  %v1114_v60 = vrot.slane %v1113_v51, 4  ;;  %v1778_v55 = vrot.slane %v1776_v48, 5 }
  0x60   : > { %2910 = vmatprep.subr.bf16.mxu1 %v3088_v29 }
  0x61   : > { %v1119_v2 = vsel %vm3260_vm2, %v1114_v60, %v1118_v56 }
  0x62   : > { %2887 = vmatpush3.bf16.msra.mxu0 %v3087_v33  ;;  %v2467_v9 = vcombine.low %v1105_v61, %v1119_v2  ;;  %v1140_v33 = vrot.slane %v1138_v16, 5  ;;  %v3101_v16 = vld [vmem:[%s3770_s1 + $0x198] sm:$0xff]  }
  0x63   : > { %2911 = vmatpush3.bf16.msra.mxu1 %v3088_v29  ;;  %2888 = vmatprep.subr.bf16.mxu0 %v3089_v12  ;;  %v1151_v29 = vrot.slane %v1149_v23, 4  ;;  %v3560_v23 = vld [vmem:[%s3222_s18 + $0x1c] sm:$0x1] }
  0x64   : > { %2912 = vmatprep.subr.bf16.mxu1 %v3090_v43  ;;  %v1141_v34 = vor.u32 %v1140_v33, %v1137_v14  ;;  %v1734_v14 = vshll.u32 %v2558_v20, 16  ;;  %v1740_v33 = vshll.u32 %v3556_v21, 16  ;;  %v2570_v20 = vld [vmem:[%s3222_s18 + $0x40] sm:$0xf] }
  0x65   : > { %v1155_v44 = vor.u32 %v1154_v35, %v1151_v29  ;;  %v1733_v29 = vrot.slane %v1731_v24, 4 }
  0x66   : > { %2889 = vmatpush3.bf16.msra.mxu0 %v3089_v12  ;;  %v1166_v12 = vshll.u32 %v2448_v22, 16  ;;  %v2560_v22 = vld [vmem:[%s3222_s18 + $0x18] sm:$0xf]  ;;  %v1736_v30 = vrot.slane %v1734_v14, 5 }
  0x67   : > { %2913 = vmatpush3.bf16.msra.mxu1 %v3090_v43  ;;  %2890 = vmatprep.subr.bf16.mxu0 %v3091_v54  ;;  %v1142_v43 = vrot.slane %v1141_v34, 4  ;;  %v1156_v51 = vrot.slane %v1155_v44, 4  ;;  %v1745_v36 = vshrl.u32 %v2560_v22, 16  ;;  %v1748_v7 = vshll.u32 %v2560_v22, 16 }
  0x68   : > { %2914 = vmatprep.subr.bf16.mxu1 %v3092_v58  ;;  %v1168_v46 = vrot.slane %v1166_v12, 5  ;;  %v2562_v12 = vld [vmem:[%s3222_s18 + $0x20] sm:$0xf]  ;;  %v1737_v15 = vor.u32 %v1736_v30, %v1733_v29  ;;  %v1815_v29 = vshrl.u32 %v2570_v20, 16  ;;  %v3113_v30 = vld [vmem:[%s3222_s18 + $0x30] ss:$8 sps:$4 sm:$0xff]  }
  0x69   : > { %v1147_v50 = vsel %vm3260_vm2, %v1142_v43, %v1146_v28  ;;  %v1161_v61 = vsel %vm3260_vm2, %v1156_v51, %v1160_v38  ;;  %v3104_v28 = vld [vmem:[%s3770_s1 + $0x1d0] sm:$0xff]   ;;  %v1747_v34 = vrot.slane %v1745_v36, 4  ;;  %v1750_v35 = vrot.slane %v1748_v7, 5  ;;  %v3572_v38 = vld [vmem:[%s3222_s18 + $0x24] sm:$0x1] }
  0x6a   : > { %2891 = vmatpush3.bf16.msra.mxu0 %v3091_v54  ;;  %v1169_v52 = vor.u32 %v1168_v46, %v1165_v45  ;;  %v2484_v54 = vld [vmem:[%s3222_s18 + $0x38] sm:$0xe]  ;;  %v2468_v56 = vcombine.low %v1133_v25, %v1147_v50  ;;  %v1759_v44 = vshrl.u32 %v2562_v12, 16  ;;  %v1762_v45 = vshll.u32 %v2562_v12, 16  ;;  %v3616_v36 = vld [vmem:[%s3222_s18 + $0x44] sm:$0x1] }
  0x6b   : > { %2915 = vmatpush3.bf16.msra.mxu1 %v3092_v58  ;;  %2924 = vmatprep.subr.bf16.mxu0 %v3093_v10  ;;  %v2491_v58 = vrot.slane %v2483_v31, 9  ;;  %v2492_v60 = vrot.slane %v2484_v54, 9  ;;  %v1751_v43 = vor.u32 %v1750_v35, %v1747_v34  ;;  %v1768_v46 = vshll.u32 %v3572_v38, 16  ;;  %v3621_v35 = vld [vmem:[%s3222_s18 + $0x4c] sm:$0x1] }
  0x6c   : > { %2948 = vmatprep.subr.bf16.mxu1 %v3094_v26  ;;  %v1170_v62 = vrot.slane %v1169_v52, 4  ;;  %v1738_v25 = vrot.slane %v1737_v15, 4  ;;  %v1782_v31 = vshll.u32 %v3576_v41, 16  ;;  %v1761_v51 = vrot.slane %v1759_v44, 4  ;;  %v3112_v15 = vld [vmem:[%s3770_s1 + $0x230] sm:$0xff]  }
  0x6d   : > { %2893 = vmatmul.mubr.bf16.vlgmr.msra.gmra.mxu0 %v2467_v9  ;;  %v1377_v2 = vsel %vm3333_vm5, %v2491_v58, %v1376_v49  ;;  %v3106_v49 = vld [vmem:[%s3770_s1 + $0x1c8] sm:$0xff]   ;;  %v1752_v50 = vrot.slane %v1751_v43, 4  ;;  %v1764_v52 = vrot.slane %v1762_v45, 5  ;;  %v1770_v58 = vrot.slane %v1768_v46, 5 }
  0x6e   : > { %2917 = vmatmul.mubr.bf16.vlgmr.msra.gmra.mxu1 %v2511_v3  ;;  %2925 = vmatpush3.bf16.msra.mxu0 %v3093_v10  ;;  %v1381_v3 = vsel %vm3333_vm5, %v2492_v60, %v1380_v17  ;;  %v1175_v5 = vsel %vm3260_vm2, %v1170_v62, %v1174_v47  ;;  %v2512_v6 = vcombine.low %v1373_v63, %v1377_v2  ;;  %v1773_v47 = vshrl.u32 %v2564_v39, 16  ;;  %v3107_v60 = vld [vmem:[%s3770_s1 + $0x180] sm:$0xff]   ;;  %v2566_v2 = vld [vmem:[%s3222_s18 + $0x30] sm:$0xf] }
  0x6f   : > { %2949 = vmatpush3.bf16.msra.mxu1 %v3094_v26  ;;  %2926 = vmatprep.subr.bf16.mxu0 %v3095_v32  ;;  %v2469_v9 = vcombine.low %v1161_v61, %v1175_v5  ;;  %v1385_v10 = vsel %vm3333_vm5, %v2493_v0, %v1384_v4  ;;  %v1754_v26 = vshll.u32 %v3560_v23, 16  ;;  %v1784_v62 = vrot.slane %v1782_v31, 5  ;;  %v3108_v63 = vld [vmem:[%s3770_s1 + $0x1c0] sm:$0xff]   ;;  %v2568_v5 = vld [vmem:[%s3222_s18 + $0x38] sm:$0xf] }
  0x70   : > { %2950 = vmatprep.subr.bf16.mxu1 %v3096_v42  ;;  %2896 = vmatprep.mubr.bf16.mxu0 %v2468_v56  ;;  %v2513_v11 = vcombine.low %v1381_v3, %v1385_v10  ;;  %v1775_v54 = vrot.slane %v1773_v47, 4  ;;  %v3598_v3 = vld [vmem:[%s3222_s18 + $0x34] sm:$0x1]  ;;  %v3110_v10 = vld [vmem:[%s3222_s18 + $0x20] ss:$8 sps:$4 sm:$0xff]   ;;  %v1824_v12 = vshll.u32 %v3616_v36, 16 }
  0x71   : > { %2920 = vmatprep.mubr.bf16.mxu1 %v2512_v6  ;;  %v1756_v37 = vrot.slane %v1754_v26, 5  ;;  %v3604_v6 = vld [vmem:[%s3222_s18 + $0x3c] sm:$0x1]  ;;  %v3115_v47 = vld [vmem:[%s3770_s1 + $0x228] sm:$0xff]  }
  0x72   : > { %2927 = vmatpush3.bf16.msra.mxu0 %v3095_v32  ;;  %v1742_v32 = vrot.slane %v1740_v33, 5  ;;  %v1779_v61 = vor.u32 %v1778_v55, %v1775_v54  ;;  %v1810_v33 = vshll.u32 %v3604_v6, 16  ;;  %v3114_v54 = vld [vmem:[%s3222_s18 + $0x40] ss:$8 sps:$4 sm:$0xff]  }
  0x73   : > { %2951 = vmatpush3.bf16.msra.mxu1 %v3096_v42  ;;  %2928 = vmatprep.subr.bf16.mxu0 %v3097_v57  ;;  %v3105_v42 = vld [vmem:[%s3770_s1 + $0x188] sm:$0xff]   ;;  %v1757_v56 = vsel %vm3260_vm2, %v1752_v50, %v1756_v37  ;;  %v1818_v37 = vshll.u32 %v2570_v20, 16  ;;  %v3117_v20 = vld [vmem:[%s3770_s1 + $0x218] sm:$0xff]  }
  0x74   : > { %2952 = vmatprep.subr.bf16.mxu1 %v3098_v1  ;;  %v1743_v53 = vsel %vm3260_vm2, %v1738_v25, %v1742_v32  ;;  %v1812_v34 = vrot.slane %v1810_v33, 5  ;;  %v1838_v25 = vshll.u32 %v3621_v35, 16  ;;  %v2605_v33 = vld [vmem:[%s3222_s18 + $0x28] sm:$0xe] }
  0x75   : > { %2897 = vmatmul.mubr.bf16.gmra.mxu0 %v2469_v9  ;;  %v2590_v17 = vcombine.low %v1743_v53, %v1757_v56  ;;  %v1790_v9 = vshll.u32 %v2566_v2, 16  ;;  %v1820_v46 = vrot.slane %v1818_v37, 5  ;;  %v3120_v37 = vld [vmem:[%s3770_s1 + $0x200] sm:$0xff]  }
  0x76   : > { %2929 = vmatpush3.bf16.msra.mxu0 %v3097_v57  ;;  %2921 = vmatmul.mubr.bf16.gmra.mxu1 %v2513_v11  ;;  %v1765_v57 = vor.u32 %v1764_v52, %v1761_v51  ;;  %v1826_v52 = vrot.slane %v1824_v12, 5  ;;  %v1840_v53 = vrot.slane %v1838_v25, 5 }
  0x77   : > { %2953 = vmatpush3.bf16.msra.mxu1 %v3098_v1  ;;  %2930 = vmatprep.subr.bf16.mxu0 %v3099_v8  ;;  %v1780_v1 = vrot.slane %v1779_v61, 4  ;;  %v1792_v14 = vrot.slane %v1790_v9, 5  ;;  %v2602_v61 = vld [vmem:[%s3222_s18 + $0x10] sm:$0xe] }
  0x78   : > { %2954 = vmatprep.subr.bf16.mxu1 %v3100_v13  ;;  %2940 = vmatprep.mubr.bf16.mxu0 %v3109_v19  ;;  %v1766_v0 = vrot.slane %v1765_v57, 4  ;;  %v1804_v19 = vshll.u32 %v2568_v5, 16 }
  0x79   : > { %2964 = vmatprep.mubr.bf16.mxu1 %v2590_v17  ;;  %v1785_v11 = vsel %vm3260_vm2, %v1780_v1, %v1784_v62  ;;  %v2603_v62 = vld [vmem:[%s3222_s18 + $0x18] sm:$0xe]  ;;  %v2610_v1 = vrot.slane %v2602_v61, 9 }
  0x7a   : > { %2931 = vmatpush3.bf16.msra.mxu0 %v3099_v8  ;;  %v1771_v4 = vsel %vm3260_vm2, %v1766_v0, %v1770_v58  ;;  %v1787_v8 = vshrl.u32 %v2566_v2, 16  ;;  %v2611_v2 = vrot.slane %v2603_v62, 9 }
  0x7b   : > { %2955 = vmatpush3.bf16.msra.mxu1 %v3100_v13  ;;  %2932 = vmatprep.subr.bf16.mxu0 %v3101_v16  ;;  %v3111_v13 = vld [vmem:[%s3770_s1 + $0x238] sm:$0xff]   ;;  %v2591_v22 = vcombine.low %v1771_v4, %v1785_v11  ;;  %v2606_v4 = vld [vmem:[%s3222_s18 + $0x30] sm:$0xe] }
  0x7c   : > { %2956 = vmatprep.subr.bf16.mxu1 %v3102_v18  ;;  %v1789_v24 = vrot.slane %v1787_v8, 4  ;;  %v2614_v9 = vrot.slane %v2606_v4, 9 }
  0x7e   : > { %2933 = vmatpush3.bf16.msra.mxu0 %v3101_v16  ;;  %v1796_v16 = vshll.u32 %v3598_v3, 16  ;;  %v1793_v32 = vor.u32 %v1792_v14, %v1789_v24  ;;  %v3119_v24 = vld [vmem:[%s3770_s1 + $0x208] sm:$0xff]   ;;  %v2604_v14 = vld [vmem:[%s3222_s18 + $0x20] sm:$0xe] }
  0x7f   : > { %2957 = vmatpush3.bf16.msra.mxu1 %v3102_v18  ;;  %2934 = vmatprep.subr.bf16.mxu0 %v3103_v27  ;;  %v1801_v18 = vshrl.u32 %v2568_v5, 16  ;;  %v2607_v5 = vld [vmem:[%s3222_s18 + $0x38] sm:$0xe] }
  0x80   : > { %2958 = vmatprep.subr.bf16.mxu1 %v3104_v28  ;;  %v1798_v7 = vrot.slane %v1796_v16, 5  ;;  %v1794_v45 = vrot.slane %v1793_v32, 4  ;;  %v2046_v32 = vrot.slane %v3616_v36, 5 }
  0x81   : > { %v1803_v26 = vrot.slane %v1801_v18, 4  ;;  %v2042_v18 = vrot.slane %v3604_v6, 5  ;;  %v3118_v6 = vld [vmem:[%s3770_s1 + $0x210] sm:$0xff]  }
  0x82   : > { %2935 = vmatpush3.bf16.msra.mxu0 %v3103_v27  ;;  %v1806_v27 = vrot.slane %v1804_v19, 5  ;;  %v1799_v50 = vsel %vm3260_vm2, %v1794_v45, %v1798_v7  ;;  %v2608_v7 = vld [vmem:[%s3222_s18 + $0x40] sm:$0xe] }
  0x83   : > { %2959 = vmatpush3.bf16.msra.mxu1 %v3104_v28  ;;  %2936 = vmatprep.subr.bf16.mxu0 %v3105_v42  ;;  %v2572_v28 = vld [vmem:[%s3222_s18 + $0x48] sm:$0xf]  ;;  %v2616_v12 = vrot.slane %v2608_v7, 9 }
  0x84   : > { %2960 = vmatprep.subr.bf16.mxu1 %v3106_v49  ;;  %v1807_v39 = vor.u32 %v1806_v27, %v1803_v26  ;;  %v1829_v43 = vshrl.u32 %v2572_v28, 16  ;;  %v1832_v44 = vshll.u32 %v2572_v28, 16  ;;  %v2609_v26 = vld [vmem:[%s3222_s18 + $0x48] sm:$0xe]  ;;  %v2612_v27 = vrot.slane %v2604_v14, 9 }
  0x85   : > { %v2030_v28 = vrot.slane %v3572_v38, 5  ;;  %v2047_v36 = vsel %vm3333_vm5, %v2616_v12, %v2046_v32 }
  0x86   : > { %2937 = vmatpush3.bf16.msra.mxu0 %v3105_v42  ;;  %v1817_v42 = vrot.slane %v1815_v29, 4  ;;  %v1808_v48 = vrot.slane %v1807_v39, 4  ;;  %v1831_v31 = vrot.slane %v1829_v43, 4  ;;  %v2613_v29 = vrot.slane %v2605_v33, 9 }
  0x87   : > { %2961 = vmatpush3.bf16.msra.mxu1 %v3106_v49  ;;  %2938 = vmatprep.subr.bf16.mxu0 %v3107_v60  ;;  %v1834_v49 = vrot.slane %v1832_v44, 5  ;;  %v2031_v38 = vsel %vm3333_vm5, %v2612_v27, %v2030_v28 }
  0x88   : > { %2962 = vmatprep.subr.bf16.mxu1 %v3108_v63  ;;  %v1821_v51 = vor.u32 %v1820_v46, %v1817_v42  ;;  %v1813_v55 = vsel %vm3260_vm2, %v1808_v48, %v1812_v34  ;;  %v2050_v34 = vrot.slane %v3621_v35, 5 }
  0x89   : > { %v1835_v56 = vor.u32 %v1834_v49, %v1831_v31  ;;  %v2592_v57 = vcombine.low %v1799_v50, %v1813_v55 }
  0x8a   : > { %2939 = vmatpush3.bf16.msra.mxu0 %v3107_v60  ;;  %v1822_v58 = vrot.slane %v1821_v51, 4  ;;  %v2022_v60 = vrot.slane %v3556_v21, 5  ;;  %v3116_v21 = vld [vmem:[%s3770_s1 + $0x220] sm:$0xff]  }
  0x8b   : > { %2963 = vmatpush3.bf16.msra.mxu1 %v3108_v63  ;;  %2972 = vmatprep.subr.bf16.mxu0 %v3111_v13  ;;  %v1836_v17 = vrot.slane %v1835_v56, 4  ;;  %v2026_v63 = vrot.slane %v3560_v23, 5  ;;  %v2038_v23 = vrot.slane %v3598_v3, 5 }
  0x8c   : > { %2996 = vmatprep.subr.bf16.mxu1 %v3111_v13  ;;  %v1827_v0 = vsel %vm3260_vm2, %v1822_v58, %v1826_v52 }
  0x8d   : > { %2941 = vmatmul.mubr.bf16.vlgmr.msra.gmra.mxu0 %v3110_v10  ;;  %v1841_v8 = vsel %vm3260_vm2, %v1836_v17, %v1840_v53  ;;  %v2615_v10 = vrot.slane %v2607_v5, 9  ;;  %v2027_v16 = vsel %vm3333_vm5, %v2611_v2, %v2026_v63  ;;  %v2039_v19 = vsel %vm3333_vm5, %v2614_v9, %v2038_v23 }
  0x8e   : > { %2965 = vmatmul.mubr.bf16.vlgmr.msra.gmra.mxu1 %v2591_v22  ;;  %2973 = vmatpush3.bf16.msra.mxu0 %v3111_v13  ;;  %v2593_v11 = vcombine.low %v1827_v0, %v1841_v8 }
  0x8f   : > { %3004 = vmatpush3.bf16.msra.mxu1 %v3111_v13  ;;  %2974 = vmatprep.subr.bf16.mxu0 %v3112_v15  ;;  %v2023_v13 = vsel %vm3333_vm5, %v2610_v1, %v2022_v60  ;;  %v2043_v3 = vsel %vm3333_vm5, %v2615_v10, %v2042_v18 }
  0x90   : > { %2997 = vmatprep.subr.bf16.mxu1 %v3112_v15  ;;  %2944 = vmatprep.mubr.bf16.mxu0 %v3113_v30  ;;  %v2634_v40 = vcombine.low %v2023_v13, %v2027_v16  ;;  %v2636_v22 = vcombine.low %v2039_v19, %v2043_v3  ;;  %v2034_v30 = vrot.slane %v3576_v41, 5 }
  0x91   : > { %2968 = vmatprep.mubr.bf16.mxu1 %v2592_v57 }
  0x92   : > { %2975 = vmatpush3.bf16.msra.mxu0 %v3112_v15  ;;  %v2035_v41 = vsel %vm3333_vm5, %v2613_v29, %v2034_v30  ;;  %v2321_v30 = vld [vmem:[%s3771_s2] ss:$0 sm:$0xff] }
  0x93   : > { %3005 = vmatpush3.bf16.msra.mxu1 %v3112_v15  ;;  %2976 = vmatprep.subr.bf16.mxu0 %v3115_v47  ;;  %v2617_v15 = vrot.slane %v2609_v26, 9  ;;  %v2635_v39 = vcombine.low %v2031_v38, %v2035_v41 }
  0x94   : > { %2998 = vmatprep.subr.bf16.mxu1 %v3115_v47 }
  0x95   : > { %2945 = vmatmul.mubr.bf16.gmra.mxu0 %v3114_v54  ;;  %v2051_v35 = vsel %vm3333_vm5, %v2617_v15, %v2050_v34 }
  0x96   : > { %2977 = vmatpush3.bf16.msra.mxu0 %v3115_v47  ;;  %2969 = vmatmul.mubr.bf16.gmra.mxu1 %v2593_v11  ;;  %v2637_v42 = vcombine.low %v2047_v36, %v2051_v35 }
  0x97   : > { %3006 = vmatpush3.bf16.msra.mxu1 %v3115_v47  ;;  %2978 = vmatprep.subr.bf16.mxu0 %v3116_v21 }
  0x98   : > { %2999 = vmatprep.subr.bf16.mxu1 %v3116_v21  ;;  %2988 = vmatprep.mubr.bf16.mxu0 %v2634_v40 }
  0x99   : > { %2992 = vmatprep.mubr.bf16.mxu1 %v2636_v22 }
  0x9a   : > { %2979 = vmatpush3.bf16.msra.mxu0 %v3116_v21 }
  0x9b   : > { %3007 = vmatpush3.bf16.msra.mxu1 %v3116_v21  ;;  %2980 = vmatprep.subr.bf16.mxu0 %v3117_v20 }
  0x9c   : > { %3000 = vmatprep.subr.bf16.mxu1 %v3117_v20 }
  0x9e   : > { %2981 = vmatpush3.bf16.msra.mxu0 %v3117_v20 }
  0x9f   : > { %3008 = vmatpush3.bf16.msra.mxu1 %v3117_v20  ;;  %2982 = vmatprep.subr.bf16.mxu0 %v3118_v6 }
  0xa0   : > { %3001 = vmatprep.subr.bf16.mxu1 %v3118_v6 }
  0xa2   : > { %2983 = vmatpush3.bf16.msra.mxu0 %v3118_v6 }
  0xa3   : > { %3009 = vmatpush3.bf16.msra.mxu1 %v3118_v6  ;;  %2984 = vmatprep.subr.bf16.mxu0 %v3119_v24 }
  0xa4   : > { %3002 = vmatprep.subr.bf16.mxu1 %v3119_v24 }
  0xa6   : > { %2985 = vmatpush3.bf16.msra.mxu0 %v3119_v24 }
  0xa7   : > { %3010 = vmatpush3.bf16.msra.mxu1 %v3119_v24  ;;  %2986 = vmatprep.subr.bf16.mxu0 %v3120_v37 }
  0xa8   : > { %3003 = vmatprep.subr.bf16.mxu1 %v3120_v37 }
  0xaa   : > { %2987 = vmatpush3.bf16.msra.mxu0 %v3120_v37 }
  0xab   : > { %3011 = vmatpush3.bf16.msra.mxu1 %v3120_v37 }
  0xad   : > { %2989 = vmatmul.mubr.bf16.vlgmr.msra.gmra.mxu0 %v2635_v39 }
  0xae   : > { %2993 = vmatmul.mubr.bf16.vlgmr.msra.gmra.mxu1 %v2637_v42 }
  0xed   : > { %v2798_v43 = vpop.f32.mrf.mxu0 }
  0xee   : > { %v2822_v45 = vpop.f32.mrf.mxu1  ;;  %v370_v34 = vadd.f32 %v2798_v43, %v2321_v30 }
  0xef   : > { %v337_v44 = vpop.f32.mrf.mxu0 }
  0xf0   : > { %v3687_v25 = vpop.f32.mrf.mxu1  ;;  %v368_v36 = vadd.f32 %v2321_v30, %v337_v44 }
  0xf1   : > { %v2799_v46 = vpop.f32.mrf.mxu0 }
  0xf2   : > { %v2823_v31 = vpop.f32.mrf.mxu1  ;;  %v371_v37 = vadd.f32 %v2799_v46, %v2321_v30 }
  0xf3   : > { %v340_v47 = vpop.f32.mrf.mxu0 }
  0xf4   : > { %v625_v50 = vpop.f32.mrf.mxu1  ;;  %v369_v35 = vadd.f32 %v2321_v30, %v340_v47 }
  0xf5   : > { %v2802_v48 = vpop.f32.mrf.mxu0 }
  0xf6   : > { %v374_v15 = vadd.f32 %v2802_v48, %v2321_v30  ;;  %v654_v43 = vadd.f32 %v625_v50, %v369_v35 }
  0xf7   : > { %v353_v49 = vpop.f32.mrf.mxu0 }
  0xf8   : > { %v2826_v59 = vpop.f32.mrf.mxu1  ;;  %v372_v39 = vadd.f32 %v2321_v30, %v353_v49 }
  0xf9   : > { %v2803_v51 = vpop.f32.mrf.mxu0 }
  0xfa   : > { %v3689_v52 = vpop.f32.mrf.mxu1  ;;  %v375_v38 = vadd.f32 %v2803_v51, %v2321_v30 }
  0xfb   : > { %v356_v53 = vpop.f32.mrf.mxu0  ;;  %v657_v48 = vadd.f32 %v3689_v52, %v372_v39 }
  0xfc   : > { %v2827_v55 = vpop.f32.mrf.mxu1  ;;  %v373_v42 = vadd.f32 %v2321_v30, %v356_v53 }
  0xfe   : > { %v641_v57 = vpop.f32.mrf.mxu1 }
  0xff   : > { %v658_v51 = vadd.f32 %v641_v57, %v373_v42 }
 0x10d   : > { %v2846_v54 = vpop.f32.mrf.mxu0 }
 0x10e   : > { %v3693_v58 = vpop.f32.mrf.mxu1 }
 0x10f   : > { %v3691_v56 = vpop.f32.mrf.mxu0 }
 0x110   : > { %v3695_v17 = vpop.f32.mrf.mxu1 }
 0x111   : > { %v2847_v60 = vpop.f32.mrf.mxu0 }
 0x112   : > { %v3697_v62 = vpop.f32.mrf.mxu1 }
 0x113   : > { %v838_v61 = vpop.f32.mrf.mxu0 }
 0x114   : > { %v3699_v0 = vpop.f32.mrf.mxu1 }
 0x115   : > { %v2850_v63 = vpop.f32.mrf.mxu0 }
 0x116   : > { %v2874_v2 = vpop.f32.mrf.mxu1 }
 0x117   : > { %v851_v1 = vpop.f32.mrf.mxu0 }
 0x118   : > { %v3701_v5 = vpop.f32.mrf.mxu1 }
 0x119   : > { %v2851_v4 = vpop.f32.mrf.mxu0 }
 0x11a   : > { %v2875_v21 = vpop.f32.mrf.mxu1 }
 0x11b   : > { %v854_v8 = vpop.f32.mrf.mxu0 }
 0x11c   : > { %v1028_v23 = vpop.f32.mrf.mxu1  ;;  %v871_v53 = vadd.f32 %v854_v8, %v658_v51 }
 0x12d   : > { %v2894_v9 = vpop.f32.mrf.mxu0 }
 0x12e   : > { %v3705_v11 = vpop.f32.mrf.mxu1 }
 0x12f   : > { %v3703_v10 = vpop.f32.mrf.mxu0 }
 0x130   : > { %v3707_v16 = vpop.f32.mrf.mxu1 }
 0x131   : > { %v2895_v13 = vpop.f32.mrf.mxu0  ;;  %3777 = vst [vmem:[#allocation2_spill] sm:$0xff] %v3707_v16 }
 0x132   : > { %v3709_v40 = vpop.f32.mrf.mxu1 }
 0x133   : > { %v1294_v18 = vpop.f32.mrf.mxu0 }
 0x134   : > { %v3711_v3 = vpop.f32.mrf.mxu1 }
 0x135   : > { %v2898_v19 = vpop.f32.mrf.mxu0  ;;  %3778 = vst [vmem:[#allocation3_spill] sm:$0xff] %v3711_v3  ;;  %v653_v3 = vadd.f32 %v3687_v25, %v368_v36 }
 0x136   : > { %v3713_v20 = vpop.f32.mrf.mxu1 }
 0x137   : > { %v1307_v22 = vpop.f32.mrf.mxu0  ;;  %v866_v49 = vadd.f32 %v3691_v56, %v653_v3  ;;  %v1045_v56 = vadd.f32 %v1028_v23, %v871_v53 }
 0x138   : > { %v3715_v6 = vpop.f32.mrf.mxu1 }
 0x139   : > { %3779 = vst [vmem:[#allocation4_spill] sm:$0xff] %v3715_v6  ;;  %v2899_v24 = vpop.f32.mrf.mxu0  ;;  %v660_v6 = vadd.f32 %v2827_v55, %v375_v38 }
 0x13a   : > { %v2923_v14 = vpop.f32.mrf.mxu1 }
 0x13b   : > { %v1310_v33 = vpop.f32.mrf.mxu0  ;;  %v873_v47 = vadd.f32 %v2851_v4, %v660_v6 }
 0x13c   : > { %v3719_v26 = vpop.f32.mrf.mxu1  ;;  %v3787_v23 = vld [vmem:[#allocation3_spill] sm:$0xff] }
 0x13d   : > { %3781 = vst [vmem:[#allocation6_spill] sm:$0xff] %v3719_v26 }
 0x14d   : > { %v3717_v7 = vpop.f32.mrf.mxu0 }
 0x14e   : > { %3780 = vst [vmem:[#allocation5_spill] sm:$0xff] %v3717_v7  ;;  %v3721_v27 = vpop.f32.mrf.mxu1 }
 0x14f   : > { %3782 = vst [vmem:[#allocation7_spill] sm:$0xff] %v3721_v27  ;;  %v3723_v28 = vpop.f32.mrf.mxu0  ;;  %v655_v27 = vadd.f32 %v2822_v45, %v370_v34  ;;  %v867_v45 = vadd.f32 %v838_v61, %v654_v43 }
 0x150   : > { %3783 = vst [vmem:[#allocation8_spill] sm:$0xff] %v3723_v28  ;;  %v3725_v29 = vpop.f32.mrf.mxu1  ;;  %v656_v28 = vadd.f32 %v2823_v31, %v371_v37  ;;  %v870_v31 = vadd.f32 %v851_v1, %v657_v48 }
 0x151   : > { %3784 = vst [vmem:[#allocation9_spill] sm:$0xff] %v3725_v29  ;;  %v2943_v32 = vpop.f32.mrf.mxu0  ;;  %v659_v29 = vadd.f32 %v2826_v59, %v374_v15  ;;  %v868_v46 = vadd.f32 %v2846_v54, %v655_v27  ;;  %v1047_v54 = vadd.f32 %v2875_v21, %v873_v47  ;;  %v1041_v52 = vadd.f32 %v3699_v0, %v867_v45 }
 0x152   : > { %v3730_v12 = vpop.f32.mrf.mxu1  ;;  %v869_v16 = vadd.f32 %v2847_v60, %v656_v28  ;;  %v1040_v60 = vadd.f32 %v3695_v17, %v866_v49  ;;  %v1044_v4 = vadd.f32 %v3701_v5, %v870_v31 }
 0x153   : > { %3785 = vst [vmem:[#allocation10_spill] sm:$0xff] %v3730_v12  ;;  %v1678_v41 = vpop.f32.mrf.mxu0  ;;  %v872_v44 = vadd.f32 %v2850_v63, %v659_v29  ;;  %v1042_v59 = vadd.f32 %v3693_v58, %v868_v46  ;;  %v1329_v1 = vadd.f32 %v2899_v24, %v1047_v54  ;;  %v1323_v58 = vadd.f32 %v1294_v18, %v1041_v52  ;;  %v3789_v18 = vld [vmem:[#allocation4_spill] sm:$0xff] }
 0x154   : > { %v3732_v26 = vpop.f32.mrf.mxu1  ;;  %v1043_v55 = vadd.f32 %v3697_v62, %v869_v16  ;;  %v1322_v3 = vadd.f32 %v3703_v10, %v1040_v60  ;;  %v1326_v62 = vadd.f32 %v1307_v22, %v1044_v4  ;;  %v1327_v16 = vadd.f32 %v1310_v33, %v1045_v56  ;;  %v3790_v33 = vld [vmem:[#allocation6_spill] sm:$0xff] }
 0x155   : > { %v2946_v7 = vpop.f32.mrf.mxu0  ;;  %v1046_v50 = vadd.f32 %v2874_v2, %v872_v44  ;;  %v1324_v57 = vadd.f32 %v2894_v9, %v1042_v59  ;;  %v1539_v21 = vadd.f32 %v2923_v14, %v1329_v1  ;;  %v3788_v24 = vld [vmem:[#allocation5_spill] sm:$0xff] }
 0x156   : > { %v2970_v12 = vpop.f32.mrf.mxu1  ;;  %v1325_v63 = vadd.f32 %v2895_v13, %v1043_v55  ;;  %v3786_v13 = vld [vmem:[#allocation2_spill] sm:$0xff]  ;;  %v1536_v22 = vadd.f32 %v3789_v18, %v1326_v62  ;;  %v1537_v29 = vadd.f32 %v3790_v33, %v1327_v16  ;;  %v3792_v39 = vld [vmem:[#allocation7_spill] sm:$0xff] }
 0x157   : > { %v1691_v30 = vpop.f32.mrf.mxu0  ;;  %v1328_v61 = vadd.f32 %v2898_v19, %v1046_v50  ;;  %v1534_v2 = vadd.f32 %v3705_v11, %v1324_v57  ;;  %v1532_v5 = vadd.f32 %v3786_v13, %v1322_v3  ;;  %v1533_v19 = vadd.f32 %v3787_v23, %v1323_v58  ;;  %v3791_v37 = vld [vmem:[#allocation8_spill] sm:$0xff] }
 0x158   : > { %v1973_v25 = vpop.f32.mrf.mxu1  ;;  %v1535_v17 = vadd.f32 %v3709_v40, %v1325_v63  ;;  %v1710_v38 = vadd.f32 %v1691_v30, %v1536_v22  ;;  %v3794_v47 = vld [vmem:[#allocation9_spill] sm:$0xff] }
 0x159   : > { %v2947_v8 = vpop.f32.mrf.mxu0  ;;  %v1538_v0 = vadd.f32 %v3713_v20, %v1328_v61  ;;  %v1708_v27 = vadd.f32 %v3788_v24, %v1534_v2  ;;  %v1706_v20 = vadd.f32 %v3791_v37, %v1532_v5  ;;  %v1707_v14 = vadd.f32 %v1678_v41, %v1533_v19 }
 0x15a   : > { %v2971_v6 = vpop.f32.mrf.mxu1  ;;  %v1709_v28 = vadd.f32 %v2943_v32, %v1535_v17  ;;  %v1713_v34 = vadd.f32 %v2947_v8, %v1539_v21  ;;  %v3793_v43 = vld [vmem:[#allocation10_spill] sm:$0xff]  ;;  %v1992_v53 = vadd.f32 %v1973_v25, %v1710_v38 }
 0x15b   : > { %v1694_v9 = vpop.f32.mrf.mxu0  ;;  %v1712_v11 = vadd.f32 %v2946_v7, %v1538_v0  ;;  %v1990_v42 = vadd.f32 %v3792_v39, %v1708_v27  ;;  %v1988_v7 = vadd.f32 %v3794_v47, %v1706_v20  ;;  %v1989_v49 = vadd.f32 %v3732_v26, %v1707_v14 }
 0x15c   : > { %v1976_v10 = vpop.f32.mrf.mxu1  ;;  %v1711_v36 = vadd.f32 %v1694_v9, %v1537_v29  ;;  %v1991_v32 = vadd.f32 %v3793_v43, %v1709_v28  ;;  %v1995_v51 = vadd.f32 %v2971_v6, %v1713_v34 }
 0x15d   : > { %v1994_v48 = vadd.f32 %v2970_v12, %v1712_v11 }
 0x15e   : > { %v1993_v30 = vadd.f32 %v1976_v10, %v1711_v36 }
 0x16d   : > { %v2990_v40 = vpop.f32.mrf.mxu0 }
 0x16e   : > { %v2994_v15 = vpop.f32.mrf.mxu1  ;;  %v2200_v45 = vadd.f32 %v2990_v40, %v1990_v42 }
 0x16f   : > { %v2167_v35 = vpop.f32.mrf.mxu0  ;;  %v2204_v59 = vadd.f32 %v2994_v15, %v1994_v48 }
 0x170   : > { %v2183_v46 = vpop.f32.mrf.mxu1  ;;  %v2198_v54 = vadd.f32 %v2167_v35, %v1988_v7 }
 0x171   : > { %v2991_v44 = vpop.f32.mrf.mxu0  ;;  %v2202_v57 = vadd.f32 %v2183_v46, %v1992_v53 }
 0x172   : > { %v2201_v31 = vadd.f32 %v2991_v44, %v1991_v32  ;;  %v2995_v41 = vpop.f32.mrf.mxu1 }
 0x173   : > { %v2205_v55 = vadd.f32 %v2995_v41, %v1995_v51  ;;  %v2170_v50 = vpop.f32.mrf.mxu0 }
 0x174   : > { %v2657_v12 = vpack.c.bf16 %v2201_v31, %v2200_v45  ;;  %v2199_v60 = vadd.f32 %v2170_v50, %v1989_v49  ;;  %v2186_v52 = vpop.f32.mrf.mxu1 }
 0x175   : > { %v2667_v63 = vpack.c.bf16 %v2205_v55, %v2204_v59  ;;  %v2203_v4 = vadd.f32 %v2186_v52, %v1993_v30 }
 0x176   : > { %2669 = vst [vmem:[%s192_s8 + $0x8] sm:$0xff] %v2657_v12   ;;  %v2652_v26 = vpack.c.bf16 %v2199_v60, %v2198_v54 }
 0x177   : > { %2671 = vst [vmem:[%s192_s8 + $0x18] sm:$0xff] %v2667_v63   ;;  %v2662_v56 = vpack.c.bf16 %v2203_v4, %v2202_v57 }
 0x178   : > { %2653 = vst [vmem:[%s192_s8] sm:$0xff] %v2652_v26  }
 0x179   : > { %2670 = vst [vmem:[%s192_s8 + $0x10] sm:$0xff] %v2662_v56  }
 0x17a PF: > { %s13_s14 = sadd.s32 1, %s3143_s14   ;;  %s3795_s12 = smov %s3139_s13 }
 0x17b   : > { %p10_p5 = scmp.ge.s32.totalorder %s13_s14, 4   ;;  %s3796_s13 = smov %s3798_s15 }
 0x17d   :  { %12 = sbr.rel (!%p10_p5) target bundleno = 2 (0x2), region = 73 }

// kernel: discriminator_forward.21
= control target key start
LH: loop header
LB: loop body
LE: loop exit
PB: predicated region body
PF: predicated region fallthrough
CT: control target
= control target key end

     0   :  { %v223_v0 = vmov 0.0   ;;  %vm224_vm0 = vmmov 0   ;;  %vm38_vm1 = vcmask 1043456   ;;  %vm90_vm2 = vcmask 1041409   ;;  %s348_s1 = inlined_call_operand.vmem [shape: f32[128,128], index: 1, kind: input, shape index: {}]   ;;  %s349_s0 = inlined_call_operand.vmem [shape: bf16[2,4,4,128], index: 0, kind: input, shape index: {}]   ;;  %s350_s2 = inlined_call_operand.vmem [shape: f32[1,128], index: 2, kind: input, shape index: {}]   ;;  %s351_s3 = inlined_call_operand.vmem [shape: f32[2,128], index: 3, kind: output, shape index: {}]  }
   0x1   :  { %186 = vmatprep.subr.mxu0 %v223_v0  ;;  %v80_v1 = vld [vmem:[%s348_s1 + $0x78] sm:$0xff]  ;;  %v79_v2 = vld [vmem:[%s348_s1 + $0x70] sm:$0xff]  ;;  %218 = vmatprep.mubr.msk.f32.mxu0 %vm224_vm0, %v223_v0  ;;  %v78_v3 = vld [vmem:[%s348_s1 + $0x68] sm:$0xff] }
   0x2   :  { %187 = vmatpush3.msra.mxu0 %v80_v1  ;;  %v77_v4 = vld [vmem:[%s348_s1 + $0x60] sm:$0xff]  ;;  %v76_v5 = vld [vmem:[%s348_s1 + $0x58] sm:$0xff]  ;;  %v18_v10 = vld [vmem:[%s349_s0 + $0x8] sm:$0x3] }
   0x3   :  { %188 = vmatprep.subr.mxu0 %v223_v0  ;;  %v14_v6 = vld [vmem:[%s349_s0] sm:$0x3]  ;;  %v15_v7 = vld [vmem:[%s349_s0 + $0x2] sm:$0x3]  ;;  %v16_v8 = vld [vmem:[%s349_s0 + $0x4] sm:$0x3]  ;;  %v26_v18 = vunpack.c.l.bf16 %v18_v10 }
   0x4   :  { %189 = vmatpush3.msra.mxu0 %v79_v2  ;;  %v17_v9 = vld [vmem:[%s349_s0 + $0x6] sm:$0x3]  ;;  %v22_v11 = vunpack.c.l.bf16 %v14_v6  ;;  %v23_v12 = vunpack.c.l.bf16 %v15_v7  ;;  %v19_v13 = vld [vmem:[%s349_s0 + $0xa] sm:$0x3]  ;;  %v20_v14 = vld [vmem:[%s349_s0 + $0xc] sm:$0x3]  ;;  %v24_v16 = vunpack.c.l.bf16 %v16_v8 }
   0x5   :  { %190 = vmatprep.subr.mxu0 %v223_v0  ;;  %v21_v15 = vld [vmem:[%s349_s0 + $0xe] sm:$0x3]  ;;  %v25_v17 = vunpack.c.l.bf16 %v17_v9  ;;  %v75_v19 = vld [vmem:[%s348_s1 + $0x50] sm:$0xff]  ;;  %v27_v20 = vunpack.c.l.bf16 %v19_v13  ;;  %v28_v21 = vunpack.c.l.bf16 %v20_v14  ;;  %v34_v27 = vmax.f32 %v26_v18, 0.0  ;;  %v73_v36 = vld [vmem:[%s348_s1 + $0x40] sm:$0xff] }
   0x6   :  { %191 = vmatpush3.msra.mxu0 %v78_v3  ;;  %v29_v22 = vunpack.c.l.bf16 %v21_v15  ;;  %v30_v23 = vmax.f32 %v22_v11, 0.0  ;;  %v31_v24 = vmax.f32 %v23_v12, 0.0  ;;  %v32_v25 = vmax.f32 %v24_v16, 0.0  ;;  %v74_v28 = vld [vmem:[%s348_s1 + $0x48] sm:$0xff]  ;;  %v72_v42 = vld [vmem:[%s348_s1 + $0x38] sm:$0xff]  ;;  %v71_v46 = vld [vmem:[%s348_s1 + $0x30] sm:$0xff] }
   0x7   :  { %192 = vmatprep.subr.mxu0 %v223_v0  ;;  %v33_v26 = vmax.f32 %v25_v17, 0.0  ;;  %v35_v29 = vmax.f32 %v27_v20, 0.0  ;;  %v36_v30 = vmax.f32 %v28_v21, 0.0  ;;  %v52_v35 = vsel %vm38_vm1, %v34_v27, 0.0  ;;  %v70_v49 = vld [vmem:[%s348_s1 + $0x28] sm:$0xff]  ;;  %v69_v52 = vld [vmem:[%s348_s1 + $0x20] sm:$0xff] }
   0x8   :  { %193 = vmatpush3.msra.mxu0 %v77_v4  ;;  %v37_v31 = vmax.f32 %v29_v22, 0.0  ;;  %v39_v32 = vsel %vm38_vm1, %v30_v23, 0.0  ;;  %v40_v33 = vsel %vm38_vm1, %v31_v24, 0.0  ;;  %v42_v34 = vsel %vm38_vm1, %v32_v25, 0.0  ;;  %v68_v55 = vld [vmem:[%s348_s1 + $0x18] sm:$0xff]  ;;  %v67_v58 = vld [vmem:[%s348_s1 + $0x10] sm:$0xff] }
   0x9   :  { %194 = vmatprep.subr.mxu0 %v223_v0  ;;  %v41_v37 = vadd.f32 %v40_v33, %v39_v32  ;;  %v53_v38 = vsel %vm38_vm1, %v35_v29, 0.0  ;;  %v55_v39 = vsel %vm38_vm1, %v36_v30, 0.0  ;;  %v44_v40 = vsel %vm38_vm1, %v33_v26, 0.0  ;;  %v66_v61 = vld [vmem:[%s348_s1 + $0x8] sm:$0xff]  ;;  %v65_v1 = vld [vmem:[%s348_s1] sm:$0xff] }
   0xa   :  { %195 = vmatpush3.msra.mxu0 %v76_v5  ;;  %v54_v41 = vadd.f32 %v53_v38, %v52_v35  ;;  %v57_v44 = vsel %vm38_vm1, %v37_v31, 0.0  ;;  %v168_v5 = vld [vmem:[%s350_s2] ss:$0 sm:$0xff] }
   0xb   :  { %196 = vmatprep.subr.mxu0 %v223_v0  ;;  %v43_v43 = vadd.f32 %v42_v34, %v41_v37 }
   0xc   :  { %197 = vmatpush3.msra.mxu0 %v75_v19  ;;  %v56_v45 = vadd.f32 %v55_v39, %v54_v41 }
   0xd   :  { %198 = vmatprep.subr.mxu0 %v223_v0  ;;  %v45_v47 = vadd.f32 %v44_v40, %v43_v43 }
   0xe   :  { %199 = vmatpush3.msra.mxu0 %v74_v28  ;;  %v58_v48 = vadd.f32 %v57_v44, %v56_v45 }
   0xf   :  { %200 = vmatprep.subr.mxu0 %v223_v0  ;;  %v46_v50 = vrot.slane %v45_v47, 4 }
  0x10   :  { %201 = vmatpush3.msra.mxu0 %v73_v36  ;;  %v59_v51 = vrot.slane %v58_v48, 4 }
  0x11   :  { %202 = vmatprep.subr.mxu0 %v223_v0  ;;  %v47_v53 = vadd.f32 %v46_v50, %v45_v47 }
  0x12   :  { %203 = vmatpush3.msra.mxu0 %v72_v42  ;;  %v60_v54 = vadd.f32 %v59_v51, %v58_v48 }
  0x13   :  { %204 = vmatprep.subr.mxu0 %v223_v0  ;;  %v48_v56 = vrot.slane %v47_v53, 2 }
  0x14   :  { %205 = vmatpush3.msra.mxu0 %v71_v46  ;;  %v61_v57 = vrot.slane %v60_v54, 2 }
  0x15   :  { %206 = vmatprep.subr.mxu0 %v223_v0  ;;  %v49_v59 = vadd.f32 %v48_v56, %v47_v53 }
  0x16   :  { %207 = vmatpush3.msra.mxu0 %v70_v49  ;;  %v62_v60 = vadd.f32 %v61_v57, %v60_v54 }
  0x17   :  { %208 = vmatprep.subr.mxu0 %v223_v0  ;;  %v50_v62 = vrot.slane %v49_v59, 1 }
  0x18   :  { %209 = vmatpush3.msra.mxu0 %v69_v52  ;;  %v63_v63 = vrot.slane %v62_v60, 1 }
  0x19   :  { %210 = vmatprep.subr.mxu0 %v223_v0  ;;  %v51_v2 = vadd.f32 %v50_v62, %v49_v59 }
  0x1a   :  { %211 = vmatpush3.msra.mxu0 %v68_v55  ;;  %v64_v3 = vadd.f32 %v63_v63, %v62_v60 }
  0x1b   :  { %212 = vmatprep.subr.mxu0 %v223_v0 }
  0x1c   :  { %213 = vmatpush3.msra.mxu0 %v67_v58  ;;  %v91_v4 = vsel %vm90_vm2, %v64_v3, %v51_v2 }
  0x1d   :  { %214 = vmatprep.subr.mxu0 %v223_v0 }
  0x1e   :  { %215 = vmatpush3.msra.mxu0 %v66_v61 }
  0x1f   :  { %216 = vmatprep.subr.mxu0 %v223_v0 }
  0x20   :  { %217 = vmatpush3.msra.mxu0 %v65_v1 }
  0x21   :  { %219 = vmatmul.mubr.f32.vlgmr.msra.gmra.mxu0 %v91_v4 }
  0xe1   :  { %v159_v6 = vpop.f32.mrf.mxu0 }
  0xe2   :  { %v160_v7 = vadd.f32 %v168_v5, %v159_v6 }
  0xe3   :  { %v220_v8 = vpop.f32.mrf.mxu0 }
  0xe4   :  { %163 = vst [vmem:[%s351_s3] sm:$0x3] %v160_v7 }

// kernel: discriminator_forward.17
= control target key start
LH: loop header
LB: loop body
LE: loop exit
PB: predicated region body
PF: predicated region fallthrough
CT: control target
= control target key end

     0   :  { %s2640_s12 = smov 0   ;;  %s2642_s13 = smov 0   ;;  %s3181_s0 = inlined_call_operand.vmem [shape: bf16[2,6,6,128], index: 0, kind: input, shape index: {}]   ;;  %s3182_s1 = inlined_call_operand.vmem [shape: bf16[3,3,128,128], index: 1, kind: input, shape index: {}]   ;;  %s3183_s2 = inlined_call_operand.vmem [shape: f32[1,128], index: 2, kind: input, shape index: {}]   ;;  %s3184_s3 = inlined_call_operand.vmem [shape: bf16[2,4,4,128], index: 3, kind: output, shape index: {}]  }
   0x1   :  { %s2644_s14 = smov 0  }
   0x2 LB: > { %s25_s15 = sadd.s32 1, %s2610_s13  ;;  %p1986_p0 = scmp.ge.s32.totalorder %s2614_s14, 1  ;;  %s2614_s14 = sphi %s2644_s14, %s13_s14   ;;  %s2610_s13 = sphi %s2642_s13, %s3194_s13   ;;  %s2606_s12 = sphi %s2640_s12, %s3193_s12  }
   0x3   : > { %p27_p1 = scmp.ge.s32.totalorder %s25_s15, 2  ;;  %p151_p2 = scmp.lt.s32.totalorder %s2614_s14, 3 }
   0x5   : > { %s3196_s15 = smov (%p27_p1, %s25_s15), 0  ;;  %p152_p3 = pnand %p1986_p0, %p151_p2 }
   0x6   : > { %p179_p4 = scmp.lt.s32.totalorder (!%p152_p3), %s2606_s12, 1 }
   0x7   : > { %155 = sbr.rel (%p152_p3) target bundleno = 379 (0x17b), region = 32 }
   0xc   : > { %v2520_v0 = vld [vmem:[%s3182_s1 + $0x38] sm:$0xff]   ;;  %v2616_v1 = vmov 0.0   ;;  %v2522_v3 = vld [vmem:[%s3182_s1 + $0x30] sm:$0xff]   ;;  %vm2617_vm0 = vmmov 0   ;;  %v2524_v5 = vld [vmem:[%s3182_s1 + $0x28] sm:$0xff]   ;;  %s3198_s12 = smov (!%p179_p4, %s2606_s12), 1  ;;  %v239_v10 = vlaneseq }
   0xd   : > { %2311 = vmatprep.subr.bf16.mxu0 %v2616_v1  ;;  %2331 = vmatprep.subr.bf16.mxu1 %v2616_v1  ;;  %v2521_v2 = vld [vmem:[%s3182_s1 + $0x78] sm:$0xff]   ;;  %v2523_v4 = vld [vmem:[%s3182_s1 + $0x70] sm:$0xff]   ;;  %v2525_v6 = vld [vmem:[%s3182_s1 + $0x68] sm:$0xff]   ;;  %s2491_s5 = smul.u32 24, %s3198_s12  ;;  %v2618_v17 = vmov 0   ;;  %vm620_vm8 = vcmask 1040384  }
   0xe   : > { %2312 = vmatpush3.bf16.msra.mxu0 %v2520_v0  ;;  %2327 = vmatprep.mubr.msk.bf16.mxu0 %vm2617_vm0, %v2616_v1  ;;  %v2526_v7 = vld [vmem:[%s3182_s1 + $0x20] sm:$0xff]   ;;  %v2528_v9 = vld [vmem:[%s3182_s1 + $0x18] sm:$0xff]   ;;  %v2530_v12 = vld [vmem:[%s3182_s1 + $0x10] sm:$0xff]   ;;  %v2619_v23 = vmov 1983009808   ;;  %v240_v25 = vshrl.u32 %v239_v10, 7 }
   0xf   : > { %2332 = vmatpush3.bf16.msra.mxu1 %v2521_v2  ;;  %2313 = vmatprep.subr.bf16.mxu0 %v2616_v1  ;;  %v2527_v8 = vld [vmem:[%s3182_s1 + $0x60] sm:$0xff]   ;;  %v2529_v11 = vld [vmem:[%s3182_s1 + $0x58] sm:$0xff]   ;;  %s2711_s16 = scalar_lea.vmem %s3181_s0, %s2491_s5  ;;  %v2531_v21 = vld [vmem:[%s3182_s1 + $0x50] sm:$0xff]   ;;  %v237_v24 = vunpack.c.l.s4 %v2619_v23  ;;  %vm387_vm1 = vsmask.f32 1280  ;;  %vm621_vm9 = vcmask 1042434  }
  0x10   : > { %2333 = vmatprep.subr.bf16.mxu1 %v2616_v1  ;;  %2347 = vmatprep.mubr.msk.bf16.mxu1 %vm2617_vm0, %v2616_v1  ;;  %v206_v13 = vld [vmem:[%s2711_s16] sm:$0x3]  ;;  %v207_v14 = vld [vmem:[%s2711_s16 + $0x4] sm:$0x3]  ;;  %v208_v15 = vld [vmem:[%s2711_s16 + $0x8] sm:$0x3] }
  0x11   : > { %v209_v16 = vld [vmem:[%s2711_s16 + $0xc] sm:$0x3]  ;;  %v210_v18 = vmax.bf16 %v2618_v17, %v206_v13  ;;  %v211_v19 = vmax.bf16 %v2618_v17, %v207_v14  ;;  %v212_v20 = vmax.bf16 %v2618_v17, %v208_v15  ;;  %v343_v26 = vld [vmem:[%s2711_s16] sm:$0x7]  ;;  %v344_v28 = vld [vmem:[%s2711_s16 + $0x4] sm:$0x7]  ;;  %v238_v32 = vunpack.c.0.s8 %v237_v24 }
  0x12   : > { %2314 = vmatpush3.bf16.msra.mxu0 %v2522_v3  ;;  %v213_v22 = vmax.bf16 %v2618_v17, %v209_v16  ;;  %v345_v29 = vld [vmem:[%s2711_s16 + $0x8] sm:$0x7]  ;;  %v346_v30 = vld [vmem:[%s2711_s16 + $0xc] sm:$0x7]  ;;  %v347_v33 = vmax.bf16 %v2618_v17, %v343_v26  ;;  %v348_v34 = vmax.bf16 %v2618_v17, %v344_v28  ;;  %vm388_vm2 = vsmask.f32 3336  ;;  %vm2801_vm10 = vmor %vm620_vm8, %vm621_vm9 }
  0x13   : > { %2334 = vmatpush3.bf16.msra.mxu1 %v2523_v4  ;;  %2315 = vmatprep.subr.bf16.mxu0 %v2616_v1  ;;  %v234_v27 = vcombine.low %v210_v18, %v211_v19  ;;  %v2532_v35 = vld [vmem:[%s3182_s1 + $0x8] sm:$0xff]   ;;  %v349_v37 = vmax.bf16 %v2618_v17, %v345_v29  ;;  %v350_v38 = vmax.bf16 %v2618_v17, %v346_v30  ;;  %vm390_vm3 = vsmask.f32 5392  ;;  %v2534_v40 = vld [vmem:[%s3182_s1] sm:$0xff]   ;;  %vm389_vm5 = vmor %vm387_vm1, %vm388_vm2  ;;  %s2229_s5 = sshll.u32 %s3198_s12, 3 }
  0x14   : > { %2335 = vmatprep.subr.bf16.mxu1 %v2616_v1  ;;  %v235_v31 = vcombine.low %v212_v20, %v213_v22  ;;  %v2533_v36 = vld [vmem:[%s3182_s1 + $0x48] sm:$0xff]   ;;  %v2744_v39 = vsub.s32 %v238_v32, %v240_v25  ;;  %v2535_v45 = vld [vmem:[%s3182_s1 + $0x40] sm:$0xff]   ;;  %vm392_vm4 = vsmask.f32 7448  ;;  %vm2765_vm6 = vmor %vm389_vm5, %vm390_vm3  ;;  %vm623_vm11 = vcmask 1044484  }
  0x15   : > { %v2536_v2 = vld [vmem:[%s3182_s1 + $0xb8] sm:$0xff]   ;;  %vm2776_vm7 = vmor %vm2765_vm6, %vm392_vm4  ;;  %v2538_v22 = vld [vmem:[%s3182_s1 + $0xb0] sm:$0xff]   ;;  %vm625_vm13 = vcmask 1046534  }
  0x16   : > { %2316 = vmatpush3.bf16.msra.mxu0 %v2524_v5  ;;  %v242_v41 = vrot.slane %v234_v27, %v2744_v39  ;;  %v249_v42 = vrot.slane %v235_v31, %v2744_v39  ;;  %v361_v43 = vrot.slane %v347_v33, %v2744_v39  ;;  %v369_v44 = vrot.slane %v348_v34, %v2744_v39  ;;  %v2540_v31 = vld [vmem:[%s3182_s1 + $0xa8] sm:$0xff]   ;;  %v576_v33 = vld [vmem:[%s2711_s16] sm:$0x6]  ;;  %v577_v34 = vld [vmem:[%s2711_s16 + $0x4] sm:$0x6] }
  0x17   : > { %2336 = vmatpush3.bf16.msra.mxu1 %v2525_v6  ;;  %2317 = vmatprep.subr.bf16.mxu0 %v2616_v1  ;;  %v377_v46 = vrot.slane %v349_v37, %v2744_v39  ;;  %v385_v47 = vrot.slane %v350_v38, %v2744_v39  ;;  %v578_v38 = vld [vmem:[%s2711_s16 + $0x8] sm:$0x6]  ;;  %vm624_vm12 = vmor %vm2801_vm10, %vm623_vm11 }
  0x18   : > { %2337 = vmatprep.subr.bf16.mxu1 %v2616_v1  ;;  %v250_v48 = vcombine.low %v242_v41, %v249_v42  ;;  %v362_v49 = vcombine.high %v361_v43, %v361_v43  ;;  %v370_v50 = vcombine.high %v369_v44, %v369_v44  ;;  %v395_v51 = vshrl.u32 %v361_v43, 16  ;;  %vm2831_vm14 = vmor %vm624_vm12, %vm625_vm13 }
  0x19   : > { %v378_v52 = vcombine.high %v377_v46, %v377_v46  ;;  %v386_v53 = vcombine.high %v385_v47, %v385_v47  ;;  %v398_v54 = vshll.u32 %v361_v43, 16  ;;  %v409_v55 = vshrl.u32 %v369_v44, 16  ;;  %v2542_v43 = vld [vmem:[%s3182_s1 + $0xa0] sm:$0xff]  }
  0x1a   : > { %2318 = vmatpush3.bf16.msra.mxu0 %v2526_v7  ;;  %v397_v56 = vrot.slane %v395_v51, 6  ;;  %v404_v57 = vshll.u32 %v362_v49, 16  ;;  %v412_v58 = vshll.u32 %v369_v44, 16  ;;  %v418_v59 = vshll.u32 %v370_v50, 16 }
  0x1b   : > { %2338 = vmatpush3.bf16.msra.mxu1 %v2527_v8  ;;  %2319 = vmatprep.subr.bf16.mxu0 %v2616_v1  ;;  %v400_v61 = vrot.slane %v398_v54, 7  ;;  %v411_v62 = vrot.slane %v409_v55, 6  ;;  %v423_v63 = vshrl.u32 %v377_v46, 16  ;;  %v426_v0 = vshll.u32 %v377_v46, 16 }
  0x1c   : > { %2339 = vmatprep.subr.bf16.mxu1 %v2616_v1  ;;  %v406_v3 = vrot.slane %v404_v57, 7  ;;  %v414_v4 = vrot.slane %v412_v58, 7  ;;  %v432_v5 = vshll.u32 %v378_v52, 16  ;;  %v440_v13 = vshll.u32 %v385_v47, 16 }
  0x1d   : > { %v401_v6 = vor.u32 %v400_v61, %v397_v56  ;;  %v425_v7 = vrot.slane %v423_v63, 6  ;;  %v428_v8 = vrot.slane %v426_v0, 7  ;;  %v446_v14 = vshll.u32 %v386_v53, 16  ;;  %v2544_v53 = vld [vmem:[%s3182_s1 + $0x98] sm:$0xff]   ;;  %v2591_v61 = vld [vmem:[%s3182_s1 + $0x200] sm:$0xff]  }
  0x1e   : > { %2320 = vmatpush3.bf16.msra.mxu0 %v2528_v9  ;;  %v437_v9 = vshrl.u32 %v385_v47, 16  ;;  %v434_v20 = vrot.slane %v432_v5, 7  ;;  %v580_v41 = vmax.bf16 %v2618_v17, %v576_v33  ;;  %v581_v42 = vmax.bf16 %v2618_v17, %v577_v34  ;;  %v2537_v47 = vld [vmem:[%s3182_s1 + $0xf8] sm:$0xff]   ;;  %v2546_v5 = vld [vmem:[%s3182_s1 + $0x90] sm:$0xff]  }
  0x1f   : > { %2340 = vmatpush3.bf16.msra.mxu1 %v2529_v11  ;;  %2321 = vmatprep.subr.bf16.mxu0 %v2616_v1  ;;  %v415_v11 = vor.u32 %v414_v4, %v411_v62  ;;  %v402_v15 = vrot.slane %v401_v6, 2  ;;  %v429_v16 = vor.u32 %v428_v8, %v425_v7  ;;  %v448_v25 = vrot.slane %v446_v14, 7  ;;  %v2548_v14 = vld [vmem:[%s3182_s1 + $0x88] sm:$0xff]   ;;  %v2552_v34 = vld [vmem:[%s3182_s1 + $0x138] sm:$0xff]  }
  0x20   : > { %2341 = vmatprep.subr.bf16.mxu1 %v2616_v1  ;;  %v439_v18 = vrot.slane %v437_v9, 6  ;;  %v582_v44 = vmax.bf16 %v2618_v17, %v578_v38  ;;  %v602_v49 = vrot.slane %v581_v42, %v2744_v39 }
  0x21   : > { %v416_v19 = vrot.slane %v415_v11, 2  ;;  %v407_v23 = vsel %vm2776_vm7, %v402_v15, %v406_v3  ;;  %v430_v24 = vrot.slane %v429_v16, 2  ;;  %v2541_v11 = vld [vmem:[%s3182_s1 + $0xe8] sm:$0xff]   ;;  %v2543_v15 = vld [vmem:[%s3182_s1 + $0xe0] sm:$0xff]  }
  0x22   : > { %2322 = vmatpush3.bf16.msra.mxu0 %v2530_v12  ;;  %v420_v12 = vrot.slane %v418_v59, 7  ;;  %v610_v50 = vrot.slane %v582_v44, %v2744_v39  ;;  %v603_v55 = vcombine.high %v602_v49, %v602_v49  ;;  %v2024_v59 = vrot.slane %v602_v49, 9  ;;  %v2550_v16 = vld [vmem:[%s3182_s1 + $0x80] sm:$0xff]  }
  0x23   : > { %2342 = vmatpush3.bf16.msra.mxu1 %v2531_v21  ;;  %2323 = vmatprep.subr.bf16.mxu0 %v2616_v1  ;;  %v442_v21 = vrot.slane %v440_v13, 7  ;;  %v435_v29 = vsel %vm2776_vm7, %v430_v24, %v434_v20  ;;  %v2051_v20 = vld [vmem:[%s2711_s16 + $0x4] sm:$0x3]  ;;  %v2054_v24 = vld [vmem:[%s2711_s16 + $0x10] sm:$0x3] }
  0x24   : > { %2343 = vmatprep.subr.bf16.mxu1 %v2616_v1  ;;  %v421_v26 = vsel %vm2776_vm7, %v416_v19, %v420_v12  ;;  %v611_v57 = vcombine.high %v610_v50, %v610_v50  ;;  %v2025_v60 = vrot.slane %v610_v50, 9  ;;  %v633_v63 = vrot.slane %v603_v55, 7  ;;  %v2556_v55 = vld [vmem:[%s3182_s1 + $0x128] sm:$0xff]  }
  0x25   : > { %v443_v27 = vor.u32 %v442_v21, %v439_v18  ;;  %v467_v28 = vcombine.low %v407_v23, %v421_v26  ;;  %v2052_v21 = vld [vmem:[%s2711_s16 + $0x8] sm:$0x3]  ;;  %v2053_v23 = vld [vmem:[%s2711_s16 + $0xc] sm:$0x3] }
  0x26   : > { %2324 = vmatpush3.bf16.msra.mxu0 %v2532_v35  ;;  %v637_v3 = vrot.slane %v611_v57, 7  ;;  %v634_v7 = vsel %vm2831_vm14, %v2024_v59, %v633_v63  ;;  %v2080_v26 = vld [vmem:[%s2711_s16 + $0x8] sm:$0x7]  ;;  %v776_v35 = vmax.bf16 %v2618_v17, %v2051_v20  ;;  %v778_v38 = vmax.bf16 %v2618_v17, %v2053_v23  ;;  %v2107_v23 = vld [vmem:[%s2711_s16 + $0x4] sm:$0x6] }
  0x27   : > { %2344 = vmatpush3.bf16.msra.mxu1 %v2533_v36  ;;  %2325 = vmatprep.subr.bf16.mxu0 %v2616_v1  ;;  %v444_v30 = vrot.slane %v443_v27, 2  ;;  %v475_v37 = vrot.slane %v467_v28, %v2744_v39  ;;  %v2081_v27 = vld [vmem:[%s2711_s16 + $0xc] sm:$0x7]  ;;  %v2082_v28 = vld [vmem:[%s2711_s16 + $0x10] sm:$0x7] }
  0x28   : > { %2345 = vmatprep.subr.bf16.mxu1 %v2616_v1  ;;  %v638_v8 = vsel %vm2831_vm14, %v2025_v60, %v637_v3  ;;  %v917_v33 = vmax.bf16 %v2618_v17, %v2082_v28  ;;  %v2110_v28 = vld [vmem:[%s2711_s16 + $0x10] sm:$0x6] }
  0x29   : > { %v449_v32 = vsel %vm2776_vm7, %v444_v30, %v448_v25  ;;  %v2079_v25 = vld [vmem:[%s2711_s16 + $0x4] sm:$0x7] }
  0x2a   : > { %2326 = vmatpush3.bf16.msra.mxu0 %v2534_v40  ;;  %v468_v36 = vcombine.low %v435_v29, %v449_v32  ;;  %v579_v40 = vld [vmem:[%s2711_s16 + $0xc] sm:$0x6]  ;;  %v914_v29 = vmax.bf16 %v2618_v17, %v2079_v25  ;;  %v916_v32 = vmax.bf16 %v2618_v17, %v2081_v27  ;;  %v2108_v25 = vld [vmem:[%s2711_s16 + $0x8] sm:$0x6] }
  0x2b   : > { %2346 = vmatpush3.bf16.msra.mxu1 %v2535_v45  ;;  %2351 = vmatprep.subr.bf16.mxu0 %v2616_v1  ;;  %v583_v45 = vmax.bf16 %v2618_v17, %v579_v40  ;;  %v779_v40 = vmax.bf16 %v2618_v17, %v2054_v24  ;;  %v2109_v27 = vld [vmem:[%s2711_s16 + $0xc] sm:$0x6] }
  0x2c   : > { %2371 = vmatprep.subr.bf16.mxu1 %v2616_v1  ;;  %v482_v46 = vrot.slane %v468_v36, %v2744_v39  ;;  %v777_v36 = vmax.bf16 %v2618_v17, %v2052_v21  ;;  %v944_v42 = vrot.slane %v916_v32, %v2744_v39 }
  0x2d   : > { %2328 = vmatmul.mubr.bf16.vlgmr.msra.gmra.mxu0 %v250_v48  ;;  %v594_v48 = vrot.slane %v580_v41, %v2744_v39  ;;  %v618_v51 = vrot.slane %v583_v45, %v2744_v39  ;;  %v952_v45 = vrot.slane %v917_v33, %v2744_v39 }
  0x2e   : > { %2352 = vmatpush3.bf16.msra.mxu0 %v2536_v2  ;;  %2367 = vmatprep.mubr.msk.bf16.mxu0 %vm2617_vm0, %v2616_v1  ;;  %v483_v52 = vcombine.low %v475_v37, %v482_v46  ;;  %v2539_v2 = vld [vmem:[%s3182_s1 + $0xf0] sm:$0xff]   ;;  %v928_v37 = vrot.slane %v914_v29, %v2744_v39  ;;  %v801_v50 = vcombine.low %v776_v35, %v777_v36 }
  0x2f   : > { %2353 = vmatprep.subr.bf16.mxu0 %v2616_v1  ;;  %v595_v54 = vcombine.high %v594_v48, %v594_v48  ;;  %v2023_v56 = vrot.slane %v594_v48, 9  ;;  %v619_v58 = vcombine.high %v618_v51, %v618_v51  ;;  %v2026_v0 = vrot.slane %v618_v51, 9  ;;  %v2554_v48 = vld [vmem:[%s3182_s1 + $0x130] sm:$0xff]  }
  0x30   : > { %2348 = vmatmul.mubr.bf16.vlgmr.msra.gmra.mxu1 %v483_v52  ;;  %v955_v44 = vshrl.u32 %v928_v37, 16  ;;  %v958_v46 = vshll.u32 %v928_v37, 16  ;;  %v802_v51 = vcombine.low %v778_v38, %v779_v40  ;;  %v983_v52 = vshrl.u32 %v944_v42, 16 }
  0x31   : > { %v629_v62 = vrot.slane %v595_v54, 7  ;;  %2372 = vmatpush3.bf16.msra.mxu1 %v2537_v47  ;;  %v641_v4 = vrot.slane %v619_v58, 7  ;;  %2387 = vmatprep.mubr.msk.bf16.mxu1 %vm2617_vm0, %v2616_v1  ;;  %v2549_v54 = vld [vmem:[%s3182_s1 + $0xc8] sm:$0xff]   ;;  %v945_v58 = vcombine.high %v944_v42, %v944_v42  ;;  %v953_v59 = vcombine.high %v952_v45, %v952_v45 }
  0x32   : > { %2354 = vmatpush3.bf16.msra.mxu0 %v2538_v22  ;;  %2373 = vmatprep.subr.bf16.mxu1 %v2616_v1  ;;  %v2545_v22 = vld [vmem:[%s3182_s1 + $0xd8] sm:$0xff]   ;;  %v957_v60 = vrot.slane %v955_v44, 6  ;;  %v985_v3 = vrot.slane %v983_v52, 6  ;;  %v1140_v38 = vmax.bf16 %v2618_v17, %v2107_v23  ;;  %v1141_v40 = vmax.bf16 %v2618_v17, %v2108_v25  ;;  %v2565_v23 = vld [vmem:[%s3182_s1 + $0x148] sm:$0xff]  }
  0x33   : > { %2355 = vmatprep.subr.bf16.mxu0 %v2616_v1  ;;  %v630_v6 = vsel %vm2831_vm14, %v2023_v56, %v629_v62  ;;  %v642_v9 = vsel %vm2831_vm14, %v2026_v0, %v641_v4  ;;  %v929_v56 = vcombine.high %v928_v37, %v928_v37  ;;  %v960_v62 = vrot.slane %v958_v46, 7  ;;  %v2555_v37 = vld [vmem:[%s3182_s1 + $0x170] sm:$0xff]   ;;  %v2168_v25 = vld [vmem:[%s2711_s16 + $0xc] sm:$0x7] }
  0x34   : > { %v660_v12 = vcombine.low %v630_v6, %v634_v7  ;;  %v661_v13 = vcombine.low %v638_v8, %v642_v9  ;;  %v997_v0 = vshrl.u32 %v952_v45, 16  ;;  %v809_v6 = vrot.slane %v801_v50, %v2744_v39  ;;  %v2551_v9 = vld [vmem:[%s3182_s1 + $0xc0] sm:$0xff]   ;;  %v2557_v50 = vld [vmem:[%s3182_s1 + $0x168] sm:$0xff]  }
  0x35   : > { %2374 = vmatpush3.bf16.msra.mxu1 %v2539_v2  ;;  %v816_v7 = vrot.slane %v802_v51, %v2744_v39 }
  0x36   : > { %2356 = vmatpush3.bf16.msra.mxu0 %v2540_v31  ;;  %2375 = vmatprep.subr.bf16.mxu1 %v2616_v1  ;;  %v668_v18 = vrot.slane %v660_v12, %v2744_v39  ;;  %v675_v19 = vrot.slane %v661_v13, %v2744_v39  ;;  %v915_v31 = vmax.bf16 %v2618_v17, %v2080_v26  ;;  %v999_v8 = vrot.slane %v997_v0, 6  ;;  %v2560_v26 = vld [vmem:[%s3182_s1 + $0x118] sm:$0xff]  }
  0x37   : > { %2357 = vmatprep.subr.bf16.mxu0 %v2616_v1  ;;  %v961_v13 = vor.u32 %v960_v62, %v957_v60  ;;  %v817_v24 = vcombine.low %v809_v6, %v816_v7  ;;  %v2561_v0 = vld [vmem:[%s3182_s1 + $0x158] sm:$0xff]  }
  0x38   : > { %v676_v30 = vcombine.low %v668_v18, %v675_v19  ;;  %v936_v41 = vrot.slane %v915_v31, %v2744_v39  ;;  %v2558_v18 = vld [vmem:[%s3182_s1 + $0x120] sm:$0xff]  }
  0x39   : > { %2376 = vmatpush3.bf16.msra.mxu1 %v2541_v11  ;;  %v964_v11 = vshll.u32 %v929_v56, 16  ;;  %v962_v29 = vrot.slane %v961_v13, 2  ;;  %v2568_v13 = vld [vmem:[%s3182_s1 + $0x1b8] sm:$0xff]  }
  0x3a   : > { %2358 = vmatpush3.bf16.msra.mxu0 %v2542_v43  ;;  %2377 = vmatprep.subr.bf16.mxu1 %v2616_v1  ;;  %v2547_v43 = vld [vmem:[%s3182_s1 + $0xd0] sm:$0xff]   ;;  %v969_v47 = vshrl.u32 %v936_v41, 16  ;;  %v972_v49 = vshll.u32 %v936_v41, 16  ;;  %v937_v57 = vcombine.high %v936_v41, %v936_v41  ;;  %v1142_v41 = vmax.bf16 %v2618_v17, %v2109_v27 }
  0x3b   : > { %2359 = vmatprep.subr.bf16.mxu0 %v2616_v1  ;;  %v2170_v27 = vld [vmem:[%s2711_s16 + $0x14] sm:$0x7] }
  0x3c   : > { %v971_v63 = vrot.slane %v969_v47, 6  ;;  %v974_v2 = vrot.slane %v972_v49, 7  ;;  %v1162_v49 = vrot.slane %v1141_v40, %v2744_v39  ;;  %v1170_v51 = vrot.slane %v1142_v41, %v2744_v39  ;;  %v2569_v41 = vld [vmem:[%s3182_s1 + $0x1f8] sm:$0xff]  }
  0x3d   : > { %2378 = vmatpush3.bf16.msra.mxu1 %v2543_v15  ;;  %v992_v15 = vshll.u32 %v945_v58, 16  ;;  %v2559_v58 = vld [vmem:[%s3182_s1 + $0x160] sm:$0xff]  }
  0x3e   : > { %2360 = vmatpush3.bf16.msra.mxu0 %v2544_v53  ;;  %2379 = vmatprep.subr.bf16.mxu1 %v2616_v1  ;;  %v986_v53 = vshll.u32 %v944_v42, 16  ;;  %v975_v19 = vor.u32 %v974_v2, %v971_v63  ;;  %v1143_v42 = vmax.bf16 %v2618_v17, %v2110_v28  ;;  %v2566_v2 = vld [vmem:[%s3182_s1 + $0x100] sm:$0xff]   ;;  %v2113_v7 = vrot.slane %v1170_v51, 9  ;;  %v2572_v28 = vld [vmem:[%s3182_s1 + $0x1a8] sm:$0xff]  }
  0x3f   : > { %2361 = vmatprep.subr.bf16.mxu0 %v2616_v1  ;;  %v994_v32 = vrot.slane %v992_v15, 7 }
  0x40   : > { %v988_v4 = vrot.slane %v986_v53, 7  ;;  %v976_v33 = vrot.slane %v975_v19, 2  ;;  %v1178_v52 = vrot.slane %v1143_v42, %v2744_v39 }
  0x41   : > { %2380 = vmatpush3.bf16.msra.mxu1 %v2545_v22  ;;  %v1006_v22 = vshll.u32 %v953_v59, 16  ;;  %v1171_v59 = vcombine.high %v1170_v51, %v1170_v51 }
  0x42   : > { %2362 = vmatpush3.bf16.msra.mxu0 %v2546_v5  ;;  %2381 = vmatprep.subr.bf16.mxu1 %v2616_v1  ;;  %v1000_v5 = vshll.u32 %v952_v45, 16  ;;  %v989_v20 = vor.u32 %v988_v4, %v985_v3  ;;  %v1179_v60 = vcombine.high %v1178_v52, %v1178_v52 }
  0x43   : > { %2363 = vmatprep.subr.bf16.mxu0 %v2616_v1  ;;  %v1008_v36 = vrot.slane %v1006_v22, 7 }
  0x44   : > { %v1002_v12 = vrot.slane %v1000_v5, 7  ;;  %v2112_v5 = vrot.slane %v1162_v49, 9 }
  0x45   : > { %2382 = vmatpush3.bf16.msra.mxu1 %v2547_v43  ;;  %v2562_v43 = vld [vmem:[%s3182_s1 + $0x110] sm:$0xff]  }
  0x46   : > { %2364 = vmatpush3.bf16.msra.mxu0 %v2548_v14  ;;  %2383 = vmatprep.subr.bf16.mxu1 %v2616_v1  ;;  %v978_v14 = vshll.u32 %v937_v57, 16  ;;  %v1003_v21 = vor.u32 %v1002_v12, %v999_v8  ;;  %v1163_v57 = vcombine.high %v1162_v49, %v1162_v49  ;;  %v1190_v8 = vrot.slane %v1171_v59, 7 }
  0x47   : > { %2365 = vmatprep.subr.bf16.mxu0 %v2616_v1 }
  0x48   : > { %v980_v31 = vrot.slane %v978_v14, 7  ;;  %v1004_v35 = vrot.slane %v1003_v21, 2  ;;  %v1186_v6 = vrot.slane %v1163_v57, 7  ;;  %v2563_v14 = vld [vmem:[%s3182_s1 + $0x150] sm:$0xff]  }
  0x49   : > { %2384 = vmatpush3.bf16.msra.mxu1 %v2549_v54 }
  0x4a   : > { %2366 = vmatpush3.bf16.msra.mxu0 %v2550_v16  ;;  %2385 = vmatprep.subr.bf16.mxu1 %v2616_v1  ;;  %v2553_v16 = vld [vmem:[%s3182_s1 + $0x178] sm:$0xff]   ;;  %v981_v45 = vsel %vm2776_vm7, %v976_v33, %v980_v31  ;;  %v1009_v47 = vsel %vm2776_vm7, %v1004_v35, %v1008_v36  ;;  %v2567_v33 = vld [vmem:[%s3182_s1 + $0x140] sm:$0xff]   ;;  %v1470_v35 = vmax.bf16 %v2618_v17, %v2170_v27 }
  0x4b   : > { %2391 = vmatprep.subr.bf16.mxu0 %v2616_v1  ;;  %v2574_v36 = vld [vmem:[%s3182_s1 + $0x1a0] sm:$0xff]  }
  0x4d   : > { %2368 = vmatmul.mubr.bf16.vlgmr.msra.gmra.mxu0 %v676_v30  ;;  %2386 = vmatpush3.bf16.msra.mxu1 %v2551_v9  ;;  %v966_v30 = vrot.slane %v964_v11, 7  ;;  %v2114_v9 = vrot.slane %v1178_v52, 9  ;;  %v1194_v11 = vrot.slane %v1179_v60, 7 }
  0x4e   : > { %2392 = vmatpush3.bf16.msra.mxu0 %v2552_v34  ;;  %2407 = vmatprep.mubr.msk.bf16.mxu0 %vm2617_vm0, %v2616_v1  ;;  %v990_v34 = vrot.slane %v989_v20, 2  ;;  %v2570_v20 = vld [vmem:[%s3182_s1 + $0x1b0] sm:$0xff]  }
  0x4f   : > { %2393 = vmatprep.subr.bf16.mxu0 %v2616_v1  ;;  %2411 = vmatprep.subr.bf16.mxu1 %v2616_v1  ;;  %v967_v44 = vsel %vm2776_vm7, %v962_v29, %v966_v30  ;;  %v1195_v19 = vsel %vm2831_vm14, %v2114_v9, %v1194_v11  ;;  %v2573_v9 = vld [vmem:[%s3182_s1 + $0x1e8] sm:$0xff]  }
  0x50   : > { %2388 = vmatmul.mubr.bf16.vlgmr.msra.gmra.mxu1 %v817_v24  ;;  %v995_v46 = vsel %vm2776_vm7, %v990_v34, %v994_v32  ;;  %v1027_v53 = vcombine.low %v967_v44, %v981_v45  ;;  %v2167_v24 = vld [vmem:[%s2711_s16 + $0x8] sm:$0x7]  ;;  %v1468_v32 = vmax.bf16 %v2618_v17, %v2168_v25  ;;  %v2576_v44 = vld [vmem:[%s3182_s1 + $0x198] sm:$0xff]  }
  0x51   : > { %2412 = vmatpush3.bf16.msra.mxu1 %v2553_v16  ;;  %2427 = vmatprep.mubr.msk.bf16.mxu1 %vm2617_vm0, %v2616_v1  ;;  %v1028_v54 = vcombine.low %v995_v46, %v1009_v47  ;;  %v1187_v16 = vsel %vm2831_vm14, %v2112_v5, %v1186_v6  ;;  %v1467_v31 = vmax.bf16 %v2618_v17, %v2167_v24  ;;  %v2139_v45 = vld [vmem:[%s2711_s16 + $0x8] sm:$0x3]  ;;  %v2140_v46 = vld [vmem:[%s2711_s16 + $0xc] sm:$0x3]  ;;  %v2141_v47 = vld [vmem:[%s2711_s16 + $0x10] sm:$0x3] }
  0x52   : > { %2394 = vmatpush3.bf16.msra.mxu0 %v2554_v48  ;;  %2413 = vmatprep.subr.bf16.mxu1 %v2616_v1  ;;  %v1154_v48 = vrot.slane %v1140_v38, %v2744_v39  ;;  %v1035_v62 = vrot.slane %v1027_v53, %v2744_v39  ;;  %v1489_v40 = vrot.slane %v1468_v32, %v2744_v39  ;;  %v2571_v53 = vld [vmem:[%s3182_s1 + $0x1f0] sm:$0xff]  }
  0x53   : > { %2395 = vmatprep.subr.bf16.mxu0 %v2616_v1  ;;  %v1042_v63 = vrot.slane %v1028_v54, %v2744_v39  ;;  %v1481_v38 = vrot.slane %v1467_v31, %v2744_v39  ;;  %v1330_v59 = vmax.bf16 %v2618_v17, %v2140_v46  ;;  %v1331_v60 = vmax.bf16 %v2618_v17, %v2141_v47  ;;  %v2198_v46 = vld [vmem:[%s2711_s16 + $0x14] sm:$0x6] }
  0x54   : > { %v1155_v56 = vcombine.high %v1154_v48, %v1154_v48  ;;  %v2111_v3 = vrot.slane %v1154_v48, 9  ;;  %v2142_v48 = vld [vmem:[%s2711_s16 + $0x14] sm:$0x3]  ;;  %v1522_v51 = vshrl.u32 %v1489_v40, 16  ;;  %v1525_v52 = vshll.u32 %v1489_v40, 16 }
  0x55   : > { %2414 = vmatpush3.bf16.msra.mxu1 %v2555_v37  ;;  %v1043_v12 = vcombine.low %v1035_v62, %v1042_v63  ;;  %v1508_v49 = vshrl.u32 %v1481_v38, 16  ;;  %v1332_v62 = vmax.bf16 %v2618_v17, %v2142_v48  ;;  %v2578_v63 = vld [vmem:[%s3182_s1 + $0x190] sm:$0xff]   ;;  %v1696_v10 = vmax.bf16 %v2618_v17, %v2198_v46 }
  0x56   : > { %2396 = vmatpush3.bf16.msra.mxu0 %v2556_v55  ;;  %2415 = vmatprep.subr.bf16.mxu1 %v2616_v1  ;;  %v2564_v55 = vld [vmem:[%s3182_s1 + $0x108] sm:$0xff]   ;;  %v1182_v4 = vrot.slane %v1155_v56, 7  ;;  %v2579_v47 = vld [vmem:[%s3182_s1 + $0x1d0] sm:$0xff]  }
  0x57   : > { %2397 = vmatprep.subr.bf16.mxu0 %v2616_v1  ;;  %v1510_v5 = vrot.slane %v1508_v49, 6 }
  0x58   : > { %v1183_v15 = vsel %vm2831_vm14, %v2111_v3, %v1182_v4 }
  0x59   : > { %2416 = vmatpush3.bf16.msra.mxu1 %v2557_v50  ;;  %v1213_v21 = vcombine.low %v1183_v15, %v1187_v16  ;;  %v1511_v50 = vshll.u32 %v1481_v38, 16  ;;  %v1355_v16 = vcombine.low %v1331_v60, %v1332_v62 }
  0x5a   : > { %2398 = vmatpush3.bf16.msra.mxu0 %v2558_v18  ;;  %2417 = vmatprep.subr.bf16.mxu1 %v2616_v1  ;;  %v1191_v18 = vsel %vm2831_vm14, %v2113_v7, %v1190_v8  ;;  %v1524_v7 = vrot.slane %v1522_v51, 6  ;;  %v1527_v8 = vrot.slane %v1525_v52, 7 }
  0x5b   : > { %2399 = vmatprep.subr.bf16.mxu0 %v2616_v1  ;;  %v1214_v22 = vcombine.low %v1191_v18, %v1195_v19  ;;  %v1221_v29 = vrot.slane %v1213_v21, %v2744_v39  ;;  %v1513_v6 = vrot.slane %v1511_v50, 7  ;;  %v2580_v18 = vld [vmem:[%s3182_s1 + $0x188] sm:$0xff]  }
  0x5c   : > { %v1528_v24 = vor.u32 %v1527_v8, %v1524_v7 }
  0x5d   : > { %2418 = vmatpush3.bf16.msra.mxu1 %v2559_v58  ;;  %v1228_v30 = vrot.slane %v1214_v22, %v2744_v39  ;;  %v1329_v58 = vmax.bf16 %v2618_v17, %v2139_v45  ;;  %v1514_v19 = vor.u32 %v1513_v6, %v1510_v5  ;;  %v2197_v45 = vld [vmem:[%s2711_s16 + $0x10] sm:$0x6]  ;;  %v2587_v6 = vld [vmem:[%s3182_s1 + $0x220] sm:$0xff]  }
  0x5e   : > { %2400 = vmatpush3.bf16.msra.mxu0 %v2560_v26  ;;  %2419 = vmatprep.subr.bf16.mxu1 %v2616_v1  ;;  %v2169_v26 = vld [vmem:[%s2711_s16 + $0x10] sm:$0x7] }
  0x5f   : > { %2401 = vmatprep.subr.bf16.mxu0 %v2616_v1  ;;  %v1469_v34 = vmax.bf16 %v2618_v17, %v2169_v26  ;;  %v1229_v37 = vcombine.low %v1221_v29, %v1228_v30  ;;  %v1354_v15 = vcombine.low %v1329_v58, %v1330_v59  ;;  %v1369_v29 = vrot.slane %v1355_v16, %v2744_v39  ;;  %v2582_v30 = vld [vmem:[%s3182_s1 + $0x180] sm:$0xff]   ;;  %v2581_v58 = vld [vmem:[%s3182_s1 + $0x1c8] sm:$0xff]  }
  0x60   : > { %v1515_v31 = vrot.slane %v1514_v19, 2 }
  0x61   : > { %2420 = vmatpush3.bf16.msra.mxu1 %v2561_v0  ;;  %v1497_v42 = vrot.slane %v1469_v34, %v2744_v39  ;;  %v1482_v0 = vcombine.high %v1481_v38, %v1481_v38 }
  0x62   : > { %2402 = vmatpush3.bf16.msra.mxu0 %v2562_v43  ;;  %2421 = vmatprep.subr.bf16.mxu1 %v2616_v1  ;;  %v1505_v43 = vrot.slane %v1470_v35, %v2744_v39  ;;  %v2577_v35 = vld [vmem:[%s3182_s1 + $0x1d8] sm:$0xff]  }
  0x63   : > { %2403 = vmatprep.subr.bf16.mxu0 %v2616_v1  ;;  %v1536_v54 = vshrl.u32 %v1497_v42, 16  ;;  %v1498_v3 = vcombine.high %v1497_v42, %v1497_v42 }
  0x64   : > { %v1550_v56 = vshrl.u32 %v1505_v43, 16  ;;  %v1553_v57 = vshll.u32 %v1505_v43, 16  ;;  %v1506_v4 = vcombine.high %v1505_v43, %v1505_v43  ;;  %v2195_v43 = vld [vmem:[%s2711_s16 + $0x8] sm:$0x6] }
  0x65   : > { %2422 = vmatpush3.bf16.msra.mxu1 %v2563_v14  ;;  %v1538_v11 = vrot.slane %v1536_v54, 6  ;;  %v1545_v22 = vshll.u32 %v1498_v3, 16  ;;  %v1693_v52 = vmax.bf16 %v2618_v17, %v2195_v43  ;;  %v2585_v54 = vld [vmem:[%s3182_s1 + $0x230] sm:$0xff]   ;;  %v2583_v3 = vld [vmem:[%s3182_s1 + $0x1c0] sm:$0xff]  }
  0x66   : > { %2404 = vmatpush3.bf16.msra.mxu0 %v2564_v55  ;;  %2423 = vmatprep.subr.bf16.mxu1 %v2616_v1  ;;  %v1539_v55 = vshll.u32 %v1497_v42, 16  ;;  %v1555_v14 = vrot.slane %v1553_v57, 7  ;;  %v1559_v27 = vshll.u32 %v1506_v4, 16  ;;  %v2584_v42 = vld [vmem:[%s3182_s1 + $0x238] sm:$0xff]  }
  0x67   : > { %2405 = vmatprep.subr.bf16.mxu0 %v2616_v1  ;;  %v1547_v34 = vrot.slane %v1545_v22, 7  ;;  %v1707_v59 = vrot.slane %v1693_v52, %v2744_v39 }
  0x69   : > { %2424 = vmatpush3.bf16.msra.mxu1 %v2565_v23  ;;  %v2575_v23 = vld [vmem:[%s3182_s1 + $0x1e0] sm:$0xff]   ;;  %v1708_v4 = vcombine.high %v1707_v59, %v1707_v59 }
  0x6a   : > { %2406 = vmatpush3.bf16.msra.mxu0 %v2566_v2  ;;  %2425 = vmatprep.subr.bf16.mxu1 %v2616_v1  ;;  %v1490_v2 = vcombine.high %v1489_v40, %v1489_v40  ;;  %v1561_v40 = vrot.slane %v1559_v27, 7 }
  0x6b   : > { %2431 = vmatprep.subr.bf16.mxu0 %v2616_v1 }
  0x6c   : > { %v1531_v21 = vshll.u32 %v1490_v2, 16 }
  0x6d   : > { %2408 = vmatmul.mubr.bf16.vlgmr.msra.gmra.mxu0 %v1043_v12  ;;  %2426 = vmatpush3.bf16.msra.mxu1 %v2567_v33  ;;  %v1541_v12 = vrot.slane %v1539_v55, 7  ;;  %v1695_v55 = vmax.bf16 %v2618_v17, %v2197_v45 }
  0x6e   : > { %2432 = vmatpush3.bf16.msra.mxu0 %v2568_v13  ;;  %2447 = vmatprep.mubr.msk.bf16.mxu0 %vm2617_vm0, %v2616_v1  ;;  %v1552_v13 = vrot.slane %v1550_v56, 6  ;;  %v1533_v33 = vrot.slane %v1531_v21, 7  ;;  %v2589_v21 = vld [vmem:[%s3182_s1 + $0x210] sm:$0xff]  }
  0x6f   : > { %2433 = vmatprep.subr.bf16.mxu0 %v2616_v1  ;;  %2451 = vmatprep.subr.bf16.mxu1 %v2616_v1  ;;  %v1542_v25 = vor.u32 %v1541_v12, %v1538_v11  ;;  %v1723_v62 = vrot.slane %v1695_v55, %v2744_v39  ;;  %v2199_v11 = vrot.slane %v1707_v59, 9  ;;  %v1735_v12 = vrot.slane %v1708_v4, 7 }
  0x70   : > { %2428 = vmatmul.mubr.bf16.vlgmr.msra.gmra.mxu1 %v1229_v37  ;;  %v1556_v26 = vor.u32 %v1555_v14, %v1552_v13 }
  0x71   : > { %2452 = vmatpush3.bf16.msra.mxu1 %v2569_v41  ;;  %2467 = vmatprep.mubr.msk.bf16.mxu1 %vm2617_vm0, %v2616_v1  ;;  %v1543_v37 = vrot.slane %v1542_v25, 2  ;;  %v1724_v7 = vcombine.high %v1723_v62, %v1723_v62  ;;  %v2201_v16 = vrot.slane %v1723_v62, 9  ;;  %v1736_v22 = vsel %vm2831_vm14, %v2199_v11, %v1735_v12 }
  0x72   : > { %2434 = vmatpush3.bf16.msra.mxu0 %v2570_v20  ;;  %2453 = vmatprep.subr.bf16.mxu1 %v2616_v1  ;;  %v1517_v20 = vshll.u32 %v1482_v0, 16  ;;  %v1557_v38 = vrot.slane %v1556_v26, 2 }
  0x73   : > { %2435 = vmatprep.subr.bf16.mxu0 %v2616_v1  ;;  %v1548_v50 = vsel %vm2776_vm7, %v1543_v37, %v1547_v34 }
  0x74   : > { %v1519_v32 = vrot.slane %v1517_v20, 7  ;;  %v1562_v51 = vsel %vm2776_vm7, %v1557_v38, %v1561_v40 }
  0x75   : > { %2454 = vmatpush3.bf16.msra.mxu1 %v2571_v53  ;;  %v1581_v57 = vcombine.low %v1548_v50, %v1562_v51 }
  0x76   : > { %2436 = vmatpush3.bf16.msra.mxu0 %v2572_v28  ;;  %2455 = vmatprep.subr.bf16.mxu1 %v2616_v1  ;;  %v1362_v28 = vrot.slane %v1354_v15, %v2744_v39  ;;  %v1520_v48 = vsel %vm2776_vm7, %v1515_v31, %v1519_v32  ;;  %v2588_v15 = vld [vmem:[%s3182_s1 + $0x218] sm:$0xff]  }
  0x77   : > { %2437 = vmatprep.subr.bf16.mxu0 %v2616_v1  ;;  %v1595_v2 = vrot.slane %v1581_v57, %v2744_v39 }
  0x78   : > { %v1370_v41 = vcombine.low %v1362_v28, %v1369_v29  ;;  %v2590_v28 = vld [vmem:[%s3182_s1 + $0x208] sm:$0xff]  }
  0x79   : > { %2456 = vmatpush3.bf16.msra.mxu1 %v2573_v9 }
  0x7a   : > { %2438 = vmatpush3.bf16.msra.mxu0 %v2574_v36  ;;  %2457 = vmatprep.subr.bf16.mxu1 %v2616_v1  ;;  %v1529_v36 = vrot.slane %v1528_v24, 2 }
  0x7b   : > { %2439 = vmatprep.subr.bf16.mxu0 %v2616_v1 }
  0x7c   : > { %v1534_v49 = vsel %vm2776_vm7, %v1529_v36, %v1533_v33  ;;  %v1990_v36 = vld [vmem:[%s3183_s2] ss:$0 sm:$0xff] }
  0x7d   : > { %2458 = vmatpush3.bf16.msra.mxu1 %v2575_v23  ;;  %v1580_v56 = vcombine.low %v1520_v48, %v1534_v49 }
  0x7e   : > { %2440 = vmatpush3.bf16.msra.mxu0 %v2576_v44  ;;  %2459 = vmatprep.subr.bf16.mxu1 %v2616_v1  ;;  %v2196_v44 = vld [vmem:[%s2711_s16 + $0xc] sm:$0x6]  ;;  %s192_s16 = scalar_lea.vmem %s3184_s3, %s2229_s5 }
  0x7f   : > { %2441 = vmatprep.subr.bf16.mxu0 %v2616_v1  ;;  %v1694_v53 = vmax.bf16 %v2618_v17, %v2196_v44  ;;  %v2586_v17 = vld [vmem:[%s3182_s1 + $0x228] sm:$0xff]   ;;  %v1588_v0 = vrot.slane %v1580_v56, %v2744_v39 }
  0x81   : > { %2460 = vmatpush3.bf16.msra.mxu1 %v2577_v35  ;;  %v1715_v60 = vrot.slane %v1694_v53, %v2744_v39  ;;  %v1596_v9 = vcombine.low %v1588_v0, %v1595_v2 }
  0x82   : > { %2442 = vmatpush3.bf16.msra.mxu0 %v2578_v63  ;;  %2461 = vmatprep.subr.bf16.mxu1 %v2616_v1  ;;  %v1731_v63 = vrot.slane %v1696_v10, %v2744_v39 }
  0x83   : > { %2443 = vmatprep.subr.bf16.mxu0 %v2616_v1  ;;  %v1716_v5 = vcombine.high %v1715_v60, %v1715_v60  ;;  %v2200_v13 = vrot.slane %v1715_v60, 9 }
  0x84   : > { %v1732_v8 = vcombine.high %v1731_v63, %v1731_v63  ;;  %v2202_v19 = vrot.slane %v1731_v63, 9 }
  0x85   : > { %2462 = vmatpush3.bf16.msra.mxu1 %v2579_v47  ;;  %v1739_v14 = vrot.slane %v1716_v5, 7 }
  0x86   : > { %2444 = vmatpush3.bf16.msra.mxu0 %v2580_v18  ;;  %2463 = vmatprep.subr.bf16.mxu1 %v2616_v1  ;;  %v1743_v18 = vrot.slane %v1724_v7, 7  ;;  %v1747_v20 = vrot.slane %v1732_v8, 7 }
  0x87   : > { %2445 = vmatprep.subr.bf16.mxu0 %v2616_v1  ;;  %v1740_v23 = vsel %vm2831_vm14, %v2200_v13, %v1739_v14 }
  0x88   : > { %v1744_v24 = vsel %vm2831_vm14, %v2201_v16, %v1743_v18  ;;  %v1748_v25 = vsel %vm2831_vm14, %v2202_v19, %v1747_v20  ;;  %v1766_v26 = vcombine.low %v1736_v22, %v1740_v23 }
  0x89   : > { %2464 = vmatpush3.bf16.msra.mxu1 %v2581_v58  ;;  %v1767_v27 = vcombine.low %v1744_v24, %v1748_v25 }
  0x8a   : > { %2446 = vmatpush3.bf16.msra.mxu0 %v2582_v30  ;;  %2465 = vmatprep.subr.bf16.mxu1 %v2616_v1  ;;  %v1774_v29 = vrot.slane %v1766_v26, %v2744_v39 }
  0x8b   : > { %2471 = vmatprep.subr.bf16.mxu0 %v2616_v1  ;;  %v1781_v30 = vrot.slane %v1767_v27, %v2744_v39 }
  0x8d   : > { %2448 = vmatmul.mubr.bf16.vlgmr.msra.gmra.mxu0 %v1370_v41  ;;  %2466 = vmatpush3.bf16.msra.mxu1 %v2583_v3  ;;  %v1782_v31 = vcombine.low %v1774_v29, %v1781_v30 }
  0x8e   : > { %2472 = vmatpush3.bf16.msra.mxu0 %v2584_v42  ;;  %2487 = vmatprep.mubr.msk.bf16.mxu0 %vm2617_vm0, %v2616_v1 }
  0x8f   : > { %2473 = vmatprep.subr.bf16.mxu0 %v2616_v1 }
  0x90   : > { %2468 = vmatmul.mubr.bf16.vlgmr.msra.gmra.mxu1 %v1596_v9 }
  0x92   : > { %2474 = vmatpush3.bf16.msra.mxu0 %v2585_v54 }
  0x93   : > { %2475 = vmatprep.subr.bf16.mxu0 %v2616_v1 }
  0x96   : > { %2476 = vmatpush3.bf16.msra.mxu0 %v2586_v17 }
  0x97   : > { %2477 = vmatprep.subr.bf16.mxu0 %v2616_v1 }
  0x9a   : > { %2478 = vmatpush3.bf16.msra.mxu0 %v2587_v6 }
  0x9b   : > { %2479 = vmatprep.subr.bf16.mxu0 %v2616_v1 }
  0x9e   : > { %2480 = vmatpush3.bf16.msra.mxu0 %v2588_v15 }
  0x9f   : > { %2481 = vmatprep.subr.bf16.mxu0 %v2616_v1 }
  0xa2   : > { %2482 = vmatpush3.bf16.msra.mxu0 %v2589_v21 }
  0xa3   : > { %2483 = vmatprep.subr.bf16.mxu0 %v2616_v1 }
  0xa6   : > { %2484 = vmatpush3.bf16.msra.mxu0 %v2590_v28 }
  0xa7   : > { %2485 = vmatprep.subr.bf16.mxu0 %v2616_v1 }
  0xaa   : > { %2486 = vmatpush3.bf16.msra.mxu0 %v2591_v61 }
  0xad   : > { %2488 = vmatmul.mubr.bf16.vlgmr.msra.gmra.mxu0 %v1782_v31 }
  0xed   : > { %v334_v32 = vpop.f32.mrf.mxu0 }
  0xee   : > { %v341_v37 = vadd.f32 %v1990_v36, %v334_v32 }
  0xef   : > { %v2329_v33 = vpop.f32.mrf.mxu0 }
  0xf0   : > { %v567_v39 = vpop.f32.mrf.mxu1 }
  0xf1   : > { %v337_v34 = vpop.f32.mrf.mxu0  ;;  %v574_v38 = vadd.f32 %v567_v39, %v341_v37 }
  0xf2   : > { %v342_v40 = vadd.f32 %v1990_v36, %v337_v34  ;;  %v2349_v41 = vpop.f32.mrf.mxu1 }
  0xf3   : > { %v2330_v35 = vpop.f32.mrf.mxu0 }
  0xf4   : > { %v570_v42 = vpop.f32.mrf.mxu1 }
  0xf5   : > { %v575_v43 = vadd.f32 %v570_v42, %v342_v40 }
  0xf6   : > { %v2350_v44 = vpop.f32.mrf.mxu1 }
 0x10d   : > { %v760_v1 = vpop.f32.mrf.mxu0 }
 0x10e   : > { %v767_v45 = vadd.f32 %v760_v1, %v574_v38 }
 0x10f   : > { %v2369_v46 = vpop.f32.mrf.mxu0 }
 0x110   : > { %v901_v50 = vpop.f32.mrf.mxu1 }
 0x111   : > { %v763_v47 = vpop.f32.mrf.mxu0  ;;  %v908_v51 = vadd.f32 %v901_v50, %v767_v45 }
 0x112   : > { %v768_v48 = vadd.f32 %v763_v47, %v575_v43  ;;  %v2389_v52 = vpop.f32.mrf.mxu1 }
 0x113   : > { %v2370_v49 = vpop.f32.mrf.mxu0 }
 0x114   : > { %v904_v53 = vpop.f32.mrf.mxu1 }
 0x115   : > { %v909_v54 = vadd.f32 %v904_v53, %v768_v48 }
 0x116   : > { %v2390_v55 = vpop.f32.mrf.mxu1 }
 0x12d   : > { %v1127_v10 = vpop.f32.mrf.mxu0 }
 0x12e   : > { %v1134_v8 = vadd.f32 %v1127_v10, %v908_v51 }
 0x12f   : > { %v2409_v56 = vpop.f32.mrf.mxu0 }
 0x130   : > { %v1313_v59 = vpop.f32.mrf.mxu1 }
 0x131   : > { %v1130_v57 = vpop.f32.mrf.mxu0  ;;  %v1320_v9 = vadd.f32 %v1313_v59, %v1134_v8 }
 0x132   : > { %v2429_v60 = vpop.f32.mrf.mxu1  ;;  %v1135_v11 = vadd.f32 %v1130_v57, %v909_v54 }
 0x133   : > { %v2410_v58 = vpop.f32.mrf.mxu0 }
 0x134   : > { %v1316_v17 = vpop.f32.mrf.mxu1 }
 0x135   : > { %v1321_v13 = vadd.f32 %v1316_v17, %v1135_v11 }
 0x136   : > { %v2430_v62 = vpop.f32.mrf.mxu1 }
 0x14d   : > { %v1454_v63 = vpop.f32.mrf.mxu0 }
 0x14e   : > { %v1461_v12 = vadd.f32 %v1454_v63, %v1320_v9 }
 0x14f   : > { %v2449_v0 = vpop.f32.mrf.mxu0 }
 0x150   : > { %v1680_v4 = vpop.f32.mrf.mxu1 }
 0x151   : > { %v1457_v2 = vpop.f32.mrf.mxu0  ;;  %v1687_v14 = vadd.f32 %v1680_v4, %v1461_v12 }
 0x152   : > { %v2469_v5 = vpop.f32.mrf.mxu1  ;;  %v1462_v15 = vadd.f32 %v1457_v2, %v1321_v13 }
 0x153   : > { %v2450_v3 = vpop.f32.mrf.mxu0 }
 0x154   : > { %v1683_v6 = vpop.f32.mrf.mxu1 }
 0x155   : > { %v1688_v20 = vadd.f32 %v1683_v6, %v1462_v15 }
 0x156   : > { %v2470_v7 = vpop.f32.mrf.mxu1 }
 0x16d   : > { %v1866_v16 = vpop.f32.mrf.mxu0 }
 0x16e   : > { %v1873_v18 = vadd.f32 %v1866_v16, %v1687_v14 }
 0x16f   : > { %v2489_v19 = vpop.f32.mrf.mxu0 }
 0x170   : > { %v1875_v21 = vmax.f32 %v1873_v18, 0.0 }
 0x171   : > { %v1869_v22 = vpop.f32.mrf.mxu0 }
 0x172   : > { %v1879_v23 = vcombine.high %v1875_v21, %v1875_v21  ;;  %v1883_v24 = vpack.c.bf16 %v1875_v21, %v1875_v21  ;;  %v1874_v25 = vadd.f32 %v1869_v22, %v1688_v20 }
 0x173   : > { %v2490_v26 = vpop.f32.mrf.mxu0 }
 0x174   : > { %v1884_v27 = vpack.c.bf16 %v1879_v23, %v1879_v23  ;;  %1887 = vst [vmem:[%s192_s16] sm:$0x3] %v1883_v24  ;;  %v1876_v28 = vmax.f32 %v1874_v25, 0.0 }
 0x176   : > { %1888 = vst [vmem:[%s192_s16 + $0x2] sm:$0x3] %v1884_v27  ;;  %v1880_v29 = vcombine.high %v1876_v28, %v1876_v28  ;;  %v1885_v30 = vpack.c.bf16 %v1876_v28, %v1876_v28 }
 0x178   : > { %v1886_v61 = vpack.c.bf16 %v1880_v29, %v1880_v29  ;;  %1889 = vst [vmem:[%s192_s16 + $0x4] sm:$0x3] %v1885_v30 }
 0x17a   : > { %1890 = vst [vmem:[%s192_s16 + $0x6] sm:$0x3] %v1886_v61 }
 0x17b PF: > { %s13_s14 = sadd.s32 1, %s2614_s14   ;;  %s3193_s12 = smov %s2610_s13 }
 0x17c   : > { %p10_p5 = scmp.ge.s32.totalorder %s13_s14, 4   ;;  %s3194_s13 = smov %s3196_s15 }
 0x17e   :  { %12 = sbr.rel (!%p10_p5) target bundleno = 2 (0x2), region = 73 }

// kernel: discriminator_forward.18
= control target key start
LH: loop header
LB: loop body
LE: loop exit
PB: predicated region body
PF: predicated region fallthrough
CT: control target
= control target key end

     0   :  { %s2743_s15 = smov 0   ;;  %s2745_s16 = smov 0   ;;  %s3225_s0 = inlined_call_operand.vmem [shape: bf16[2,6,6,128], index: 0, kind: input, shape index: {}]   ;;  %s3226_s1 = inlined_call_operand.vmem [shape: bf16[3,3,128,128], index: 1, kind: input, shape index: {}]   ;;  %s3227_s2 = inlined_call_operand.vmem [shape: f32[1,128], index: 2, kind: input, shape index: {}]   ;;  %s3228_s3 = inlined_call_operand.vmem [shape: bf16[2,4,4,128], index: 3, kind: input, shape index: {}]   ;;  %s3229_s4 = inlined_call_operand.vmem [shape: bf16[2,4,4,128], index: 4, kind: output, shape index: {}]  }
   0x1   :  { %s2747_s17 = smov 0  }
   0x2 LB: > { %s26_s18 = sadd.s32 1, %s2709_s16  ;;  %p2047_p0 = scmp.ge.s32.totalorder %s2713_s17, 1  ;;  %s2713_s17 = sphi %s2747_s17, %s14_s17   ;;  %s2709_s16 = sphi %s2745_s16, %s3239_s16   ;;  %s2705_s15 = sphi %s2743_s15, %s3238_s15  }
   0x3   : > { %p28_p1 = scmp.ge.s32.totalorder %s26_s18, 2  ;;  %p193_p2 = scmp.lt.s32.totalorder %s2713_s17, 3 }
   0x5   : > { %s3241_s18 = smov (%p28_p1, %s26_s18), 0  ;;  %p194_p3 = pnand %p2047_p0, %p193_p2 }
   0x6   : > { %p232_p4 = scmp.lt.s32.totalorder (!%p194_p3), %s2705_s15, 1 }
   0x7   : > { %197 = sbr.rel (%p194_p3) target bundleno = 379 (0x17b), region = 36 }
   0xc   : > { %v2607_v0 = vld [vmem:[%s3226_s1 + $0x38] sm:$0xff]   ;;  %v2715_v1 = vmov 0.0   ;;  %v2609_v3 = vld [vmem:[%s3226_s1 + $0x30] sm:$0xff]   ;;  %vm2716_vm0 = vmmov 0   ;;  %v2611_v5 = vld [vmem:[%s3226_s1 + $0x28] sm:$0xff]   ;;  %s3243_s15 = smov (!%p232_p4, %s2705_s15), 1  ;;  %v298_v9 = vlaneseq }
   0xd   : > { %2399 = vmatprep.subr.bf16.mxu0 %v2715_v1  ;;  %2419 = vmatprep.subr.bf16.mxu1 %v2715_v1  ;;  %v2608_v2 = vld [vmem:[%s3226_s1 + $0x78] sm:$0xff]   ;;  %v2610_v4 = vld [vmem:[%s3226_s1 + $0x70] sm:$0xff]   ;;  %v2612_v6 = vld [vmem:[%s3226_s1 + $0x68] sm:$0xff]   ;;  %s2579_s9 = smul.u32 24, %s3243_s15  ;;  %v2717_v17 = vmov 1983009808  }
   0xe   : > { %2400 = vmatpush3.bf16.msra.mxu0 %v2607_v0  ;;  %2415 = vmatprep.mubr.msk.bf16.mxu0 %vm2716_vm0, %v2715_v1  ;;  %v2613_v7 = vld [vmem:[%s3226_s1 + $0x20] sm:$0xff]   ;;  %v2615_v10 = vld [vmem:[%s3226_s1 + $0x18] sm:$0xff]   ;;  %v2617_v12 = vld [vmem:[%s3226_s1 + $0x10] sm:$0xff]   ;;  %v299_v14 = vshrl.u32 %v298_v9, 7  ;;  %v296_v18 = vunpack.c.l.s4 %v2717_v17  ;;  %vm442_vm1 = vsmask.f32 1280 }
   0xf   : > { %2420 = vmatpush3.bf16.msra.mxu1 %v2608_v2  ;;  %2401 = vmatprep.subr.bf16.mxu0 %v2715_v1  ;;  %v2614_v8 = vld [vmem:[%s3226_s1 + $0x60] sm:$0xff]   ;;  %v2616_v11 = vld [vmem:[%s3226_s1 + $0x58] sm:$0xff]   ;;  %s2814_s20 = scalar_lea.vmem %s3225_s0, %s2579_s9  ;;  %v2618_v13 = vld [vmem:[%s3226_s1 + $0x50] sm:$0xff]   ;;  %vm443_vm2 = vsmask.f32 3336  ;;  %vm671_vm8 = vcmask 1040384  }
  0x10   : > { %2421 = vmatprep.subr.bf16.mxu1 %v2715_v1  ;;  %2435 = vmatprep.mubr.msk.bf16.mxu1 %vm2716_vm0, %v2715_v1  ;;  %v2825_v15 = vld.sshfl [vmem:[%s2814_s20] sm:$0xf pattern:$0x76325410]  ;;  %v2619_v20 = vld [vmem:[%s3226_s1 + $0x8] sm:$0xff]   ;;  %v297_v23 = vunpack.c.0.s8 %v296_v18  ;;  %vm444_vm4 = vmor %vm442_vm1, %vm443_vm2  ;;  %vm672_vm9 = vcmask 1042434  }
  0x11   : > { %v2828_v16 = vld.sshfl [vmem:[%s2814_s20 + $0x8] sm:$0xf pattern:$0x76325410]  ;;  %vm445_vm3 = vsmask.f32 5392  ;;  %vm673_vm10 = vmor %vm671_vm8, %vm672_vm9 }
  0x12   : > { %2402 = vmatpush3.bf16.msra.mxu0 %v2609_v3  ;;  %v2062_v19 = vld.sshfl [vmem:[%s2814_s20] sm:$0x13 pattern:$0x76325410]  ;;  %v2620_v28 = vld [vmem:[%s3226_s1 + $0x48] sm:$0xff]   ;;  %v2842_v29 = vsub.s32 %v297_v23, %v299_v14  ;;  %vm2849_vm6 = vmor %vm444_vm4, %vm445_vm3  ;;  %v309_v45 = vcombine.low %v2825_v15, %v2828_v16  ;;  %vm674_vm11 = vcmask 1044484  }
  0x13   : > { %2422 = vmatpush3.bf16.msra.mxu1 %v2610_v4  ;;  %2403 = vmatprep.subr.bf16.mxu0 %v2715_v1  ;;  %v2063_v21 = vld.sshfl [vmem:[%s2814_s20 + $0x4] sm:$0x13 pattern:$0x76325410]  ;;  %v417_v22 = vcombine.high %v2062_v19, %v2062_v19  ;;  %vm447_vm5 = vsmask.f32 7448  ;;  %vm2916_vm12 = vmor %vm673_vm10, %vm674_vm11 }
  0x14   : > { %2423 = vmatprep.subr.bf16.mxu1 %v2715_v1  ;;  %v2064_v24 = vld.sshfl [vmem:[%s2814_s20 + $0x8] sm:$0x13 pattern:$0x76325410]  ;;  %v425_v25 = vcombine.high %v2063_v21, %v2063_v21  ;;  %v450_v31 = vshrl.u32 %v2062_v19, 16  ;;  %v2621_v32 = vld [vmem:[%s3226_s1] sm:$0xff]   ;;  %vm2863_vm7 = vmor %vm2849_vm6, %vm447_vm5 }
  0x15   : > { %v2065_v26 = vld.sshfl [vmem:[%s2814_s20 + $0xc] sm:$0x13 pattern:$0x76325410]  ;;  %v433_v27 = vcombine.high %v2064_v24, %v2064_v24  ;;  %v453_v33 = vshll.u32 %v2062_v19, 16  ;;  %v459_v34 = vshll.u32 %v417_v22, 16 }
  0x16   : > { %2404 = vmatpush3.bf16.msra.mxu0 %v2611_v5  ;;  %v441_v30 = vcombine.high %v2065_v26, %v2065_v26  ;;  %v464_v35 = vshrl.u32 %v2063_v21, 16  ;;  %v467_v36 = vshll.u32 %v2063_v21, 16  ;;  %v452_v37 = vrot.slane %v450_v31, 6  ;;  %v2622_v44 = vld [vmem:[%s3226_s1 + $0x40] sm:$0xff]   ;;  %v2625_v58 = vld [vmem:[%s3226_s1 + $0xb8] sm:$0xff]   ;;  %v2629_v14 = vld [vmem:[%s3226_s1 + $0xa8] sm:$0xff]  }
  0x17   : > { %2424 = vmatpush3.bf16.msra.mxu1 %v2612_v6  ;;  %2405 = vmatprep.subr.bf16.mxu0 %v2715_v1  ;;  %v473_v38 = vshll.u32 %v425_v25, 16  ;;  %v455_v40 = vrot.slane %v453_v33, 7  ;;  %v461_v41 = vrot.slane %v459_v34, 7  ;;  %v478_v47 = vshrl.u32 %v2064_v24, 16  ;;  %v2626_v16 = vld [vmem:[%s3226_s1 + $0xf8] sm:$0xff]   ;;  %v2631_v17 = vld [vmem:[%s3226_s1 + $0xa0] sm:$0xff]  }
  0x18   : > { %2425 = vmatprep.subr.bf16.mxu1 %v2715_v1  ;;  %v466_v42 = vrot.slane %v464_v35, 6  ;;  %v469_v43 = vrot.slane %v467_v36, 7  ;;  %v481_v48 = vshll.u32 %v2064_v24, 16  ;;  %v487_v51 = vshll.u32 %v433_v27, 16  ;;  %v2633_v24 = vld [vmem:[%s3226_s1 + $0x98] sm:$0xff]   ;;  %v2630_v39 = vld [vmem:[%s3226_s1 + $0xe8] sm:$0xff]  }
  0x19   : > { %v475_v46 = vrot.slane %v473_v38, 7  ;;  %v456_v49 = vor.u32 %v455_v40, %v452_v37  ;;  %v492_v52 = vshrl.u32 %v2065_v26, 16  ;;  %v480_v54 = vrot.slane %v478_v47, 6  ;;  %v2635_v40 = vld [vmem:[%s3226_s1 + $0x90] sm:$0xff]   ;;  %s2316_s14 = sshll.u32 %s3243_s15, 3 }
  0x1a   : > { %2406 = vmatpush3.bf16.msra.mxu0 %v2613_v7  ;;  %v470_v50 = vor.u32 %v469_v43, %v466_v42  ;;  %v483_v55 = vrot.slane %v481_v48, 7  ;;  %v495_v56 = vshll.u32 %v2065_v26, 16  ;;  %v501_v57 = vshll.u32 %v441_v30, 16  ;;  %s245_s22 = scalar_lea.vmem %s3228_s3, %s2316_s14  ;;  %s255_s24 = scalar_lea.vmem %s3229_s4, %s2316_s14 }
  0x1b   : > { %2426 = vmatpush3.bf16.msra.mxu1 %v2614_v8  ;;  %2407 = vmatprep.subr.bf16.mxu0 %v2715_v1  ;;  %v457_v59 = vrot.slane %v456_v49, 2  ;;  %v494_v61 = vrot.slane %v492_v52, 6  ;;  %v489_v63 = vrot.slane %v487_v51, 7  ;;  %v2627_v8 = vld [vmem:[%s3226_s1 + $0xb0] sm:$0xff]   ;;  %vm676_vm13 = vcmask 1046534   ;;  %v2637_v49 = vld [vmem:[%s3226_s1 + $0x88] sm:$0xff]  }
  0x1c   : > { %2427 = vmatprep.subr.bf16.mxu1 %v2715_v1  ;;  %v471_v60 = vrot.slane %v470_v50, 2  ;;  %v484_v62 = vor.u32 %v483_v55, %v480_v54  ;;  %v497_v0 = vrot.slane %v495_v56, 7  ;;  %v503_v6 = vrot.slane %v501_v57, 7  ;;  %vm2931_vm14 = vmor %vm2916_vm12, %vm676_vm13  ;;  %v2634_v50 = vld [vmem:[%s3226_s1 + $0xd8] sm:$0xff]   ;;  %v2639_v54 = vld [vmem:[%s3226_s1 + $0x80] sm:$0xff]  }
  0x1d   : > { %v462_v2 = vsel %vm2863_vm7, %v457_v59, %v461_v41  ;;  %v2090_v19 = vld.sshfl [vmem:[%s2814_s20] sm:$0x12 pattern:$0x76325410]  ;;  %v2636_v55 = vld [vmem:[%s3226_s1 + $0xd0] sm:$0xff]   ;;  %v2641_v57 = vld [vmem:[%s3226_s1 + $0x138] sm:$0xff]  }
  0x1e   : > { %2408 = vmatpush3.bf16.msra.mxu0 %v2615_v10  ;;  %v2875_v3 = vsel %vm2863_vm7, %v471_v60, %v475_v46  ;;  %v485_v4 = vrot.slane %v484_v62, 2  ;;  %v498_v5 = vor.u32 %v497_v0, %v494_v61  ;;  %v2091_v21 = vld.sshfl [vmem:[%s2814_s20 + $0x4] sm:$0x12 pattern:$0x76325410]  ;;  %v646_v22 = vcombine.high %v2090_v19, %v2090_v19  ;;  %v2638_v61 = vld [vmem:[%s3226_s1 + $0xc8] sm:$0xff]  }
  0x1f   : > { %2428 = vmatpush3.bf16.msra.mxu1 %v2616_v11  ;;  %2409 = vmatprep.subr.bf16.mxu0 %v2715_v1  ;;  %v522_v7 = vcombine.low %v462_v2, %v2875_v3  ;;  %v2092_v25 = vld.sshfl [vmem:[%s2814_s20 + $0x8] sm:$0x12 pattern:$0x76325410]  ;;  %v654_v26 = vcombine.high %v2091_v21, %v2091_v21  ;;  %v2094_v27 = vrot.slane %v2090_v19, 9  ;;  %v2632_v46 = vld [vmem:[%s3226_s1 + $0xe0] sm:$0xff]  }
  0x20   : > { %2429 = vmatprep.subr.bf16.mxu1 %v2715_v1  ;;  %v2886_v9 = vsel %vm2863_vm7, %v485_v4, %v489_v63  ;;  %v499_v10 = vrot.slane %v498_v5, 2  ;;  %v2093_v30 = vld.sshfl [vmem:[%s2814_s20 + $0xc] sm:$0x12 pattern:$0x76325410]  ;;  %v662_v31 = vcombine.high %v2092_v25, %v2092_v25  ;;  %v2096_v33 = vrot.slane %v2092_v25, 9 }
  0x21   : > { %v670_v34 = vcombine.high %v2093_v30, %v2093_v30  ;;  %v684_v36 = vrot.slane %v654_v26, 7  ;;  %v2097_v37 = vrot.slane %v2093_v30, 9  ;;  %v2687_v59 = vld.sshfl [vmem:[%s2814_s20 + $0x4] sm:$0xf pattern:$0x76325410] }
  0x22   : > { %2410 = vmatpush3.bf16.msra.mxu0 %v2617_v12  ;;  %v2891_v11 = vsel %vm2863_vm7, %v499_v10, %v503_v6  ;;  %v688_v38 = vrot.slane %v662_v31, 7  ;;  %v2688_v60 = vld.sshfl [vmem:[%s2814_s20 + $0xc] sm:$0xf pattern:$0x76325410]  ;;  %v2640_v2 = vld [vmem:[%s3226_s1 + $0xc0] sm:$0xff]  }
  0x23   : > { %2430 = vmatpush3.bf16.msra.mxu1 %v2618_v13  ;;  %2411 = vmatprep.subr.bf16.mxu0 %v2715_v1  ;;  %v523_v12 = vcombine.low %v2886_v9, %v2891_v11  ;;  %v530_v13 = vrot.slane %v522_v7, %v2842_v29  ;;  %v692_v41 = vrot.slane %v670_v34, 7  ;;  %v2645_v62 = vld [vmem:[%s3226_s1 + $0x130] sm:$0xff]   ;;  %v2647_v4 = vld [vmem:[%s3226_s1 + $0x128] sm:$0xff]   ;;  %v2644_v10 = vld [vmem:[%s3226_s1 + $0x178] sm:$0xff]  }
  0x24   : > { %2431 = vmatprep.subr.bf16.mxu1 %v2715_v1  ;;  %v2253_v26 = vld.sshfl [vmem:[%s2814_s20 + $0x14] sm:$0x13 pattern:$0x76325410] }
  0x25   : > { %v2901_v15 = vrot.slane %v523_v12, %v2842_v29  ;;  %v2649_v12 = vld [vmem:[%s3226_s1 + $0x120] sm:$0xff]   ;;  %v1537_v31 = vcombine.high %v2253_v26, %v2253_v26 }
  0x26   : > { %2412 = vmatpush3.bf16.msra.mxu0 %v2619_v20  ;;  %v2628_v20 = vld [vmem:[%s3226_s1 + $0xf0] sm:$0xff]  }
  0x27   : > { %2432 = vmatpush3.bf16.msra.mxu1 %v2620_v28  ;;  %2413 = vmatprep.subr.bf16.mxu0 %v2715_v1  ;;  %v538_v18 = vcombine.low %v530_v13, %v2901_v15  ;;  %v2095_v28 = vrot.slane %v2091_v21, 9  ;;  %v2648_v21 = vld [vmem:[%s3226_s1 + $0x168] sm:$0xff]   ;;  %v1590_v34 = vshll.u32 %v1537_v31, 16  ;;  %v2682_v31 = vld [vmem:[%s3226_s1 + $0x210] sm:$0xff]  }
  0x28   : > { %2433 = vmatprep.subr.bf16.mxu1 %v2715_v1 }
  0x29   : > { %v2947_v43 = vsel %vm2931_vm14, %v2095_v28, %v684_v36  ;;  %v2655_v28 = vld [vmem:[%s3226_s1 + $0x108] sm:$0xff]  }
  0x2a   : > { %2414 = vmatpush3.bf16.msra.mxu0 %v2621_v32  ;;  %v680_v32 = vrot.slane %v646_v22, 7  ;;  %v2653_v22 = vld [vmem:[%s3226_s1 + $0x110] sm:$0xff]  }
  0x2b   : > { %2434 = vmatpush3.bf16.msra.mxu1 %v2622_v44  ;;  %2439 = vmatprep.subr.bf16.mxu0 %v2715_v1  ;;  %v2951_v44 = vsel %vm2931_vm14, %v2096_v33, %v688_v38  ;;  %v1584_v33 = vshll.u32 %v2253_v26, 16  ;;  %v2652_v38 = vld [vmem:[%s3226_s1 + $0x158] sm:$0xff]  }
  0x2c   : > { %2459 = vmatprep.subr.bf16.mxu1 %v2715_v1  ;;  %v681_v42 = vsel %vm2931_vm14, %v2094_v27, %v680_v32  ;;  %v2650_v27 = vld [vmem:[%s3226_s1 + $0x160] sm:$0xff]   ;;  %v1581_v32 = vshrl.u32 %v2253_v26, 16 }
  0x2d   : > { %2416 = vmatmul.mubr.bf16.vlgmr.msra.gmra.mxu0 %v309_v45  ;;  %v2955_v45 = vsel %vm2931_vm14, %v2097_v37, %v692_v41  ;;  %v711_v47 = vcombine.low %v681_v42, %v2947_v43  ;;  %v1592_v41 = vrot.slane %v1590_v34, 7  ;;  %v2657_v42 = vld [vmem:[%s3226_s1 + $0x100] sm:$0xff]  }
  0x2e   : > { %2440 = vmatpush3.bf16.msra.mxu0 %v2625_v58  ;;  %2455 = vmatprep.mubr.msk.bf16.mxu0 %vm2716_vm0, %v2715_v1  ;;  %v712_v48 = vcombine.low %v2951_v44, %v2955_v45  ;;  %v2157_v58 = vld.sshfl [vmem:[%s2814_s20 + $0x10] sm:$0x13 pattern:$0x76325410]  ;;  %v2674_v26 = vld [vmem:[%s3226_s1 + $0x1c0] sm:$0xff]  }
  0x2f   : > { %2441 = vmatprep.subr.bf16.mxu0 %v2715_v1  ;;  %2436 = vmatmul.mubr.bf16.vlgmr.msra.gmra.mxu1 %v538_v18  ;;  %v719_v51 = vrot.slane %v711_v47, %v2842_v29  ;;  %v1040_v63 = vshrl.u32 %v2157_v58, 16  ;;  %v1043_v0 = vshll.u32 %v2157_v58, 16  ;;  %v996_v5 = vcombine.high %v2157_v58, %v2157_v58  ;;  %v2053_v34 = vld [vmem:[%s3227_s2] ss:$0 sm:$0xff] }
  0x30   : > { %2460 = vmatpush3.bf16.msra.mxu1 %v2626_v16  ;;  %2475 = vmatprep.mubr.msk.bf16.mxu1 %vm2716_vm0, %v2715_v1  ;;  %v2974_v52 = vrot.slane %v712_v48, %v2842_v29  ;;  %v2646_v16 = vld [vmem:[%s3226_s1 + $0x170] sm:$0xff]  }
  0x31   : > { %2461 = vmatprep.subr.bf16.mxu1 %v2715_v1  ;;  %v1042_v6 = vrot.slane %v1040_v63, 6  ;;  %v1045_v7 = vrot.slane %v1043_v0, 7  ;;  %v2285_v48 = vld.sshfl [vmem:[%s2814_s20 + $0x14] sm:$0x12 pattern:$0x76325410] }
  0x32   : > { %2442 = vmatpush3.bf16.msra.mxu0 %v2627_v8  ;;  %v727_v56 = vcombine.low %v719_v51, %v2974_v52  ;;  %v864_v8 = vcombine.low %v2687_v59, %v2688_v60  ;;  %v1252_v59 = vcombine.low %v2947_v43, %v2951_v44  ;;  %v2661_v43 = vld [vmem:[%s3226_s1 + $0x1b0] sm:$0xff]  }
  0x33   : > { %2443 = vmatprep.subr.bf16.mxu0 %v2715_v1  ;;  %v1046_v13 = vor.u32 %v1045_v7, %v1042_v6  ;;  %v2665_v7 = vld [vmem:[%s3226_s1 + $0x1a0] sm:$0xff]  }
  0x34   : > { %2462 = vmatpush3.bf16.msra.mxu1 %v2628_v20  ;;  %v2189_v20 = vld.sshfl [vmem:[%s2814_s20 + $0x10] sm:$0x12 pattern:$0x76325410]  ;;  %v1260_v63 = vrot.slane %v1252_v59, %v2842_v29 }
  0x35   : > { %2463 = vmatprep.subr.bf16.mxu1 %v2715_v1  ;;  %v1047_v18 = vrot.slane %v1046_v13, 2  ;;  %v1218_v25 = vcombine.high %v2189_v20, %v2189_v20  ;;  %v2193_v36 = vrot.slane %v2189_v20, 9  ;;  %v2669_v13 = vld [vmem:[%s3226_s1 + $0x190] sm:$0xff]   ;;  %v2673_v20 = vld [vmem:[%s3226_s1 + $0x180] sm:$0xff]  }
  0x36   : > { %2444 = vmatpush3.bf16.msra.mxu0 %v2629_v14  ;;  %v1049_v14 = vshll.u32 %v996_v5, 16 }
  0x37   : > { %2445 = vmatprep.subr.bf16.mxu0 %v2715_v1  ;;  %v1233_v37 = vrot.slane %v1218_v25, 7  ;;  %v2678_v25 = vld [vmem:[%s3226_s1 + $0x230] sm:$0xff]  }
  0x38   : > { %2464 = vmatpush3.bf16.msra.mxu1 %v2630_v39  ;;  %v1051_v19 = vrot.slane %v1049_v14, 7  ;;  %v2666_v14 = vld [vmem:[%s3226_s1 + $0x1e0] sm:$0xff]  }
  0x39   : > { %2465 = vmatprep.subr.bf16.mxu1 %v2715_v1  ;;  %v1234_v47 = vsel %vm2931_vm14, %v2193_v36, %v1233_v37 }
  0x3a   : > { %2446 = vmatpush3.bf16.msra.mxu0 %v2631_v17  ;;  %v2651_v17 = vld [vmem:[%s3226_s1 + $0x118] sm:$0xff]   ;;  %v1052_v23 = vsel %vm2863_vm7, %v1047_v18, %v1051_v19  ;;  %v1253_v60 = vcombine.low %v2955_v45, %v1234_v47  ;;  %v2671_v18 = vld [vmem:[%s3226_s1 + $0x188] sm:$0xff]  }
  0x3b   : > { %2447 = vmatprep.subr.bf16.mxu0 %v2715_v1  ;;  %v1071_v30 = vcombine.low %v2891_v11, %v1052_v23  ;;  %v2668_v19 = vld [vmem:[%s3226_s1 + $0x1d8] sm:$0xff]  }
  0x3c   : > { %2466 = vmatpush3.bf16.msra.mxu1 %v2632_v46  ;;  %v1267_v35 = vrot.slane %v1253_v60, %v2842_v29 }
  0x3d   : > { %2467 = vmatprep.subr.bf16.mxu1 %v2715_v1  ;;  %v1085_v39 = vrot.slane %v1071_v30, %v2842_v29  ;;  %v2681_v30 = vld [vmem:[%s3226_s1 + $0x218] sm:$0xff]  }
  0x3e   : > { %2448 = vmatpush3.bf16.msra.mxu0 %v2633_v24  ;;  %v1070_v24 = vcombine.low %v2875_v3, %v2886_v9  ;;  %v1583_v3 = vrot.slane %v1581_v32, 6  ;;  %v1586_v9 = vrot.slane %v1584_v33, 7  ;;  %v1268_v6 = vcombine.low %v1260_v63, %v1267_v35  ;;  %v2684_v32 = vld [vmem:[%s3226_s1 + $0x200] sm:$0xff]  }
  0x3f   : > { %2449 = vmatprep.subr.bf16.mxu0 %v2715_v1 }
  0x40   : > { %2468 = vmatpush3.bf16.msra.mxu1 %v2634_v50  ;;  %v1078_v11 = vrot.slane %v1070_v24, %v2842_v29  ;;  %v2672_v24 = vld [vmem:[%s3226_s1 + $0x1c8] sm:$0xff]  }
  0x41   : > { %2469 = vmatprep.subr.bf16.mxu1 %v2715_v1 }
  0x42   : > { %2450 = vmatpush3.bf16.msra.mxu0 %v2635_v40  ;;  %v1587_v40 = vor.u32 %v1586_v9, %v1583_v3  ;;  %v1086_v50 = vcombine.low %v1078_v11, %v1085_v39 }
  0x43   : > { %2451 = vmatprep.subr.bf16.mxu0 %v2715_v1 }
  0x44   : > { %2470 = vmatpush3.bf16.msra.mxu1 %v2636_v55  ;;  %v1588_v46 = vrot.slane %v1587_v40, 2  ;;  %v2289_v55 = vrot.slane %v2285_v48, 9 }
  0x45   : > { %2471 = vmatprep.subr.bf16.mxu1 %v2715_v1 }
  0x46   : > { %2452 = vmatpush3.bf16.msra.mxu0 %v2637_v49  ;;  %v2654_v49 = vld [vmem:[%s3226_s1 + $0x150] sm:$0xff]   ;;  %v1593_v51 = vsel %vm2863_vm7, %v1588_v46, %v1592_v41 }
  0x47   : > { %2453 = vmatprep.subr.bf16.mxu0 %v2715_v1 }
  0x48   : > { %2472 = vmatpush3.bf16.msra.mxu1 %v2638_v61  ;;  %v2656_v61 = vld [vmem:[%s3226_s1 + $0x148] sm:$0xff]  }
  0x49   : > { %2473 = vmatprep.subr.bf16.mxu1 %v2715_v1 }
  0x4a   : > { %2454 = vmatpush3.bf16.msra.mxu0 %v2639_v54  ;;  %v1759_v54 = vcombine.high %v2285_v48, %v2285_v48 }
  0x4b   : > { %2479 = vmatprep.subr.bf16.mxu0 %v2715_v1 }
  0x4c   : > { %2474 = vmatpush3.bf16.msra.mxu1 %v2640_v2  ;;  %v1774_v58 = vrot.slane %v1759_v54, 7  ;;  %v2658_v2 = vld [vmem:[%s3226_s1 + $0x140] sm:$0xff]  }
  0x4d   : > { %2456 = vmatmul.mubr.bf16.vlgmr.msra.gmra.mxu0 %v727_v56  ;;  %2499 = vmatprep.subr.bf16.mxu1 %v2715_v1  ;;  %v2659_v56 = vld [vmem:[%s3226_s1 + $0x1b8] sm:$0xff]  }
  0x4e   : > { %2480 = vmatpush3.bf16.msra.mxu0 %v2641_v57  ;;  %2495 = vmatprep.mubr.msk.bf16.mxu0 %vm2716_vm0, %v2715_v1  ;;  %v1612_v57 = vcombine.low %v1052_v23, %v1593_v51  ;;  %v2677_v23 = vld [vmem:[%s3226_s1 + $0x238] sm:$0xff]  }
  0x4f   : > { %2481 = vmatprep.subr.bf16.mxu0 %v2715_v1  ;;  %2476 = vmatmul.mubr.bf16.vlgmr.msra.gmra.mxu1 %v864_v8  ;;  %v2662_v8 = vld [vmem:[%s3226_s1 + $0x1f0] sm:$0xff]  }
  0x50   : > { %2500 = vmatpush3.bf16.msra.mxu1 %v2644_v10  ;;  %2515 = vmatprep.mubr.msk.bf16.mxu1 %vm2716_vm0, %v2715_v1  ;;  %v3079_v53 = vrot.slane %v1612_v57, %v2842_v29  ;;  %v2667_v10 = vld [vmem:[%s3226_s1 + $0x198] sm:$0xff]  }
  0x51   : > { %2501 = vmatprep.subr.bf16.mxu1 %v2715_v1 }
  0x52   : > { %2482 = vmatpush3.bf16.msra.mxu0 %v2645_v62  ;;  %v1775_v62 = vsel %vm2931_vm14, %v2289_v55, %v1774_v58  ;;  %v1627_v44 = vcombine.low %v2901_v15, %v3079_v53  ;;  %v2683_v15 = vld [vmem:[%s3226_s1 + $0x208] sm:$0xff]  }
  0x53   : > { %2483 = vmatprep.subr.bf16.mxu0 %v2715_v1  ;;  %v1794_v45 = vcombine.low %v1234_v47, %v1775_v62 }
  0x54   : > { %2502 = vmatpush3.bf16.msra.mxu1 %v2646_v16  ;;  %v2689_v16 = vld.sshfl [vmem:[%s2814_s20 + $0x8] sm:$0xf pattern:$0x76325410] }
  0x55   : > { %2503 = vmatprep.subr.bf16.mxu1 %v2715_v1  ;;  %v3098_v0 = vrot.slane %v1794_v45, %v2842_v29  ;;  %v2660_v29 = vld [vmem:[%s3226_s1 + $0x1f8] sm:$0xff]  }
  0x56   : > { %2484 = vmatpush3.bf16.msra.mxu0 %v2647_v4  ;;  %v2663_v4 = vld [vmem:[%s3226_s1 + $0x1a8] sm:$0xff]  }
  0x57   : > { %2485 = vmatprep.subr.bf16.mxu0 %v2715_v1  ;;  %v1809_v5 = vcombine.low %v2974_v52, %v3098_v0 }
  0x58   : > { %2504 = vmatpush3.bf16.msra.mxu1 %v2648_v21  ;;  %v2670_v21 = vld [vmem:[%s3226_s1 + $0x1d0] sm:$0xff]  }
  0x59   : > { %2505 = vmatprep.subr.bf16.mxu1 %v2715_v1 }
  0x5a   : > { %2486 = vmatpush3.bf16.msra.mxu0 %v2649_v12  ;;  %v2664_v12 = vld [vmem:[%s3226_s1 + $0x1e8] sm:$0xff]  }
  0x5b   : > { %2487 = vmatprep.subr.bf16.mxu0 %v2715_v1 }
  0x5c   : > { %2506 = vmatpush3.bf16.msra.mxu1 %v2650_v27  ;;  %v2679_v27 = vld [vmem:[%s3226_s1 + $0x228] sm:$0xff]  }
  0x5d   : > { %2507 = vmatprep.subr.bf16.mxu1 %v2715_v1 }
  0x5e   : > { %2488 = vmatpush3.bf16.msra.mxu0 %v2651_v17  ;;  %v2690_v17 = vld.sshfl [vmem:[%s2814_s20 + $0x10] sm:$0xf pattern:$0x76325410] }
  0x5f   : > { %2489 = vmatprep.subr.bf16.mxu0 %v2715_v1 }
  0x60   : > { %2508 = vmatpush3.bf16.msra.mxu1 %v2652_v38 }
  0x61   : > { %2509 = vmatprep.subr.bf16.mxu1 %v2715_v1 }
  0x62   : > { %2490 = vmatpush3.bf16.msra.mxu0 %v2653_v22  ;;  %v1405_v22 = vcombine.low %v2689_v16, %v2690_v17 }
  0x63   : > { %2491 = vmatprep.subr.bf16.mxu0 %v2715_v1 }
  0x64   : > { %2510 = vmatpush3.bf16.msra.mxu1 %v2654_v49 }
  0x65   : > { %2511 = vmatprep.subr.bf16.mxu1 %v2715_v1 }
  0x66   : > { %2492 = vmatpush3.bf16.msra.mxu0 %v2655_v28  ;;  %v2680_v28 = vld [vmem:[%s3226_s1 + $0x220] sm:$0xff]  }
  0x67   : > { %2493 = vmatprep.subr.bf16.mxu0 %v2715_v1 }
  0x68   : > { %2512 = vmatpush3.bf16.msra.mxu1 %v2656_v61 }
  0x69   : > { %2513 = vmatprep.subr.bf16.mxu1 %v2715_v1 }
  0x6a   : > { %2494 = vmatpush3.bf16.msra.mxu0 %v2657_v42 }
  0x6b   : > { %2519 = vmatprep.subr.bf16.mxu0 %v2715_v1 }
  0x6c   : > { %2514 = vmatpush3.bf16.msra.mxu1 %v2658_v2 }
  0x6d   : > { %2496 = vmatmul.mubr.bf16.vlgmr.msra.gmra.mxu0 %v1086_v50  ;;  %2539 = vmatprep.subr.bf16.mxu1 %v2715_v1 }
  0x6e   : > { %2520 = vmatpush3.bf16.msra.mxu0 %v2659_v56  ;;  %2535 = vmatprep.mubr.msk.bf16.mxu0 %vm2716_vm0, %v2715_v1 }
  0x6f   : > { %2521 = vmatprep.subr.bf16.mxu0 %v2715_v1  ;;  %2516 = vmatmul.mubr.bf16.vlgmr.msra.gmra.mxu1 %v1268_v6 }
  0x70   : > { %2540 = vmatpush3.bf16.msra.mxu1 %v2660_v29  ;;  %2555 = vmatprep.mubr.msk.bf16.mxu1 %vm2716_vm0, %v2715_v1 }
  0x71   : > { %2541 = vmatprep.subr.bf16.mxu1 %v2715_v1 }
  0x72   : > { %2522 = vmatpush3.bf16.msra.mxu0 %v2661_v43 }
  0x73   : > { %2523 = vmatprep.subr.bf16.mxu0 %v2715_v1 }
  0x74   : > { %2542 = vmatpush3.bf16.msra.mxu1 %v2662_v8  ;;  %v1902_v8 = vld [vmem:[%s245_s22] sm:$0x3] }
  0x75   : > { %2543 = vmatprep.subr.bf16.mxu1 %v2715_v1 }
  0x76   : > { %2524 = vmatpush3.bf16.msra.mxu0 %v2663_v4 }
  0x77   : > { %2525 = vmatprep.subr.bf16.mxu0 %v2715_v1 }
  0x78   : > { %2544 = vmatpush3.bf16.msra.mxu1 %v2664_v12 }
  0x79   : > { %2545 = vmatprep.subr.bf16.mxu1 %v2715_v1 }
  0x7a   : > { %2526 = vmatpush3.bf16.msra.mxu0 %v2665_v7 }
  0x7b   : > { %2527 = vmatprep.subr.bf16.mxu0 %v2715_v1 }
  0x7c   : > { %2546 = vmatpush3.bf16.msra.mxu1 %v2666_v14  ;;  %v1906_v14 = vunpack.c.l.bf16 %v1902_v8 }
  0x7d   : > { %2547 = vmatprep.subr.bf16.mxu1 %v2715_v1 }
  0x7e   : > { %2528 = vmatpush3.bf16.msra.mxu0 %v2667_v10  ;;  %v1903_v10 = vld [vmem:[%s245_s22 + $0x2] sm:$0x3] }
  0x7f   : > { %2529 = vmatprep.subr.bf16.mxu0 %v2715_v1  ;;  %v1907_v16 = vunpack.c.l.bf16 %v1903_v10 }
  0x80   : > { %2548 = vmatpush3.bf16.msra.mxu1 %v2668_v19  ;;  %v1905_v19 = vld [vmem:[%s245_s22 + $0x6] sm:$0x3] }
  0x81   : > { %2549 = vmatprep.subr.bf16.mxu1 %v2715_v1 }
  0x82   : > { %2530 = vmatpush3.bf16.msra.mxu0 %v2669_v13 }
  0x83   : > { %2531 = vmatprep.subr.bf16.mxu0 %v2715_v1 }
  0x84   : > { %2550 = vmatpush3.bf16.msra.mxu1 %v2670_v21  ;;  %v1914_v21 = vcombine.low %v1906_v14, %v1907_v16 }
  0x85   : > { %2551 = vmatprep.subr.bf16.mxu1 %v2715_v1 }
  0x86   : > { %2532 = vmatpush3.bf16.msra.mxu0 %v2671_v18  ;;  %v1904_v18 = vld [vmem:[%s245_s22 + $0x4] sm:$0x3] }
  0x87   : > { %2533 = vmatprep.subr.bf16.mxu0 %v2715_v1 }
  0x88   : > { %2552 = vmatpush3.bf16.msra.mxu1 %v2672_v24  ;;  %v1908_v24 = vunpack.c.l.bf16 %v1904_v18 }
  0x89   : > { %2553 = vmatprep.subr.bf16.mxu1 %v2715_v1 }
  0x8a   : > { %2534 = vmatpush3.bf16.msra.mxu0 %v2673_v20 }
  0x8b   : > { %2559 = vmatprep.subr.bf16.mxu0 %v2715_v1 }
  0x8c   : > { %2554 = vmatpush3.bf16.msra.mxu1 %v2674_v26 }
  0x8d   : > { %2536 = vmatmul.mubr.bf16.vlgmr.msra.gmra.mxu0 %v1405_v22 }
  0x8e   : > { %2560 = vmatpush3.bf16.msra.mxu0 %v2677_v23  ;;  %2575 = vmatprep.mubr.msk.bf16.mxu0 %vm2716_vm0, %v2715_v1 }
  0x8f   : > { %2561 = vmatprep.subr.bf16.mxu0 %v2715_v1  ;;  %2556 = vmatmul.mubr.bf16.vlgmr.msra.gmra.mxu1 %v1627_v44 }
  0x92   : > { %2562 = vmatpush3.bf16.msra.mxu0 %v2678_v25  ;;  %v1909_v25 = vunpack.c.l.bf16 %v1905_v19 }
  0x93   : > { %2563 = vmatprep.subr.bf16.mxu0 %v2715_v1 }
  0x96   : > { %2564 = vmatpush3.bf16.msra.mxu0 %v2679_v27 }
  0x97   : > { %2565 = vmatprep.subr.bf16.mxu0 %v2715_v1 }
  0x9a   : > { %2566 = vmatpush3.bf16.msra.mxu0 %v2680_v28 }
  0x9b   : > { %2567 = vmatprep.subr.bf16.mxu0 %v2715_v1 }
  0x9e   : > { %2568 = vmatpush3.bf16.msra.mxu0 %v2681_v30 }
  0x9f   : > { %2569 = vmatprep.subr.bf16.mxu0 %v2715_v1 }
  0xa2   : > { %2570 = vmatpush3.bf16.msra.mxu0 %v2682_v31 }
  0xa3   : > { %2571 = vmatprep.subr.bf16.mxu0 %v2715_v1 }
  0xa6   : > { %2572 = vmatpush3.bf16.msra.mxu0 %v2683_v15  ;;  %v1915_v15 = vcombine.low %v1908_v24, %v1909_v25 }
  0xa7   : > { %2573 = vmatprep.subr.bf16.mxu0 %v2715_v1 }
  0xaa   : > { %2574 = vmatpush3.bf16.msra.mxu0 %v2684_v32 }
  0xad   : > { %2576 = vmatmul.mubr.bf16.vlgmr.msra.gmra.mxu0 %v1809_v5 }
  0xed   : > { %v393_v33 = vpop.f32.mrf.mxu0 }
  0xee   : > { %v400_v37 = vadd.f32 %v2053_v34, %v393_v33 }
  0xef   : > { %v2417_v3 = vpop.f32.mrf.mxu0  ;;  %v622_v38 = vpop.f32.mrf.mxu1 }
  0xf0   : > { %v629_v11 = vadd.f32 %v622_v38, %v400_v37 }
  0xf1   : > { %v396_v9 = vpop.f32.mrf.mxu0  ;;  %v2437_v40 = vpop.f32.mrf.mxu1 }
  0xf2   : > { %v401_v39 = vadd.f32 %v2053_v34, %v396_v9 }
  0xf3   : > { %v2418_v36 = vpop.f32.mrf.mxu0  ;;  %v625_v41 = vpop.f32.mrf.mxu1 }
  0xf4   : > { %v630_v1 = vadd.f32 %v625_v41, %v401_v39 }
  0xf5   : > { %v2438_v42 = vpop.f32.mrf.mxu1 }
 0x10d   : > { %v811_v46 = vpop.f32.mrf.mxu0 }
 0x10e   : > { %v818_v47 = vadd.f32 %v811_v46, %v629_v11 }
 0x10f   : > { %v2457_v52 = vpop.f32.mrf.mxu0  ;;  %v948_v51 = vpop.f32.mrf.mxu1 }
 0x110   : > { %v955_v54 = vadd.f32 %v948_v51, %v818_v47 }
 0x111   : > { %v814_v48 = vpop.f32.mrf.mxu0  ;;  %v2477_v55 = vpop.f32.mrf.mxu1 }
 0x112   : > { %v819_v49 = vadd.f32 %v814_v48, %v630_v1 }
 0x113   : > { %v2458_v50 = vpop.f32.mrf.mxu0  ;;  %v951_v56 = vpop.f32.mrf.mxu1 }
 0x114   : > { %v956_v57 = vadd.f32 %v951_v56, %v819_v49 }
 0x115   : > { %v2478_v58 = vpop.f32.mrf.mxu1 }
 0x12d   : > { %v1170_v59 = vpop.f32.mrf.mxu0 }
 0x12e   : > { %v1177_v7 = vadd.f32 %v1170_v59, %v955_v54 }
 0x12f   : > { %v2497_v60 = vpop.f32.mrf.mxu0  ;;  %v1352_v62 = vpop.f32.mrf.mxu1 }
 0x130   : > { %v1359_v12 = vadd.f32 %v1352_v62, %v1177_v7 }
 0x131   : > { %v1173_v53 = vpop.f32.mrf.mxu0  ;;  %v2517_v43 = vpop.f32.mrf.mxu1 }
 0x132   : > { %v1178_v13 = vadd.f32 %v1173_v53, %v956_v57 }
 0x133   : > { %v2498_v61 = vpop.f32.mrf.mxu0  ;;  %v1355_v44 = vpop.f32.mrf.mxu1 }
 0x134   : > { %v1360_v20 = vadd.f32 %v1355_v44, %v1178_v13 }
 0x135   : > { %v2518_v45 = vpop.f32.mrf.mxu1 }
 0x14d   : > { %v1489_v63 = vpop.f32.mrf.mxu0 }
 0x14e   : > { %v1496_v17 = vadd.f32 %v1489_v63, %v1359_v12 }
 0x14f   : > { %v2537_v35 = vpop.f32.mrf.mxu0  ;;  %v1711_v4 = vpop.f32.mrf.mxu1 }
 0x150   : > { %v1718_v22 = vadd.f32 %v1711_v4, %v1496_v17 }
 0x151   : > { %v1492_v0 = vpop.f32.mrf.mxu0  ;;  %v2557_v5 = vpop.f32.mrf.mxu1 }
 0x152   : > { %v1497_v23 = vadd.f32 %v1492_v0, %v1360_v20 }
 0x153   : > { %v2538_v2 = vpop.f32.mrf.mxu0  ;;  %v1714_v6 = vpop.f32.mrf.mxu1 }
 0x154   : > { %v1719_v30 = vadd.f32 %v1714_v6, %v1497_v23 }
 0x155   : > { %v2558_v29 = vpop.f32.mrf.mxu1 }
 0x16d   : > { %v1893_v26 = vpop.f32.mrf.mxu0 }
 0x16e   : > { %v1900_v27 = vadd.f32 %v1893_v26, %v1718_v22 }
 0x16f   : > { %v2577_v28 = vpop.f32.mrf.mxu0 }
 0x170   : > { %v1918_v31 = vadd.f32 %v1914_v21, %v1900_v27 }
 0x171   : > { %v1896_v32 = vpop.f32.mrf.mxu0 }
 0x172   : > { %v1922_v33 = vcombine.high %v1918_v31, %v1918_v31  ;;  %v1926_v3 = vpack.c.bf16 %v1918_v31, %v1918_v31  ;;  %v1901_v9 = vadd.f32 %v1896_v32, %v1719_v30 }
 0x173   : > { %v2578_v34 = vpop.f32.mrf.mxu0 }
 0x174   : > { %v1927_v36 = vpack.c.bf16 %v1922_v33, %v1922_v33  ;;  %1930 = vst [vmem:[%s255_s24] sm:$0x3] %v1926_v3  ;;  %v1919_v37 = vadd.f32 %v1915_v15, %v1901_v9 }
 0x176   : > { %1931 = vst [vmem:[%s255_s24 + $0x2] sm:$0x3] %v1927_v36  ;;  %v1923_v38 = vcombine.high %v1919_v37, %v1919_v37  ;;  %v1928_v11 = vpack.c.bf16 %v1919_v37, %v1919_v37 }
 0x178   : > { %v1929_v39 = vpack.c.bf16 %v1923_v38, %v1923_v38  ;;  %1932 = vst [vmem:[%s255_s24 + $0x4] sm:$0x3] %v1928_v11 }
 0x17a   : > { %1933 = vst [vmem:[%s255_s24 + $0x6] sm:$0x3] %v1929_v39 }
 0x17b PF: > { %s14_s17 = sadd.s32 1, %s2713_s17   ;;  %s3238_s15 = smov %s2709_s16 }
 0x17c   : > { %p11_p5 = scmp.ge.s32.totalorder %s14_s17, 4   ;;  %s3239_s16 = smov %s3241_s18 }
 0x17e   :  { %13 = sbr.rel (!%p11_p5) target bundleno = 2 (0x2), region = 80 }

</bundles_post_ra>
